<compile_context>
chip_gen: v7x
topology: tpu7x:2x2x1
jax: 0.10.0
libtpu: 0.0.40
codegen_flags: <defaults>
</compile_context>

<pallas_src>
import functools

import jax
import jax.numpy as jnp
from jax.experimental import pallas as pl
from jax.experimental.pallas import tpu as pltpu

EPS = 1e-6                 # LayerNorm eps: reference divides by (std + eps)**0.5 (unbiased std)
NEG_INF = -1e9             # reference: masked_fill(..., -1e9)
APPROX_RECIPROCAL = True   # softmax denominator via EUP approx reciprocal (small numeric deviation)


def _layernorm(x, gamma, beta, ones_e, embed):
    # Reference LayerNorm: xhat = (x - mean) / (std + eps)**0.5 with torch's *unbiased*
    # std (divides by N-1). Sum reductions are pushed onto the MXU (x @ ones column)
    # to keep the XLU free; rsqrt goes to the EUP.
    mean = jnp.dot(x, ones_e, preferred_element_type=jnp.float32) * (1.0 / embed)
    xc = x - mean
    var = jnp.dot(xc * xc, ones_e, preferred_element_type=jnp.float32) * (1.0 / (embed - 1))
    std = jnp.sqrt(var)
    return gamma * (xc * jax.lax.rsqrt(std + EPS)) + beta


def _bigram_fwd_kernel(
    tok_ref, emb_ref, pos_ref,
    ln1g_ref, ln1b_ref, wqkv_ref, projw_ref, projb_ref,
    ln2g_ref, ln2b_ref, ffw1_ref, ffb1_ref, ffw2_ref, ffb2_ref,
    lnfg_ref, lnfb_ref, lmw_ref, lmb_ref,
    o_ref,
    *, num_layers, num_heads, batch, seq, embed, vocab,
):
    hs = embed // num_heads
    rows = batch * seq
    scale = embed ** -0.5            # reference scales by embed_dim**-0.5 (not head_size)

    # ---------------- fused token + position embedding ----------------
    tok = tok_ref[...]                                                  # (B*T, 1) int32
    vcol = jax.lax.broadcasted_iota(jnp.int32, (rows, vocab), 1)
    tok_onehot = (vcol == tok).astype(jnp.float32)                      # (B*T, V)
    x = jnp.dot(tok_onehot, emb_ref[...], preferred_element_type=jnp.float32)  # (B*T, E)

    pos_rows = pos_ref[0:seq, :]                                        # pos_embedding(arange(T))
    x = x + jnp.tile(pos_rows, (batch, 1))                              # broadcast over batch

    # ---------------- constants hoisted out of the layer loop ----------------
    ones_e = jnp.ones((embed, 1), jnp.float32)          # MXU row-sum helper (LayerNorm)
    ones_t = jnp.ones((batch, seq, 1), jnp.float32)     # MXU row-sum helper (softmax denom)
    r = jax.lax.broadcasted_iota(jnp.int32, (seq, seq), 0)
    c = jax.lax.broadcasted_iota(jnp.int32, (seq, seq), 1)
    bias = jnp.broadcast_to(
        jnp.where(c <= r, 0.0, NEG_INF).astype(jnp.float32), (batch, seq, seq))

    for l in range(num_layers):                          # static unroll (6 layers)
        # ----------------- attention sub-block -----------------
        h = _layernorm(x, ln1g_ref[l], ln1b_ref[l], ones_e, embed)
        wqkv = wqkv_ref[l]                               # (E, 3E) bf16
        qkv = jnp.dot(h.astype(jnp.bfloat16), wqkv,
                      preferred_element_type=jnp.float32)               # (B*T, 3E) f32
        qkv3 = qkv.reshape(batch, seq, 3 * embed)                       # (B, T, 3E)

        projw = projw_ref[l]                             # (E, E) bf16
        att = None
        for hd in range(num_heads):                      # static unroll (H heads)
            c0 = hd * hs
            q3 = qkv3[:, :, c0:c0 + hs]                                  # (B, T, hs)
            k3 = qkv3[:, :, embed + c0:embed + c0 + hs]
            v3 = qkv3[:, :, 2 * embed + c0:2 * embed + c0 + hs]

            s = jnp.einsum('bqd,bkd->bqk', q3, k3,
                           preferred_element_type=jnp.float32) * scale + bias
            m = jnp.max(s, axis=-1, keepdims=True)
            e = jnp.exp(s - m)
            num = jnp.einsum('bqk,bkd->bqd', e, v3,
                             preferred_element_type=jnp.float32)
            den = jnp.einsum('bqk,bko->bqo', e, ones_t,
                             preferred_element_type=jnp.float32)
            out = num * pl.reciprocal(den, approx=APPROX_RECIPROCAL)     # (B, T, hs)

            # Fold the output projection into a per-head accumulation — removes the
            # lane-axis head concatenation entirely.
            contrib = jnp.dot(out.reshape(rows, hs).astype(jnp.bfloat16),
                              projw[c0:c0 + hs, :],
                              preferred_element_type=jnp.float32)        # (B*T, E)
            att = contrib if att is None else att + contrib

        x = x + att + projb_ref[l]                       # attn dropout -> identity (eval)

        # ----------------- feed-forward sub-block -----------------
        h = _layernorm(x, ln2g_ref[l], ln2b_ref[l], ones_e, embed)
        f = jnp.dot(h.astype(jnp.bfloat16), ffw1_ref[l],
                    preferred_element_type=jnp.float32) + ffb1_ref[l]
        f = jnp.maximum(f, 0.0)
        f = jnp.dot(f.astype(jnp.bfloat16), ffw2_ref[l],
                    preferred_element_type=jnp.float32) + ffb2_ref[l]
        x = x + f                                        # ffn dropout -> identity (eval)

    # ----------------- final LayerNorm + LM head (lane-dense, vocab padded) -----------
    h = _layernorm(x, lnfg_ref[...], lnfb_ref[...], ones_e, embed)
    logits = jnp.dot(h.astype(jnp.bfloat16), lmw_ref[...],
                     preferred_element_type=jnp.float32) + lmb_ref[...]
    o_ref[...] = logits


def bigram_forward(tokens, params, num_heads, target=None):
    """tokens: (B, T) int32 -> (logits (B, T, vocab), loss)."""
    B, T = tokens.shape
    V, E = params["embedding"].shape
    L = params["ln1_g"].shape[0]
    VP = params["lm_w"].shape[1]                         # lane-padded vocab (multiple of 128)

    tok2d = tokens.reshape(B * T, 1).astype(jnp.int32)   # row-major bitcast; embedding gather
                                                         # itself happens inside the kernel.
    kernel = functools.partial(
        _bigram_fwd_kernel, num_layers=L, num_heads=num_heads,
        batch=B, seq=T, embed=E, vocab=V)

    inputs = (
        tok2d, params["embedding"], params["pos_embedding"],
        params["ln1_g"], params["ln1_b"], params["wqkv"],
        params["proj_w"], params["proj_b"],
        params["ln2_g"], params["ln2_b"],
        params["ff_w1"], params["ff_b1"], params["ff_w2"], params["ff_b2"],
        params["ln_f_g"], params["ln_f_b"], params["lm_w"], params["lm_b"],
    )
    vmem = pl.BlockSpec(memory_space=pltpu.MemorySpace.VMEM)
    logits_pad = pl.pallas_call(
        kernel,
        out_shape=jax.ShapeDtypeStruct((B * T, VP), jnp.float32),
        in_specs=[vmem] * len(inputs),                   # derived from inputs: cannot mismatch
        out_specs=vmem,
        compiler_params=pltpu.CompilerParams(vmem_limit_bytes=32 * 1024 * 1024),
    )(*inputs)
    # TODO(synk): on v7x a (B,)-parallel grid could split batches across the 2 TensorCores,
    # and the whole-weights-in-VMEM design must switch to layer-streamed BlockSpecs
    # (pl.Buffered) once E grows past ~512 (64 MiB VMEM ceiling on v7x).

    logits2d = logits_pad[:, :V]                         # drop lane padding
    logits = logits2d.reshape(B, T, V)
    if target is None:
        loss = None
    else:
        # cross-entropy in plain JAX (matches F.cross_entropy on flattened logits)
        lse = jax.nn.logsumexp(logits2d, axis=-1)
        tgt = target.reshape(-1)
        picked = jnp.take_along_axis(logits2d, tgt[:, None], axis=-1)[:, 0]
        loss = jnp.mean(lse - picked)
    return logits, loss


# ----------------------------------------------------------------------------
# Deterministic parameter initialization (weights packed for the fused kernel)
# ----------------------------------------------------------------------------
def init_params(key, vocab, embed, num_heads, num_layers=6):
    hs = embed // num_heads
    keys = iter(jax.random.split(key, 3 + num_layers * 6))

    def nrm(shape, scale=0.02):
        return scale * jax.random.normal(next(keys), shape, jnp.float32)

    def pack_heads(w):  # (H, E, hs) -> (E, H*hs), matches torch.cat over heads order
        return jnp.transpose(w, (1, 0, 2)).reshape(embed, num_heads * hs)

    embedding = nrm((vocab, embed))
    pos_embedding = nrm((vocab, embed))                  # nn.Embedding(vocab_size, embed_dim)

    vp = ((vocab + 127) // 128) * 128                    # lane-dense LM head
    lm_w = jnp.zeros((embed, vp), jnp.float32).at[:, :vocab].set(nrm((embed, vocab)))

    wqkv, proj_w, ff_w1, ff_w2 = [], [], [], []
    for _ in range(num_layers):
        wq = pack_heads(nrm((num_heads, embed, hs)))
        wk = pack_heads(nrm((num_heads, embed, hs)))
        wv = pack_heads(nrm((num_heads, embed, hs)))
        wqkv.append(jnp.concatenate([wq, wk, wv], axis=1))        # (E, 3E)
        proj_w.append(nrm((embed, embed)))
        ff_w1.append(nrm((embed, 4 * embed)))
        ff_w2.append(nrm((4 * embed, embed)))

    L = num_layers
    bf16 = jnp.bfloat16
    return {
        "embedding": embedding,                                   # (V, E) f32
        "pos_embedding": pos_embedding,                           # (V, E) f32
        "ln1_g": jnp.ones((L, 1, embed), jnp.float32),
        "ln1_b": jnp.zeros((L, 1, embed), jnp.float32),
        "wqkv": jnp.stack(wqkv).astype(bf16),                     # (L, E, 3E) bf16
        "proj_w": jnp.stack(proj_w).astype(bf16),                 # (L, E, E) bf16
        "proj_b": jnp.zeros((L, 1, embed), jnp.float32),
        "ln2_g": jnp.ones((L, 1, embed), jnp.float32),
        "ln2_b": jnp.zeros((L, 1, embed), jnp.float32),
        "ff_w1": jnp.stack(ff_w1).astype(bf16),                   # (L, E, 4E) bf16
        "ff_b1": jnp.zeros((L, 1, 4 * embed), jnp.float32),
        "ff_w2": jnp.stack(ff_w2).astype(bf16),                   # (L, 4E, E) bf16
        "ff_b2": jnp.zeros((L, 1, embed), jnp.float32),
        "ln_f_g": jnp.ones((1, embed), jnp.float32),
        "ln_f_b": jnp.zeros((1, embed), jnp.float32),
        "lm_w": lm_w.astype(bf16),                                # (E, VP) zero-padded
        "lm_b": jnp.zeros((1, vp), jnp.float32),                  # (1, VP)
    }


if __name__ == "__main__":
    vocab_size, embed_dim, block_size, num_heads, batch = 64, 32, 8, 4, 2
    key = jax.random.PRNGKey(0)
    pkey, tkey = jax.random.split(key)
    params = init_params(pkey, vocab_size, embed_dim, num_heads)
    tokens = jax.random.randint(tkey, (batch, block_size), 0, vocab_size,
                                dtype=jnp.int32)

    fwd = jax.jit(bigram_forward, static_argnums=(2,))
    logits, loss = fwd(tokens, params, num_heads)
    logits = jax.block_until_ready(logits)

    assert logits.shape == (batch, block_size, vocab_size)
    assert loss is None
    print("KERNEL_OK")
</pallas_src>

<mosaic_0001>
module attributes {stable_mosaic.version = 11 : i64} {
  func.func @_bigram_fwd_kernel(%arg0: memref<16x1xi32, #tpu.memory_space<vmem>>, %arg1: memref<64x32xf32, #tpu.memory_space<vmem>>, %arg2: memref<64x32xf32, #tpu.memory_space<vmem>>, %arg3: memref<6x1x32xf32, #tpu.memory_space<vmem>>, %arg4: memref<6x1x32xf32, #tpu.memory_space<vmem>>, %arg5: memref<6x32x96xbf16, #tpu.memory_space<vmem>>, %arg6: memref<6x32x32xbf16, #tpu.memory_space<vmem>>, %arg7: memref<6x1x32xf32, #tpu.memory_space<vmem>>, %arg8: memref<6x1x32xf32, #tpu.memory_space<vmem>>, %arg9: memref<6x1x32xf32, #tpu.memory_space<vmem>>, %arg10: memref<6x32x128xbf16, #tpu.memory_space<vmem>>, %arg11: memref<6x1x128xf32, #tpu.memory_space<vmem>>, %arg12: memref<6x128x32xbf16, #tpu.memory_space<vmem>>, %arg13: memref<6x1x32xf32, #tpu.memory_space<vmem>>, %arg14: memref<1x32xf32, #tpu.memory_space<vmem>>, %arg15: memref<1x32xf32, #tpu.memory_space<vmem>>, %arg16: memref<32x128xbf16, #tpu.memory_space<vmem>>, %arg17: memref<1x128xf32, #tpu.memory_space<vmem>>, %arg18: memref<16x128xf32, #tpu.memory_space<vmem>>) attributes {dimension_semantics = [], scalar_prefetch = 0 : i64, scratch_operands = 0 : i64, tpu.core_type = #tpu.core_type<tc>} {
    %c0 = arith.constant 0 : index
    %c0_0 = arith.constant 0 : index
    %0 = vector.load %arg0[%c0, %c0_0] : memref<16x1xi32, #tpu.memory_space<vmem>>, vector<16x1xi32>
    %1 = tpu.iota {dimensions = array<i32: 1>} : vector<16x64xi32>
    %2 = vector.broadcast %0 : vector<16x1xi32> to vector<16x64xi32>
    %3 = arith.cmpi eq, %1, %2 : vector<16x64xi32>
    %4 = arith.extui %3 : vector<16x64xi1> to vector<16x64xi32>
    %5 = arith.sitofp %4 : vector<16x64xi32> to vector<16x64xf32>
    %c0_1 = arith.constant 0 : index
    %c0_2 = arith.constant 0 : index
    %6 = vector.load %arg1[%c0_1, %c0_2] : memref<64x32xf32, #tpu.memory_space<vmem>>, vector<64x32xf32>
    %cst = arith.constant dense<0.000000e+00> : vector<16x32xf32>
    %7 = tpu.matmul %5, %6, %cst {dimension_numbers = #tpu.dot_dimension_numbers<[1], [0], [0], [1], [0, 0, 1, 1], [], []>} : vector<16x64xf32>, vector<64x32xf32>, vector<16x32xf32> -> vector<16x32xf32>
    %c0_3 = arith.constant 0 : index
    %c0_4 = arith.constant 0 : index
    %8 = vector.load %arg2[%c0_3, %c0_4] : memref<64x32xf32, #tpu.memory_space<vmem>>, vector<8x32xf32>
    %9 = tpu.concatenate %8, %8 in 0 : vector<8x32xf32>, vector<8x32xf32> -> vector<16x32xf32>
    %10 = arith.addf %7, %9 : vector<16x32xf32>
    %cst_5 = arith.constant 1.000000e+00 : f32
    %11 = vector.broadcast %cst_5 : f32 to vector<32x1xf32>
    %cst_6 = arith.constant 1.000000e+00 : f32
    %12 = vector.broadcast %cst_6 : f32 to vector<2x8x1xf32>
    %13 = tpu.iota {dimensions = array<i32: 0>} : vector<8x8xi32>
    %14 = tpu.iota {dimensions = array<i32: 1>} : vector<8x8xi32>
    %15 = arith.cmpi sle, %14, %13 : vector<8x8xi32>
    %cst_7 = arith.constant 0.000000e+00 : f32
    %cst_8 = arith.constant -1.000000e+09 : f32
    %16 = vector.broadcast %cst_7 : f32 to vector<8x8xf32>
    %17 = vector.broadcast %cst_8 : f32 to vector<8x8xf32>
    %18 = arith.select %15, %16, %17 : vector<8x8xi1>, vector<8x8xf32>
    %19 = vector.shape_cast %18 : vector<8x8xf32> to vector<1x8x8xf32>
    %20 = vector.broadcast %19 : vector<1x8x8xf32> to vector<2x8x8xf32>
    %c0_9 = arith.constant 0 : index
    %c0_10 = arith.constant 0 : index
    %c0_11 = arith.constant 0 : index
    %21 = vector.load %arg3[%c0_9, %c0_10, %c0_11] : memref<6x1x32xf32, #tpu.memory_space<vmem>>, vector<1x1x32xf32>
    %22 = vector.shape_cast %21 : vector<1x1x32xf32> to vector<1x32xf32>
    %c0_12 = arith.constant 0 : index
    %c0_13 = arith.constant 0 : index
    %c0_14 = arith.constant 0 : index
    %23 = vector.load %arg4[%c0_12, %c0_13, %c0_14] : memref<6x1x32xf32, #tpu.memory_space<vmem>>, vector<1x1x32xf32>
    %24 = vector.shape_cast %23 : vector<1x1x32xf32> to vector<1x32xf32>
    %cst_15 = arith.constant dense<0.000000e+00> : vector<16x1xf32>
    %25 = tpu.matmul %10, %11, %cst_15 {dimension_numbers = #tpu.dot_dimension_numbers<[1], [0], [0], [1], [0, 0, 1, 1], [], []>} : vector<16x32xf32>, vector<32x1xf32>, vector<16x1xf32> -> vector<16x1xf32>
    %cst_16 = arith.constant 3.125000e-02 : f32
    %26 = vector.broadcast %cst_16 : f32 to vector<16x1xf32>
    %27 = arith.mulf %25, %26 : vector<16x1xf32>
    %28 = vector.broadcast %27 : vector<16x1xf32> to vector<16x32xf32>
    %29 = arith.subf %10, %28 : vector<16x32xf32>
    %30 = arith.mulf %29, %29 : vector<16x32xf32>
    %cst_17 = arith.constant dense<0.000000e+00> : vector<16x1xf32>
    %31 = tpu.matmul %30, %11, %cst_17 {dimension_numbers = #tpu.dot_dimension_numbers<[1], [0], [0], [1], [0, 0, 1, 1], [], []>} : vector<16x32xf32>, vector<32x1xf32>, vector<16x1xf32> -> vector<16x1xf32>
    %cst_18 = arith.constant 0.0322580636 : f32
    %32 = vector.broadcast %cst_18 : f32 to vector<16x1xf32>
    %33 = arith.mulf %31, %32 : vector<16x1xf32>
    %34 = math.sqrt %33 : vector<16x1xf32>
    %cst_19 = arith.constant 9.99999997E-7 : f32
    %35 = vector.broadcast %cst_19 : f32 to vector<16x1xf32>
    %36 = arith.addf %34, %35 : vector<16x1xf32>
    %37 = math.rsqrt %36 : vector<16x1xf32>
    %38 = vector.broadcast %37 : vector<16x1xf32> to vector<16x32xf32>
    %39 = arith.mulf %29, %38 : vector<16x32xf32>
    %40 = vector.broadcast %22 : vector<1x32xf32> to vector<16x32xf32>
    %41 = arith.mulf %40, %39 : vector<16x32xf32>
    %42 = vector.broadcast %24 : vector<1x32xf32> to vector<16x32xf32>
    %43 = arith.addf %41, %42 : vector<16x32xf32>
    %c0_20 = arith.constant 0 : index
    %c0_21 = arith.constant 0 : index
    %c0_22 = arith.constant 0 : index
    %44 = vector.load %arg5[%c0_20, %c0_21, %c0_22] : memref<6x32x96xbf16, #tpu.memory_space<vmem>>, vector<1x32x96xbf16>
    %45 = vector.shape_cast %44 : vector<1x32x96xbf16> to vector<32x96xbf16>
    %46 = arith.truncf %43 : vector<16x32xf32> to vector<16x32xbf16>
    %cst_23 = arith.constant dense<0.000000e+00> : vector<16x96xf32>
    %47 = tpu.matmul %46, %45, %cst_23 {dimension_numbers = #tpu.dot_dimension_numbers<[1], [0], [0], [1], [0, 0, 1, 1], [], []>} : vector<16x32xbf16>, vector<32x96xbf16>, vector<16x96xf32> -> vector<16x96xf32>
    %48 = vector.shape_cast %47 : vector<16x96xf32> to vector<2x8x96xf32>
    %c0_24 = arith.constant 0 : index
    %c0_25 = arith.constant 0 : index
    %c0_26 = arith.constant 0 : index
    %49 = vector.load %arg6[%c0_24, %c0_25, %c0_26] : memref<6x32x32xbf16, #tpu.memory_space<vmem>>, vector<1x32x32xbf16>
    %50 = vector.shape_cast %49 : vector<1x32x32xbf16> to vector<32x32xbf16>
    %51 = vector.extract_strided_slice %48 {offsets = [0, 0, 0], sizes = [2, 8, 8], strides = [1, 1, 1]} : vector<2x8x96xf32> to vector<2x8x8xf32>
    %52 = vector.extract_strided_slice %48 {offsets = [0, 0, 32], sizes = [2, 8, 8], strides = [1, 1, 1]} : vector<2x8x96xf32> to vector<2x8x8xf32>
    %53 = vector.extract_strided_slice %48 {offsets = [0, 0, 64], sizes = [2, 8, 8], strides = [1, 1, 1]} : vector<2x8x96xf32> to vector<2x8x8xf32>
    "tpu.trace_start"() <{level = 10 : i32, message = "bqd,bkd->bqk"}> : () -> ()
    %cst_27 = arith.constant dense<0.000000e+00> : vector<2x8x8xf32>
    %54 = tpu.matmul %51, %52, %cst_27 {dimension_numbers = #tpu.dot_dimension_numbers<[2], [2], [1], [1], [0, 0, 0, 1, 1, 1], [0], [0]>} : vector<2x8x8xf32>, vector<2x8x8xf32>, vector<2x8x8xf32> -> vector<2x8x8xf32>
    "tpu.trace_stop"() : () -> ()
    %cst_28 = arith.constant 0.176776692 : f32
    %55 = vector.broadcast %cst_28 : f32 to vector<2x8x8xf32>
    %56 = arith.mulf %54, %55 : vector<2x8x8xf32>
    %57 = arith.addf %56, %20 : vector<2x8x8xf32>
    %cst_29 = arith.constant dense<0xFF800000> : vector<2x8xf32>
    %58 = vector.multi_reduction <maximumf>, %57, %cst_29 [2] : vector<2x8x8xf32> to vector<2x8xf32>
    %59 = vector.shape_cast %58 : vector<2x8xf32> to vector<2x8x1xf32>
    %60 = vector.broadcast %59 : vector<2x8x1xf32> to vector<2x8x8xf32>
    %61 = arith.subf %57, %60 : vector<2x8x8xf32>
    %62 = math.exp %61 : vector<2x8x8xf32>
    "tpu.trace_start"() <{level = 10 : i32, message = "bqk,bkd->bqd"}> : () -> ()
    %cst_30 = arith.constant dense<0.000000e+00> : vector<2x8x8xf32>
    %63 = tpu.matmul %62, %53, %cst_30 {dimension_numbers = #tpu.dot_dimension_numbers<[2], [1], [1], [2], [0, 0, 0, 1, 1, 2], [0], [0]>} : vector<2x8x8xf32>, vector<2x8x8xf32>, vector<2x8x8xf32> -> vector<2x8x8xf32>
    "tpu.trace_stop"() : () -> ()
    "tpu.trace_start"() <{level = 10 : i32, message = "bqk,bko->bqo"}> : () -> ()
    %cst_31 = arith.constant dense<0.000000e+00> : vector<2x8x1xf32>
    %64 = tpu.matmul %62, %12, %cst_31 {dimension_numbers = #tpu.dot_dimension_numbers<[2], [1], [1], [2], [0, 0, 0, 1, 1, 2], [0], [0]>} : vector<2x8x8xf32>, vector<2x8x1xf32>, vector<2x8x1xf32> -> vector<2x8x1xf32>
    "tpu.trace_stop"() : () -> ()
    %65 = tpu.reciprocal %64 {approx = true} : vector<2x8x1xf32> -> vector<2x8x1xf32>
    %66 = vector.broadcast %65 : vector<2x8x1xf32> to vector<2x8x8xf32>
    %67 = arith.mulf %63, %66 : vector<2x8x8xf32>
    %68 = vector.shape_cast %67 : vector<2x8x8xf32> to vector<16x8xf32>
    %69 = arith.truncf %68 : vector<16x8xf32> to vector<16x8xbf16>
    %70 = vector.extract_strided_slice %50 {offsets = [0, 0], sizes = [8, 32], strides = [1, 1]} : vector<32x32xbf16> to vector<8x32xbf16>
    %cst_32 = arith.constant dense<0.000000e+00> : vector<16x32xf32>
    %71 = tpu.matmul %69, %70, %cst_32 {dimension_numbers = #tpu.dot_dimension_numbers<[1], [0], [0], [1], [0, 0, 1, 1], [], []>} : vector<16x8xbf16>, vector<8x32xbf16>, vector<16x32xf32> -> vector<16x32xf32>
    %72 = vector.extract_strided_slice %48 {offsets = [0, 0, 8], sizes = [2, 8, 8], strides = [1, 1, 1]} : vector<2x8x96xf32> to vector<2x8x8xf32>
    %73 = vector.extract_strided_slice %48 {offsets = [0, 0, 40], sizes = [2, 8, 8], strides = [1, 1, 1]} : vector<2x8x96xf32> to vector<2x8x8xf32>
    %74 = vector.extract_strided_slice %48 {offsets = [0, 0, 72], sizes = [2, 8, 8], strides = [1, 1, 1]} : vector<2x8x96xf32> to vector<2x8x8xf32>
    "tpu.trace_start"() <{level = 10 : i32, message = "bqd,bkd->bqk"}> : () -> ()
    %cst_33 = arith.constant dense<0.000000e+00> : vector<2x8x8xf32>
    %75 = tpu.matmul %72, %73, %cst_33 {dimension_numbers = #tpu.dot_dimension_numbers<[2], [2], [1], [1], [0, 0, 0, 1, 1, 1], [0], [0]>} : vector<2x8x8xf32>, vector<2x8x8xf32>, vector<2x8x8xf32> -> vector<2x8x8xf32>
    "tpu.trace_stop"() : () -> ()
    %cst_34 = arith.constant 0.176776692 : f32
    %76 = vector.broadcast %cst_34 : f32 to vector<2x8x8xf32>
    %77 = arith.mulf %75, %76 : vector<2x8x8xf32>
    %78 = arith.addf %77, %20 : vector<2x8x8xf32>
    %cst_35 = arith.constant dense<0xFF800000> : vector<2x8xf32>
    %79 = vector.multi_reduction <maximumf>, %78, %cst_35 [2] : vector<2x8x8xf32> to vector<2x8xf32>
    %80 = vector.shape_cast %79 : vector<2x8xf32> to vector<2x8x1xf32>
    %81 = vector.broadcast %80 : vector<2x8x1xf32> to vector<2x8x8xf32>
    %82 = arith.subf %78, %81 : vector<2x8x8xf32>
    %83 = math.exp %82 : vector<2x8x8xf32>
    "tpu.trace_start"() <{level = 10 : i32, message = "bqk,bkd->bqd"}> : () -> ()
    %cst_36 = arith.constant dense<0.000000e+00> : vector<2x8x8xf32>
    %84 = tpu.matmul %83, %74, %cst_36 {dimension_numbers = #tpu.dot_dimension_numbers<[2], [1], [1], [2], [0, 0, 0, 1, 1, 2], [0], [0]>} : vector<2x8x8xf32>, vector<2x8x8xf32>, vector<2x8x8xf32> -> vector<2x8x8xf32>
    "tpu.trace_stop"() : () -> ()
    "tpu.trace_start"() <{level = 10 : i32, message = "bqk,bko->bqo"}> : () -> ()
    %cst_37 = arith.constant dense<0.000000e+00> : vector<2x8x1xf32>
    %85 = tpu.matmul %83, %12, %cst_37 {dimension_numbers = #tpu.dot_dimension_numbers<[2], [1], [1], [2], [0, 0, 0, 1, 1, 2], [0], [0]>} : vector<2x8x8xf32>, vector<2x8x1xf32>, vector<2x8x1xf32> -> vector<2x8x1xf32>
    "tpu.trace_stop"() : () -> ()
    %86 = tpu.reciprocal %85 {approx = true} : vector<2x8x1xf32> -> vector<2x8x1xf32>
    %87 = vector.broadcast %86 : vector<2x8x1xf32> to vector<2x8x8xf32>
    %88 = arith.mulf %84, %87 : vector<2x8x8xf32>
    %89 = vector.shape_cast %88 : vector<2x8x8xf32> to vector<16x8xf32>
    %90 = arith.truncf %89 : vector<16x8xf32> to vector<16x8xbf16>
    %91 = vector.extract_strided_slice %50 {offsets = [8, 0], sizes = [8, 32], strides = [1, 1]} : vector<32x32xbf16> to vector<8x32xbf16>
    %cst_38 = arith.constant dense<0.000000e+00> : vector<16x32xf32>
    %92 = tpu.matmul %90, %91, %cst_38 {dimension_numbers = #tpu.dot_dimension_numbers<[1], [0], [0], [1], [0, 0, 1, 1], [], []>} : vector<16x8xbf16>, vector<8x32xbf16>, vector<16x32xf32> -> vector<16x32xf32>
    %93 = arith.addf %71, %92 : vector<16x32xf32>
    %94 = vector.extract_strided_slice %48 {offsets = [0, 0, 16], sizes = [2, 8, 8], strides = [1, 1, 1]} : vector<2x8x96xf32> to vector<2x8x8xf32>
    %95 = vector.extract_strided_slice %48 {offsets = [0, 0, 48], sizes = [2, 8, 8], strides = [1, 1, 1]} : vector<2x8x96xf32> to vector<2x8x8xf32>
    %96 = vector.extract_strided_slice %48 {offsets = [0, 0, 80], sizes = [2, 8, 8], strides = [1, 1, 1]} : vector<2x8x96xf32> to vector<2x8x8xf32>
    "tpu.trace_start"() <{level = 10 : i32, message = "bqd,bkd->bqk"}> : () -> ()
    %cst_39 = arith.constant dense<0.000000e+00> : vector<2x8x8xf32>
    %97 = tpu.matmul %94, %95, %cst_39 {dimension_numbers = #tpu.dot_dimension_numbers<[2], [2], [1], [1], [0, 0, 0, 1, 1, 1], [0], [0]>} : vector<2x8x8xf32>, vector<2x8x8xf32>, vector<2x8x8xf32> -> vector<2x8x8xf32>
    "tpu.trace_stop"() : () -> ()
    %cst_40 = arith.constant 0.176776692 : f32
    %98 = vector.broadcast %cst_40 : f32 to vector<2x8x8xf32>
    %99 = arith.mulf %97, %98 : vector<2x8x8xf32>
    %100 = arith.addf %99, %20 : vector<2x8x8xf32>
    %cst_41 = arith.constant dense<0xFF800000> : vector<2x8xf32>
    %101 = vector.multi_reduction <maximumf>, %100, %cst_41 [2] : vector<2x8x8xf32> to vector<2x8xf32>
    %102 = vector.shape_cast %101 : vector<2x8xf32> to vector<2x8x1xf32>
    %103 = vector.broadcast %102 : vector<2x8x1xf32> to vector<2x8x8xf32>
    %104 = arith.subf %100, %103 : vector<2x8x8xf32>
    %105 = math.exp %104 : vector<2x8x8xf32>
    "tpu.trace_start"() <{level = 10 : i32, message = "bqk,bkd->bqd"}> : () -> ()
    %cst_42 = arith.constant dense<0.000000e+00> : vector<2x8x8xf32>
    %106 = tpu.matmul %105, %96, %cst_42 {dimension_numbers = #tpu.dot_dimension_numbers<[2], [1], [1], [2], [0, 0, 0, 1, 1, 2], [0], [0]>} : vector<2x8x8xf32>, vector<2x8x8xf32>, vector<2x8x8xf32> -> vector<2x8x8xf32>
    "tpu.trace_stop"() : () -> ()
    "tpu.trace_start"() <{level = 10 : i32, message = "bqk,bko->bqo"}> : () -> ()
    %cst_43 = arith.constant dense<0.000000e+00> : vector<2x8x1xf32>
    %107 = tpu.matmul %105, %12, %cst_43 {dimension_numbers = #tpu.dot_dimension_numbers<[2], [1], [1], [2], [0, 0, 0, 1, 1, 2], [0], [0]>} : vector<2x8x8xf32>, vector<2x8x1xf32>, vector<2x8x1xf32> -> vector<2x8x1xf32>
    "tpu.trace_stop"() : () -> ()
    %108 = tpu.reciprocal %107 {approx = true} : vector<2x8x1xf32> -> vector<2x8x1xf32>
    %109 = vector.broadcast %108 : vector<2x8x1xf32> to vector<2x8x8xf32>
    %110 = arith.mulf %106, %109 : vector<2x8x8xf32>
    %111 = vector.shape_cast %110 : vector<2x8x8xf32> to vector<16x8xf32>
    %112 = arith.truncf %111 : vector<16x8xf32> to vector<16x8xbf16>
    %113 = vector.extract_strided_slice %50 {offsets = [16, 0], sizes = [8, 32], strides = [1, 1]} : vector<32x32xbf16> to vector<8x32xbf16>
    %cst_44 = arith.constant dense<0.000000e+00> : vector<16x32xf32>
    %114 = tpu.matmul %112, %113, %cst_44 {dimension_numbers = #tpu.dot_dimension_numbers<[1], [0], [0], [1], [0, 0, 1, 1], [], []>} : vector<16x8xbf16>, vector<8x32xbf16>, vector<16x32xf32> -> vector<16x32xf32>
    %115 = arith.addf %93, %114 : vector<16x32xf32>
    %116 = vector.extract_strided_slice %48 {offsets = [0, 0, 24], sizes = [2, 8, 8], strides = [1, 1, 1]} : vector<2x8x96xf32> to vector<2x8x8xf32>
    %117 = vector.extract_strided_slice %48 {offsets = [0, 0, 56], sizes = [2, 8, 8], strides = [1, 1, 1]} : vector<2x8x96xf32> to vector<2x8x8xf32>
    %118 = vector.extract_strided_slice %48 {offsets = [0, 0, 88], sizes = [2, 8, 8], strides = [1, 1, 1]} : vector<2x8x96xf32> to vector<2x8x8xf32>
    "tpu.trace_start"() <{level = 10 : i32, message = "bqd,bkd->bqk"}> : () -> ()
    %cst_45 = arith.constant dense<0.000000e+00> : vector<2x8x8xf32>
    %119 = tpu.matmul %116, %117, %cst_45 {dimension_numbers = #tpu.dot_dimension_numbers<[2], [2], [1], [1], [0, 0, 0, 1, 1, 1], [0], [0]>} : vector<2x8x8xf32>, vector<2x8x8xf32>, vector<2x8x8xf32> -> vector<2x8x8xf32>
    "tpu.trace_stop"() : () -> ()
    %cst_46 = arith.constant 0.176776692 : f32
    %120 = vector.broadcast %cst_46 : f32 to vector<2x8x8xf32>
    %121 = arith.mulf %119, %120 : vector<2x8x8xf32>
    %122 = arith.addf %121, %20 : vector<2x8x8xf32>
    %cst_47 = arith.constant dense<0xFF800000> : vector<2x8xf32>
    %123 = vector.multi_reduction <maximumf>, %122, %cst_47 [2] : vector<2x8x8xf32> to vector<2x8xf32>
    %124 = vector.shape_cast %123 : vector<2x8xf32> to vector<2x8x1xf32>
    %125 = vector.broadcast %124 : vector<2x8x1xf32> to vector<2x8x8xf32>
    %126 = arith.subf %122, %125 : vector<2x8x8xf32>
    %127 = math.exp %126 : vector<2x8x8xf32>
    "tpu.trace_start"() <{level = 10 : i32, message = "bqk,bkd->bqd"}> : () -> ()
    %cst_48 = arith.constant dense<0.000000e+00> : vector<2x8x8xf32>
    %128 = tpu.matmul %127, %118, %cst_48 {dimension_numbers = #tpu.dot_dimension_numbers<[2], [1], [1], [2], [0, 0, 0, 1, 1, 2], [0], [0]>} : vector<2x8x8xf32>, vector<2x8x8xf32>, vector<2x8x8xf32> -> vector<2x8x8xf32>
    "tpu.trace_stop"() : () -> ()
    "tpu.trace_start"() <{level = 10 : i32, message = "bqk,bko->bqo"}> : () -> ()
    %cst_49 = arith.constant dense<0.000000e+00> : vector<2x8x1xf32>
    %129 = tpu.matmul %127, %12, %cst_49 {dimension_numbers = #tpu.dot_dimension_numbers<[2], [1], [1], [2], [0, 0, 0, 1, 1, 2], [0], [0]>} : vector<2x8x8xf32>, vector<2x8x1xf32>, vector<2x8x1xf32> -> vector<2x8x1xf32>
    "tpu.trace_stop"() : () -> ()
    %130 = tpu.reciprocal %129 {approx = true} : vector<2x8x1xf32> -> vector<2x8x1xf32>
    %131 = vector.broadcast %130 : vector<2x8x1xf32> to vector<2x8x8xf32>
    %132 = arith.mulf %128, %131 : vector<2x8x8xf32>
    %133 = vector.shape_cast %132 : vector<2x8x8xf32> to vector<16x8xf32>
    %134 = arith.truncf %133 : vector<16x8xf32> to vector<16x8xbf16>
    %135 = vector.extract_strided_slice %50 {offsets = [24, 0], sizes = [8, 32], strides = [1, 1]} : vector<32x32xbf16> to vector<8x32xbf16>
    %cst_50 = arith.constant dense<0.000000e+00> : vector<16x32xf32>
    %136 = tpu.matmul %134, %135, %cst_50 {dimension_numbers = #tpu.dot_dimension_numbers<[1], [0], [0], [1], [0, 0, 1, 1], [], []>} : vector<16x8xbf16>, vector<8x32xbf16>, vector<16x32xf32> -> vector<16x32xf32>
    %137 = arith.addf %115, %136 : vector<16x32xf32>
    %138 = arith.addf %10, %137 : vector<16x32xf32>
    %c0_51 = arith.constant 0 : index
    %c0_52 = arith.constant 0 : index
    %c0_53 = arith.constant 0 : index
    %139 = vector.load %arg7[%c0_51, %c0_52, %c0_53] : memref<6x1x32xf32, #tpu.memory_space<vmem>>, vector<1x1x32xf32>
    %140 = vector.shape_cast %139 : vector<1x1x32xf32> to vector<1x32xf32>
    %141 = vector.broadcast %140 : vector<1x32xf32> to vector<16x32xf32>
    %142 = arith.addf %138, %141 : vector<16x32xf32>
    %c0_54 = arith.constant 0 : index
    %c0_55 = arith.constant 0 : index
    %c0_56 = arith.constant 0 : index
    %143 = vector.load %arg8[%c0_54, %c0_55, %c0_56] : memref<6x1x32xf32, #tpu.memory_space<vmem>>, vector<1x1x32xf32>
    %144 = vector.shape_cast %143 : vector<1x1x32xf32> to vector<1x32xf32>
    %c0_57 = arith.constant 0 : index
    %c0_58 = arith.constant 0 : index
    %c0_59 = arith.constant 0 : index
    %145 = vector.load %arg9[%c0_57, %c0_58, %c0_59] : memref<6x1x32xf32, #tpu.memory_space<vmem>>, vector<1x1x32xf32>
    %146 = vector.shape_cast %145 : vector<1x1x32xf32> to vector<1x32xf32>
    %cst_60 = arith.constant dense<0.000000e+00> : vector<16x1xf32>
    %147 = tpu.matmul %142, %11, %cst_60 {dimension_numbers = #tpu.dot_dimension_numbers<[1], [0], [0], [1], [0, 0, 1, 1], [], []>} : vector<16x32xf32>, vector<32x1xf32>, vector<16x1xf32> -> vector<16x1xf32>
    %cst_61 = arith.constant 3.125000e-02 : f32
    %148 = vector.broadcast %cst_61 : f32 to vector<16x1xf32>
    %149 = arith.mulf %147, %148 : vector<16x1xf32>
    %150 = vector.broadcast %149 : vector<16x1xf32> to vector<16x32xf32>
    %151 = arith.subf %142, %150 : vector<16x32xf32>
    %152 = arith.mulf %151, %151 : vector<16x32xf32>
    %cst_62 = arith.constant dense<0.000000e+00> : vector<16x1xf32>
    %153 = tpu.matmul %152, %11, %cst_62 {dimension_numbers = #tpu.dot_dimension_numbers<[1], [0], [0], [1], [0, 0, 1, 1], [], []>} : vector<16x32xf32>, vector<32x1xf32>, vector<16x1xf32> -> vector<16x1xf32>
    %cst_63 = arith.constant 0.0322580636 : f32
    %154 = vector.broadcast %cst_63 : f32 to vector<16x1xf32>
    %155 = arith.mulf %153, %154 : vector<16x1xf32>
    %156 = math.sqrt %155 : vector<16x1xf32>
    %cst_64 = arith.constant 9.99999997E-7 : f32
    %157 = vector.broadcast %cst_64 : f32 to vector<16x1xf32>
    %158 = arith.addf %156, %157 : vector<16x1xf32>
    %159 = math.rsqrt %158 : vector<16x1xf32>
    %160 = vector.broadcast %159 : vector<16x1xf32> to vector<16x32xf32>
    %161 = arith.mulf %151, %160 : vector<16x32xf32>
    %162 = vector.broadcast %144 : vector<1x32xf32> to vector<16x32xf32>
    %163 = arith.mulf %162, %161 : vector<16x32xf32>
    %164 = vector.broadcast %146 : vector<1x32xf32> to vector<16x32xf32>
    %165 = arith.addf %163, %164 : vector<16x32xf32>
    %166 = arith.truncf %165 : vector<16x32xf32> to vector<16x32xbf16>
    %c0_65 = arith.constant 0 : index
    %c0_66 = arith.constant 0 : index
    %c0_67 = arith.constant 0 : index
    %167 = vector.load %arg10[%c0_65, %c0_66, %c0_67] : memref<6x32x128xbf16, #tpu.memory_space<vmem>>, vector<1x32x128xbf16>
    %168 = vector.shape_cast %167 : vector<1x32x128xbf16> to vector<32x128xbf16>
    %cst_68 = arith.constant dense<0.000000e+00> : vector<16x128xf32>
    %169 = tpu.matmul %166, %168, %cst_68 {dimension_numbers = #tpu.dot_dimension_numbers<[1], [0], [0], [1], [0, 0, 1, 1], [], []>} : vector<16x32xbf16>, vector<32x128xbf16>, vector<16x128xf32> -> vector<16x128xf32>
    %c0_69 = arith.constant 0 : index
    %c0_70 = arith.constant 0 : index
    %c0_71 = arith.constant 0 : index
    %170 = vector.load %arg11[%c0_69, %c0_70, %c0_71] : memref<6x1x128xf32, #tpu.memory_space<vmem>>, vector<1x1x128xf32>
    %171 = vector.shape_cast %170 : vector<1x1x128xf32> to vector<1x128xf32>
    %172 = vector.broadcast %171 : vector<1x128xf32> to vector<16x128xf32>
    %173 = arith.addf %169, %172 : vector<16x128xf32>
    %cst_72 = arith.constant 0.000000e+00 : f32
    %174 = vector.broadcast %cst_72 : f32 to vector<16x128xf32>
    %175 = arith.maximumf %173, %174 : vector<16x128xf32>
    %176 = arith.truncf %175 : vector<16x128xf32> to vector<16x128xbf16>
    %c0_73 = arith.constant 0 : index
    %c0_74 = arith.constant 0 : index
    %c0_75 = arith.constant 0 : index
    %177 = vector.load %arg12[%c0_73, %c0_74, %c0_75] : memref<6x128x32xbf16, #tpu.memory_space<vmem>>, vector<1x128x32xbf16>
    %178 = vector.shape_cast %177 : vector<1x128x32xbf16> to vector<128x32xbf16>
    %cst_76 = arith.constant dense<0.000000e+00> : vector<16x32xf32>
    %179 = tpu.matmul %176, %178, %cst_76 {dimension_numbers = #tpu.dot_dimension_numbers<[1], [0], [0], [1], [0, 0, 1, 1], [], []>} : vector<16x128xbf16>, vector<128x32xbf16>, vector<16x32xf32> -> vector<16x32xf32>
    %c0_77 = arith.constant 0 : index
    %c0_78 = arith.constant 0 : index
    %c0_79 = arith.constant 0 : index
    %180 = vector.load %arg13[%c0_77, %c0_78, %c0_79] : memref<6x1x32xf32, #tpu.memory_space<vmem>>, vector<1x1x32xf32>
    %181 = vector.shape_cast %180 : vector<1x1x32xf32> to vector<1x32xf32>
    %182 = vector.broadcast %181 : vector<1x32xf32> to vector<16x32xf32>
    %183 = arith.addf %179, %182 : vector<16x32xf32>
    %184 = arith.addf %142, %183 : vector<16x32xf32>
    %c1 = arith.constant 1 : index
    %c0_80 = arith.constant 0 : index
    %c0_81 = arith.constant 0 : index
    %185 = vector.load %arg3[%c1, %c0_80, %c0_81] : memref<6x1x32xf32, #tpu.memory_space<vmem>>, vector<1x1x32xf32>
    %186 = vector.shape_cast %185 : vector<1x1x32xf32> to vector<1x32xf32>
    %c1_82 = arith.constant 1 : index
    %c0_83 = arith.constant 0 : index
    %c0_84 = arith.constant 0 : index
    %187 = vector.load %arg4[%c1_82, %c0_83, %c0_84] : memref<6x1x32xf32, #tpu.memory_space<vmem>>, vector<1x1x32xf32>
    %188 = vector.shape_cast %187 : vector<1x1x32xf32> to vector<1x32xf32>
    %cst_85 = arith.constant dense<0.000000e+00> : vector<16x1xf32>
    %189 = tpu.matmul %184, %11, %cst_85 {dimension_numbers = #tpu.dot_dimension_numbers<[1], [0], [0], [1], [0, 0, 1, 1], [], []>} : vector<16x32xf32>, vector<32x1xf32>, vector<16x1xf32> -> vector<16x1xf32>
    %cst_86 = arith.constant 3.125000e-02 : f32
    %190 = vector.broadcast %cst_86 : f32 to vector<16x1xf32>
    %191 = arith.mulf %189, %190 : vector<16x1xf32>
    %192 = vector.broadcast %191 : vector<16x1xf32> to vector<16x32xf32>
    %193 = arith.subf %184, %192 : vector<16x32xf32>
    %194 = arith.mulf %193, %193 : vector<16x32xf32>
    %cst_87 = arith.constant dense<0.000000e+00> : vector<16x1xf32>
    %195 = tpu.matmul %194, %11, %cst_87 {dimension_numbers = #tpu.dot_dimension_numbers<[1], [0], [0], [1], [0, 0, 1, 1], [], []>} : vector<16x32xf32>, vector<32x1xf32>, vector<16x1xf32> -> vector<16x1xf32>
    %cst_88 = arith.constant 0.0322580636 : f32
    %196 = vector.broadcast %cst_88 : f32 to vector<16x1xf32>
    %197 = arith.mulf %195, %196 : vector<16x1xf32>
    %198 = math.sqrt %197 : vector<16x1xf32>
    %cst_89 = arith.constant 9.99999997E-7 : f32
    %199 = vector.broadcast %cst_89 : f32 to vector<16x1xf32>
    %200 = arith.addf %198, %199 : vector<16x1xf32>
    %201 = math.rsqrt %200 : vector<16x1xf32>
    %202 = vector.broadcast %201 : vector<16x1xf32> to vector<16x32xf32>
    %203 = arith.mulf %193, %202 : vector<16x32xf32>
    %204 = vector.broadcast %186 : vector<1x32xf32> to vector<16x32xf32>
    %205 = arith.mulf %204, %203 : vector<16x32xf32>
    %206 = vector.broadcast %188 : vector<1x32xf32> to vector<16x32xf32>
    %207 = arith.addf %205, %206 : vector<16x32xf32>
    %c1_90 = arith.constant 1 : index
    %c0_91 = arith.constant 0 : index
    %c0_92 = arith.constant 0 : index
    %208 = vector.load %arg5[%c1_90, %c0_91, %c0_92] : memref<6x32x96xbf16, #tpu.memory_space<vmem>>, vector<1x32x96xbf16>
    %209 = vector.shape_cast %208 : vector<1x32x96xbf16> to vector<32x96xbf16>
    %210 = arith.truncf %207 : vector<16x32xf32> to vector<16x32xbf16>
    %cst_93 = arith.constant dense<0.000000e+00> : vector<16x96xf32>
    %211 = tpu.matmul %210, %209, %cst_93 {dimension_numbers = #tpu.dot_dimension_numbers<[1], [0], [0], [1], [0, 0, 1, 1], [], []>} : vector<16x32xbf16>, vector<32x96xbf16>, vector<16x96xf32> -> vector<16x96xf32>
    %212 = vector.shape_cast %211 : vector<16x96xf32> to vector<2x8x96xf32>
    %c1_94 = arith.constant 1 : index
    %c0_95 = arith.constant 0 : index
    %c0_96 = arith.constant 0 : index
    %213 = vector.load %arg6[%c1_94, %c0_95, %c0_96] : memref<6x32x32xbf16, #tpu.memory_space<vmem>>, vector<1x32x32xbf16>
    %214 = vector.shape_cast %213 : vector<1x32x32xbf16> to vector<32x32xbf16>
    %215 = vector.extract_strided_slice %212 {offsets = [0, 0, 0], sizes = [2, 8, 8], strides = [1, 1, 1]} : vector<2x8x96xf32> to vector<2x8x8xf32>
    %216 = vector.extract_strided_slice %212 {offsets = [0, 0, 32], sizes = [2, 8, 8], strides = [1, 1, 1]} : vector<2x8x96xf32> to vector<2x8x8xf32>
    %217 = vector.extract_strided_slice %212 {offsets = [0, 0, 64], sizes = [2, 8, 8], strides = [1, 1, 1]} : vector<2x8x96xf32> to vector<2x8x8xf32>
    "tpu.trace_start"() <{level = 10 : i32, message = "bqd,bkd->bqk"}> : () -> ()
    %cst_97 = arith.constant dense<0.000000e+00> : vector<2x8x8xf32>
    %218 = tpu.matmul %215, %216, %cst_97 {dimension_numbers = #tpu.dot_dimension_numbers<[2], [2], [1], [1], [0, 0, 0, 1, 1, 1], [0], [0]>} : vector<2x8x8xf32>, vector<2x8x8xf32>, vector<2x8x8xf32> -> vector<2x8x8xf32>
    "tpu.trace_stop"() : () -> ()
    %cst_98 = arith.constant 0.176776692 : f32
    %219 = vector.broadcast %cst_98 : f32 to vector<2x8x8xf32>
    %220 = arith.mulf %218, %219 : vector<2x8x8xf32>
    %221 = arith.addf %220, %20 : vector<2x8x8xf32>
    %cst_99 = arith.constant dense<0xFF800000> : vector<2x8xf32>
    %222 = vector.multi_reduction <maximumf>, %221, %cst_99 [2] : vector<2x8x8xf32> to vector<2x8xf32>
    %223 = vector.shape_cast %222 : vector<2x8xf32> to vector<2x8x1xf32>
    %224 = vector.broadcast %223 : vector<2x8x1xf32> to vector<2x8x8xf32>
    %225 = arith.subf %221, %224 : vector<2x8x8xf32>
    %226 = math.exp %225 : vector<2x8x8xf32>
    "tpu.trace_start"() <{level = 10 : i32, message = "bqk,bkd->bqd"}> : () -> ()
    %cst_100 = arith.constant dense<0.000000e+00> : vector<2x8x8xf32>
    %227 = tpu.matmul %226, %217, %cst_100 {dimension_numbers = #tpu.dot_dimension_numbers<[2], [1], [1], [2], [0, 0, 0, 1, 1, 2], [0], [0]>} : vector<2x8x8xf32>, vector<2x8x8xf32>, vector<2x8x8xf32> -> vector<2x8x8xf32>
    "tpu.trace_stop"() : () -> ()
    "tpu.trace_start"() <{level = 10 : i32, message = "bqk,bko->bqo"}> : () -> ()
    %cst_101 = arith.constant dense<0.000000e+00> : vector<2x8x1xf32>
    %228 = tpu.matmul %226, %12, %cst_101 {dimension_numbers = #tpu.dot_dimension_numbers<[2], [1], [1], [2], [0, 0, 0, 1, 1, 2], [0], [0]>} : vector<2x8x8xf32>, vector<2x8x1xf32>, vector<2x8x1xf32> -> vector<2x8x1xf32>
    "tpu.trace_stop"() : () -> ()
    %229 = tpu.reciprocal %228 {approx = true} : vector<2x8x1xf32> -> vector<2x8x1xf32>
    %230 = vector.broadcast %229 : vector<2x8x1xf32> to vector<2x8x8xf32>
    %231 = arith.mulf %227, %230 : vector<2x8x8xf32>
    %232 = vector.shape_cast %231 : vector<2x8x8xf32> to vector<16x8xf32>
    %233 = arith.truncf %232 : vector<16x8xf32> to vector<16x8xbf16>
    %234 = vector.extract_strided_slice %214 {offsets = [0, 0], sizes = [8, 32], strides = [1, 1]} : vector<32x32xbf16> to vector<8x32xbf16>
    %cst_102 = arith.constant dense<0.000000e+00> : vector<16x32xf32>
    %235 = tpu.matmul %233, %234, %cst_102 {dimension_numbers = #tpu.dot_dimension_numbers<[1], [0], [0], [1], [0, 0, 1, 1], [], []>} : vector<16x8xbf16>, vector<8x32xbf16>, vector<16x32xf32> -> vector<16x32xf32>
    %236 = vector.extract_strided_slice %212 {offsets = [0, 0, 8], sizes = [2, 8, 8], strides = [1, 1, 1]} : vector<2x8x96xf32> to vector<2x8x8xf32>
    %237 = vector.extract_strided_slice %212 {offsets = [0, 0, 40], sizes = [2, 8, 8], strides = [1, 1, 1]} : vector<2x8x96xf32> to vector<2x8x8xf32>
    %238 = vector.extract_strided_slice %212 {offsets = [0, 0, 72], sizes = [2, 8, 8], strides = [1, 1, 1]} : vector<2x8x96xf32> to vector<2x8x8xf32>
    "tpu.trace_start"() <{level = 10 : i32, message = "bqd,bkd->bqk"}> : () -> ()
    %cst_103 = arith.constant dense<0.000000e+00> : vector<2x8x8xf32>
    %239 = tpu.matmul %236, %237, %cst_103 {dimension_numbers = #tpu.dot_dimension_numbers<[2], [2], [1], [1], [0, 0, 0, 1, 1, 1], [0], [0]>} : vector<2x8x8xf32>, vector<2x8x8xf32>, vector<2x8x8xf32> -> vector<2x8x8xf32>
    "tpu.trace_stop"() : () -> ()
    %cst_104 = arith.constant 0.176776692 : f32
    %240 = vector.broadcast %cst_104 : f32 to vector<2x8x8xf32>
    %241 = arith.mulf %239, %240 : vector<2x8x8xf32>
    %242 = arith.addf %241, %20 : vector<2x8x8xf32>
    %cst_105 = arith.constant dense<0xFF800000> : vector<2x8xf32>
    %243 = vector.multi_reduction <maximumf>, %242, %cst_105 [2] : vector<2x8x8xf32> to vector<2x8xf32>
    %244 = vector.shape_cast %243 : vector<2x8xf32> to vector<2x8x1xf32>
    %245 = vector.broadcast %244 : vector<2x8x1xf32> to vector<2x8x8xf32>
    %246 = arith.subf %242, %245 : vector<2x8x8xf32>
    %247 = math.exp %246 : vector<2x8x8xf32>
    "tpu.trace_start"() <{level = 10 : i32, message = "bqk,bkd->bqd"}> : () -> ()
    %cst_106 = arith.constant dense<0.000000e+00> : vector<2x8x8xf32>
    %248 = tpu.matmul %247, %238, %cst_106 {dimension_numbers = #tpu.dot_dimension_numbers<[2], [1], [1], [2], [0, 0, 0, 1, 1, 2], [0], [0]>} : vector<2x8x8xf32>, vector<2x8x8xf32>, vector<2x8x8xf32> -> vector<2x8x8xf32>
    "tpu.trace_stop"() : () -> ()
    "tpu.trace_start"() <{level = 10 : i32, message = "bqk,bko->bqo"}> : () -> ()
    %cst_107 = arith.constant dense<0.000000e+00> : vector<2x8x1xf32>
    %249 = tpu.matmul %247, %12, %cst_107 {dimension_numbers = #tpu.dot_dimension_numbers<[2], [1], [1], [2], [0, 0, 0, 1, 1, 2], [0], [0]>} : vector<2x8x8xf32>, vector<2x8x1xf32>, vector<2x8x1xf32> -> vector<2x8x1xf32>
    "tpu.trace_stop"() : () -> ()
    %250 = tpu.reciprocal %249 {approx = true} : vector<2x8x1xf32> -> vector<2x8x1xf32>
    %251 = vector.broadcast %250 : vector<2x8x1xf32> to vector<2x8x8xf32>
    %252 = arith.mulf %248, %251 : vector<2x8x8xf32>
    %253 = vector.shape_cast %252 : vector<2x8x8xf32> to vector<16x8xf32>
    %254 = arith.truncf %253 : vector<16x8xf32> to vector<16x8xbf16>
    %255 = vector.extract_strided_slice %214 {offsets = [8, 0], sizes = [8, 32], strides = [1, 1]} : vector<32x32xbf16> to vector<8x32xbf16>
    %cst_108 = arith.constant dense<0.000000e+00> : vector<16x32xf32>
    %256 = tpu.matmul %254, %255, %cst_108 {dimension_numbers = #tpu.dot_dimension_numbers<[1], [0], [0], [1], [0, 0, 1, 1], [], []>} : vector<16x8xbf16>, vector<8x32xbf16>, vector<16x32xf32> -> vector<16x32xf32>
    %257 = arith.addf %235, %256 : vector<16x32xf32>
    %258 = vector.extract_strided_slice %212 {offsets = [0, 0, 16], sizes = [2, 8, 8], strides = [1, 1, 1]} : vector<2x8x96xf32> to vector<2x8x8xf32>
    %259 = vector.extract_strided_slice %212 {offsets = [0, 0, 48], sizes = [2, 8, 8], strides = [1, 1, 1]} : vector<2x8x96xf32> to vector<2x8x8xf32>
    %260 = vector.extract_strided_slice %212 {offsets = [0, 0, 80], sizes = [2, 8, 8], strides = [1, 1, 1]} : vector<2x8x96xf32> to vector<2x8x8xf32>
    "tpu.trace_start"() <{level = 10 : i32, message = "bqd,bkd->bqk"}> : () -> ()
    %cst_109 = arith.constant dense<0.000000e+00> : vector<2x8x8xf32>
    %261 = tpu.matmul %258, %259, %cst_109 {dimension_numbers = #tpu.dot_dimension_numbers<[2], [2], [1], [1], [0, 0, 0, 1, 1, 1], [0], [0]>} : vector<2x8x8xf32>, vector<2x8x8xf32>, vector<2x8x8xf32> -> vector<2x8x8xf32>
    "tpu.trace_stop"() : () -> ()
    %cst_110 = arith.constant 0.176776692 : f32
    %262 = vector.broadcast %cst_110 : f32 to vector<2x8x8xf32>
    %263 = arith.mulf %261, %262 : vector<2x8x8xf32>
    %264 = arith.addf %263, %20 : vector<2x8x8xf32>
    %cst_111 = arith.constant dense<0xFF800000> : vector<2x8xf32>
    %265 = vector.multi_reduction <maximumf>, %264, %cst_111 [2] : vector<2x8x8xf32> to vector<2x8xf32>
    %266 = vector.shape_cast %265 : vector<2x8xf32> to vector<2x8x1xf32>
    %267 = vector.broadcast %266 : vector<2x8x1xf32> to vector<2x8x8xf32>
    %268 = arith.subf %264, %267 : vector<2x8x8xf32>
    %269 = math.exp %268 : vector<2x8x8xf32>
    "tpu.trace_start"() <{level = 10 : i32, message = "bqk,bkd->bqd"}> : () -> ()
    %cst_112 = arith.constant dense<0.000000e+00> : vector<2x8x8xf32>
    %270 = tpu.matmul %269, %260, %cst_112 {dimension_numbers = #tpu.dot_dimension_numbers<[2], [1], [1], [2], [0, 0, 0, 1, 1, 2], [0], [0]>} : vector<2x8x8xf32>, vector<2x8x8xf32>, vector<2x8x8xf32> -> vector<2x8x8xf32>
    "tpu.trace_stop"() : () -> ()
    "tpu.trace_start"() <{level = 10 : i32, message = "bqk,bko->bqo"}> : () -> ()
    %cst_113 = arith.constant dense<0.000000e+00> : vector<2x8x1xf32>
    %271 = tpu.matmul %269, %12, %cst_113 {dimension_numbers = #tpu.dot_dimension_numbers<[2], [1], [1], [2], [0, 0, 0, 1, 1, 2], [0], [0]>} : vector<2x8x8xf32>, vector<2x8x1xf32>, vector<2x8x1xf32> -> vector<2x8x1xf32>
    "tpu.trace_stop"() : () -> ()
    %272 = tpu.reciprocal %271 {approx = true} : vector<2x8x1xf32> -> vector<2x8x1xf32>
    %273 = vector.broadcast %272 : vector<2x8x1xf32> to vector<2x8x8xf32>
    %274 = arith.mulf %270, %273 : vector<2x8x8xf32>
    %275 = vector.shape_cast %274 : vector<2x8x8xf32> to vector<16x8xf32>
    %276 = arith.truncf %275 : vector<16x8xf32> to vector<16x8xbf16>
    %277 = vector.extract_strided_slice %214 {offsets = [16, 0], sizes = [8, 32], strides = [1, 1]} : vector<32x32xbf16> to vector<8x32xbf16>
    %cst_114 = arith.constant dense<0.000000e+00> : vector<16x32xf32>
    %278 = tpu.matmul %276, %277, %cst_114 {dimension_numbers = #tpu.dot_dimension_numbers<[1], [0], [0], [1], [0, 0, 1, 1], [], []>} : vector<16x8xbf16>, vector<8x32xbf16>, vector<16x32xf32> -> vector<16x32xf32>
    %279 = arith.addf %257, %278 : vector<16x32xf32>
    %280 = vector.extract_strided_slice %212 {offsets = [0, 0, 24], sizes = [2, 8, 8], strides = [1, 1, 1]} : vector<2x8x96xf32> to vector<2x8x8xf32>
    %281 = vector.extract_strided_slice %212 {offsets = [0, 0, 56], sizes = [2, 8, 8], strides = [1, 1, 1]} : vector<2x8x96xf32> to vector<2x8x8xf32>
    %282 = vector.extract_strided_slice %212 {offsets = [0, 0, 88], sizes = [2, 8, 8], strides = [1, 1, 1]} : vector<2x8x96xf32> to vector<2x8x8xf32>
    "tpu.trace_start"() <{level = 10 : i32, message = "bqd,bkd->bqk"}> : () -> ()
    %cst_115 = arith.constant dense<0.000000e+00> : vector<2x8x8xf32>
    %283 = tpu.matmul %280, %281, %cst_115 {dimension_numbers = #tpu.dot_dimension_numbers<[2], [2], [1], [1], [0, 0, 0, 1, 1, 1], [0], [0]>} : vector<2x8x8xf32>, vector<2x8x8xf32>, vector<2x8x8xf32> -> vector<2x8x8xf32>
    "tpu.trace_stop"() : () -> ()
    %cst_116 = arith.constant 0.176776692 : f32
    %284 = vector.broadcast %cst_116 : f32 to vector<2x8x8xf32>
    %285 = arith.mulf %283, %284 : vector<2x8x8xf32>
    %286 = arith.addf %285, %20 : vector<2x8x8xf32>
    %cst_117 = arith.constant dense<0xFF800000> : vector<2x8xf32>
    %287 = vector.multi_reduction <maximumf>, %286, %cst_117 [2] : vector<2x8x8xf32> to vector<2x8xf32>
    %288 = vector.shape_cast %287 : vector<2x8xf32> to vector<2x8x1xf32>
    %289 = vector.broadcast %288 : vector<2x8x1xf32> to vector<2x8x8xf32>
    %290 = arith.subf %286, %289 : vector<2x8x8xf32>
    %291 = math.exp %290 : vector<2x8x8xf32>
    "tpu.trace_start"() <{level = 10 : i32, message = "bqk,bkd->bqd"}> : () -> ()
    %cst_118 = arith.constant dense<0.000000e+00> : vector<2x8x8xf32>
    %292 = tpu.matmul %291, %282, %cst_118 {dimension_numbers = #tpu.dot_dimension_numbers<[2], [1], [1], [2], [0, 0, 0, 1, 1, 2], [0], [0]>} : vector<2x8x8xf32>, vector<2x8x8xf32>, vector<2x8x8xf32> -> vector<2x8x8xf32>
    "tpu.trace_stop"() : () -> ()
    "tpu.trace_start"() <{level = 10 : i32, message = "bqk,bko->bqo"}> : () -> ()
    %cst_119 = arith.constant dense<0.000000e+00> : vector<2x8x1xf32>
    %293 = tpu.matmul %291, %12, %cst_119 {dimension_numbers = #tpu.dot_dimension_numbers<[2], [1], [1], [2], [0, 0, 0, 1, 1, 2], [0], [0]>} : vector<2x8x8xf32>, vector<2x8x1xf32>, vector<2x8x1xf32> -> vector<2x8x1xf32>
    "tpu.trace_stop"() : () -> ()
    %294 = tpu.reciprocal %293 {approx = true} : vector<2x8x1xf32> -> vector<2x8x1xf32>
    %295 = vector.broadcast %294 : vector<2x8x1xf32> to vector<2x8x8xf32>
    %296 = arith.mulf %292, %295 : vector<2x8x8xf32>
    %297 = vector.shape_cast %296 : vector<2x8x8xf32> to vector<16x8xf32>
    %298 = arith.truncf %297 : vector<16x8xf32> to vector<16x8xbf16>
    %299 = vector.extract_strided_slice %214 {offsets = [24, 0], sizes = [8, 32], strides = [1, 1]} : vector<32x32xbf16> to vector<8x32xbf16>
    %cst_120 = arith.constant dense<0.000000e+00> : vector<16x32xf32>
    %300 = tpu.matmul %298, %299, %cst_120 {dimension_numbers = #tpu.dot_dimension_numbers<[1], [0], [0], [1], [0, 0, 1, 1], [], []>} : vector<16x8xbf16>, vector<8x32xbf16>, vector<16x32xf32> -> vector<16x32xf32>
    %301 = arith.addf %279, %300 : vector<16x32xf32>
    %302 = arith.addf %184, %301 : vector<16x32xf32>
    %c1_121 = arith.constant 1 : index
    %c0_122 = arith.constant 0 : index
    %c0_123 = arith.constant 0 : index
    %303 = vector.load %arg7[%c1_121, %c0_122, %c0_123] : memref<6x1x32xf32, #tpu.memory_space<vmem>>, vector<1x1x32xf32>
    %304 = vector.shape_cast %303 : vector<1x1x32xf32> to vector<1x32xf32>
    %305 = vector.broadcast %304 : vector<1x32xf32> to vector<16x32xf32>
    %306 = arith.addf %302, %305 : vector<16x32xf32>
    %c1_124 = arith.constant 1 : index
    %c0_125 = arith.constant 0 : index
    %c0_126 = arith.constant 0 : index
    %307 = vector.load %arg8[%c1_124, %c0_125, %c0_126] : memref<6x1x32xf32, #tpu.memory_space<vmem>>, vector<1x1x32xf32>
    %308 = vector.shape_cast %307 : vector<1x1x32xf32> to vector<1x32xf32>
    %c1_127 = arith.constant 1 : index
    %c0_128 = arith.constant 0 : index
    %c0_129 = arith.constant 0 : index
    %309 = vector.load %arg9[%c1_127, %c0_128, %c0_129] : memref<6x1x32xf32, #tpu.memory_space<vmem>>, vector<1x1x32xf32>
    %310 = vector.shape_cast %309 : vector<1x1x32xf32> to vector<1x32xf32>
    %cst_130 = arith.constant dense<0.000000e+00> : vector<16x1xf32>
    %311 = tpu.matmul %306, %11, %cst_130 {dimension_numbers = #tpu.dot_dimension_numbers<[1], [0], [0], [1], [0, 0, 1, 1], [], []>} : vector<16x32xf32>, vector<32x1xf32>, vector<16x1xf32> -> vector<16x1xf32>
    %cst_131 = arith.constant 3.125000e-02 : f32
    %312 = vector.broadcast %cst_131 : f32 to vector<16x1xf32>
    %313 = arith.mulf %311, %312 : vector<16x1xf32>
    %314 = vector.broadcast %313 : vector<16x1xf32> to vector<16x32xf32>
    %315 = arith.subf %306, %314 : vector<16x32xf32>
    %316 = arith.mulf %315, %315 : vector<16x32xf32>
    %cst_132 = arith.constant dense<0.000000e+00> : vector<16x1xf32>
    %317 = tpu.matmul %316, %11, %cst_132 {dimension_numbers = #tpu.dot_dimension_numbers<[1], [0], [0], [1], [0, 0, 1, 1], [], []>} : vector<16x32xf32>, vector<32x1xf32>, vector<16x1xf32> -> vector<16x1xf32>
    %cst_133 = arith.constant 0.0322580636 : f32
    %318 = vector.broadcast %cst_133 : f32 to vector<16x1xf32>
    %319 = arith.mulf %317, %318 : vector<16x1xf32>
    %320 = math.sqrt %319 : vector<16x1xf32>
    %cst_134 = arith.constant 9.99999997E-7 : f32
    %321 = vector.broadcast %cst_134 : f32 to vector<16x1xf32>
    %322 = arith.addf %320, %321 : vector<16x1xf32>
    %323 = math.rsqrt %322 : vector<16x1xf32>
    %324 = vector.broadcast %323 : vector<16x1xf32> to vector<16x32xf32>
    %325 = arith.mulf %315, %324 : vector<16x32xf32>
    %326 = vector.broadcast %308 : vector<1x32xf32> to vector<16x32xf32>
    %327 = arith.mulf %326, %325 : vector<16x32xf32>
    %328 = vector.broadcast %310 : vector<1x32xf32> to vector<16x32xf32>
    %329 = arith.addf %327, %328 : vector<16x32xf32>
    %330 = arith.truncf %329 : vector<16x32xf32> to vector<16x32xbf16>
    %c1_135 = arith.constant 1 : index
    %c0_136 = arith.constant 0 : index
    %c0_137 = arith.constant 0 : index
    %331 = vector.load %arg10[%c1_135, %c0_136, %c0_137] : memref<6x32x128xbf16, #tpu.memory_space<vmem>>, vector<1x32x128xbf16>
    %332 = vector.shape_cast %331 : vector<1x32x128xbf16> to vector<32x128xbf16>
    %cst_138 = arith.constant dense<0.000000e+00> : vector<16x128xf32>
    %333 = tpu.matmul %330, %332, %cst_138 {dimension_numbers = #tpu.dot_dimension_numbers<[1], [0], [0], [1], [0, 0, 1, 1], [], []>} : vector<16x32xbf16>, vector<32x128xbf16>, vector<16x128xf32> -> vector<16x128xf32>
    %c1_139 = arith.constant 1 : index
    %c0_140 = arith.constant 0 : index
    %c0_141 = arith.constant 0 : index
    %334 = vector.load %arg11[%c1_139, %c0_140, %c0_141] : memref<6x1x128xf32, #tpu.memory_space<vmem>>, vector<1x1x128xf32>
    %335 = vector.shape_cast %334 : vector<1x1x128xf32> to vector<1x128xf32>
    %336 = vector.broadcast %335 : vector<1x128xf32> to vector<16x128xf32>
    %337 = arith.addf %333, %336 : vector<16x128xf32>
    %cst_142 = arith.constant 0.000000e+00 : f32
    %338 = vector.broadcast %cst_142 : f32 to vector<16x128xf32>
    %339 = arith.maximumf %337, %338 : vector<16x128xf32>
    %340 = arith.truncf %339 : vector<16x128xf32> to vector<16x128xbf16>
    %c1_143 = arith.constant 1 : index
    %c0_144 = arith.constant 0 : index
    %c0_145 = arith.constant 0 : index
    %341 = vector.load %arg12[%c1_143, %c0_144, %c0_145] : memref<6x128x32xbf16, #tpu.memory_space<vmem>>, vector<1x128x32xbf16>
    %342 = vector.shape_cast %341 : vector<1x128x32xbf16> to vector<128x32xbf16>
    %cst_146 = arith.constant dense<0.000000e+00> : vector<16x32xf32>
    %343 = tpu.matmul %340, %342, %cst_146 {dimension_numbers = #tpu.dot_dimension_numbers<[1], [0], [0], [1], [0, 0, 1, 1], [], []>} : vector<16x128xbf16>, vector<128x32xbf16>, vector<16x32xf32> -> vector<16x32xf32>
    %c1_147 = arith.constant 1 : index
    %c0_148 = arith.constant 0 : index
    %c0_149 = arith.constant 0 : index
    %344 = vector.load %arg13[%c1_147, %c0_148, %c0_149] : memref<6x1x32xf32, #tpu.memory_space<vmem>>, vector<1x1x32xf32>
    %345 = vector.shape_cast %344 : vector<1x1x32xf32> to vector<1x32xf32>
    %346 = vector.broadcast %345 : vector<1x32xf32> to vector<16x32xf32>
    %347 = arith.addf %343, %346 : vector<16x32xf32>
    %348 = arith.addf %306, %347 : vector<16x32xf32>
    %c2 = arith.constant 2 : index
    %c0_150 = arith.constant 0 : index
    %c0_151 = arith.constant 0 : index
    %349 = vector.load %arg3[%c2, %c0_150, %c0_151] : memref<6x1x32xf32, #tpu.memory_space<vmem>>, vector<1x1x32xf32>
    %350 = vector.shape_cast %349 : vector<1x1x32xf32> to vector<1x32xf32>
    %c2_152 = arith.constant 2 : index
    %c0_153 = arith.constant 0 : index
    %c0_154 = arith.constant 0 : index
    %351 = vector.load %arg4[%c2_152, %c0_153, %c0_154] : memref<6x1x32xf32, #tpu.memory_space<vmem>>, vector<1x1x32xf32>
    %352 = vector.shape_cast %351 : vector<1x1x32xf32> to vector<1x32xf32>
    %cst_155 = arith.constant dense<0.000000e+00> : vector<16x1xf32>
    %353 = tpu.matmul %348, %11, %cst_155 {dimension_numbers = #tpu.dot_dimension_numbers<[1], [0], [0], [1], [0, 0, 1, 1], [], []>} : vector<16x32xf32>, vector<32x1xf32>, vector<16x1xf32> -> vector<16x1xf32>
    %cst_156 = arith.constant 3.125000e-02 : f32
    %354 = vector.broadcast %cst_156 : f32 to vector<16x1xf32>
    %355 = arith.mulf %353, %354 : vector<16x1xf32>
    %356 = vector.broadcast %355 : vector<16x1xf32> to vector<16x32xf32>
    %357 = arith.subf %348, %356 : vector<16x32xf32>
    %358 = arith.mulf %357, %357 : vector<16x32xf32>
    %cst_157 = arith.constant dense<0.000000e+00> : vector<16x1xf32>
    %359 = tpu.matmul %358, %11, %cst_157 {dimension_numbers = #tpu.dot_dimension_numbers<[1], [0], [0], [1], [0, 0, 1, 1], [], []>} : vector<16x32xf32>, vector<32x1xf32>, vector<16x1xf32> -> vector<16x1xf32>
    %cst_158 = arith.constant 0.0322580636 : f32
    %360 = vector.broadcast %cst_158 : f32 to vector<16x1xf32>
    %361 = arith.mulf %359, %360 : vector<16x1xf32>
    %362 = math.sqrt %361 : vector<16x1xf32>
    %cst_159 = arith.constant 9.99999997E-7 : f32
    %363 = vector.broadcast %cst_159 : f32 to vector<16x1xf32>
    %364 = arith.addf %362, %363 : vector<16x1xf32>
    %365 = math.rsqrt %364 : vector<16x1xf32>
    %366 = vector.broadcast %365 : vector<16x1xf32> to vector<16x32xf32>
    %367 = arith.mulf %357, %366 : vector<16x32xf32>
    %368 = vector.broadcast %350 : vector<1x32xf32> to vector<16x32xf32>
    %369 = arith.mulf %368, %367 : vector<16x32xf32>
    %370 = vector.broadcast %352 : vector<1x32xf32> to vector<16x32xf32>
    %371 = arith.addf %369, %370 : vector<16x32xf32>
    %c2_160 = arith.constant 2 : index
    %c0_161 = arith.constant 0 : index
    %c0_162 = arith.constant 0 : index
    %372 = vector.load %arg5[%c2_160, %c0_161, %c0_162] : memref<6x32x96xbf16, #tpu.memory_space<vmem>>, vector<1x32x96xbf16>
    %373 = vector.shape_cast %372 : vector<1x32x96xbf16> to vector<32x96xbf16>
    %374 = arith.truncf %371 : vector<16x32xf32> to vector<16x32xbf16>
    %cst_163 = arith.constant dense<0.000000e+00> : vector<16x96xf32>
    %375 = tpu.matmul %374, %373, %cst_163 {dimension_numbers = #tpu.dot_dimension_numbers<[1], [0], [0], [1], [0, 0, 1, 1], [], []>} : vector<16x32xbf16>, vector<32x96xbf16>, vector<16x96xf32> -> vector<16x96xf32>
    %376 = vector.shape_cast %375 : vector<16x96xf32> to vector<2x8x96xf32>
    %c2_164 = arith.constant 2 : index
    %c0_165 = arith.constant 0 : index
    %c0_166 = arith.constant 0 : index
    %377 = vector.load %arg6[%c2_164, %c0_165, %c0_166] : memref<6x32x32xbf16, #tpu.memory_space<vmem>>, vector<1x32x32xbf16>
    %378 = vector.shape_cast %377 : vector<1x32x32xbf16> to vector<32x32xbf16>
    %379 = vector.extract_strided_slice %376 {offsets = [0, 0, 0], sizes = [2, 8, 8], strides = [1, 1, 1]} : vector<2x8x96xf32> to vector<2x8x8xf32>
    %380 = vector.extract_strided_slice %376 {offsets = [0, 0, 32], sizes = [2, 8, 8], strides = [1, 1, 1]} : vector<2x8x96xf32> to vector<2x8x8xf32>
    %381 = vector.extract_strided_slice %376 {offsets = [0, 0, 64], sizes = [2, 8, 8], strides = [1, 1, 1]} : vector<2x8x96xf32> to vector<2x8x8xf32>
    "tpu.trace_start"() <{level = 10 : i32, message = "bqd,bkd->bqk"}> : () -> ()
    %cst_167 = arith.constant dense<0.000000e+00> : vector<2x8x8xf32>
    %382 = tpu.matmul %379, %380, %cst_167 {dimension_numbers = #tpu.dot_dimension_numbers<[2], [2], [1], [1], [0, 0, 0, 1, 1, 1], [0], [0]>} : vector<2x8x8xf32>, vector<2x8x8xf32>, vector<2x8x8xf32> -> vector<2x8x8xf32>
    "tpu.trace_stop"() : () -> ()
    %cst_168 = arith.constant 0.176776692 : f32
    %383 = vector.broadcast %cst_168 : f32 to vector<2x8x8xf32>
    %384 = arith.mulf %382, %383 : vector<2x8x8xf32>
    %385 = arith.addf %384, %20 : vector<2x8x8xf32>
    %cst_169 = arith.constant dense<0xFF800000> : vector<2x8xf32>
    %386 = vector.multi_reduction <maximumf>, %385, %cst_169 [2] : vector<2x8x8xf32> to vector<2x8xf32>
    %387 = vector.shape_cast %386 : vector<2x8xf32> to vector<2x8x1xf32>
    %388 = vector.broadcast %387 : vector<2x8x1xf32> to vector<2x8x8xf32>
    %389 = arith.subf %385, %388 : vector<2x8x8xf32>
    %390 = math.exp %389 : vector<2x8x8xf32>
    "tpu.trace_start"() <{level = 10 : i32, message = "bqk,bkd->bqd"}> : () -> ()
    %cst_170 = arith.constant dense<0.000000e+00> : vector<2x8x8xf32>
    %391 = tpu.matmul %390, %381, %cst_170 {dimension_numbers = #tpu.dot_dimension_numbers<[2], [1], [1], [2], [0, 0, 0, 1, 1, 2], [0], [0]>} : vector<2x8x8xf32>, vector<2x8x8xf32>, vector<2x8x8xf32> -> vector<2x8x8xf32>
    "tpu.trace_stop"() : () -> ()
    "tpu.trace_start"() <{level = 10 : i32, message = "bqk,bko->bqo"}> : () -> ()
    %cst_171 = arith.constant dense<0.000000e+00> : vector<2x8x1xf32>
    %392 = tpu.matmul %390, %12, %cst_171 {dimension_numbers = #tpu.dot_dimension_numbers<[2], [1], [1], [2], [0, 0, 0, 1, 1, 2], [0], [0]>} : vector<2x8x8xf32>, vector<2x8x1xf32>, vector<2x8x1xf32> -> vector<2x8x1xf32>
    "tpu.trace_stop"() : () -> ()
    %393 = tpu.reciprocal %392 {approx = true} : vector<2x8x1xf32> -> vector<2x8x1xf32>
    %394 = vector.broadcast %393 : vector<2x8x1xf32> to vector<2x8x8xf32>
    %395 = arith.mulf %391, %394 : vector<2x8x8xf32>
    %396 = vector.shape_cast %395 : vector<2x8x8xf32> to vector<16x8xf32>
    %397 = arith.truncf %396 : vector<16x8xf32> to vector<16x8xbf16>
    %398 = vector.extract_strided_slice %378 {offsets = [0, 0], sizes = [8, 32], strides = [1, 1]} : vector<32x32xbf16> to vector<8x32xbf16>
    %cst_172 = arith.constant dense<0.000000e+00> : vector<16x32xf32>
    %399 = tpu.matmul %397, %398, %cst_172 {dimension_numbers = #tpu.dot_dimension_numbers<[1], [0], [0], [1], [0, 0, 1, 1], [], []>} : vector<16x8xbf16>, vector<8x32xbf16>, vector<16x32xf32> -> vector<16x32xf32>
    %400 = vector.extract_strided_slice %376 {offsets = [0, 0, 8], sizes = [2, 8, 8], strides = [1, 1, 1]} : vector<2x8x96xf32> to vector<2x8x8xf32>
    %401 = vector.extract_strided_slice %376 {offsets = [0, 0, 40], sizes = [2, 8, 8], strides = [1, 1, 1]} : vector<2x8x96xf32> to vector<2x8x8xf32>
    %402 = vector.extract_strided_slice %376 {offsets = [0, 0, 72], sizes = [2, 8, 8], strides = [1, 1, 1]} : vector<2x8x96xf32> to vector<2x8x8xf32>
    "tpu.trace_start"() <{level = 10 : i32, message = "bqd,bkd->bqk"}> : () -> ()
    %cst_173 = arith.constant dense<0.000000e+00> : vector<2x8x8xf32>
    %403 = tpu.matmul %400, %401, %cst_173 {dimension_numbers = #tpu.dot_dimension_numbers<[2], [2], [1], [1], [0, 0, 0, 1, 1, 1], [0], [0]>} : vector<2x8x8xf32>, vector<2x8x8xf32>, vector<2x8x8xf32> -> vector<2x8x8xf32>
    "tpu.trace_stop"() : () -> ()
    %cst_174 = arith.constant 0.176776692 : f32
    %404 = vector.broadcast %cst_174 : f32 to vector<2x8x8xf32>
    %405 = arith.mulf %403, %404 : vector<2x8x8xf32>
    %406 = arith.addf %405, %20 : vector<2x8x8xf32>
    %cst_175 = arith.constant dense<0xFF800000> : vector<2x8xf32>
    %407 = vector.multi_reduction <maximumf>, %406, %cst_175 [2] : vector<2x8x8xf32> to vector<2x8xf32>
    %408 = vector.shape_cast %407 : vector<2x8xf32> to vector<2x8x1xf32>
    %409 = vector.broadcast %408 : vector<2x8x1xf32> to vector<2x8x8xf32>
    %410 = arith.subf %406, %409 : vector<2x8x8xf32>
    %411 = math.exp %410 : vector<2x8x8xf32>
    "tpu.trace_start"() <{level = 10 : i32, message = "bqk,bkd->bqd"}> : () -> ()
    %cst_176 = arith.constant dense<0.000000e+00> : vector<2x8x8xf32>
    %412 = tpu.matmul %411, %402, %cst_176 {dimension_numbers = #tpu.dot_dimension_numbers<[2], [1], [1], [2], [0, 0, 0, 1, 1, 2], [0], [0]>} : vector<2x8x8xf32>, vector<2x8x8xf32>, vector<2x8x8xf32> -> vector<2x8x8xf32>
    "tpu.trace_stop"() : () -> ()
    "tpu.trace_start"() <{level = 10 : i32, message = "bqk,bko->bqo"}> : () -> ()
    %cst_177 = arith.constant dense<0.000000e+00> : vector<2x8x1xf32>
    %413 = tpu.matmul %411, %12, %cst_177 {dimension_numbers = #tpu.dot_dimension_numbers<[2], [1], [1], [2], [0, 0, 0, 1, 1, 2], [0], [0]>} : vector<2x8x8xf32>, vector<2x8x1xf32>, vector<2x8x1xf32> -> vector<2x8x1xf32>
    "tpu.trace_stop"() : () -> ()
    %414 = tpu.reciprocal %413 {approx = true} : vector<2x8x1xf32> -> vector<2x8x1xf32>
    %415 = vector.broadcast %414 : vector<2x8x1xf32> to vector<2x8x8xf32>
    %416 = arith.mulf %412, %415 : vector<2x8x8xf32>
    %417 = vector.shape_cast %416 : vector<2x8x8xf32> to vector<16x8xf32>
    %418 = arith.truncf %417 : vector<16x8xf32> to vector<16x8xbf16>
    %419 = vector.extract_strided_slice %378 {offsets = [8, 0], sizes = [8, 32], strides = [1, 1]} : vector<32x32xbf16> to vector<8x32xbf16>
    %cst_178 = arith.constant dense<0.000000e+00> : vector<16x32xf32>
    %420 = tpu.matmul %418, %419, %cst_178 {dimension_numbers = #tpu.dot_dimension_numbers<[1], [0], [0], [1], [0, 0, 1, 1], [], []>} : vector<16x8xbf16>, vector<8x32xbf16>, vector<16x32xf32> -> vector<16x32xf32>
    %421 = arith.addf %399, %420 : vector<16x32xf32>
    %422 = vector.extract_strided_slice %376 {offsets = [0, 0, 16], sizes = [2, 8, 8], strides = [1, 1, 1]} : vector<2x8x96xf32> to vector<2x8x8xf32>
    %423 = vector.extract_strided_slice %376 {offsets = [0, 0, 48], sizes = [2, 8, 8], strides = [1, 1, 1]} : vector<2x8x96xf32> to vector<2x8x8xf32>
    %424 = vector.extract_strided_slice %376 {offsets = [0, 0, 80], sizes = [2, 8, 8], strides = [1, 1, 1]} : vector<2x8x96xf32> to vector<2x8x8xf32>
    "tpu.trace_start"() <{level = 10 : i32, message = "bqd,bkd->bqk"}> : () -> ()
    %cst_179 = arith.constant dense<0.000000e+00> : vector<2x8x8xf32>
    %425 = tpu.matmul %422, %423, %cst_179 {dimension_numbers = #tpu.dot_dimension_numbers<[2], [2], [1], [1], [0, 0, 0, 1, 1, 1], [0], [0]>} : vector<2x8x8xf32>, vector<2x8x8xf32>, vector<2x8x8xf32> -> vector<2x8x8xf32>
    "tpu.trace_stop"() : () -> ()
    %cst_180 = arith.constant 0.176776692 : f32
    %426 = vector.broadcast %cst_180 : f32 to vector<2x8x8xf32>
    %427 = arith.mulf %425, %426 : vector<2x8x8xf32>
    %428 = arith.addf %427, %20 : vector<2x8x8xf32>
    %cst_181 = arith.constant dense<0xFF800000> : vector<2x8xf32>
    %429 = vector.multi_reduction <maximumf>, %428, %cst_181 [2] : vector<2x8x8xf32> to vector<2x8xf32>
    %430 = vector.shape_cast %429 : vector<2x8xf32> to vector<2x8x1xf32>
    %431 = vector.broadcast %430 : vector<2x8x1xf32> to vector<2x8x8xf32>
    %432 = arith.subf %428, %431 : vector<2x8x8xf32>
    %433 = math.exp %432 : vector<2x8x8xf32>
    "tpu.trace_start"() <{level = 10 : i32, message = "bqk,bkd->bqd"}> : () -> ()
    %cst_182 = arith.constant dense<0.000000e+00> : vector<2x8x8xf32>
    %434 = tpu.matmul %433, %424, %cst_182 {dimension_numbers = #tpu.dot_dimension_numbers<[2], [1], [1], [2], [0, 0, 0, 1, 1, 2], [0], [0]>} : vector<2x8x8xf32>, vector<2x8x8xf32>, vector<2x8x8xf32> -> vector<2x8x8xf32>
    "tpu.trace_stop"() : () -> ()
    "tpu.trace_start"() <{level = 10 : i32, message = "bqk,bko->bqo"}> : () -> ()
    %cst_183 = arith.constant dense<0.000000e+00> : vector<2x8x1xf32>
    %435 = tpu.matmul %433, %12, %cst_183 {dimension_numbers = #tpu.dot_dimension_numbers<[2], [1], [1], [2], [0, 0, 0, 1, 1, 2], [0], [0]>} : vector<2x8x8xf32>, vector<2x8x1xf32>, vector<2x8x1xf32> -> vector<2x8x1xf32>
    "tpu.trace_stop"() : () -> ()
    %436 = tpu.reciprocal %435 {approx = true} : vector<2x8x1xf32> -> vector<2x8x1xf32>
    %437 = vector.broadcast %436 : vector<2x8x1xf32> to vector<2x8x8xf32>
    %438 = arith.mulf %434, %437 : vector<2x8x8xf32>
    %439 = vector.shape_cast %438 : vector<2x8x8xf32> to vector<16x8xf32>
    %440 = arith.truncf %439 : vector<16x8xf32> to vector<16x8xbf16>
    %441 = vector.extract_strided_slice %378 {offsets = [16, 0], sizes = [8, 32], strides = [1, 1]} : vector<32x32xbf16> to vector<8x32xbf16>
    %cst_184 = arith.constant dense<0.000000e+00> : vector<16x32xf32>
    %442 = tpu.matmul %440, %441, %cst_184 {dimension_numbers = #tpu.dot_dimension_numbers<[1], [0], [0], [1], [0, 0, 1, 1], [], []>} : vector<16x8xbf16>, vector<8x32xbf16>, vector<16x32xf32> -> vector<16x32xf32>
    %443 = arith.addf %421, %442 : vector<16x32xf32>
    %444 = vector.extract_strided_slice %376 {offsets = [0, 0, 24], sizes = [2, 8, 8], strides = [1, 1, 1]} : vector<2x8x96xf32> to vector<2x8x8xf32>
    %445 = vector.extract_strided_slice %376 {offsets = [0, 0, 56], sizes = [2, 8, 8], strides = [1, 1, 1]} : vector<2x8x96xf32> to vector<2x8x8xf32>
    %446 = vector.extract_strided_slice %376 {offsets = [0, 0, 88], sizes = [2, 8, 8], strides = [1, 1, 1]} : vector<2x8x96xf32> to vector<2x8x8xf32>
    "tpu.trace_start"() <{level = 10 : i32, message = "bqd,bkd->bqk"}> : () -> ()
    %cst_185 = arith.constant dense<0.000000e+00> : vector<2x8x8xf32>
    %447 = tpu.matmul %444, %445, %cst_185 {dimension_numbers = #tpu.dot_dimension_numbers<[2], [2], [1], [1], [0, 0, 0, 1, 1, 1], [0], [0]>} : vector<2x8x8xf32>, vector<2x8x8xf32>, vector<2x8x8xf32> -> vector<2x8x8xf32>
    "tpu.trace_stop"() : () -> ()
    %cst_186 = arith.constant 0.176776692 : f32
    %448 = vector.broadcast %cst_186 : f32 to vector<2x8x8xf32>
    %449 = arith.mulf %447, %448 : vector<2x8x8xf32>
    %450 = arith.addf %449, %20 : vector<2x8x8xf32>
    %cst_187 = arith.constant dense<0xFF800000> : vector<2x8xf32>
    %451 = vector.multi_reduction <maximumf>, %450, %cst_187 [2] : vector<2x8x8xf32> to vector<2x8xf32>
    %452 = vector.shape_cast %451 : vector<2x8xf32> to vector<2x8x1xf32>
    %453 = vector.broadcast %452 : vector<2x8x1xf32> to vector<2x8x8xf32>
    %454 = arith.subf %450, %453 : vector<2x8x8xf32>
    %455 = math.exp %454 : vector<2x8x8xf32>
    "tpu.trace_start"() <{level = 10 : i32, message = "bqk,bkd->bqd"}> : () -> ()
    %cst_188 = arith.constant dense<0.000000e+00> : vector<2x8x8xf32>
    %456 = tpu.matmul %455, %446, %cst_188 {dimension_numbers = #tpu.dot_dimension_numbers<[2], [1], [1], [2], [0, 0, 0, 1, 1, 2], [0], [0]>} : vector<2x8x8xf32>, vector<2x8x8xf32>, vector<2x8x8xf32> -> vector<2x8x8xf32>
    "tpu.trace_stop"() : () -> ()
    "tpu.trace_start"() <{level = 10 : i32, message = "bqk,bko->bqo"}> : () -> ()
    %cst_189 = arith.constant dense<0.000000e+00> : vector<2x8x1xf32>
    %457 = tpu.matmul %455, %12, %cst_189 {dimension_numbers = #tpu.dot_dimension_numbers<[2], [1], [1], [2], [0, 0, 0, 1, 1, 2], [0], [0]>} : vector<2x8x8xf32>, vector<2x8x1xf32>, vector<2x8x1xf32> -> vector<2x8x1xf32>
    "tpu.trace_stop"() : () -> ()
    %458 = tpu.reciprocal %457 {approx = true} : vector<2x8x1xf32> -> vector<2x8x1xf32>
    %459 = vector.broadcast %458 : vector<2x8x1xf32> to vector<2x8x8xf32>
    %460 = arith.mulf %456, %459 : vector<2x8x8xf32>
    %461 = vector.shape_cast %460 : vector<2x8x8xf32> to vector<16x8xf32>
    %462 = arith.truncf %461 : vector<16x8xf32> to vector<16x8xbf16>
    %463 = vector.extract_strided_slice %378 {offsets = [24, 0], sizes = [8, 32], strides = [1, 1]} : vector<32x32xbf16> to vector<8x32xbf16>
    %cst_190 = arith.constant dense<0.000000e+00> : vector<16x32xf32>
    %464 = tpu.matmul %462, %463, %cst_190 {dimension_numbers = #tpu.dot_dimension_numbers<[1], [0], [0], [1], [0, 0, 1, 1], [], []>} : vector<16x8xbf16>, vector<8x32xbf16>, vector<16x32xf32> -> vector<16x32xf32>
    %465 = arith.addf %443, %464 : vector<16x32xf32>
    %466 = arith.addf %348, %465 : vector<16x32xf32>
    %c2_191 = arith.constant 2 : index
    %c0_192 = arith.constant 0 : index
    %c0_193 = arith.constant 0 : index
    %467 = vector.load %arg7[%c2_191, %c0_192, %c0_193] : memref<6x1x32xf32, #tpu.memory_space<vmem>>, vector<1x1x32xf32>
    %468 = vector.shape_cast %467 : vector<1x1x32xf32> to vector<1x32xf32>
    %469 = vector.broadcast %468 : vector<1x32xf32> to vector<16x32xf32>
    %470 = arith.addf %466, %469 : vector<16x32xf32>
    %c2_194 = arith.constant 2 : index
    %c0_195 = arith.constant 0 : index
    %c0_196 = arith.constant 0 : index
    %471 = vector.load %arg8[%c2_194, %c0_195, %c0_196] : memref<6x1x32xf32, #tpu.memory_space<vmem>>, vector<1x1x32xf32>
    %472 = vector.shape_cast %471 : vector<1x1x32xf32> to vector<1x32xf32>
    %c2_197 = arith.constant 2 : index
    %c0_198 = arith.constant 0 : index
    %c0_199 = arith.constant 0 : index
    %473 = vector.load %arg9[%c2_197, %c0_198, %c0_199] : memref<6x1x32xf32, #tpu.memory_space<vmem>>, vector<1x1x32xf32>
    %474 = vector.shape_cast %473 : vector<1x1x32xf32> to vector<1x32xf32>
    %cst_200 = arith.constant dense<0.000000e+00> : vector<16x1xf32>
    %475 = tpu.matmul %470, %11, %cst_200 {dimension_numbers = #tpu.dot_dimension_numbers<[1], [0], [0], [1], [0, 0, 1, 1], [], []>} : vector<16x32xf32>, vector<32x1xf32>, vector<16x1xf32> -> vector<16x1xf32>
    %cst_201 = arith.constant 3.125000e-02 : f32
    %476 = vector.broadcast %cst_201 : f32 to vector<16x1xf32>
    %477 = arith.mulf %475, %476 : vector<16x1xf32>
    %478 = vector.broadcast %477 : vector<16x1xf32> to vector<16x32xf32>
    %479 = arith.subf %470, %478 : vector<16x32xf32>
    %480 = arith.mulf %479, %479 : vector<16x32xf32>
    %cst_202 = arith.constant dense<0.000000e+00> : vector<16x1xf32>
    %481 = tpu.matmul %480, %11, %cst_202 {dimension_numbers = #tpu.dot_dimension_numbers<[1], [0], [0], [1], [0, 0, 1, 1], [], []>} : vector<16x32xf32>, vector<32x1xf32>, vector<16x1xf32> -> vector<16x1xf32>
    %cst_203 = arith.constant 0.0322580636 : f32
    %482 = vector.broadcast %cst_203 : f32 to vector<16x1xf32>
    %483 = arith.mulf %481, %482 : vector<16x1xf32>
    %484 = math.sqrt %483 : vector<16x1xf32>
    %cst_204 = arith.constant 9.99999997E-7 : f32
    %485 = vector.broadcast %cst_204 : f32 to vector<16x1xf32>
    %486 = arith.addf %484, %485 : vector<16x1xf32>
    %487 = math.rsqrt %486 : vector<16x1xf32>
    %488 = vector.broadcast %487 : vector<16x1xf32> to vector<16x32xf32>
    %489 = arith.mulf %479, %488 : vector<16x32xf32>
    %490 = vector.broadcast %472 : vector<1x32xf32> to vector<16x32xf32>
    %491 = arith.mulf %490, %489 : vector<16x32xf32>
    %492 = vector.broadcast %474 : vector<1x32xf32> to vector<16x32xf32>
    %493 = arith.addf %491, %492 : vector<16x32xf32>
    %494 = arith.truncf %493 : vector<16x32xf32> to vector<16x32xbf16>
    %c2_205 = arith.constant 2 : index
    %c0_206 = arith.constant 0 : index
    %c0_207 = arith.constant 0 : index
    %495 = vector.load %arg10[%c2_205, %c0_206, %c0_207] : memref<6x32x128xbf16, #tpu.memory_space<vmem>>, vector<1x32x128xbf16>
    %496 = vector.shape_cast %495 : vector<1x32x128xbf16> to vector<32x128xbf16>
    %cst_208 = arith.constant dense<0.000000e+00> : vector<16x128xf32>
    %497 = tpu.matmul %494, %496, %cst_208 {dimension_numbers = #tpu.dot_dimension_numbers<[1], [0], [0], [1], [0, 0, 1, 1], [], []>} : vector<16x32xbf16>, vector<32x128xbf16>, vector<16x128xf32> -> vector<16x128xf32>
    %c2_209 = arith.constant 2 : index
    %c0_210 = arith.constant 0 : index
    %c0_211 = arith.constant 0 : index
    %498 = vector.load %arg11[%c2_209, %c0_210, %c0_211] : memref<6x1x128xf32, #tpu.memory_space<vmem>>, vector<1x1x128xf32>
    %499 = vector.shape_cast %498 : vector<1x1x128xf32> to vector<1x128xf32>
    %500 = vector.broadcast %499 : vector<1x128xf32> to vector<16x128xf32>
    %501 = arith.addf %497, %500 : vector<16x128xf32>
    %cst_212 = arith.constant 0.000000e+00 : f32
    %502 = vector.broadcast %cst_212 : f32 to vector<16x128xf32>
    %503 = arith.maximumf %501, %502 : vector<16x128xf32>
    %504 = arith.truncf %503 : vector<16x128xf32> to vector<16x128xbf16>
    %c2_213 = arith.constant 2 : index
    %c0_214 = arith.constant 0 : index
    %c0_215 = arith.constant 0 : index
    %505 = vector.load %arg12[%c2_213, %c0_214, %c0_215] : memref<6x128x32xbf16, #tpu.memory_space<vmem>>, vector<1x128x32xbf16>
    %506 = vector.shape_cast %505 : vector<1x128x32xbf16> to vector<128x32xbf16>
    %cst_216 = arith.constant dense<0.000000e+00> : vector<16x32xf32>
    %507 = tpu.matmul %504, %506, %cst_216 {dimension_numbers = #tpu.dot_dimension_numbers<[1], [0], [0], [1], [0, 0, 1, 1], [], []>} : vector<16x128xbf16>, vector<128x32xbf16>, vector<16x32xf32> -> vector<16x32xf32>
    %c2_217 = arith.constant 2 : index
    %c0_218 = arith.constant 0 : index
    %c0_219 = arith.constant 0 : index
    %508 = vector.load %arg13[%c2_217, %c0_218, %c0_219] : memref<6x1x32xf32, #tpu.memory_space<vmem>>, vector<1x1x32xf32>
    %509 = vector.shape_cast %508 : vector<1x1x32xf32> to vector<1x32xf32>
    %510 = vector.broadcast %509 : vector<1x32xf32> to vector<16x32xf32>
    %511 = arith.addf %507, %510 : vector<16x32xf32>
    %512 = arith.addf %470, %511 : vector<16x32xf32>
    %c3 = arith.constant 3 : index
    %c0_220 = arith.constant 0 : index
    %c0_221 = arith.constant 0 : index
    %513 = vector.load %arg3[%c3, %c0_220, %c0_221] : memref<6x1x32xf32, #tpu.memory_space<vmem>>, vector<1x1x32xf32>
    %514 = vector.shape_cast %513 : vector<1x1x32xf32> to vector<1x32xf32>
    %c3_222 = arith.constant 3 : index
    %c0_223 = arith.constant 0 : index
    %c0_224 = arith.constant 0 : index
    %515 = vector.load %arg4[%c3_222, %c0_223, %c0_224] : memref<6x1x32xf32, #tpu.memory_space<vmem>>, vector<1x1x32xf32>
    %516 = vector.shape_cast %515 : vector<1x1x32xf32> to vector<1x32xf32>
    %cst_225 = arith.constant dense<0.000000e+00> : vector<16x1xf32>
    %517 = tpu.matmul %512, %11, %cst_225 {dimension_numbers = #tpu.dot_dimension_numbers<[1], [0], [0], [1], [0, 0, 1, 1], [], []>} : vector<16x32xf32>, vector<32x1xf32>, vector<16x1xf32> -> vector<16x1xf32>
    %cst_226 = arith.constant 3.125000e-02 : f32
    %518 = vector.broadcast %cst_226 : f32 to vector<16x1xf32>
    %519 = arith.mulf %517, %518 : vector<16x1xf32>
    %520 = vector.broadcast %519 : vector<16x1xf32> to vector<16x32xf32>
    %521 = arith.subf %512, %520 : vector<16x32xf32>
    %522 = arith.mulf %521, %521 : vector<16x32xf32>
    %cst_227 = arith.constant dense<0.000000e+00> : vector<16x1xf32>
    %523 = tpu.matmul %522, %11, %cst_227 {dimension_numbers = #tpu.dot_dimension_numbers<[1], [0], [0], [1], [0, 0, 1, 1], [], []>} : vector<16x32xf32>, vector<32x1xf32>, vector<16x1xf32> -> vector<16x1xf32>
    %cst_228 = arith.constant 0.0322580636 : f32
    %524 = vector.broadcast %cst_228 : f32 to vector<16x1xf32>
    %525 = arith.mulf %523, %524 : vector<16x1xf32>
    %526 = math.sqrt %525 : vector<16x1xf32>
    %cst_229 = arith.constant 9.99999997E-7 : f32
    %527 = vector.broadcast %cst_229 : f32 to vector<16x1xf32>
    %528 = arith.addf %526, %527 : vector<16x1xf32>
    %529 = math.rsqrt %528 : vector<16x1xf32>
    %530 = vector.broadcast %529 : vector<16x1xf32> to vector<16x32xf32>
    %531 = arith.mulf %521, %530 : vector<16x32xf32>
    %532 = vector.broadcast %514 : vector<1x32xf32> to vector<16x32xf32>
    %533 = arith.mulf %532, %531 : vector<16x32xf32>
    %534 = vector.broadcast %516 : vector<1x32xf32> to vector<16x32xf32>
    %535 = arith.addf %533, %534 : vector<16x32xf32>
    %c3_230 = arith.constant 3 : index
    %c0_231 = arith.constant 0 : index
    %c0_232 = arith.constant 0 : index
    %536 = vector.load %arg5[%c3_230, %c0_231, %c0_232] : memref<6x32x96xbf16, #tpu.memory_space<vmem>>, vector<1x32x96xbf16>
    %537 = vector.shape_cast %536 : vector<1x32x96xbf16> to vector<32x96xbf16>
    %538 = arith.truncf %535 : vector<16x32xf32> to vector<16x32xbf16>
    %cst_233 = arith.constant dense<0.000000e+00> : vector<16x96xf32>
    %539 = tpu.matmul %538, %537, %cst_233 {dimension_numbers = #tpu.dot_dimension_numbers<[1], [0], [0], [1], [0, 0, 1, 1], [], []>} : vector<16x32xbf16>, vector<32x96xbf16>, vector<16x96xf32> -> vector<16x96xf32>
    %540 = vector.shape_cast %539 : vector<16x96xf32> to vector<2x8x96xf32>
    %c3_234 = arith.constant 3 : index
    %c0_235 = arith.constant 0 : index
    %c0_236 = arith.constant 0 : index
    %541 = vector.load %arg6[%c3_234, %c0_235, %c0_236] : memref<6x32x32xbf16, #tpu.memory_space<vmem>>, vector<1x32x32xbf16>
    %542 = vector.shape_cast %541 : vector<1x32x32xbf16> to vector<32x32xbf16>
    %543 = vector.extract_strided_slice %540 {offsets = [0, 0, 0], sizes = [2, 8, 8], strides = [1, 1, 1]} : vector<2x8x96xf32> to vector<2x8x8xf32>
    %544 = vector.extract_strided_slice %540 {offsets = [0, 0, 32], sizes = [2, 8, 8], strides = [1, 1, 1]} : vector<2x8x96xf32> to vector<2x8x8xf32>
    %545 = vector.extract_strided_slice %540 {offsets = [0, 0, 64], sizes = [2, 8, 8], strides = [1, 1, 1]} : vector<2x8x96xf32> to vector<2x8x8xf32>
    "tpu.trace_start"() <{level = 10 : i32, message = "bqd,bkd->bqk"}> : () -> ()
    %cst_237 = arith.constant dense<0.000000e+00> : vector<2x8x8xf32>
    %546 = tpu.matmul %543, %544, %cst_237 {dimension_numbers = #tpu.dot_dimension_numbers<[2], [2], [1], [1], [0, 0, 0, 1, 1, 1], [0], [0]>} : vector<2x8x8xf32>, vector<2x8x8xf32>, vector<2x8x8xf32> -> vector<2x8x8xf32>
    "tpu.trace_stop"() : () -> ()
    %cst_238 = arith.constant 0.176776692 : f32
    %547 = vector.broadcast %cst_238 : f32 to vector<2x8x8xf32>
    %548 = arith.mulf %546, %547 : vector<2x8x8xf32>
    %549 = arith.addf %548, %20 : vector<2x8x8xf32>
    %cst_239 = arith.constant dense<0xFF800000> : vector<2x8xf32>
    %550 = vector.multi_reduction <maximumf>, %549, %cst_239 [2] : vector<2x8x8xf32> to vector<2x8xf32>
    %551 = vector.shape_cast %550 : vector<2x8xf32> to vector<2x8x1xf32>
    %552 = vector.broadcast %551 : vector<2x8x1xf32> to vector<2x8x8xf32>
    %553 = arith.subf %549, %552 : vector<2x8x8xf32>
    %554 = math.exp %553 : vector<2x8x8xf32>
    "tpu.trace_start"() <{level = 10 : i32, message = "bqk,bkd->bqd"}> : () -> ()
    %cst_240 = arith.constant dense<0.000000e+00> : vector<2x8x8xf32>
    %555 = tpu.matmul %554, %545, %cst_240 {dimension_numbers = #tpu.dot_dimension_numbers<[2], [1], [1], [2], [0, 0, 0, 1, 1, 2], [0], [0]>} : vector<2x8x8xf32>, vector<2x8x8xf32>, vector<2x8x8xf32> -> vector<2x8x8xf32>
    "tpu.trace_stop"() : () -> ()
    "tpu.trace_start"() <{level = 10 : i32, message = "bqk,bko->bqo"}> : () -> ()
    %cst_241 = arith.constant dense<0.000000e+00> : vector<2x8x1xf32>
    %556 = tpu.matmul %554, %12, %cst_241 {dimension_numbers = #tpu.dot_dimension_numbers<[2], [1], [1], [2], [0, 0, 0, 1, 1, 2], [0], [0]>} : vector<2x8x8xf32>, vector<2x8x1xf32>, vector<2x8x1xf32> -> vector<2x8x1xf32>
    "tpu.trace_stop"() : () -> ()
    %557 = tpu.reciprocal %556 {approx = true} : vector<2x8x1xf32> -> vector<2x8x1xf32>
    %558 = vector.broadcast %557 : vector<2x8x1xf32> to vector<2x8x8xf32>
    %559 = arith.mulf %555, %558 : vector<2x8x8xf32>
    %560 = vector.shape_cast %559 : vector<2x8x8xf32> to vector<16x8xf32>
    %561 = arith.truncf %560 : vector<16x8xf32> to vector<16x8xbf16>
    %562 = vector.extract_strided_slice %542 {offsets = [0, 0], sizes = [8, 32], strides = [1, 1]} : vector<32x32xbf16> to vector<8x32xbf16>
    %cst_242 = arith.constant dense<0.000000e+00> : vector<16x32xf32>
    %563 = tpu.matmul %561, %562, %cst_242 {dimension_numbers = #tpu.dot_dimension_numbers<[1], [0], [0], [1], [0, 0, 1, 1], [], []>} : vector<16x8xbf16>, vector<8x32xbf16>, vector<16x32xf32> -> vector<16x32xf32>
    %564 = vector.extract_strided_slice %540 {offsets = [0, 0, 8], sizes = [2, 8, 8], strides = [1, 1, 1]} : vector<2x8x96xf32> to vector<2x8x8xf32>
    %565 = vector.extract_strided_slice %540 {offsets = [0, 0, 40], sizes = [2, 8, 8], strides = [1, 1, 1]} : vector<2x8x96xf32> to vector<2x8x8xf32>
    %566 = vector.extract_strided_slice %540 {offsets = [0, 0, 72], sizes = [2, 8, 8], strides = [1, 1, 1]} : vector<2x8x96xf32> to vector<2x8x8xf32>
    "tpu.trace_start"() <{level = 10 : i32, message = "bqd,bkd->bqk"}> : () -> ()
    %cst_243 = arith.constant dense<0.000000e+00> : vector<2x8x8xf32>
    %567 = tpu.matmul %564, %565, %cst_243 {dimension_numbers = #tpu.dot_dimension_numbers<[2], [2], [1], [1], [0, 0, 0, 1, 1, 1], [0], [0]>} : vector<2x8x8xf32>, vector<2x8x8xf32>, vector<2x8x8xf32> -> vector<2x8x8xf32>
    "tpu.trace_stop"() : () -> ()
    %cst_244 = arith.constant 0.176776692 : f32
    %568 = vector.broadcast %cst_244 : f32 to vector<2x8x8xf32>
    %569 = arith.mulf %567, %568 : vector<2x8x8xf32>
    %570 = arith.addf %569, %20 : vector<2x8x8xf32>
    %cst_245 = arith.constant dense<0xFF800000> : vector<2x8xf32>
    %571 = vector.multi_reduction <maximumf>, %570, %cst_245 [2] : vector<2x8x8xf32> to vector<2x8xf32>
    %572 = vector.shape_cast %571 : vector<2x8xf32> to vector<2x8x1xf32>
    %573 = vector.broadcast %572 : vector<2x8x1xf32> to vector<2x8x8xf32>
    %574 = arith.subf %570, %573 : vector<2x8x8xf32>
    %575 = math.exp %574 : vector<2x8x8xf32>
    "tpu.trace_start"() <{level = 10 : i32, message = "bqk,bkd->bqd"}> : () -> ()
    %cst_246 = arith.constant dense<0.000000e+00> : vector<2x8x8xf32>
    %576 = tpu.matmul %575, %566, %cst_246 {dimension_numbers = #tpu.dot_dimension_numbers<[2], [1], [1], [2], [0, 0, 0, 1, 1, 2], [0], [0]>} : vector<2x8x8xf32>, vector<2x8x8xf32>, vector<2x8x8xf32> -> vector<2x8x8xf32>
    "tpu.trace_stop"() : () -> ()
    "tpu.trace_start"() <{level = 10 : i32, message = "bqk,bko->bqo"}> : () -> ()
    %cst_247 = arith.constant dense<0.000000e+00> : vector<2x8x1xf32>
    %577 = tpu.matmul %575, %12, %cst_247 {dimension_numbers = #tpu.dot_dimension_numbers<[2], [1], [1], [2], [0, 0, 0, 1, 1, 2], [0], [0]>} : vector<2x8x8xf32>, vector<2x8x1xf32>, vector<2x8x1xf32> -> vector<2x8x1xf32>
    "tpu.trace_stop"() : () -> ()
    %578 = tpu.reciprocal %577 {approx = true} : vector<2x8x1xf32> -> vector<2x8x1xf32>
    %579 = vector.broadcast %578 : vector<2x8x1xf32> to vector<2x8x8xf32>
    %580 = arith.mulf %576, %579 : vector<2x8x8xf32>
    %581 = vector.shape_cast %580 : vector<2x8x8xf32> to vector<16x8xf32>
    %582 = arith.truncf %581 : vector<16x8xf32> to vector<16x8xbf16>
    %583 = vector.extract_strided_slice %542 {offsets = [8, 0], sizes = [8, 32], strides = [1, 1]} : vector<32x32xbf16> to vector<8x32xbf16>
    %cst_248 = arith.constant dense<0.000000e+00> : vector<16x32xf32>
    %584 = tpu.matmul %582, %583, %cst_248 {dimension_numbers = #tpu.dot_dimension_numbers<[1], [0], [0], [1], [0, 0, 1, 1], [], []>} : vector<16x8xbf16>, vector<8x32xbf16>, vector<16x32xf32> -> vector<16x32xf32>
    %585 = arith.addf %563, %584 : vector<16x32xf32>
    %586 = vector.extract_strided_slice %540 {offsets = [0, 0, 16], sizes = [2, 8, 8], strides = [1, 1, 1]} : vector<2x8x96xf32> to vector<2x8x8xf32>
    %587 = vector.extract_strided_slice %540 {offsets = [0, 0, 48], sizes = [2, 8, 8], strides = [1, 1, 1]} : vector<2x8x96xf32> to vector<2x8x8xf32>
    %588 = vector.extract_strided_slice %540 {offsets = [0, 0, 80], sizes = [2, 8, 8], strides = [1, 1, 1]} : vector<2x8x96xf32> to vector<2x8x8xf32>
    "tpu.trace_start"() <{level = 10 : i32, message = "bqd,bkd->bqk"}> : () -> ()
    %cst_249 = arith.constant dense<0.000000e+00> : vector<2x8x8xf32>
    %589 = tpu.matmul %586, %587, %cst_249 {dimension_numbers = #tpu.dot_dimension_numbers<[2], [2], [1], [1], [0, 0, 0, 1, 1, 1], [0], [0]>} : vector<2x8x8xf32>, vector<2x8x8xf32>, vector<2x8x8xf32> -> vector<2x8x8xf32>
    "tpu.trace_stop"() : () -> ()
    %cst_250 = arith.constant 0.176776692 : f32
    %590 = vector.broadcast %cst_250 : f32 to vector<2x8x8xf32>
    %591 = arith.mulf %589, %590 : vector<2x8x8xf32>
    %592 = arith.addf %591, %20 : vector<2x8x8xf32>
    %cst_251 = arith.constant dense<0xFF800000> : vector<2x8xf32>
    %593 = vector.multi_reduction <maximumf>, %592, %cst_251 [2] : vector<2x8x8xf32> to vector<2x8xf32>
    %594 = vector.shape_cast %593 : vector<2x8xf32> to vector<2x8x1xf32>
    %595 = vector.broadcast %594 : vector<2x8x1xf32> to vector<2x8x8xf32>
    %596 = arith.subf %592, %595 : vector<2x8x8xf32>
    %597 = math.exp %596 : vector<2x8x8xf32>
    "tpu.trace_start"() <{level = 10 : i32, message = "bqk,bkd->bqd"}> : () -> ()
    %cst_252 = arith.constant dense<0.000000e+00> : vector<2x8x8xf32>
    %598 = tpu.matmul %597, %588, %cst_252 {dimension_numbers = #tpu.dot_dimension_numbers<[2], [1], [1], [2], [0, 0, 0, 1, 1, 2], [0], [0]>} : vector<2x8x8xf32>, vector<2x8x8xf32>, vector<2x8x8xf32> -> vector<2x8x8xf32>
    "tpu.trace_stop"() : () -> ()
    "tpu.trace_start"() <{level = 10 : i32, message = "bqk,bko->bqo"}> : () -> ()
    %cst_253 = arith.constant dense<0.000000e+00> : vector<2x8x1xf32>
    %599 = tpu.matmul %597, %12, %cst_253 {dimension_numbers = #tpu.dot_dimension_numbers<[2], [1], [1], [2], [0, 0, 0, 1, 1, 2], [0], [0]>} : vector<2x8x8xf32>, vector<2x8x1xf32>, vector<2x8x1xf32> -> vector<2x8x1xf32>
    "tpu.trace_stop"() : () -> ()
    %600 = tpu.reciprocal %599 {approx = true} : vector<2x8x1xf32> -> vector<2x8x1xf32>
    %601 = vector.broadcast %600 : vector<2x8x1xf32> to vector<2x8x8xf32>
    %602 = arith.mulf %598, %601 : vector<2x8x8xf32>
    %603 = vector.shape_cast %602 : vector<2x8x8xf32> to vector<16x8xf32>
    %604 = arith.truncf %603 : vector<16x8xf32> to vector<16x8xbf16>
    %605 = vector.extract_strided_slice %542 {offsets = [16, 0], sizes = [8, 32], strides = [1, 1]} : vector<32x32xbf16> to vector<8x32xbf16>
    %cst_254 = arith.constant dense<0.000000e+00> : vector<16x32xf32>
    %606 = tpu.matmul %604, %605, %cst_254 {dimension_numbers = #tpu.dot_dimension_numbers<[1], [0], [0], [1], [0, 0, 1, 1], [], []>} : vector<16x8xbf16>, vector<8x32xbf16>, vector<16x32xf32> -> vector<16x32xf32>
    %607 = arith.addf %585, %606 : vector<16x32xf32>
    %608 = vector.extract_strided_slice %540 {offsets = [0, 0, 24], sizes = [2, 8, 8], strides = [1, 1, 1]} : vector<2x8x96xf32> to vector<2x8x8xf32>
    %609 = vector.extract_strided_slice %540 {offsets = [0, 0, 56], sizes = [2, 8, 8], strides = [1, 1, 1]} : vector<2x8x96xf32> to vector<2x8x8xf32>
    %610 = vector.extract_strided_slice %540 {offsets = [0, 0, 88], sizes = [2, 8, 8], strides = [1, 1, 1]} : vector<2x8x96xf32> to vector<2x8x8xf32>
    "tpu.trace_start"() <{level = 10 : i32, message = "bqd,bkd->bqk"}> : () -> ()
    %cst_255 = arith.constant dense<0.000000e+00> : vector<2x8x8xf32>
    %611 = tpu.matmul %608, %609, %cst_255 {dimension_numbers = #tpu.dot_dimension_numbers<[2], [2], [1], [1], [0, 0, 0, 1, 1, 1], [0], [0]>} : vector<2x8x8xf32>, vector<2x8x8xf32>, vector<2x8x8xf32> -> vector<2x8x8xf32>
    "tpu.trace_stop"() : () -> ()
    %cst_256 = arith.constant 0.176776692 : f32
    %612 = vector.broadcast %cst_256 : f32 to vector<2x8x8xf32>
    %613 = arith.mulf %611, %612 : vector<2x8x8xf32>
    %614 = arith.addf %613, %20 : vector<2x8x8xf32>
    %cst_257 = arith.constant dense<0xFF800000> : vector<2x8xf32>
    %615 = vector.multi_reduction <maximumf>, %614, %cst_257 [2] : vector<2x8x8xf32> to vector<2x8xf32>
    %616 = vector.shape_cast %615 : vector<2x8xf32> to vector<2x8x1xf32>
    %617 = vector.broadcast %616 : vector<2x8x1xf32> to vector<2x8x8xf32>
    %618 = arith.subf %614, %617 : vector<2x8x8xf32>
    %619 = math.exp %618 : vector<2x8x8xf32>
    "tpu.trace_start"() <{level = 10 : i32, message = "bqk,bkd->bqd"}> : () -> ()
    %cst_258 = arith.constant dense<0.000000e+00> : vector<2x8x8xf32>
    %620 = tpu.matmul %619, %610, %cst_258 {dimension_numbers = #tpu.dot_dimension_numbers<[2], [1], [1], [2], [0, 0, 0, 1, 1, 2], [0], [0]>} : vector<2x8x8xf32>, vector<2x8x8xf32>, vector<2x8x8xf32> -> vector<2x8x8xf32>
    "tpu.trace_stop"() : () -> ()
    "tpu.trace_start"() <{level = 10 : i32, message = "bqk,bko->bqo"}> : () -> ()
    %cst_259 = arith.constant dense<0.000000e+00> : vector<2x8x1xf32>
    %621 = tpu.matmul %619, %12, %cst_259 {dimension_numbers = #tpu.dot_dimension_numbers<[2], [1], [1], [2], [0, 0, 0, 1, 1, 2], [0], [0]>} : vector<2x8x8xf32>, vector<2x8x1xf32>, vector<2x8x1xf32> -> vector<2x8x1xf32>
    "tpu.trace_stop"() : () -> ()
    %622 = tpu.reciprocal %621 {approx = true} : vector<2x8x1xf32> -> vector<2x8x1xf32>
    %623 = vector.broadcast %622 : vector<2x8x1xf32> to vector<2x8x8xf32>
    %624 = arith.mulf %620, %623 : vector<2x8x8xf32>
    %625 = vector.shape_cast %624 : vector<2x8x8xf32> to vector<16x8xf32>
    %626 = arith.truncf %625 : vector<16x8xf32> to vector<16x8xbf16>
    %627 = vector.extract_strided_slice %542 {offsets = [24, 0], sizes = [8, 32], strides = [1, 1]} : vector<32x32xbf16> to vector<8x32xbf16>
    %cst_260 = arith.constant dense<0.000000e+00> : vector<16x32xf32>
    %628 = tpu.matmul %626, %627, %cst_260 {dimension_numbers = #tpu.dot_dimension_numbers<[1], [0], [0], [1], [0, 0, 1, 1], [], []>} : vector<16x8xbf16>, vector<8x32xbf16>, vector<16x32xf32> -> vector<16x32xf32>
    %629 = arith.addf %607, %628 : vector<16x32xf32>
    %630 = arith.addf %512, %629 : vector<16x32xf32>
    %c3_261 = arith.constant 3 : index
    %c0_262 = arith.constant 0 : index
    %c0_263 = arith.constant 0 : index
    %631 = vector.load %arg7[%c3_261, %c0_262, %c0_263] : memref<6x1x32xf32, #tpu.memory_space<vmem>>, vector<1x1x32xf32>
    %632 = vector.shape_cast %631 : vector<1x1x32xf32> to vector<1x32xf32>
    %633 = vector.broadcast %632 : vector<1x32xf32> to vector<16x32xf32>
    %634 = arith.addf %630, %633 : vector<16x32xf32>
    %c3_264 = arith.constant 3 : index
    %c0_265 = arith.constant 0 : index
    %c0_266 = arith.constant 0 : index
    %635 = vector.load %arg8[%c3_264, %c0_265, %c0_266] : memref<6x1x32xf32, #tpu.memory_space<vmem>>, vector<1x1x32xf32>
    %636 = vector.shape_cast %635 : vector<1x1x32xf32> to vector<1x32xf32>
    %c3_267 = arith.constant 3 : index
    %c0_268 = arith.constant 0 : index
    %c0_269 = arith.constant 0 : index
    %637 = vector.load %arg9[%c3_267, %c0_268, %c0_269] : memref<6x1x32xf32, #tpu.memory_space<vmem>>, vector<1x1x32xf32>
    %638 = vector.shape_cast %637 : vector<1x1x32xf32> to vector<1x32xf32>
    %cst_270 = arith.constant dense<0.000000e+00> : vector<16x1xf32>
    %639 = tpu.matmul %634, %11, %cst_270 {dimension_numbers = #tpu.dot_dimension_numbers<[1], [0], [0], [1], [0, 0, 1, 1], [], []>} : vector<16x32xf32>, vector<32x1xf32>, vector<16x1xf32> -> vector<16x1xf32>
    %cst_271 = arith.constant 3.125000e-02 : f32
    %640 = vector.broadcast %cst_271 : f32 to vector<16x1xf32>
    %641 = arith.mulf %639, %640 : vector<16x1xf32>
    %642 = vector.broadcast %641 : vector<16x1xf32> to vector<16x32xf32>
    %643 = arith.subf %634, %642 : vector<16x32xf32>
    %644 = arith.mulf %643, %643 : vector<16x32xf32>
    %cst_272 = arith.constant dense<0.000000e+00> : vector<16x1xf32>
    %645 = tpu.matmul %644, %11, %cst_272 {dimension_numbers = #tpu.dot_dimension_numbers<[1], [0], [0], [1], [0, 0, 1, 1], [], []>} : vector<16x32xf32>, vector<32x1xf32>, vector<16x1xf32> -> vector<16x1xf32>
    %cst_273 = arith.constant 0.0322580636 : f32
    %646 = vector.broadcast %cst_273 : f32 to vector<16x1xf32>
    %647 = arith.mulf %645, %646 : vector<16x1xf32>
    %648 = math.sqrt %647 : vector<16x1xf32>
    %cst_274 = arith.constant 9.99999997E-7 : f32
    %649 = vector.broadcast %cst_274 : f32 to vector<16x1xf32>
    %650 = arith.addf %648, %649 : vector<16x1xf32>
    %651 = math.rsqrt %650 : vector<16x1xf32>
    %652 = vector.broadcast %651 : vector<16x1xf32> to vector<16x32xf32>
    %653 = arith.mulf %643, %652 : vector<16x32xf32>
    %654 = vector.broadcast %636 : vector<1x32xf32> to vector<16x32xf32>
    %655 = arith.mulf %654, %653 : vector<16x32xf32>
    %656 = vector.broadcast %638 : vector<1x32xf32> to vector<16x32xf32>
    %657 = arith.addf %655, %656 : vector<16x32xf32>
    %658 = arith.truncf %657 : vector<16x32xf32> to vector<16x32xbf16>
    %c3_275 = arith.constant 3 : index
    %c0_276 = arith.constant 0 : index
    %c0_277 = arith.constant 0 : index
    %659 = vector.load %arg10[%c3_275, %c0_276, %c0_277] : memref<6x32x128xbf16, #tpu.memory_space<vmem>>, vector<1x32x128xbf16>
    %660 = vector.shape_cast %659 : vector<1x32x128xbf16> to vector<32x128xbf16>
    %cst_278 = arith.constant dense<0.000000e+00> : vector<16x128xf32>
    %661 = tpu.matmul %658, %660, %cst_278 {dimension_numbers = #tpu.dot_dimension_numbers<[1], [0], [0], [1], [0, 0, 1, 1], [], []>} : vector<16x32xbf16>, vector<32x128xbf16>, vector<16x128xf32> -> vector<16x128xf32>
    %c3_279 = arith.constant 3 : index
    %c0_280 = arith.constant 0 : index
    %c0_281 = arith.constant 0 : index
    %662 = vector.load %arg11[%c3_279, %c0_280, %c0_281] : memref<6x1x128xf32, #tpu.memory_space<vmem>>, vector<1x1x128xf32>
    %663 = vector.shape_cast %662 : vector<1x1x128xf32> to vector<1x128xf32>
    %664 = vector.broadcast %663 : vector<1x128xf32> to vector<16x128xf32>
    %665 = arith.addf %661, %664 : vector<16x128xf32>
    %cst_282 = arith.constant 0.000000e+00 : f32
    %666 = vector.broadcast %cst_282 : f32 to vector<16x128xf32>
    %667 = arith.maximumf %665, %666 : vector<16x128xf32>
    %668 = arith.truncf %667 : vector<16x128xf32> to vector<16x128xbf16>
    %c3_283 = arith.constant 3 : index
    %c0_284 = arith.constant 0 : index
    %c0_285 = arith.constant 0 : index
    %669 = vector.load %arg12[%c3_283, %c0_284, %c0_285] : memref<6x128x32xbf16, #tpu.memory_space<vmem>>, vector<1x128x32xbf16>
    %670 = vector.shape_cast %669 : vector<1x128x32xbf16> to vector<128x32xbf16>
    %cst_286 = arith.constant dense<0.000000e+00> : vector<16x32xf32>
    %671 = tpu.matmul %668, %670, %cst_286 {dimension_numbers = #tpu.dot_dimension_numbers<[1], [0], [0], [1], [0, 0, 1, 1], [], []>} : vector<16x128xbf16>, vector<128x32xbf16>, vector<16x32xf32> -> vector<16x32xf32>
    %c3_287 = arith.constant 3 : index
    %c0_288 = arith.constant 0 : index
    %c0_289 = arith.constant 0 : index
    %672 = vector.load %arg13[%c3_287, %c0_288, %c0_289] : memref<6x1x32xf32, #tpu.memory_space<vmem>>, vector<1x1x32xf32>
    %673 = vector.shape_cast %672 : vector<1x1x32xf32> to vector<1x32xf32>
    %674 = vector.broadcast %673 : vector<1x32xf32> to vector<16x32xf32>
    %675 = arith.addf %671, %674 : vector<16x32xf32>
    %676 = arith.addf %634, %675 : vector<16x32xf32>
    %c4 = arith.constant 4 : index
    %c0_290 = arith.constant 0 : index
    %c0_291 = arith.constant 0 : index
    %677 = vector.load %arg3[%c4, %c0_290, %c0_291] : memref<6x1x32xf32, #tpu.memory_space<vmem>>, vector<1x1x32xf32>
    %678 = vector.shape_cast %677 : vector<1x1x32xf32> to vector<1x32xf32>
    %c4_292 = arith.constant 4 : index
    %c0_293 = arith.constant 0 : index
    %c0_294 = arith.constant 0 : index
    %679 = vector.load %arg4[%c4_292, %c0_293, %c0_294] : memref<6x1x32xf32, #tpu.memory_space<vmem>>, vector<1x1x32xf32>
    %680 = vector.shape_cast %679 : vector<1x1x32xf32> to vector<1x32xf32>
    %cst_295 = arith.constant dense<0.000000e+00> : vector<16x1xf32>
    %681 = tpu.matmul %676, %11, %cst_295 {dimension_numbers = #tpu.dot_dimension_numbers<[1], [0], [0], [1], [0, 0, 1, 1], [], []>} : vector<16x32xf32>, vector<32x1xf32>, vector<16x1xf32> -> vector<16x1xf32>
    %cst_296 = arith.constant 3.125000e-02 : f32
    %682 = vector.broadcast %cst_296 : f32 to vector<16x1xf32>
    %683 = arith.mulf %681, %682 : vector<16x1xf32>
    %684 = vector.broadcast %683 : vector<16x1xf32> to vector<16x32xf32>
    %685 = arith.subf %676, %684 : vector<16x32xf32>
    %686 = arith.mulf %685, %685 : vector<16x32xf32>
    %cst_297 = arith.constant dense<0.000000e+00> : vector<16x1xf32>
    %687 = tpu.matmul %686, %11, %cst_297 {dimension_numbers = #tpu.dot_dimension_numbers<[1], [0], [0], [1], [0, 0, 1, 1], [], []>} : vector<16x32xf32>, vector<32x1xf32>, vector<16x1xf32> -> vector<16x1xf32>
    %cst_298 = arith.constant 0.0322580636 : f32
    %688 = vector.broadcast %cst_298 : f32 to vector<16x1xf32>
    %689 = arith.mulf %687, %688 : vector<16x1xf32>
    %690 = math.sqrt %689 : vector<16x1xf32>
    %cst_299 = arith.constant 9.99999997E-7 : f32
    %691 = vector.broadcast %cst_299 : f32 to vector<16x1xf32>
    %692 = arith.addf %690, %691 : vector<16x1xf32>
    %693 = math.rsqrt %692 : vector<16x1xf32>
    %694 = vector.broadcast %693 : vector<16x1xf32> to vector<16x32xf32>
    %695 = arith.mulf %685, %694 : vector<16x32xf32>
    %696 = vector.broadcast %678 : vector<1x32xf32> to vector<16x32xf32>
    %697 = arith.mulf %696, %695 : vector<16x32xf32>
    %698 = vector.broadcast %680 : vector<1x32xf32> to vector<16x32xf32>
    %699 = arith.addf %697, %698 : vector<16x32xf32>
    %c4_300 = arith.constant 4 : index
    %c0_301 = arith.constant 0 : index
    %c0_302 = arith.constant 0 : index
    %700 = vector.load %arg5[%c4_300, %c0_301, %c0_302] : memref<6x32x96xbf16, #tpu.memory_space<vmem>>, vector<1x32x96xbf16>
    %701 = vector.shape_cast %700 : vector<1x32x96xbf16> to vector<32x96xbf16>
    %702 = arith.truncf %699 : vector<16x32xf32> to vector<16x32xbf16>
    %cst_303 = arith.constant dense<0.000000e+00> : vector<16x96xf32>
    %703 = tpu.matmul %702, %701, %cst_303 {dimension_numbers = #tpu.dot_dimension_numbers<[1], [0], [0], [1], [0, 0, 1, 1], [], []>} : vector<16x32xbf16>, vector<32x96xbf16>, vector<16x96xf32> -> vector<16x96xf32>
    %704 = vector.shape_cast %703 : vector<16x96xf32> to vector<2x8x96xf32>
    %c4_304 = arith.constant 4 : index
    %c0_305 = arith.constant 0 : index
    %c0_306 = arith.constant 0 : index
    %705 = vector.load %arg6[%c4_304, %c0_305, %c0_306] : memref<6x32x32xbf16, #tpu.memory_space<vmem>>, vector<1x32x32xbf16>
    %706 = vector.shape_cast %705 : vector<1x32x32xbf16> to vector<32x32xbf16>
    %707 = vector.extract_strided_slice %704 {offsets = [0, 0, 0], sizes = [2, 8, 8], strides = [1, 1, 1]} : vector<2x8x96xf32> to vector<2x8x8xf32>
    %708 = vector.extract_strided_slice %704 {offsets = [0, 0, 32], sizes = [2, 8, 8], strides = [1, 1, 1]} : vector<2x8x96xf32> to vector<2x8x8xf32>
    %709 = vector.extract_strided_slice %704 {offsets = [0, 0, 64], sizes = [2, 8, 8], strides = [1, 1, 1]} : vector<2x8x96xf32> to vector<2x8x8xf32>
    "tpu.trace_start"() <{level = 10 : i32, message = "bqd,bkd->bqk"}> : () -> ()
    %cst_307 = arith.constant dense<0.000000e+00> : vector<2x8x8xf32>
    %710 = tpu.matmul %707, %708, %cst_307 {dimension_numbers = #tpu.dot_dimension_numbers<[2], [2], [1], [1], [0, 0, 0, 1, 1, 1], [0], [0]>} : vector<2x8x8xf32>, vector<2x8x8xf32>, vector<2x8x8xf32> -> vector<2x8x8xf32>
    "tpu.trace_stop"() : () -> ()
    %cst_308 = arith.constant 0.176776692 : f32
    %711 = vector.broadcast %cst_308 : f32 to vector<2x8x8xf32>
    %712 = arith.mulf %710, %711 : vector<2x8x8xf32>
    %713 = arith.addf %712, %20 : vector<2x8x8xf32>
    %cst_309 = arith.constant dense<0xFF800000> : vector<2x8xf32>
    %714 = vector.multi_reduction <maximumf>, %713, %cst_309 [2] : vector<2x8x8xf32> to vector<2x8xf32>
    %715 = vector.shape_cast %714 : vector<2x8xf32> to vector<2x8x1xf32>
    %716 = vector.broadcast %715 : vector<2x8x1xf32> to vector<2x8x8xf32>
    %717 = arith.subf %713, %716 : vector<2x8x8xf32>
    %718 = math.exp %717 : vector<2x8x8xf32>
    "tpu.trace_start"() <{level = 10 : i32, message = "bqk,bkd->bqd"}> : () -> ()
    %cst_310 = arith.constant dense<0.000000e+00> : vector<2x8x8xf32>
    %719 = tpu.matmul %718, %709, %cst_310 {dimension_numbers = #tpu.dot_dimension_numbers<[2], [1], [1], [2], [0, 0, 0, 1, 1, 2], [0], [0]>} : vector<2x8x8xf32>, vector<2x8x8xf32>, vector<2x8x8xf32> -> vector<2x8x8xf32>
    "tpu.trace_stop"() : () -> ()
    "tpu.trace_start"() <{level = 10 : i32, message = "bqk,bko->bqo"}> : () -> ()
    %cst_311 = arith.constant dense<0.000000e+00> : vector<2x8x1xf32>
    %720 = tpu.matmul %718, %12, %cst_311 {dimension_numbers = #tpu.dot_dimension_numbers<[2], [1], [1], [2], [0, 0, 0, 1, 1, 2], [0], [0]>} : vector<2x8x8xf32>, vector<2x8x1xf32>, vector<2x8x1xf32> -> vector<2x8x1xf32>
    "tpu.trace_stop"() : () -> ()
    %721 = tpu.reciprocal %720 {approx = true} : vector<2x8x1xf32> -> vector<2x8x1xf32>
    %722 = vector.broadcast %721 : vector<2x8x1xf32> to vector<2x8x8xf32>
    %723 = arith.mulf %719, %722 : vector<2x8x8xf32>
    %724 = vector.shape_cast %723 : vector<2x8x8xf32> to vector<16x8xf32>
    %725 = arith.truncf %724 : vector<16x8xf32> to vector<16x8xbf16>
    %726 = vector.extract_strided_slice %706 {offsets = [0, 0], sizes = [8, 32], strides = [1, 1]} : vector<32x32xbf16> to vector<8x32xbf16>
    %cst_312 = arith.constant dense<0.000000e+00> : vector<16x32xf32>
    %727 = tpu.matmul %725, %726, %cst_312 {dimension_numbers = #tpu.dot_dimension_numbers<[1], [0], [0], [1], [0, 0, 1, 1], [], []>} : vector<16x8xbf16>, vector<8x32xbf16>, vector<16x32xf32> -> vector<16x32xf32>
    %728 = vector.extract_strided_slice %704 {offsets = [0, 0, 8], sizes = [2, 8, 8], strides = [1, 1, 1]} : vector<2x8x96xf32> to vector<2x8x8xf32>
    %729 = vector.extract_strided_slice %704 {offsets = [0, 0, 40], sizes = [2, 8, 8], strides = [1, 1, 1]} : vector<2x8x96xf32> to vector<2x8x8xf32>
    %730 = vector.extract_strided_slice %704 {offsets = [0, 0, 72], sizes = [2, 8, 8], strides = [1, 1, 1]} : vector<2x8x96xf32> to vector<2x8x8xf32>
    "tpu.trace_start"() <{level = 10 : i32, message = "bqd,bkd->bqk"}> : () -> ()
    %cst_313 = arith.constant dense<0.000000e+00> : vector<2x8x8xf32>
    %731 = tpu.matmul %728, %729, %cst_313 {dimension_numbers = #tpu.dot_dimension_numbers<[2], [2], [1], [1], [0, 0, 0, 1, 1, 1], [0], [0]>} : vector<2x8x8xf32>, vector<2x8x8xf32>, vector<2x8x8xf32> -> vector<2x8x8xf32>
    "tpu.trace_stop"() : () -> ()
    %cst_314 = arith.constant 0.176776692 : f32
    %732 = vector.broadcast %cst_314 : f32 to vector<2x8x8xf32>
    %733 = arith.mulf %731, %732 : vector<2x8x8xf32>
    %734 = arith.addf %733, %20 : vector<2x8x8xf32>
    %cst_315 = arith.constant dense<0xFF800000> : vector<2x8xf32>
    %735 = vector.multi_reduction <maximumf>, %734, %cst_315 [2] : vector<2x8x8xf32> to vector<2x8xf32>
    %736 = vector.shape_cast %735 : vector<2x8xf32> to vector<2x8x1xf32>
    %737 = vector.broadcast %736 : vector<2x8x1xf32> to vector<2x8x8xf32>
    %738 = arith.subf %734, %737 : vector<2x8x8xf32>
    %739 = math.exp %738 : vector<2x8x8xf32>
    "tpu.trace_start"() <{level = 10 : i32, message = "bqk,bkd->bqd"}> : () -> ()
    %cst_316 = arith.constant dense<0.000000e+00> : vector<2x8x8xf32>
    %740 = tpu.matmul %739, %730, %cst_316 {dimension_numbers = #tpu.dot_dimension_numbers<[2], [1], [1], [2], [0, 0, 0, 1, 1, 2], [0], [0]>} : vector<2x8x8xf32>, vector<2x8x8xf32>, vector<2x8x8xf32> -> vector<2x8x8xf32>
    "tpu.trace_stop"() : () -> ()
    "tpu.trace_start"() <{level = 10 : i32, message = "bqk,bko->bqo"}> : () -> ()
    %cst_317 = arith.constant dense<0.000000e+00> : vector<2x8x1xf32>
    %741 = tpu.matmul %739, %12, %cst_317 {dimension_numbers = #tpu.dot_dimension_numbers<[2], [1], [1], [2], [0, 0, 0, 1, 1, 2], [0], [0]>} : vector<2x8x8xf32>, vector<2x8x1xf32>, vector<2x8x1xf32> -> vector<2x8x1xf32>
    "tpu.trace_stop"() : () -> ()
    %742 = tpu.reciprocal %741 {approx = true} : vector<2x8x1xf32> -> vector<2x8x1xf32>
    %743 = vector.broadcast %742 : vector<2x8x1xf32> to vector<2x8x8xf32>
    %744 = arith.mulf %740, %743 : vector<2x8x8xf32>
    %745 = vector.shape_cast %744 : vector<2x8x8xf32> to vector<16x8xf32>
    %746 = arith.truncf %745 : vector<16x8xf32> to vector<16x8xbf16>
    %747 = vector.extract_strided_slice %706 {offsets = [8, 0], sizes = [8, 32], strides = [1, 1]} : vector<32x32xbf16> to vector<8x32xbf16>
    %cst_318 = arith.constant dense<0.000000e+00> : vector<16x32xf32>
    %748 = tpu.matmul %746, %747, %cst_318 {dimension_numbers = #tpu.dot_dimension_numbers<[1], [0], [0], [1], [0, 0, 1, 1], [], []>} : vector<16x8xbf16>, vector<8x32xbf16>, vector<16x32xf32> -> vector<16x32xf32>
    %749 = arith.addf %727, %748 : vector<16x32xf32>
    %750 = vector.extract_strided_slice %704 {offsets = [0, 0, 16], sizes = [2, 8, 8], strides = [1, 1, 1]} : vector<2x8x96xf32> to vector<2x8x8xf32>
    %751 = vector.extract_strided_slice %704 {offsets = [0, 0, 48], sizes = [2, 8, 8], strides = [1, 1, 1]} : vector<2x8x96xf32> to vector<2x8x8xf32>
    %752 = vector.extract_strided_slice %704 {offsets = [0, 0, 80], sizes = [2, 8, 8], strides = [1, 1, 1]} : vector<2x8x96xf32> to vector<2x8x8xf32>
    "tpu.trace_start"() <{level = 10 : i32, message = "bqd,bkd->bqk"}> : () -> ()
    %cst_319 = arith.constant dense<0.000000e+00> : vector<2x8x8xf32>
    %753 = tpu.matmul %750, %751, %cst_319 {dimension_numbers = #tpu.dot_dimension_numbers<[2], [2], [1], [1], [0, 0, 0, 1, 1, 1], [0], [0]>} : vector<2x8x8xf32>, vector<2x8x8xf32>, vector<2x8x8xf32> -> vector<2x8x8xf32>
    "tpu.trace_stop"() : () -> ()
    %cst_320 = arith.constant 0.176776692 : f32
    %754 = vector.broadcast %cst_320 : f32 to vector<2x8x8xf32>
    %755 = arith.mulf %753, %754 : vector<2x8x8xf32>
    %756 = arith.addf %755, %20 : vector<2x8x8xf32>
    %cst_321 = arith.constant dense<0xFF800000> : vector<2x8xf32>
    %757 = vector.multi_reduction <maximumf>, %756, %cst_321 [2] : vector<2x8x8xf32> to vector<2x8xf32>
    %758 = vector.shape_cast %757 : vector<2x8xf32> to vector<2x8x1xf32>
    %759 = vector.broadcast %758 : vector<2x8x1xf32> to vector<2x8x8xf32>
    %760 = arith.subf %756, %759 : vector<2x8x8xf32>
    %761 = math.exp %760 : vector<2x8x8xf32>
    "tpu.trace_start"() <{level = 10 : i32, message = "bqk,bkd->bqd"}> : () -> ()
    %cst_322 = arith.constant dense<0.000000e+00> : vector<2x8x8xf32>
    %762 = tpu.matmul %761, %752, %cst_322 {dimension_numbers = #tpu.dot_dimension_numbers<[2], [1], [1], [2], [0, 0, 0, 1, 1, 2], [0], [0]>} : vector<2x8x8xf32>, vector<2x8x8xf32>, vector<2x8x8xf32> -> vector<2x8x8xf32>
    "tpu.trace_stop"() : () -> ()
    "tpu.trace_start"() <{level = 10 : i32, message = "bqk,bko->bqo"}> : () -> ()
    %cst_323 = arith.constant dense<0.000000e+00> : vector<2x8x1xf32>
    %763 = tpu.matmul %761, %12, %cst_323 {dimension_numbers = #tpu.dot_dimension_numbers<[2], [1], [1], [2], [0, 0, 0, 1, 1, 2], [0], [0]>} : vector<2x8x8xf32>, vector<2x8x1xf32>, vector<2x8x1xf32> -> vector<2x8x1xf32>
    "tpu.trace_stop"() : () -> ()
    %764 = tpu.reciprocal %763 {approx = true} : vector<2x8x1xf32> -> vector<2x8x1xf32>
    %765 = vector.broadcast %764 : vector<2x8x1xf32> to vector<2x8x8xf32>
    %766 = arith.mulf %762, %765 : vector<2x8x8xf32>
    %767 = vector.shape_cast %766 : vector<2x8x8xf32> to vector<16x8xf32>
    %768 = arith.truncf %767 : vector<16x8xf32> to vector<16x8xbf16>
    %769 = vector.extract_strided_slice %706 {offsets = [16, 0], sizes = [8, 32], strides = [1, 1]} : vector<32x32xbf16> to vector<8x32xbf16>
    %cst_324 = arith.constant dense<0.000000e+00> : vector<16x32xf32>
    %770 = tpu.matmul %768, %769, %cst_324 {dimension_numbers = #tpu.dot_dimension_numbers<[1], [0], [0], [1], [0, 0, 1, 1], [], []>} : vector<16x8xbf16>, vector<8x32xbf16>, vector<16x32xf32> -> vector<16x32xf32>
    %771 = arith.addf %749, %770 : vector<16x32xf32>
    %772 = vector.extract_strided_slice %704 {offsets = [0, 0, 24], sizes = [2, 8, 8], strides = [1, 1, 1]} : vector<2x8x96xf32> to vector<2x8x8xf32>
    %773 = vector.extract_strided_slice %704 {offsets = [0, 0, 56], sizes = [2, 8, 8], strides = [1, 1, 1]} : vector<2x8x96xf32> to vector<2x8x8xf32>
    %774 = vector.extract_strided_slice %704 {offsets = [0, 0, 88], sizes = [2, 8, 8], strides = [1, 1, 1]} : vector<2x8x96xf32> to vector<2x8x8xf32>
    "tpu.trace_start"() <{level = 10 : i32, message = "bqd,bkd->bqk"}> : () -> ()
    %cst_325 = arith.constant dense<0.000000e+00> : vector<2x8x8xf32>
    %775 = tpu.matmul %772, %773, %cst_325 {dimension_numbers = #tpu.dot_dimension_numbers<[2], [2], [1], [1], [0, 0, 0, 1, 1, 1], [0], [0]>} : vector<2x8x8xf32>, vector<2x8x8xf32>, vector<2x8x8xf32> -> vector<2x8x8xf32>
    "tpu.trace_stop"() : () -> ()
    %cst_326 = arith.constant 0.176776692 : f32
    %776 = vector.broadcast %cst_326 : f32 to vector<2x8x8xf32>
    %777 = arith.mulf %775, %776 : vector<2x8x8xf32>
    %778 = arith.addf %777, %20 : vector<2x8x8xf32>
    %cst_327 = arith.constant dense<0xFF800000> : vector<2x8xf32>
    %779 = vector.multi_reduction <maximumf>, %778, %cst_327 [2] : vector<2x8x8xf32> to vector<2x8xf32>
    %780 = vector.shape_cast %779 : vector<2x8xf32> to vector<2x8x1xf32>
    %781 = vector.broadcast %780 : vector<2x8x1xf32> to vector<2x8x8xf32>
    %782 = arith.subf %778, %781 : vector<2x8x8xf32>
    %783 = math.exp %782 : vector<2x8x8xf32>
    "tpu.trace_start"() <{level = 10 : i32, message = "bqk,bkd->bqd"}> : () -> ()
    %cst_328 = arith.constant dense<0.000000e+00> : vector<2x8x8xf32>
    %784 = tpu.matmul %783, %774, %cst_328 {dimension_numbers = #tpu.dot_dimension_numbers<[2], [1], [1], [2], [0, 0, 0, 1, 1, 2], [0], [0]>} : vector<2x8x8xf32>, vector<2x8x8xf32>, vector<2x8x8xf32> -> vector<2x8x8xf32>
    "tpu.trace_stop"() : () -> ()
    "tpu.trace_start"() <{level = 10 : i32, message = "bqk,bko->bqo"}> : () -> ()
    %cst_329 = arith.constant dense<0.000000e+00> : vector<2x8x1xf32>
    %785 = tpu.matmul %783, %12, %cst_329 {dimension_numbers = #tpu.dot_dimension_numbers<[2], [1], [1], [2], [0, 0, 0, 1, 1, 2], [0], [0]>} : vector<2x8x8xf32>, vector<2x8x1xf32>, vector<2x8x1xf32> -> vector<2x8x1xf32>
    "tpu.trace_stop"() : () -> ()
    %786 = tpu.reciprocal %785 {approx = true} : vector<2x8x1xf32> -> vector<2x8x1xf32>
    %787 = vector.broadcast %786 : vector<2x8x1xf32> to vector<2x8x8xf32>
    %788 = arith.mulf %784, %787 : vector<2x8x8xf32>
    %789 = vector.shape_cast %788 : vector<2x8x8xf32> to vector<16x8xf32>
    %790 = arith.truncf %789 : vector<16x8xf32> to vector<16x8xbf16>
    %791 = vector.extract_strided_slice %706 {offsets = [24, 0], sizes = [8, 32], strides = [1, 1]} : vector<32x32xbf16> to vector<8x32xbf16>
    %cst_330 = arith.constant dense<0.000000e+00> : vector<16x32xf32>
    %792 = tpu.matmul %790, %791, %cst_330 {dimension_numbers = #tpu.dot_dimension_numbers<[1], [0], [0], [1], [0, 0, 1, 1], [], []>} : vector<16x8xbf16>, vector<8x32xbf16>, vector<16x32xf32> -> vector<16x32xf32>
    %793 = arith.addf %771, %792 : vector<16x32xf32>
    %794 = arith.addf %676, %793 : vector<16x32xf32>
    %c4_331 = arith.constant 4 : index
    %c0_332 = arith.constant 0 : index
    %c0_333 = arith.constant 0 : index
    %795 = vector.load %arg7[%c4_331, %c0_332, %c0_333] : memref<6x1x32xf32, #tpu.memory_space<vmem>>, vector<1x1x32xf32>
    %796 = vector.shape_cast %795 : vector<1x1x32xf32> to vector<1x32xf32>
    %797 = vector.broadcast %796 : vector<1x32xf32> to vector<16x32xf32>
    %798 = arith.addf %794, %797 : vector<16x32xf32>
    %c4_334 = arith.constant 4 : index
    %c0_335 = arith.constant 0 : index
    %c0_336 = arith.constant 0 : index
    %799 = vector.load %arg8[%c4_334, %c0_335, %c0_336] : memref<6x1x32xf32, #tpu.memory_space<vmem>>, vector<1x1x32xf32>
    %800 = vector.shape_cast %799 : vector<1x1x32xf32> to vector<1x32xf32>
    %c4_337 = arith.constant 4 : index
    %c0_338 = arith.constant 0 : index
    %c0_339 = arith.constant 0 : index
    %801 = vector.load %arg9[%c4_337, %c0_338, %c0_339] : memref<6x1x32xf32, #tpu.memory_space<vmem>>, vector<1x1x32xf32>
    %802 = vector.shape_cast %801 : vector<1x1x32xf32> to vector<1x32xf32>
    %cst_340 = arith.constant dense<0.000000e+00> : vector<16x1xf32>
    %803 = tpu.matmul %798, %11, %cst_340 {dimension_numbers = #tpu.dot_dimension_numbers<[1], [0], [0], [1], [0, 0, 1, 1], [], []>} : vector<16x32xf32>, vector<32x1xf32>, vector<16x1xf32> -> vector<16x1xf32>
    %cst_341 = arith.constant 3.125000e-02 : f32
    %804 = vector.broadcast %cst_341 : f32 to vector<16x1xf32>
    %805 = arith.mulf %803, %804 : vector<16x1xf32>
    %806 = vector.broadcast %805 : vector<16x1xf32> to vector<16x32xf32>
    %807 = arith.subf %798, %806 : vector<16x32xf32>
    %808 = arith.mulf %807, %807 : vector<16x32xf32>
    %cst_342 = arith.constant dense<0.000000e+00> : vector<16x1xf32>
    %809 = tpu.matmul %808, %11, %cst_342 {dimension_numbers = #tpu.dot_dimension_numbers<[1], [0], [0], [1], [0, 0, 1, 1], [], []>} : vector<16x32xf32>, vector<32x1xf32>, vector<16x1xf32> -> vector<16x1xf32>
    %cst_343 = arith.constant 0.0322580636 : f32
    %810 = vector.broadcast %cst_343 : f32 to vector<16x1xf32>
    %811 = arith.mulf %809, %810 : vector<16x1xf32>
    %812 = math.sqrt %811 : vector<16x1xf32>
    %cst_344 = arith.constant 9.99999997E-7 : f32
    %813 = vector.broadcast %cst_344 : f32 to vector<16x1xf32>
    %814 = arith.addf %812, %813 : vector<16x1xf32>
    %815 = math.rsqrt %814 : vector<16x1xf32>
    %816 = vector.broadcast %815 : vector<16x1xf32> to vector<16x32xf32>
    %817 = arith.mulf %807, %816 : vector<16x32xf32>
    %818 = vector.broadcast %800 : vector<1x32xf32> to vector<16x32xf32>
    %819 = arith.mulf %818, %817 : vector<16x32xf32>
    %820 = vector.broadcast %802 : vector<1x32xf32> to vector<16x32xf32>
    %821 = arith.addf %819, %820 : vector<16x32xf32>
    %822 = arith.truncf %821 : vector<16x32xf32> to vector<16x32xbf16>
    %c4_345 = arith.constant 4 : index
    %c0_346 = arith.constant 0 : index
    %c0_347 = arith.constant 0 : index
    %823 = vector.load %arg10[%c4_345, %c0_346, %c0_347] : memref<6x32x128xbf16, #tpu.memory_space<vmem>>, vector<1x32x128xbf16>
    %824 = vector.shape_cast %823 : vector<1x32x128xbf16> to vector<32x128xbf16>
    %cst_348 = arith.constant dense<0.000000e+00> : vector<16x128xf32>
    %825 = tpu.matmul %822, %824, %cst_348 {dimension_numbers = #tpu.dot_dimension_numbers<[1], [0], [0], [1], [0, 0, 1, 1], [], []>} : vector<16x32xbf16>, vector<32x128xbf16>, vector<16x128xf32> -> vector<16x128xf32>
    %c4_349 = arith.constant 4 : index
    %c0_350 = arith.constant 0 : index
    %c0_351 = arith.constant 0 : index
    %826 = vector.load %arg11[%c4_349, %c0_350, %c0_351] : memref<6x1x128xf32, #tpu.memory_space<vmem>>, vector<1x1x128xf32>
    %827 = vector.shape_cast %826 : vector<1x1x128xf32> to vector<1x128xf32>
    %828 = vector.broadcast %827 : vector<1x128xf32> to vector<16x128xf32>
    %829 = arith.addf %825, %828 : vector<16x128xf32>
    %cst_352 = arith.constant 0.000000e+00 : f32
    %830 = vector.broadcast %cst_352 : f32 to vector<16x128xf32>
    %831 = arith.maximumf %829, %830 : vector<16x128xf32>
    %832 = arith.truncf %831 : vector<16x128xf32> to vector<16x128xbf16>
    %c4_353 = arith.constant 4 : index
    %c0_354 = arith.constant 0 : index
    %c0_355 = arith.constant 0 : index
    %833 = vector.load %arg12[%c4_353, %c0_354, %c0_355] : memref<6x128x32xbf16, #tpu.memory_space<vmem>>, vector<1x128x32xbf16>
    %834 = vector.shape_cast %833 : vector<1x128x32xbf16> to vector<128x32xbf16>
    %cst_356 = arith.constant dense<0.000000e+00> : vector<16x32xf32>
    %835 = tpu.matmul %832, %834, %cst_356 {dimension_numbers = #tpu.dot_dimension_numbers<[1], [0], [0], [1], [0, 0, 1, 1], [], []>} : vector<16x128xbf16>, vector<128x32xbf16>, vector<16x32xf32> -> vector<16x32xf32>
    %c4_357 = arith.constant 4 : index
    %c0_358 = arith.constant 0 : index
    %c0_359 = arith.constant 0 : index
    %836 = vector.load %arg13[%c4_357, %c0_358, %c0_359] : memref<6x1x32xf32, #tpu.memory_space<vmem>>, vector<1x1x32xf32>
    %837 = vector.shape_cast %836 : vector<1x1x32xf32> to vector<1x32xf32>
    %838 = vector.broadcast %837 : vector<1x32xf32> to vector<16x32xf32>
    %839 = arith.addf %835, %838 : vector<16x32xf32>
    %840 = arith.addf %798, %839 : vector<16x32xf32>
    %c5 = arith.constant 5 : index
    %c0_360 = arith.constant 0 : index
    %c0_361 = arith.constant 0 : index
    %841 = vector.load %arg3[%c5, %c0_360, %c0_361] : memref<6x1x32xf32, #tpu.memory_space<vmem>>, vector<1x1x32xf32>
    %842 = vector.shape_cast %841 : vector<1x1x32xf32> to vector<1x32xf32>
    %c5_362 = arith.constant 5 : index
    %c0_363 = arith.constant 0 : index
    %c0_364 = arith.constant 0 : index
    %843 = vector.load %arg4[%c5_362, %c0_363, %c0_364] : memref<6x1x32xf32, #tpu.memory_space<vmem>>, vector<1x1x32xf32>
    %844 = vector.shape_cast %843 : vector<1x1x32xf32> to vector<1x32xf32>
    %cst_365 = arith.constant dense<0.000000e+00> : vector<16x1xf32>
    %845 = tpu.matmul %840, %11, %cst_365 {dimension_numbers = #tpu.dot_dimension_numbers<[1], [0], [0], [1], [0, 0, 1, 1], [], []>} : vector<16x32xf32>, vector<32x1xf32>, vector<16x1xf32> -> vector<16x1xf32>
    %cst_366 = arith.constant 3.125000e-02 : f32
    %846 = vector.broadcast %cst_366 : f32 to vector<16x1xf32>
    %847 = arith.mulf %845, %846 : vector<16x1xf32>
    %848 = vector.broadcast %847 : vector<16x1xf32> to vector<16x32xf32>
    %849 = arith.subf %840, %848 : vector<16x32xf32>
    %850 = arith.mulf %849, %849 : vector<16x32xf32>
    %cst_367 = arith.constant dense<0.000000e+00> : vector<16x1xf32>
    %851 = tpu.matmul %850, %11, %cst_367 {dimension_numbers = #tpu.dot_dimension_numbers<[1], [0], [0], [1], [0, 0, 1, 1], [], []>} : vector<16x32xf32>, vector<32x1xf32>, vector<16x1xf32> -> vector<16x1xf32>
    %cst_368 = arith.constant 0.0322580636 : f32
    %852 = vector.broadcast %cst_368 : f32 to vector<16x1xf32>
    %853 = arith.mulf %851, %852 : vector<16x1xf32>
    %854 = math.sqrt %853 : vector<16x1xf32>
    %cst_369 = arith.constant 9.99999997E-7 : f32
    %855 = vector.broadcast %cst_369 : f32 to vector<16x1xf32>
    %856 = arith.addf %854, %855 : vector<16x1xf32>
    %857 = math.rsqrt %856 : vector<16x1xf32>
    %858 = vector.broadcast %857 : vector<16x1xf32> to vector<16x32xf32>
    %859 = arith.mulf %849, %858 : vector<16x32xf32>
    %860 = vector.broadcast %842 : vector<1x32xf32> to vector<16x32xf32>
    %861 = arith.mulf %860, %859 : vector<16x32xf32>
    %862 = vector.broadcast %844 : vector<1x32xf32> to vector<16x32xf32>
    %863 = arith.addf %861, %862 : vector<16x32xf32>
    %c5_370 = arith.constant 5 : index
    %c0_371 = arith.constant 0 : index
    %c0_372 = arith.constant 0 : index
    %864 = vector.load %arg5[%c5_370, %c0_371, %c0_372] : memref<6x32x96xbf16, #tpu.memory_space<vmem>>, vector<1x32x96xbf16>
    %865 = vector.shape_cast %864 : vector<1x32x96xbf16> to vector<32x96xbf16>
    %866 = arith.truncf %863 : vector<16x32xf32> to vector<16x32xbf16>
    %cst_373 = arith.constant dense<0.000000e+00> : vector<16x96xf32>
    %867 = tpu.matmul %866, %865, %cst_373 {dimension_numbers = #tpu.dot_dimension_numbers<[1], [0], [0], [1], [0, 0, 1, 1], [], []>} : vector<16x32xbf16>, vector<32x96xbf16>, vector<16x96xf32> -> vector<16x96xf32>
    %868 = vector.shape_cast %867 : vector<16x96xf32> to vector<2x8x96xf32>
    %c5_374 = arith.constant 5 : index
    %c0_375 = arith.constant 0 : index
    %c0_376 = arith.constant 0 : index
    %869 = vector.load %arg6[%c5_374, %c0_375, %c0_376] : memref<6x32x32xbf16, #tpu.memory_space<vmem>>, vector<1x32x32xbf16>
    %870 = vector.shape_cast %869 : vector<1x32x32xbf16> to vector<32x32xbf16>
    %871 = vector.extract_strided_slice %868 {offsets = [0, 0, 0], sizes = [2, 8, 8], strides = [1, 1, 1]} : vector<2x8x96xf32> to vector<2x8x8xf32>
    %872 = vector.extract_strided_slice %868 {offsets = [0, 0, 32], sizes = [2, 8, 8], strides = [1, 1, 1]} : vector<2x8x96xf32> to vector<2x8x8xf32>
    %873 = vector.extract_strided_slice %868 {offsets = [0, 0, 64], sizes = [2, 8, 8], strides = [1, 1, 1]} : vector<2x8x96xf32> to vector<2x8x8xf32>
    "tpu.trace_start"() <{level = 10 : i32, message = "bqd,bkd->bqk"}> : () -> ()
    %cst_377 = arith.constant dense<0.000000e+00> : vector<2x8x8xf32>
    %874 = tpu.matmul %871, %872, %cst_377 {dimension_numbers = #tpu.dot_dimension_numbers<[2], [2], [1], [1], [0, 0, 0, 1, 1, 1], [0], [0]>} : vector<2x8x8xf32>, vector<2x8x8xf32>, vector<2x8x8xf32> -> vector<2x8x8xf32>
    "tpu.trace_stop"() : () -> ()
    %cst_378 = arith.constant 0.176776692 : f32
    %875 = vector.broadcast %cst_378 : f32 to vector<2x8x8xf32>
    %876 = arith.mulf %874, %875 : vector<2x8x8xf32>
    %877 = arith.addf %876, %20 : vector<2x8x8xf32>
    %cst_379 = arith.constant dense<0xFF800000> : vector<2x8xf32>
    %878 = vector.multi_reduction <maximumf>, %877, %cst_379 [2] : vector<2x8x8xf32> to vector<2x8xf32>
    %879 = vector.shape_cast %878 : vector<2x8xf32> to vector<2x8x1xf32>
    %880 = vector.broadcast %879 : vector<2x8x1xf32> to vector<2x8x8xf32>
    %881 = arith.subf %877, %880 : vector<2x8x8xf32>
    %882 = math.exp %881 : vector<2x8x8xf32>
    "tpu.trace_start"() <{level = 10 : i32, message = "bqk,bkd->bqd"}> : () -> ()
    %cst_380 = arith.constant dense<0.000000e+00> : vector<2x8x8xf32>
    %883 = tpu.matmul %882, %873, %cst_380 {dimension_numbers = #tpu.dot_dimension_numbers<[2], [1], [1], [2], [0, 0, 0, 1, 1, 2], [0], [0]>} : vector<2x8x8xf32>, vector<2x8x8xf32>, vector<2x8x8xf32> -> vector<2x8x8xf32>
    "tpu.trace_stop"() : () -> ()
    "tpu.trace_start"() <{level = 10 : i32, message = "bqk,bko->bqo"}> : () -> ()
    %cst_381 = arith.constant dense<0.000000e+00> : vector<2x8x1xf32>
    %884 = tpu.matmul %882, %12, %cst_381 {dimension_numbers = #tpu.dot_dimension_numbers<[2], [1], [1], [2], [0, 0, 0, 1, 1, 2], [0], [0]>} : vector<2x8x8xf32>, vector<2x8x1xf32>, vector<2x8x1xf32> -> vector<2x8x1xf32>
    "tpu.trace_stop"() : () -> ()
    %885 = tpu.reciprocal %884 {approx = true} : vector<2x8x1xf32> -> vector<2x8x1xf32>
    %886 = vector.broadcast %885 : vector<2x8x1xf32> to vector<2x8x8xf32>
    %887 = arith.mulf %883, %886 : vector<2x8x8xf32>
    %888 = vector.shape_cast %887 : vector<2x8x8xf32> to vector<16x8xf32>
    %889 = arith.truncf %888 : vector<16x8xf32> to vector<16x8xbf16>
    %890 = vector.extract_strided_slice %870 {offsets = [0, 0], sizes = [8, 32], strides = [1, 1]} : vector<32x32xbf16> to vector<8x32xbf16>
    %cst_382 = arith.constant dense<0.000000e+00> : vector<16x32xf32>
    %891 = tpu.matmul %889, %890, %cst_382 {dimension_numbers = #tpu.dot_dimension_numbers<[1], [0], [0], [1], [0, 0, 1, 1], [], []>} : vector<16x8xbf16>, vector<8x32xbf16>, vector<16x32xf32> -> vector<16x32xf32>
    %892 = vector.extract_strided_slice %868 {offsets = [0, 0, 8], sizes = [2, 8, 8], strides = [1, 1, 1]} : vector<2x8x96xf32> to vector<2x8x8xf32>
    %893 = vector.extract_strided_slice %868 {offsets = [0, 0, 40], sizes = [2, 8, 8], strides = [1, 1, 1]} : vector<2x8x96xf32> to vector<2x8x8xf32>
    %894 = vector.extract_strided_slice %868 {offsets = [0, 0, 72], sizes = [2, 8, 8], strides = [1, 1, 1]} : vector<2x8x96xf32> to vector<2x8x8xf32>
    "tpu.trace_start"() <{level = 10 : i32, message = "bqd,bkd->bqk"}> : () -> ()
    %cst_383 = arith.constant dense<0.000000e+00> : vector<2x8x8xf32>
    %895 = tpu.matmul %892, %893, %cst_383 {dimension_numbers = #tpu.dot_dimension_numbers<[2], [2], [1], [1], [0, 0, 0, 1, 1, 1], [0], [0]>} : vector<2x8x8xf32>, vector<2x8x8xf32>, vector<2x8x8xf32> -> vector<2x8x8xf32>
    "tpu.trace_stop"() : () -> ()
    %cst_384 = arith.constant 0.176776692 : f32
    %896 = vector.broadcast %cst_384 : f32 to vector<2x8x8xf32>
    %897 = arith.mulf %895, %896 : vector<2x8x8xf32>
    %898 = arith.addf %897, %20 : vector<2x8x8xf32>
    %cst_385 = arith.constant dense<0xFF800000> : vector<2x8xf32>
    %899 = vector.multi_reduction <maximumf>, %898, %cst_385 [2] : vector<2x8x8xf32> to vector<2x8xf32>
    %900 = vector.shape_cast %899 : vector<2x8xf32> to vector<2x8x1xf32>
    %901 = vector.broadcast %900 : vector<2x8x1xf32> to vector<2x8x8xf32>
    %902 = arith.subf %898, %901 : vector<2x8x8xf32>
    %903 = math.exp %902 : vector<2x8x8xf32>
    "tpu.trace_start"() <{level = 10 : i32, message = "bqk,bkd->bqd"}> : () -> ()
    %cst_386 = arith.constant dense<0.000000e+00> : vector<2x8x8xf32>
    %904 = tpu.matmul %903, %894, %cst_386 {dimension_numbers = #tpu.dot_dimension_numbers<[2], [1], [1], [2], [0, 0, 0, 1, 1, 2], [0], [0]>} : vector<2x8x8xf32>, vector<2x8x8xf32>, vector<2x8x8xf32> -> vector<2x8x8xf32>
    "tpu.trace_stop"() : () -> ()
    "tpu.trace_start"() <{level = 10 : i32, message = "bqk,bko->bqo"}> : () -> ()
    %cst_387 = arith.constant dense<0.000000e+00> : vector<2x8x1xf32>
    %905 = tpu.matmul %903, %12, %cst_387 {dimension_numbers = #tpu.dot_dimension_numbers<[2], [1], [1], [2], [0, 0, 0, 1, 1, 2], [0], [0]>} : vector<2x8x8xf32>, vector<2x8x1xf32>, vector<2x8x1xf32> -> vector<2x8x1xf32>
    "tpu.trace_stop"() : () -> ()
    %906 = tpu.reciprocal %905 {approx = true} : vector<2x8x1xf32> -> vector<2x8x1xf32>
    %907 = vector.broadcast %906 : vector<2x8x1xf32> to vector<2x8x8xf32>
    %908 = arith.mulf %904, %907 : vector<2x8x8xf32>
    %909 = vector.shape_cast %908 : vector<2x8x8xf32> to vector<16x8xf32>
    %910 = arith.truncf %909 : vector<16x8xf32> to vector<16x8xbf16>
    %911 = vector.extract_strided_slice %870 {offsets = [8, 0], sizes = [8, 32], strides = [1, 1]} : vector<32x32xbf16> to vector<8x32xbf16>
    %cst_388 = arith.constant dense<0.000000e+00> : vector<16x32xf32>
    %912 = tpu.matmul %910, %911, %cst_388 {dimension_numbers = #tpu.dot_dimension_numbers<[1], [0], [0], [1], [0, 0, 1, 1], [], []>} : vector<16x8xbf16>, vector<8x32xbf16>, vector<16x32xf32> -> vector<16x32xf32>
    %913 = arith.addf %891, %912 : vector<16x32xf32>
    %914 = vector.extract_strided_slice %868 {offsets = [0, 0, 16], sizes = [2, 8, 8], strides = [1, 1, 1]} : vector<2x8x96xf32> to vector<2x8x8xf32>
    %915 = vector.extract_strided_slice %868 {offsets = [0, 0, 48], sizes = [2, 8, 8], strides = [1, 1, 1]} : vector<2x8x96xf32> to vector<2x8x8xf32>
    %916 = vector.extract_strided_slice %868 {offsets = [0, 0, 80], sizes = [2, 8, 8], strides = [1, 1, 1]} : vector<2x8x96xf32> to vector<2x8x8xf32>
    "tpu.trace_start"() <{level = 10 : i32, message = "bqd,bkd->bqk"}> : () -> ()
    %cst_389 = arith.constant dense<0.000000e+00> : vector<2x8x8xf32>
    %917 = tpu.matmul %914, %915, %cst_389 {dimension_numbers = #tpu.dot_dimension_numbers<[2], [2], [1], [1], [0, 0, 0, 1, 1, 1], [0], [0]>} : vector<2x8x8xf32>, vector<2x8x8xf32>, vector<2x8x8xf32> -> vector<2x8x8xf32>
    "tpu.trace_stop"() : () -> ()
    %cst_390 = arith.constant 0.176776692 : f32
    %918 = vector.broadcast %cst_390 : f32 to vector<2x8x8xf32>
    %919 = arith.mulf %917, %918 : vector<2x8x8xf32>
    %920 = arith.addf %919, %20 : vector<2x8x8xf32>
    %cst_391 = arith.constant dense<0xFF800000> : vector<2x8xf32>
    %921 = vector.multi_reduction <maximumf>, %920, %cst_391 [2] : vector<2x8x8xf32> to vector<2x8xf32>
    %922 = vector.shape_cast %921 : vector<2x8xf32> to vector<2x8x1xf32>
    %923 = vector.broadcast %922 : vector<2x8x1xf32> to vector<2x8x8xf32>
    %924 = arith.subf %920, %923 : vector<2x8x8xf32>
    %925 = math.exp %924 : vector<2x8x8xf32>
    "tpu.trace_start"() <{level = 10 : i32, message = "bqk,bkd->bqd"}> : () -> ()
    %cst_392 = arith.constant dense<0.000000e+00> : vector<2x8x8xf32>
    %926 = tpu.matmul %925, %916, %cst_392 {dimension_numbers = #tpu.dot_dimension_numbers<[2], [1], [1], [2], [0, 0, 0, 1, 1, 2], [0], [0]>} : vector<2x8x8xf32>, vector<2x8x8xf32>, vector<2x8x8xf32> -> vector<2x8x8xf32>
    "tpu.trace_stop"() : () -> ()
    "tpu.trace_start"() <{level = 10 : i32, message = "bqk,bko->bqo"}> : () -> ()
    %cst_393 = arith.constant dense<0.000000e+00> : vector<2x8x1xf32>
    %927 = tpu.matmul %925, %12, %cst_393 {dimension_numbers = #tpu.dot_dimension_numbers<[2], [1], [1], [2], [0, 0, 0, 1, 1, 2], [0], [0]>} : vector<2x8x8xf32>, vector<2x8x1xf32>, vector<2x8x1xf32> -> vector<2x8x1xf32>
    "tpu.trace_stop"() : () -> ()
    %928 = tpu.reciprocal %927 {approx = true} : vector<2x8x1xf32> -> vector<2x8x1xf32>
    %929 = vector.broadcast %928 : vector<2x8x1xf32> to vector<2x8x8xf32>
    %930 = arith.mulf %926, %929 : vector<2x8x8xf32>
    %931 = vector.shape_cast %930 : vector<2x8x8xf32> to vector<16x8xf32>
    %932 = arith.truncf %931 : vector<16x8xf32> to vector<16x8xbf16>
    %933 = vector.extract_strided_slice %870 {offsets = [16, 0], sizes = [8, 32], strides = [1, 1]} : vector<32x32xbf16> to vector<8x32xbf16>
    %cst_394 = arith.constant dense<0.000000e+00> : vector<16x32xf32>
    %934 = tpu.matmul %932, %933, %cst_394 {dimension_numbers = #tpu.dot_dimension_numbers<[1], [0], [0], [1], [0, 0, 1, 1], [], []>} : vector<16x8xbf16>, vector<8x32xbf16>, vector<16x32xf32> -> vector<16x32xf32>
    %935 = arith.addf %913, %934 : vector<16x32xf32>
    %936 = vector.extract_strided_slice %868 {offsets = [0, 0, 24], sizes = [2, 8, 8], strides = [1, 1, 1]} : vector<2x8x96xf32> to vector<2x8x8xf32>
    %937 = vector.extract_strided_slice %868 {offsets = [0, 0, 56], sizes = [2, 8, 8], strides = [1, 1, 1]} : vector<2x8x96xf32> to vector<2x8x8xf32>
    %938 = vector.extract_strided_slice %868 {offsets = [0, 0, 88], sizes = [2, 8, 8], strides = [1, 1, 1]} : vector<2x8x96xf32> to vector<2x8x8xf32>
    "tpu.trace_start"() <{level = 10 : i32, message = "bqd,bkd->bqk"}> : () -> ()
    %cst_395 = arith.constant dense<0.000000e+00> : vector<2x8x8xf32>
    %939 = tpu.matmul %936, %937, %cst_395 {dimension_numbers = #tpu.dot_dimension_numbers<[2], [2], [1], [1], [0, 0, 0, 1, 1, 1], [0], [0]>} : vector<2x8x8xf32>, vector<2x8x8xf32>, vector<2x8x8xf32> -> vector<2x8x8xf32>
    "tpu.trace_stop"() : () -> ()
    %cst_396 = arith.constant 0.176776692 : f32
    %940 = vector.broadcast %cst_396 : f32 to vector<2x8x8xf32>
    %941 = arith.mulf %939, %940 : vector<2x8x8xf32>
    %942 = arith.addf %941, %20 : vector<2x8x8xf32>
    %cst_397 = arith.constant dense<0xFF800000> : vector<2x8xf32>
    %943 = vector.multi_reduction <maximumf>, %942, %cst_397 [2] : vector<2x8x8xf32> to vector<2x8xf32>
    %944 = vector.shape_cast %943 : vector<2x8xf32> to vector<2x8x1xf32>
    %945 = vector.broadcast %944 : vector<2x8x1xf32> to vector<2x8x8xf32>
    %946 = arith.subf %942, %945 : vector<2x8x8xf32>
    %947 = math.exp %946 : vector<2x8x8xf32>
    "tpu.trace_start"() <{level = 10 : i32, message = "bqk,bkd->bqd"}> : () -> ()
    %cst_398 = arith.constant dense<0.000000e+00> : vector<2x8x8xf32>
    %948 = tpu.matmul %947, %938, %cst_398 {dimension_numbers = #tpu.dot_dimension_numbers<[2], [1], [1], [2], [0, 0, 0, 1, 1, 2], [0], [0]>} : vector<2x8x8xf32>, vector<2x8x8xf32>, vector<2x8x8xf32> -> vector<2x8x8xf32>
    "tpu.trace_stop"() : () -> ()
    "tpu.trace_start"() <{level = 10 : i32, message = "bqk,bko->bqo"}> : () -> ()
    %cst_399 = arith.constant dense<0.000000e+00> : vector<2x8x1xf32>
    %949 = tpu.matmul %947, %12, %cst_399 {dimension_numbers = #tpu.dot_dimension_numbers<[2], [1], [1], [2], [0, 0, 0, 1, 1, 2], [0], [0]>} : vector<2x8x8xf32>, vector<2x8x1xf32>, vector<2x8x1xf32> -> vector<2x8x1xf32>
    "tpu.trace_stop"() : () -> ()
    %950 = tpu.reciprocal %949 {approx = true} : vector<2x8x1xf32> -> vector<2x8x1xf32>
    %951 = vector.broadcast %950 : vector<2x8x1xf32> to vector<2x8x8xf32>
    %952 = arith.mulf %948, %951 : vector<2x8x8xf32>
    %953 = vector.shape_cast %952 : vector<2x8x8xf32> to vector<16x8xf32>
    %954 = arith.truncf %953 : vector<16x8xf32> to vector<16x8xbf16>
    %955 = vector.extract_strided_slice %870 {offsets = [24, 0], sizes = [8, 32], strides = [1, 1]} : vector<32x32xbf16> to vector<8x32xbf16>
    %cst_400 = arith.constant dense<0.000000e+00> : vector<16x32xf32>
    %956 = tpu.matmul %954, %955, %cst_400 {dimension_numbers = #tpu.dot_dimension_numbers<[1], [0], [0], [1], [0, 0, 1, 1], [], []>} : vector<16x8xbf16>, vector<8x32xbf16>, vector<16x32xf32> -> vector<16x32xf32>
    %957 = arith.addf %935, %956 : vector<16x32xf32>
    %958 = arith.addf %840, %957 : vector<16x32xf32>
    %c5_401 = arith.constant 5 : index
    %c0_402 = arith.constant 0 : index
    %c0_403 = arith.constant 0 : index
    %959 = vector.load %arg7[%c5_401, %c0_402, %c0_403] : memref<6x1x32xf32, #tpu.memory_space<vmem>>, vector<1x1x32xf32>
    %960 = vector.shape_cast %959 : vector<1x1x32xf32> to vector<1x32xf32>
    %961 = vector.broadcast %960 : vector<1x32xf32> to vector<16x32xf32>
    %962 = arith.addf %958, %961 : vector<16x32xf32>
    %c5_404 = arith.constant 5 : index
    %c0_405 = arith.constant 0 : index
    %c0_406 = arith.constant 0 : index
    %963 = vector.load %arg8[%c5_404, %c0_405, %c0_406] : memref<6x1x32xf32, #tpu.memory_space<vmem>>, vector<1x1x32xf32>
    %964 = vector.shape_cast %963 : vector<1x1x32xf32> to vector<1x32xf32>
    %c5_407 = arith.constant 5 : index
    %c0_408 = arith.constant 0 : index
    %c0_409 = arith.constant 0 : index
    %965 = vector.load %arg9[%c5_407, %c0_408, %c0_409] : memref<6x1x32xf32, #tpu.memory_space<vmem>>, vector<1x1x32xf32>
    %966 = vector.shape_cast %965 : vector<1x1x32xf32> to vector<1x32xf32>
    %cst_410 = arith.constant dense<0.000000e+00> : vector<16x1xf32>
    %967 = tpu.matmul %962, %11, %cst_410 {dimension_numbers = #tpu.dot_dimension_numbers<[1], [0], [0], [1], [0, 0, 1, 1], [], []>} : vector<16x32xf32>, vector<32x1xf32>, vector<16x1xf32> -> vector<16x1xf32>
    %cst_411 = arith.constant 3.125000e-02 : f32
    %968 = vector.broadcast %cst_411 : f32 to vector<16x1xf32>
    %969 = arith.mulf %967, %968 : vector<16x1xf32>
    %970 = vector.broadcast %969 : vector<16x1xf32> to vector<16x32xf32>
    %971 = arith.subf %962, %970 : vector<16x32xf32>
    %972 = arith.mulf %971, %971 : vector<16x32xf32>
    %cst_412 = arith.constant dense<0.000000e+00> : vector<16x1xf32>
    %973 = tpu.matmul %972, %11, %cst_412 {dimension_numbers = #tpu.dot_dimension_numbers<[1], [0], [0], [1], [0, 0, 1, 1], [], []>} : vector<16x32xf32>, vector<32x1xf32>, vector<16x1xf32> -> vector<16x1xf32>
    %cst_413 = arith.constant 0.0322580636 : f32
    %974 = vector.broadcast %cst_413 : f32 to vector<16x1xf32>
    %975 = arith.mulf %973, %974 : vector<16x1xf32>
    %976 = math.sqrt %975 : vector<16x1xf32>
    %cst_414 = arith.constant 9.99999997E-7 : f32
    %977 = vector.broadcast %cst_414 : f32 to vector<16x1xf32>
    %978 = arith.addf %976, %977 : vector<16x1xf32>
    %979 = math.rsqrt %978 : vector<16x1xf32>
    %980 = vector.broadcast %979 : vector<16x1xf32> to vector<16x32xf32>
    %981 = arith.mulf %971, %980 : vector<16x32xf32>
    %982 = vector.broadcast %964 : vector<1x32xf32> to vector<16x32xf32>
    %983 = arith.mulf %982, %981 : vector<16x32xf32>
    %984 = vector.broadcast %966 : vector<1x32xf32> to vector<16x32xf32>
    %985 = arith.addf %983, %984 : vector<16x32xf32>
    %986 = arith.truncf %985 : vector<16x32xf32> to vector<16x32xbf16>
    %c5_415 = arith.constant 5 : index
    %c0_416 = arith.constant 0 : index
    %c0_417 = arith.constant 0 : index
    %987 = vector.load %arg10[%c5_415, %c0_416, %c0_417] : memref<6x32x128xbf16, #tpu.memory_space<vmem>>, vector<1x32x128xbf16>
    %988 = vector.shape_cast %987 : vector<1x32x128xbf16> to vector<32x128xbf16>
    %cst_418 = arith.constant dense<0.000000e+00> : vector<16x128xf32>
    %989 = tpu.matmul %986, %988, %cst_418 {dimension_numbers = #tpu.dot_dimension_numbers<[1], [0], [0], [1], [0, 0, 1, 1], [], []>} : vector<16x32xbf16>, vector<32x128xbf16>, vector<16x128xf32> -> vector<16x128xf32>
    %c5_419 = arith.constant 5 : index
    %c0_420 = arith.constant 0 : index
    %c0_421 = arith.constant 0 : index
    %990 = vector.load %arg11[%c5_419, %c0_420, %c0_421] : memref<6x1x128xf32, #tpu.memory_space<vmem>>, vector<1x1x128xf32>
    %991 = vector.shape_cast %990 : vector<1x1x128xf32> to vector<1x128xf32>
    %992 = vector.broadcast %991 : vector<1x128xf32> to vector<16x128xf32>
    %993 = arith.addf %989, %992 : vector<16x128xf32>
    %cst_422 = arith.constant 0.000000e+00 : f32
    %994 = vector.broadcast %cst_422 : f32 to vector<16x128xf32>
    %995 = arith.maximumf %993, %994 : vector<16x128xf32>
    %996 = arith.truncf %995 : vector<16x128xf32> to vector<16x128xbf16>
    %c5_423 = arith.constant 5 : index
    %c0_424 = arith.constant 0 : index
    %c0_425 = arith.constant 0 : index
    %997 = vector.load %arg12[%c5_423, %c0_424, %c0_425] : memref<6x128x32xbf16, #tpu.memory_space<vmem>>, vector<1x128x32xbf16>
    %998 = vector.shape_cast %997 : vector<1x128x32xbf16> to vector<128x32xbf16>
    %cst_426 = arith.constant dense<0.000000e+00> : vector<16x32xf32>
    %999 = tpu.matmul %996, %998, %cst_426 {dimension_numbers = #tpu.dot_dimension_numbers<[1], [0], [0], [1], [0, 0, 1, 1], [], []>} : vector<16x128xbf16>, vector<128x32xbf16>, vector<16x32xf32> -> vector<16x32xf32>
    %c5_427 = arith.constant 5 : index
    %c0_428 = arith.constant 0 : index
    %c0_429 = arith.constant 0 : index
    %1000 = vector.load %arg13[%c5_427, %c0_428, %c0_429] : memref<6x1x32xf32, #tpu.memory_space<vmem>>, vector<1x1x32xf32>
    %1001 = vector.shape_cast %1000 : vector<1x1x32xf32> to vector<1x32xf32>
    %1002 = vector.broadcast %1001 : vector<1x32xf32> to vector<16x32xf32>
    %1003 = arith.addf %999, %1002 : vector<16x32xf32>
    %1004 = arith.addf %962, %1003 : vector<16x32xf32>
    %c0_430 = arith.constant 0 : index
    %c0_431 = arith.constant 0 : index
    %1005 = vector.load %arg14[%c0_430, %c0_431] : memref<1x32xf32, #tpu.memory_space<vmem>>, vector<1x32xf32>
    %c0_432 = arith.constant 0 : index
    %c0_433 = arith.constant 0 : index
    %1006 = vector.load %arg15[%c0_432, %c0_433] : memref<1x32xf32, #tpu.memory_space<vmem>>, vector<1x32xf32>
    %cst_434 = arith.constant dense<0.000000e+00> : vector<16x1xf32>
    %1007 = tpu.matmul %1004, %11, %cst_434 {dimension_numbers = #tpu.dot_dimension_numbers<[1], [0], [0], [1], [0, 0, 1, 1], [], []>} : vector<16x32xf32>, vector<32x1xf32>, vector<16x1xf32> -> vector<16x1xf32>
    %cst_435 = arith.constant 3.125000e-02 : f32
    %1008 = vector.broadcast %cst_435 : f32 to vector<16x1xf32>
    %1009 = arith.mulf %1007, %1008 : vector<16x1xf32>
    %1010 = vector.broadcast %1009 : vector<16x1xf32> to vector<16x32xf32>
    %1011 = arith.subf %1004, %1010 : vector<16x32xf32>
    %1012 = arith.mulf %1011, %1011 : vector<16x32xf32>
    %cst_436 = arith.constant dense<0.000000e+00> : vector<16x1xf32>
    %1013 = tpu.matmul %1012, %11, %cst_436 {dimension_numbers = #tpu.dot_dimension_numbers<[1], [0], [0], [1], [0, 0, 1, 1], [], []>} : vector<16x32xf32>, vector<32x1xf32>, vector<16x1xf32> -> vector<16x1xf32>
    %cst_437 = arith.constant 0.0322580636 : f32
    %1014 = vector.broadcast %cst_437 : f32 to vector<16x1xf32>
    %1015 = arith.mulf %1013, %1014 : vector<16x1xf32>
    %1016 = math.sqrt %1015 : vector<16x1xf32>
    %cst_438 = arith.constant 9.99999997E-7 : f32
    %1017 = vector.broadcast %cst_438 : f32 to vector<16x1xf32>
    %1018 = arith.addf %1016, %1017 : vector<16x1xf32>
    %1019 = math.rsqrt %1018 : vector<16x1xf32>
    %1020 = vector.broadcast %1019 : vector<16x1xf32> to vector<16x32xf32>
    %1021 = arith.mulf %1011, %1020 : vector<16x32xf32>
    %1022 = vector.broadcast %1005 : vector<1x32xf32> to vector<16x32xf32>
    %1023 = arith.mulf %1022, %1021 : vector<16x32xf32>
    %1024 = vector.broadcast %1006 : vector<1x32xf32> to vector<16x32xf32>
    %1025 = arith.addf %1023, %1024 : vector<16x32xf32>
    %1026 = arith.truncf %1025 : vector<16x32xf32> to vector<16x32xbf16>
    %c0_439 = arith.constant 0 : index
    %c0_440 = arith.constant 0 : index
    %1027 = vector.load %arg16[%c0_439, %c0_440] : memref<32x128xbf16, #tpu.memory_space<vmem>>, vector<32x128xbf16>
    %cst_441 = arith.constant dense<0.000000e+00> : vector<16x128xf32>
    %1028 = tpu.matmul %1026, %1027, %cst_441 {dimension_numbers = #tpu.dot_dimension_numbers<[1], [0], [0], [1], [0, 0, 1, 1], [], []>} : vector<16x32xbf16>, vector<32x128xbf16>, vector<16x128xf32> -> vector<16x128xf32>
    %c0_442 = arith.constant 0 : index
    %c0_443 = arith.constant 0 : index
    %1029 = vector.load %arg17[%c0_442, %c0_443] : memref<1x128xf32, #tpu.memory_space<vmem>>, vector<1x128xf32>
    %1030 = vector.broadcast %1029 : vector<1x128xf32> to vector<16x128xf32>
    %1031 = arith.addf %1028, %1030 : vector<16x128xf32>
    %c0_444 = arith.constant 0 : index
    %c0_445 = arith.constant 0 : index
    %1032 = vector.load %arg18[%c0_444, %c0_445] : memref<16x128xf32, #tpu.memory_space<vmem>>, vector<16x128xf32>
    tpu.vector_store %arg18[%c0_444, %c0_445], %1031 {strides = array<i32>} : memref<16x128xf32, #tpu.memory_space<vmem>>, vector<16x128xf32>,
    return
  }
}

</mosaic_0001>

<bundles_post_ra>
// kernel: bigram_forward.1
= control target key start
LH: loop header
LB: loop body
LE: loop exit
PB: predicated region body
PF: predicated region fallthrough
CT: control target
= control target key end

     0   :  { %v20545_v0 = vmov 0   ;;  %v20546_v14 = vmov 1.0|1.0   ;;  %v20547_v16 = vmov 0.0   ;;  %v62_v17 = vlaneseq  ;;  %s22831_s20 = smov 120   ;;  %s22827_s24 = smov 80   ;;  %s22796_s0 = inlined_call_operand.vmem [shape: s32[16,1], index: 0, kind: input, shape index: {}]   ;;  %s22797_s1 = inlined_call_operand.vmem [shape: f32[64,32], index: 1, kind: input, shape index: {}]   ;;  %s22798_s2 = inlined_call_operand.vmem [shape: f32[64,32], index: 2, kind: input, shape index: {}]   ;;  %s22799_s5 = inlined_call_operand.vmem [shape: bf16[6,32,96], index: 5, kind: input, shape index: {}]   ;;  %s22800_s3 = inlined_call_operand.vmem [shape: f32[6,1,32], index: 3, kind: input, shape index: {}]   ;;  %s22801_s4 = inlined_call_operand.vmem [shape: f32[6,1,32], index: 4, kind: input, shape index: {}]   ;;  %s22802_s6 = inlined_call_operand.vmem [shape: bf16[6,32,32], index: 6, kind: input, shape index: {}]   ;;  %s22803_s7 = inlined_call_operand.vmem [shape: f32[6,1,32], index: 7, kind: input, shape index: {}]   ;;  %s22804_s10 = inlined_call_operand.vmem [shape: bf16[6,32,128], index: 10, kind: input, shape index: {}]   ;;  %s22805_s12 = inlined_call_operand.vmem [shape: bf16[6,128,32], index: 12, kind: input, shape index: {}]   ;;  %s22806_s8 = inlined_call_operand.vmem [shape: f32[6,1,32], index: 8, kind: input, shape index: {}]   ;;  %s22807_s9 = inlined_call_operand.vmem [shape: f32[6,1,32], index: 9, kind: input, shape index: {}]   ;;  %s22808_s11 = inlined_call_operand.vmem [shape: f32[6,1,128], index: 11, kind: input, shape index: {}]   ;;  %s22809_s13 = inlined_call_operand.vmem [shape: f32[6,1,32], index: 13, kind: input, shape index: {}]   ;;  %s22810_s16 = inlined_call_operand.vmem [shape: bf16[32,128], index: 16, kind: input, shape index: {}]   ;;  %s22811_s14 = inlined_call_operand.vmem [shape: f32[1,32], index: 14, kind: input, shape index: {}]   ;;  %s22812_s15 = inlined_call_operand.vmem [shape: f32[1,32], index: 15, kind: input, shape index: {}]   ;;  %s22813_s17 = inlined_call_operand.vmem [shape: f32[1,128], index: 17, kind: input, shape index: {}]   ;;  %s22814_s18 = inlined_call_operand.vmem [shape: f32[16,128], index: 18, kind: output, shape index: {}]  }
   0x1   :  { %22840 = sst [smem:[#allocation2_spill]] %s22796_s0  ;;  %20173 = vset.pattern.permute.xlu0 %v20545_v0  ;;  %20174 = vset.pattern.permute.xlu1 %v20545_v0  ;;  %vm85_vm0 = vcmask 523264   ;;  %vm173_vm3 = vcmask 261120   ;;  %v20175_v56 = vld [vmem:[%s22799_s5] sm:$0xff]   ;;  %v20176_v57 = vld [vmem:[%s22799_s5 + $0x8] sm:$0xff]   ;;  %vm20548_vm8 = vmmov 0  }
   0x2   :  { %22841 = sst [smem:[#allocation3_spill]] %s22797_s1  ;;  %s22847_s29 = sld [smem:[#allocation2_spill]]  ;;  %20052 = vmatprep.subr.bf16.mxu1 %v20546_v14  ;;  %v20694_v18 = vand.u32 127, %v62_v17  ;;  %v17477_v58 = vld [vmem:[%s22800_s3] ss:$0 sm:$0xff]  ;;  %vm468_vm9 = vcmask 64512  }
   0x3   :  { %22842 = sst [smem:[#allocation4_spill]] %s22798_s2  ;;  %s22848_s19 = sld [smem:[#allocation3_spill]]  ;;  %20053 = vmatpush3.bf16.msra.mxu1 %v20546_v14  ;;  %v17478_v62 = vld [vmem:[%s22801_s4] ss:$0 sm:$0xff]  ;;  %vm1425_vm11 = vcmask 1043456  }
   0x4   :  { %22843 = sst [smem:[#allocation5_spill]] %s22811_s14  ;;  %20054 = vmatprep.subr.bf16.mxu1 %v20546_v14  ;;  %s22849_s22 = sld [smem:[#allocation4_spill]] }
   0x5   :  { %22844 = sst [smem:[#allocation6_spill]] %s22812_s15  ;;  %s22837_s0 = smov 96  }
   0x6   :  { %22845 = sst [smem:[#allocation7_spill]] %s22813_s17  ;;  %s22835_s1 = smov 64  }
   0x7   :  { %22846 = sst [smem:[#allocation8_spill]] %s22814_s18  ;;  %20055 = vmatpush3.bf16.msra.mxu1 %v20546_v14  ;;  %s22825_s25 = smov 112  }
   0x8   :  { %v60_v1 = vld [vmem:[%s22847_s29] sm:$0xff]  ;;  %v61_v6 = vld [vmem:[%s22847_s29 + $0x8] sm:$0xff]  ;;  %20056 = vmatprep.subr.bf16.mxu1 %v20546_v14  ;;  %s22833_s29 = smov 88   ;;  %s22823_s26 = smov 72  }
   0x9   :  { %v76_v2 = vld [vmem:[%s22848_s19] sm:$0xff]  ;;  %65 = vperm.xlu0 %20173, %v60_v1   ;;  %v77_v3 = vld [vmem:[%s22848_s19 + $0x8] sm:$0xff]  ;;  %v78_v4 = vld [vmem:[%s22848_s19 + $0x10] sm:$0xff]  ;;  %s22821_s27 = smov 48   ;;  %s22819_s28 = smov 104  }
   0xa   :  { %v79_v5 = vld [vmem:[%s22848_s19 + $0x18] sm:$0xff]  ;;  %v20036_v7 = vpack.c.bf16 %v77_v3, %v76_v2  ;;  %v80_v9 = vld [vmem:[%s22848_s19 + $0x20] sm:$0xff]  ;;  %v81_v10 = vld [vmem:[%s22848_s19 + $0x28] sm:$0xff]  ;;  %s22850_s2 = smov 72   ;;  %s22851_s23 = smov 48  }
   0xb   :  { %v20040_v8 = vpack.c.bf16 %v79_v5, %v78_v4  ;;  %v20044_v11 = vpack.c.bf16 %v81_v10, %v80_v9  ;;  %v82_v12 = vld [vmem:[%s22848_s19 + $0x30] sm:$0xff]  ;;  %v83_v13 = vld [vmem:[%s22848_s19 + $0x38] sm:$0xff]  ;;  %v84_v23 = vld [vmem:[%s22849_s22] sm:$0xff]  ;;  %s22829_s19 = smov 56   ;;  %s22817_s22 = smov 40  }
   0xc   :  { %20037 = vmatprep.subr.bf16.mxu0 %v20036_v7  ;;  %v20048_v15 = vpack.c.bf16 %v83_v13, %v82_v12  ;;  %v168_v12 = vshrl.u32 %v62_v17, 7  ;;  %v20551_v13 = vmov -1e+09   ;;  %s22852_s30 = smov 104   ;;  %s22856_s21 = smov 80  }
   0xd   :  { %68 = vperm.xlu0 %20173, %v61_v6   ;;  %20039 = vmatpush3.bf16.msra.mxu0 %v20036_v7  ;;  %s22859_s18 = smov 64   ;;  %s22863_s14 = sld [smem:[#allocation7_spill]] }
   0xe   :  { %20041 = vmatprep.subr.bf16.mxu0 %v20040_v8  ;;  %vm169_vm10 = vcmp.le.s32.totalorder %v20694_v18, %v168_v12 }
  0x11   :  { %20043 = vmatpush3.bf16.msra.mxu0 %v20040_v8 }
  0x12   :  { %20045 = vmatprep.subr.bf16.mxu0 %v20044_v11 }
  0x15   :  { %20047 = vmatpush3.bf16.msra.mxu0 %v20044_v11 }
  0x16   :  { %20049 = vmatprep.subr.bf16.mxu0 %v20048_v15 }
  0x19   :  { %20051 = vmatpush3.bf16.msra.mxu0 %v20048_v15  ;;  %v20765_v15 = vsel %vm169_vm10, 0.0, %v20551_v13 }
  0x1a   :  { %18684 = vmatprep.subr.bf16.mxu0 %v20547_v16 }
  0x88   :  { %v66_v19 = vpop.permute.xlu0 %65 }
  0x89   :  { %vm70_vm1 = vcmp.eq.s32.totalorder %v20694_v18, %v66_v19 }
  0x8a   :  { %v17469_v20 = vsel %vm70_vm1, 1.0, %v20547_v16 }
  0x8b   :  { %18659 = vmatprep.mubr.msk.f32.mxu0 %vm85_vm0, %v17469_v20 }
  0x8c   :  { %v69_v21 = vpop.permute.xlu0 %68 }
  0x8d   :  { %vm71_vm2 = vcmp.eq.s32.totalorder %v20694_v18, %v69_v21 }
  0x8e   :  { %v17470_v22 = vsel %vm71_vm2, 1.0, %v20547_v16 }
  0x8f   :  { %18660 = vmatmul.mubr.msk.f32.vlgmr.msra.gmra.mrb[0].mxu0 %vm85_vm0, %v17470_v22 }
  0x90   :  { %18685 = vmatpush3.bf16.msra.mxu0 %v20175_v56  ;;  %18688 = vmatprep.mubr.msk.bf16.mxu0 %vm20548_vm8, %v20547_v16 }
  0x91   :  { %18686 = vmatprep.subr.bf16.mxu0 %v20547_v16 }
  0x94   :  { %18687 = vmatpush3.bf16.msra.mxu0 %v20176_v57 }
  0x95   :  { %18707 = vmatprep.subr.mxu0 %v20547_v16 }
 0x162   :  { %v18661_v24 = vpop.f32.mrb[0].mxu0 }
 0x163   :  { %v158_v25 = vpop.f32.mrb[1].mxu0  ;;  %v20705_v27 = vadd.f32 %v18661_v24, %v84_v23 }
 0x164   :  { %v20703_v26 = vadd.f32 %v158_v25, %v84_v23 }
 0x166   :  { %18670 = vmatprep.mubr.msk.f32.mxu1 %vm173_vm3, %v20703_v26 }
 0x167   :  { %18671 = vmatmul.mubr.msk.f32.vlgmr.msra.gmra.mrb[0].mxu1 %vm173_vm3, %v20705_v27 }
 0x168   :  { %20057 = vmatpush3.bf16.msra.mxu1 %v20546_v14 }
 0x169   :  { %20058 = vmatprep.subr.bf16.mxu1 %v20546_v14 }
 0x16c   :  { %20059 = vmatpush3.bf16.msra.mxu1 %v20546_v14 }
 0x16d   :  { %18692 = vmatprep.subr.mxu1 %v20547_v16 }
 0x23a   :  { %v18672_v28 = vpop.f32.mrb[0].mxu1 }
 0x23b   :  { %v246_v29 = vpop.f32.mrb[1].mxu1  ;;  %v256_v31 = vmul.f32 0.03125, %v18672_v28 }
 0x23c   :  { %v255_v30 = vmul.f32 0.03125, %v246_v29 }
 0x23e   :  { %259 = vperm.xlu1 %20174, %v255_v30  }
 0x242   :  { %264 = vperm.xlu1 %20174, %v256_v31  }
 0x2bd   :  { %v260_v32 = vpop.permute.xlu1 %259 }
 0x2be   :  { %v267_v33 = vsub.f32 %v20703_v26, %v260_v32 }
 0x2c0   :  { %v269_v34 = vmul.f32 %v267_v33, %v267_v33 }
 0x2c1   :  { %v265_v35 = vpop.permute.xlu1 %264 }
 0x2c2   :  { %v268_v36 = vsub.f32 %v20705_v27, %v265_v35  ;;  %18681 = vmatprep.mubr.msk.f32.mxu1 %vm173_vm3, %v269_v34 }
 0x2c4   :  { %v270_v37 = vmul.f32 %v268_v36, %v268_v36 }
 0x2c6   :  { %18682 = vmatmul.mubr.msk.f32.vlgmr.msra.gmra.mrb[2].mxu1 %vm173_vm3, %v270_v37  ;;  %v20554_v37 = vmov 1.0  }
 0x2c7   :  { %18694 = vmatprep.mubr.msk.f32.mxu1 %vm20548_vm8, %v20547_v16 }
 0x399   :  { %v18683_v38 = vpop.f32.mrb[2].mxu1 }
 0x39a   :  { %v353_v39 = vmul.f32 0.032258064, %v18683_v38  ;;  %v343_v40 = vpop.f32.mrb[3].mxu1 }
 0x39b   :  { %v352_v41 = vmul.f32 0.032258064, %v343_v40 }
 0x39c   :  { %20249 = vrsqrt.f32 %v353_v39  ;;  %vm363_vm4 = vcmp.eq.f32.partialorder %v353_v39, inf  ;;  %v366_v45 = vand.u32 2147483648, %v353_v39  ;;  %vm365_vm5 = vcmp.eq.f32.partialorder %v353_v39, 0.0 }
 0x39d   :  { %20251 = vrsqrt.f32 %v352_v41  ;;  %vm356_vm6 = vcmp.eq.f32.partialorder %v352_v41, inf  ;;  %v359_v48 = vand.u32 2147483648, %v352_v41  ;;  %vm358_vm7 = vcmp.eq.f32.partialorder %v352_v41, 0.0 }
 0x3a6   :  { %v20250_v42 = vpop.eup %20249 }
 0x3a7   :  { %v20252_v43 = vpop.eup %20251  ;;  %v362_v44 = vmul.f32 %v20250_v42, %v353_v39 }
 0x3a8   :  { %v355_v46 = vmul.f32 %v20252_v43, %v352_v41 }
 0x3a9   :  { %v364_v47 = vsel %vm363_vm4, %v353_v39, %v362_v44 }
 0x3aa   :  { %v367_v49 = vsel %vm365_vm5, %v366_v45, %v364_v47  ;;  %v357_v50 = vsel %vm356_vm6, %v352_v41, %v355_v46 }
 0x3ab   :  { %v369_v51 = vadd.f32 1e-06, %v367_v49  ;;  %v360_v52 = vsel %vm358_vm7, %v359_v48, %v357_v50 }
 0x3ac   :  { %v368_v53 = vadd.f32 1e-06, %v360_v52 }
 0x3ad   :  { %20253 = vrsqrt.f32 %v369_v51 }
 0x3ae   :  { %20255 = vrsqrt.f32 %v368_v53 }
 0x3b7   :  { %v20254_v54 = vpop.eup %20253 }
 0x3b8   :  { %v20256_v55 = vpop.eup %20255  ;;  %379 = vperm.xlu1 %20174, %v20254_v54  }
 0x3b9   :  { %374 = vperm.xlu0 %20173, %v20256_v55  }
 0x437   :  { %v380_v59 = vpop.permute.xlu1 %379 }
 0x438   :  { %v383_v60 = vmul.f32 %v380_v59, %v268_v36  ;;  %v375_v61 = vpop.permute.xlu0 %374 }
 0x439   :  { %v382_v63 = vmul.f32 %v375_v61, %v267_v33 }
 0x43a   :  { %v391_v0 = vmul.f32 %v17477_v58, %v383_v60 }
 0x43b   :  { %v390_v1 = vmul.f32 %v17477_v58, %v382_v63 }
 0x43c   :  { %v399_v2 = vadd.f32 %v17478_v62, %v391_v0 }
 0x43d   :  { %v398_v3 = vadd.f32 %v17478_v62, %v390_v1 }
 0x43f   :  { %v404_v4 = vpack.c.bf16 %v399_v2, %v398_v3 }
 0x441   :  { %18689 = vmatmul.mubr.msk.bf16.vlgmr.msra.gmra.mrb[4].mxu0 %vm173_vm3, %v404_v4 }
 0x442   :  { %18709 = vmatprep.mubr.msk.f32.mxu0 %vm20548_vm8, %v20547_v16 }
 0x514   :  { %v20740_v5 = vpop.f32.mrb[4].mxu0 }
 0x515   :  { %466 = vrot.lane.b32.xlu0 %v20740_v5, %s22837_s0  ;;  %v18690_v6 = vpop.f32.mrb[5].mxu0 }
 0x516   :  { %v20744_v7 = vpop.f32.mrb[6].mxu0 }
 0x517   :  { %544 = vrot.lane.b32.xlu1 %v20744_v7, %s22837_s0  ;;  %v18691_v8 = vpop.f32.mrb[7].mxu0 }
 0x51b   :  { %712 = vrot.lane.b32.xlu1 %v20744_v7, %s22835_s1 }
 0x587   :  { %v467_v9 = vpop.permute.xlu0 %466 }
 0x588   :  { %18693 = vmatpush3.xpose.msk.msra.mxu1 %vm468_vm9, %v467_v9 }
 0x589   :  { %v545_v10 = vpop.permute.xlu1 %544  ;;  %18697 = vmatprep.subr.mxu1 %v20547_v16 }
 0x58b   :  { %18695 = vmatmul.mubr.msk.f32.vlgmr.msra.gmra.mrb[4].mxu1 %vm468_vm9, %v20740_v5 }
 0x58c   :  { %18698 = vmatpush3.xpose.msk.msra.mxu1 %vm468_vm9, %v545_v10  ;;  %18699 = vmatprep.mubr.msk.f32.mxu1 %vm20548_vm8, %v20547_v16 }
 0x58d   :  { %v713_v11 = vpop.permute.xlu1 %712  ;;  %18702 = vmatprep.subr.mxu1 %v20547_v16 }
 0x58e   :  { %18708 = vmatpush3.msra.mxu0 %v713_v11 }
 0x58f   :  { %18700 = vmatmul.mubr.msk.f32.vlgmr.msra.gmra.mrb[6].mxu1 %vm468_vm9, %v20744_v7  ;;  %18717 = vmatprep.subr.mxu0 %v20547_v16 }
 0x590   :  { %18704 = vmatprep.mubr.msk.f32.mxu1 %vm20548_vm8, %v20547_v16 }
 0x65e   :  { %v539_v19 = vpop.f32.mrb[4].mxu1 }
 0x65f   :  { %v620_v20 = vmul.f32 0.17677669, %v539_v19  ;;  %v18696_v21 = vpop.f32.mrb[5].mxu1 }
 0x660   :  { %v461_v21 = vld [vmem:[%s22802_s6] sm:$0xf] }
 0x661   :  { %v622_v22 = vadd.f32 %v620_v20, %v20765_v15 }
 0x662   :  { %v616_v23 = vpop.f32.mrb[6].mxu1 }
 0x663   :  { %v621_v24 = vmul.f32 0.17677669, %v616_v23  ;;  %v18701_v25 = vpop.f32.mrb[7].mxu1  ;;  %v624_v28 = vsel %vm468_vm9, %v622_v22, -inf  ;;  %v462_v23 = vld [vmem:[%s22802_s6 + $0x4] sm:$0xf] }
 0x664   :  { %625 = vmax.xlane.f32.xlu0 %v624_v28 }
 0x665   :  { %v623_v29 = vadd.f32 %v621_v24, %v20765_v15  ;;  %v1427_v24 = vsel %vm1425_vm11, %v462_v23, 0 }
 0x667   :  { %v627_v17 = vsel %vm468_vm9, %v623_v29, -inf }
 0x668   :  { %628 = vmax.xlane.f32.xlu1 %v627_v17 }
 0x679   :  { %1023 = vrot.lane.b32.xlu1 %v20744_v7, %s22833_s29 }
 0x67a   :  { %636 = vrot.lane.b32.xlu0 %v20740_v5, %s22835_s1 }
 0x67d   :  { %1021 = vrot.lane.b32.xlu1 %v20744_v7, %s22831_s20 }
 0x67e   :  { %945 = vrot.lane.b32.xlu0 %v20740_v5, %s22833_s29 }
 0x682   :  { %943 = vrot.lane.b32.xlu0 %v20740_v5, %s22831_s20 }
 0x6f1   :  { %v626_v18 = vpop.xlane.xlu0 %625 }
 0x6f2   :  { %v630_v30 = vsub.f32 %v622_v22, %v626_v18  ;;  %v1474_v22 = vsel %vm1425_vm11, %v461_v21, 0 }
 0x6f4   :  { %v632_v31 = vmul.f32 1.442695, %v630_v30 }
 0x6f5   :  { %v637_v32 = vpop.permute.xlu0 %636  ;;  %v629_v33 = vpop.xlane.xlu1 %628 }
 0x6f6   :  { %20257 = vpow2.f32 %v632_v31  ;;  %v631_v34 = vsub.f32 %v623_v29, %v629_v33  ;;  %18703 = vmatpush3.msra.mxu1 %v637_v32 }
 0x6f7   :  { %18712 = vmatprep.subr.mxu1 %v20547_v16 }
 0x6f8   :  { %v634_v35 = vmul.f32 1.442695, %v631_v34 }
 0x6f9   :  { %v946_v39 = vpop.permute.xlu0 %945  ;;  %v1024_v40 = vpop.permute.xlu1 %1023 }
 0x6fa   :  { %20259 = vpow2.f32 %v634_v35 }
 0x6fd   :  { %v944_v41 = vpop.permute.xlu0 %943  ;;  %v1022_v42 = vpop.permute.xlu1 %1021 }
 0x700   :  { %v20258_v36 = vpop.eup %20257 }
 0x701   :  { %18705 = vmatmul.mubr.msk.f32.vlgmr.msra.gmra.mrb[8].mxu1 %vm468_vm9, %v20258_v36 }
 0x702   :  { %18713 = vmatpush3.msra.mxu1 %v20554_v37  ;;  %18714 = vmatprep.mubr.msk.f32.mxu1 %vm20548_vm8, %v20547_v16 }
 0x703   :  { %18722 = vmatprep.subr.mxu1 %v20547_v16 }
 0x704   :  { %v20260_v38 = vpop.eup %20259 }
 0x705   :  { %18710 = vmatmul.mubr.msk.f32.vlgmr.msra.gmra.mrb[2].mxu0 %vm468_vm9, %v20260_v38  ;;  %18715 = vmatmul.mubr.msk.f32.vlgmr.msra.gmra.mrb[10].mxu1 %vm468_vm9, %v20258_v36 }
 0x706   :  { %18718 = vmatpush3.msra.mxu0 %v20554_v37  ;;  %18719 = vmatprep.mubr.msk.f32.mxu0 %vm20548_vm8, %v20547_v16 }
 0x707   :  { %18724 = vmatprep.mubr.msk.f32.mxu1 %vm20548_vm8, %v20547_v16  ;;  %18727 = vmatprep.subr.mxu0 %v20547_v16 }
 0x709   :  { %18723 = vmatpush3.xpose.msk.msra.mxu1 %vm468_vm9, %v946_v39  ;;  %18720 = vmatmul.mubr.msk.f32.vlgmr.msra.gmra.mrb[8].mxu0 %vm468_vm9, %v20260_v38 }
 0x70a   :  { %18729 = vmatprep.mubr.msk.f32.mxu0 %vm20548_vm8, %v20547_v16  ;;  %18732 = vmatprep.subr.mxu1 %v20547_v16 }
 0x70c   :  { %18725 = vmatmul.mubr.msk.f32.vlgmr.msra.gmra.mrb[12].mxu1 %vm468_vm9, %v944_v41 }
 0x70d   :  { %18728 = vmatpush3.xpose.msk.msra.mxu0 %vm468_vm9, %v1024_v40  ;;  %18734 = vmatprep.mubr.msk.f32.mxu1 %vm20548_vm8, %v20547_v16 }
 0x70e   :  { %18737 = vmatprep.subr.mxu0 %v20547_v16 }
 0x710   :  { %18730 = vmatmul.mubr.msk.f32.vlgmr.msra.gmra.mrb[10].mxu0 %vm468_vm9, %v1022_v42 }
 0x711   :  { %18739 = vmatprep.mubr.msk.f32.mxu0 %vm20548_vm8, %v20547_v16 }
 0x7d4   :  { %v708_v43 = vpop.f32.mrb[8].mxu1 }
 0x7d5   :  { %v18706_v44 = vpop.f32.mrb[9].mxu1 }
 0x7d8   :  { %v784_v45 = vpop.f32.mrb[2].mxu0  ;;  %v854_v46 = vpop.f32.mrb[10].mxu1 }
 0x7d9   :  { %v18711_v47 = vpop.f32.mrb[3].mxu0  ;;  %v18716_v48 = vpop.f32.mrb[11].mxu1 }
 0x7dc   :  { %v924_v49 = vpop.f32.mrb[8].mxu0 }
 0x7dd   :  { %v18721_v50 = vpop.f32.mrb[9].mxu0  ;;  %20261 = vrcp.f32 %v924_v49 }
 0x7de   :  { %20263 = vrcp.f32 %v854_v46 }
 0x7df   :  { %v1017_v51 = vpop.f32.mrb[12].mxu1 }
 0x7e0   :  { %v1099_v52 = vmul.f32 0.17677669, %v1017_v51  ;;  %v18726_v53 = vpop.f32.mrb[13].mxu1 }
 0x7e2   :  { %v1101_v54 = vadd.f32 %v1099_v52, %v20765_v15 }
 0x7e3   :  { %v1095_v55 = vpop.f32.mrb[10].mxu0 }
 0x7e4   :  { %v1100_v56 = vmul.f32 0.17677669, %v1095_v55  ;;  %v18731_v57 = vpop.f32.mrb[11].mxu0  ;;  %v1103_v58 = vsel %vm468_vm9, %v1101_v54, -inf }
 0x7e5   :  { %1104 = vmax.xlane.f32.xlu0 %v1103_v58 }
 0x7e6   :  { %v1102_v59 = vadd.f32 %v1100_v56, %v20765_v15 }
 0x7e7   :  { %v20262_v61 = vpop.eup %20261 }
 0x7e8   :  { %v1106_v60 = vsel %vm468_vm9, %v1102_v59, -inf  ;;  %v20264_v62 = vpop.eup %20263 }
 0x7e9   :  { %1107 = vmax.xlane.f32.xlu1 %v1106_v60 }
 0x7fa   :  { %1191 = vrot.lane.b32.xlu1 %v20744_v7, %s22829_s19 }
 0x7fb   :  { %1115 = vrot.lane.b32.xlu0 %v20740_v5, %s22829_s19 }
 0x7fe   :  { %937 = vperm.xlu1 %20174, %v20262_v61  }
 0x7ff   :  { %932 = vperm.xlu0 %20173, %v20264_v62  }
 0x872   :  { %v1105_v63 = vpop.xlane.xlu0 %1104 }
 0x873   :  { %v1109_v0 = vsub.f32 %v1101_v54, %v1105_v63 }
 0x875   :  { %v1111_v1 = vmul.f32 1.442695, %v1109_v0 }
 0x876   :  { %v1116_v2 = vpop.permute.xlu0 %1115  ;;  %v1108_v3 = vpop.xlane.xlu1 %1107 }
 0x877   :  { %20265 = vpow2.f32 %v1111_v1  ;;  %v1110_v4 = vsub.f32 %v1102_v59, %v1108_v3  ;;  %18733 = vmatpush3.msra.mxu1 %v1116_v2 }
 0x878   :  { %18742 = vmatprep.subr.mxu1 %v20547_v16 }
 0x879   :  { %v1113_v6 = vmul.f32 1.442695, %v1110_v4 }
 0x87a   :  { %v1192_v8 = vpop.permute.xlu1 %1191 }
 0x87b   :  { %20267 = vpow2.f32 %v1113_v6  ;;  %18738 = vmatpush3.msra.mxu0 %v1192_v8 }
 0x87c   :  { %18747 = vmatprep.subr.mxu0 %v20547_v16 }
 0x87e   :  { %v933_v9 = vpop.permute.xlu0 %932  ;;  %v938_v10 = vpop.permute.xlu1 %937 }
 0x87f   :  { %v940_v11 = vmul.f32 %v933_v9, %v708_v43  ;;  %v941_v12 = vmul.f32 %v938_v10, %v784_v45 }
 0x881   :  { %v20266_v13 = vpop.eup %20265  ;;  %v942_v19 = vpack.c.bf16 %v941_v12, %v940_v11 }
 0x882   :  { %18735 = vmatmul.mubr.msk.f32.vlgmr.msra.gmra.mrb[14].mxu1 %vm468_vm9, %v20266_v13 }
 0x883   :  { %18743 = vmatpush3.msra.mxu1 %v20554_v37  ;;  %18744 = vmatprep.mubr.msk.f32.mxu1 %vm20548_vm8, %v20547_v16 }
 0x884   :  { %18752 = vmatprep.subr.bf16.mxu1 %v20547_v16 }
 0x885   :  { %v20268_v20 = vpop.eup %20267 }
 0x886   :  { %18740 = vmatmul.mubr.msk.f32.vlgmr.msra.gmra.mrb[12].mxu0 %vm468_vm9, %v20268_v20  ;;  %18745 = vmatmul.mubr.msk.f32.vlgmr.msra.gmra.mrb[16].mxu1 %vm468_vm9, %v20266_v13 }
 0x887   :  { %18748 = vmatpush3.msra.mxu0 %v20554_v37  ;;  %18749 = vmatprep.mubr.msk.f32.mxu0 %vm20548_vm8, %v20547_v16 }
 0x888   :  { %18758 = vmatprep.subr.bf16.mxu0 %v20547_v16  ;;  %18754 = vmatprep.mubr.msk.bf16.mxu1 %vm20548_vm8, %v20547_v16 }
 0x889   :  { %18753 = vmatpush3.bf16.msra.mxu1 %v1427_v24 }
 0x88a   :  { %18750 = vmatmul.mubr.msk.f32.vlgmr.msra.gmra.mrb[14].mxu0 %vm468_vm9, %v20268_v20  ;;  %18764 = vmatprep.subr.mxu1 %v20547_v16 }
 0x88b   :  { %18759 = vmatpush3.bf16.msra.mxu0 %v1474_v22  ;;  %18760 = vmatprep.mubr.msk.bf16.mxu0 %vm20548_vm8, %v20547_v16 }
 0x88c   :  { %18769 = vmatprep.subr.mxu0 %v20547_v16 }
 0x88e   :  { %18761 = vmatmul.mubr.msk.bf16.vlgmr.msra.gmra.mrb[16].mxu0 %vm468_vm9, %v942_v19 }
 0x88f   :  { %18771 = vmatprep.mubr.msk.f32.mxu0 %vm20548_vm8, %v20547_v16 }
 0x955   :  { %v1187_v25 = vpop.f32.mrb[14].mxu1 }
 0x956   :  { %v18736_v28 = vpop.f32.mrb[15].mxu1 }
 0x959   :  { %v1263_v29 = vpop.f32.mrb[12].mxu0  ;;  %v1333_v17 = vpop.f32.mrb[16].mxu1 }
 0x95a   :  { %20269 = vrcp.f32 %v1333_v17  ;;  %v18741_v18 = vpop.f32.mrb[13].mxu0  ;;  %v18746_v30 = vpop.f32.mrb[17].mxu1 }
 0x95d   :  { %v1403_v31 = vpop.f32.mrb[14].mxu0 }
 0x95e   :  { %20271 = vrcp.f32 %v1403_v31  ;;  %v18751_v32 = vpop.f32.mrb[15].mxu0 }
 0x961   :  { %v1510_v33 = vpop.f32.mrb[16].mxu0 }
 0x962   :  { %v18762_v34 = vpop.f32.mrb[17].mxu0 }
 0x963   :  { %v1513_v35 = vpop.f32.mrb[18].mxu0 }
 0x964   :  { %v20270_v36 = vpop.eup %20269  ;;  %v18763_v38 = vpop.f32.mrb[19].mxu0 }
 0x965   :  { %1411 = vperm.xlu0 %20173, %v20270_v36  }
 0x968   :  { %v20272_v39 = vpop.eup %20271 }
 0x969   :  { %1597 = vrot.lane.b32.xlu0 %v20744_v7, %s22827_s24  ;;  %1416 = vperm.xlu1 %20174, %v20272_v39  }
 0x96d   :  { %1519 = vrot.lane.b32.xlu0 %v20740_v5, %s22827_s24  ;;  %1595 = vrot.lane.b32.xlu1 %v20744_v7, %s22825_s25 }
 0x971   :  { %1517 = vrot.lane.b32.xlu1 %v20740_v5, %s22825_s25 }
 0x975   :  { %2047 = vrot.lane.b32.xlu1 %v20740_v5, %s22823_s26 }
 0x979   :  { %2125 = vrot.lane.b32.xlu1 %v20744_v7, %s22823_s26 }
 0x9e4   :  { %v1412_v40 = vpop.permute.xlu0 %1411 }
 0x9e5   :  { %v1419_v43 = vmul.f32 %v1412_v40, %v1187_v25 }
 0x9e8   :  { %v1598_v41 = vpop.permute.xlu0 %1597  ;;  %v1417_v42 = vpop.permute.xlu1 %1416 }
 0x9e9   :  { %v1420_v44 = vmul.f32 %v1417_v42, %v1263_v29  ;;  %18770 = vmatpush3.xpose.msk.msra.mxu0 %vm468_vm9, %v1598_v41  ;;  %v463_v42 = vld [vmem:[%s22802_s6 + $0x8] sm:$0xf] }
 0x9ea   :  { %18779 = vmatprep.subr.mxu0 %v20547_v16 }
 0x9eb   :  { %v1421_v45 = vpack.c.bf16 %v1420_v44, %v1419_v43  ;;  %v2000_v44 = vsel %vm1425_vm11, %v463_v42, 0 }
 0x9ec   :  { %v1520_v46 = vpop.permute.xlu0 %1519  ;;  %v1596_v47 = vpop.permute.xlu1 %1595 }
 0x9ed   :  { %18755 = vmatmul.mubr.msk.bf16.vlgmr.msra.gmra.mrb[20].mxu1 %vm468_vm9, %v1421_v45  ;;  %18772 = vmatmul.mubr.msk.f32.vlgmr.msra.gmra.mrb[20].mxu0 %vm468_vm9, %v1596_v47 }
 0x9ee   :  { %18765 = vmatpush3.xpose.msk.msra.mxu1 %vm468_vm9, %v1520_v46  ;;  %18766 = vmatprep.mubr.msk.f32.mxu1 %vm20548_vm8, %v20547_v16 }
 0x9ef   :  { %18774 = vmatprep.subr.mxu1 %v20547_v16  ;;  %18781 = vmatprep.mubr.msk.f32.mxu0 %vm20548_vm8, %v20547_v16 }
 0x9f0   :  { %v1518_v48 = vpop.permute.xlu1 %1517 }
 0x9f4   :  { %v2048_v1 = vpop.permute.xlu1 %2047 }
 0x9f5   :  { %18767 = vmatmul.mubr.msk.f32.vlgmr.msra.gmra.mrb[18].mxu1 %vm468_vm9, %v1518_v48 }
 0x9f6   :  { %18776 = vmatprep.mubr.msk.f32.mxu1 %vm20548_vm8, %v20547_v16 }
 0x9f8   :  { %v2126_v6 = vpop.permute.xlu1 %2125 }
 0xac0   :  { %v1463_v49 = vpop.f32.mrb[20].mxu1  ;;  %v1669_v50 = vpop.f32.mrb[20].mxu0 }
 0xac1   :  { %v20872_v51 = vadd.f32 %v1510_v33, %v1463_v49  ;;  %v1674_v52 = vmul.f32 0.17677669, %v1669_v50  ;;  %v18756_v53 = vpop.f32.mrb[21].mxu1  ;;  %v18773_v54 = vpop.f32.mrb[21].mxu0 }
 0xac2   :  { %v1466_v55 = vpop.f32.mrb[22].mxu1 }
 0xac3   :  { %v20874_v56 = vadd.f32 %v1513_v35, %v1466_v55  ;;  %v18757_v57 = vpop.f32.mrb[23].mxu1  ;;  %v1676_v58 = vadd.f32 %v1674_v52, %v20765_v15 }
 0xac5   :  { %v1680_v59 = vsel %vm468_vm9, %v1676_v58, -inf }
 0xac6   :  { %1681 = vmax.xlane.f32.xlu0 %v1680_v59 }
 0xac8   :  { %v1591_v60 = vpop.f32.mrb[18].mxu1 }
 0xac9   :  { %v1673_v61 = vmul.f32 0.17677669, %v1591_v60  ;;  %v18768_v62 = vpop.f32.mrb[19].mxu1 }
 0xacb   :  { %v1675_v63 = vadd.f32 %v1673_v61, %v20765_v15 }
 0xacd   :  { %v1677_v0 = vsel %vm468_vm9, %v1675_v63, -inf }
 0xace   :  { %1678 = vmax.xlane.f32.xlu1 %v1677_v0 }
 0xadc   :  { %1765 = vrot.lane.b32.xlu0 %v20744_v7, %s22821_s27 }
 0xadf   :  { %2123 = vrot.lane.b32.xlu1 %v20744_v7, %s22819_s28 }
 0xae0   :  { %2045 = vrot.lane.b32.xlu0 %v20740_v5, %s22819_s28  ;;  %s22857_s28 = smov 112  }
 0xae4   :  { %1689 = vrot.lane.b32.xlu0 %v20740_v5, %s22821_s27 }
 0xb53   :  { %v1682_v2 = vpop.xlane.xlu0 %1681 }
 0xb54   :  { %v1684_v3 = vsub.f32 %v1676_v58, %v1682_v2 }
 0xb56   :  { %v1687_v4 = vmul.f32 1.442695, %v1684_v3 }
 0xb57   :  { %v1766_v8 = vpop.permute.xlu0 %1765 }
 0xb58   :  { %20273 = vpow2.f32 %v1687_v4  ;;  %18780 = vmatpush3.msra.mxu0 %v1766_v8 }
 0xb59   :  { %18789 = vmatprep.subr.mxu0 %v20547_v16 }
 0xb5b   :  { %v1679_v9 = vpop.xlane.xlu1 %1678  ;;  %v2046_v10 = vpop.permute.xlu0 %2045 }
 0xb5c   :  { %v1683_v11 = vsub.f32 %v1675_v63, %v1679_v9 }
 0xb5e   :  { %v1685_v12 = vmul.f32 1.442695, %v1683_v11 }
 0xb5f   :  { %v1690_v13 = vpop.permute.xlu0 %1689  ;;  %v2124_v21 = vpop.permute.xlu1 %2123 }
 0xb60   :  { %20275 = vpow2.f32 %v1685_v12  ;;  %18775 = vmatpush3.msra.mxu1 %v1690_v13 }
 0xb61   :  { %18784 = vmatprep.subr.mxu1 %v20547_v16 }
 0xb62   :  { %v20274_v19 = vpop.eup %20273 }
 0xb63   :  { %18782 = vmatmul.mubr.msk.f32.vlgmr.msra.gmra.mrb[22].mxu0 %vm468_vm9, %v20274_v19 }
 0xb64   :  { %18790 = vmatpush3.msra.mxu0 %v20554_v37  ;;  %18791 = vmatprep.mubr.msk.f32.mxu0 %vm20548_vm8, %v20547_v16 }
 0xb65   :  { %18800 = vmatprep.subr.mxu0 %v20547_v16 }
 0xb67   :  { %18792 = vmatmul.mubr.msk.f32.vlgmr.msra.gmra.mrb[24].mxu0 %vm468_vm9, %v20274_v19 }
 0xb68   :  { %18802 = vmatprep.mubr.msk.f32.mxu0 %vm20548_vm8, %v20547_v16 }
 0xb6a   :  { %v20276_v20 = vpop.eup %20275 }
 0xb6b   :  { %18801 = vmatpush3.xpose.msk.msra.mxu0 %vm468_vm9, %v2048_v1  ;;  %18777 = vmatmul.mubr.msk.f32.vlgmr.msra.gmra.mrb[24].mxu1 %vm468_vm9, %v20276_v20 }
 0xb6c   :  { %18805 = vmatprep.subr.mxu0 %v20547_v16  ;;  %18785 = vmatpush3.msra.mxu1 %v20554_v37 }
 0xb6d   :  { %18786 = vmatprep.mubr.msk.f32.mxu1 %vm20548_vm8, %v20547_v16  ;;  %18794 = vmatprep.subr.bf16.mxu1 %v20547_v16 }
 0xb6e   :  { %18803 = vmatmul.mubr.msk.f32.vlgmr.msra.gmra.mrb[26].mxu0 %vm468_vm9, %v2046_v10 }
 0xb6f   :  { %18806 = vmatpush3.xpose.msk.msra.mxu0 %vm468_vm9, %v2126_v6  ;;  %18787 = vmatmul.mubr.msk.f32.vlgmr.msra.gmra.mrb[26].mxu1 %vm468_vm9, %v20276_v20 }
 0xb70   :  { %18807 = vmatprep.mubr.msk.f32.mxu0 %vm20548_vm8, %v20547_v16  ;;  %18796 = vmatprep.mubr.msk.bf16.mxu1 %vm20548_vm8, %v20547_v16 }
 0xb71   :  { %18815 = vmatprep.subr.mxu0 %v20547_v16  ;;  %18795 = vmatpush3.bf16.msra.mxu1 %v2000_v44 }
 0xb72   :  { %18808 = vmatmul.mubr.msk.f32.vlgmr.msra.gmra.mrb[28].mxu0 %vm468_vm9, %v2124_v21  ;;  %18810 = vmatprep.subr.mxu1 %v20547_v16 }
 0xb73   :  { %18817 = vmatprep.mubr.msk.f32.mxu0 %vm20548_vm8, %v20547_v16 }
 0xc36   :  { %v1837_v22 = vpop.f32.mrb[22].mxu0 }
 0xc37   :  { %v18783_v23 = vpop.f32.mrb[23].mxu0 }
 0xc3a   :  { %v1977_v24 = vpop.f32.mrb[24].mxu0 }
 0xc3b   :  { %v18793_v25 = vpop.f32.mrb[25].mxu0  ;;  %20277 = vrcp.f32 %v1977_v24 }
 0xc3e   :  { %v1761_v28 = vpop.f32.mrb[24].mxu1 }
 0xc3f   :  { %v18778_v29 = vpop.f32.mrb[25].mxu1 }
 0xc40   :  { %v17518_v29 = vld [vmem:[%s22803_s7] ss:$0 sm:$0xff] }
 0xc41   :  { %v2119_v17 = vpop.f32.mrb[26].mxu0 }
 0xc42   :  { %v2201_v18 = vmul.f32 0.17677669, %v2119_v17  ;;  %v18804_v30 = vpop.f32.mrb[27].mxu0  ;;  %v1907_v31 = vpop.f32.mrb[26].mxu1 }
 0xc43   :  { %v18788_v32 = vpop.f32.mrb[27].mxu1  ;;  %20279 = vrcp.f32 %v1907_v31 }
 0xc44   :  { %v2203_v33 = vadd.f32 %v2201_v18, %v20765_v15 }
 0xc45   :  { %v2197_v34 = vpop.f32.mrb[28].mxu0  ;;  %v20278_v41 = vpop.eup %20277 }
 0xc46   :  { %v2202_v35 = vmul.f32 0.17677669, %v2197_v34  ;;  %v18809_v36 = vpop.f32.mrb[29].mxu0  ;;  %v2205_v38 = vsel %vm468_vm9, %v2203_v33, -inf }
 0xc47   :  { %2206 = vmax.xlane.f32.xlu0 %v2205_v38 }
 0xc48   :  { %v2204_v39 = vadd.f32 %v2202_v35, %v20765_v15 }
 0xc4a   :  { %v2208_v40 = vsel %vm468_vm9, %v2204_v39, -inf }
 0xc4b   :  { %2209 = vmax.xlane.f32.xlu1 %v2208_v40 }
 0xc4d   :  { %v20280_v43 = vpop.eup %20279 }
 0xc5c   :  { %1990 = vperm.xlu1 %20174, %v20278_v41  }
 0xc5d   :  { %1985 = vperm.xlu0 %20173, %v20280_v43  }
 0xc60   :  { %2293 = vrot.lane.b32.xlu1 %v20744_v7, %s22817_s22 }
 0xc61   :  { %2217 = vrot.lane.b32.xlu0 %v20740_v5, %s22817_s22  ;;  %s22853_s22 = smov 40  }
 0xcd4   :  { %v2207_v45 = vpop.xlane.xlu0 %2206 }
 0xcd5   :  { %v2211_v46 = vsub.f32 %v2203_v33, %v2207_v45 }
 0xcd7   :  { %v2213_v49 = vmul.f32 1.442695, %v2211_v46 }
 0xcd8   :  { %v2210_v47 = vpop.xlane.xlu1 %2209 }
 0xcd9   :  { %v2212_v48 = vsub.f32 %v2204_v39, %v2210_v47 }
 0xcdb   :  { %v2215_v50 = vmul.f32 1.442695, %v2212_v48 }
 0xcdc   :  { %v1986_v52 = vpop.permute.xlu0 %1985  ;;  %v1991_v53 = vpop.permute.xlu1 %1990 }
 0xcdd   :  { %20281 = vpow2.f32 %v2215_v50  ;;  %v1993_v54 = vmul.f32 %v1986_v52, %v1761_v28  ;;  %v1994_v55 = vmul.f32 %v1991_v53, %v1837_v22 }
 0xcde   :  { %20283 = vpow2.f32 %v2213_v49 }
 0xcdf   :  { %v1995_v57 = vpack.c.bf16 %v1994_v55, %v1993_v54 }
 0xce0   :  { %v2218_v58 = vpop.permute.xlu0 %2217  ;;  %v2294_v59 = vpop.permute.xlu1 %2293 }
 0xce1   :  { %18797 = vmatmul.mubr.msk.bf16.vlgmr.msra.gmra.mrb[28].mxu1 %vm468_vm9, %v1995_v57  ;;  %18816 = vmatpush3.msra.mxu0 %v2294_v59 }
 0xce2   :  { %18811 = vmatpush3.msra.mxu1 %v2218_v58  ;;  %18812 = vmatprep.mubr.msk.f32.mxu1 %vm20548_vm8, %v20547_v16 }
 0xce3   :  { %18825 = vmatprep.subr.mxu0 %v20547_v16  ;;  %18820 = vmatprep.subr.mxu1 %v20547_v16 }
 0xce7   :  { %v20282_v5 = vpop.eup %20281 }
 0xce8   :  { %v20284_v7 = vpop.eup %20283  ;;  %18818 = vmatmul.mubr.msk.f32.vlgmr.msra.gmra.mrb[30].mxu0 %vm468_vm9, %v20282_v5 }
 0xce9   :  { %18813 = vmatmul.mubr.msk.f32.vlgmr.msra.gmra.mrb[32].mxu1 %vm468_vm9, %v20284_v7  ;;  %18826 = vmatpush3.msra.mxu0 %v20554_v37 }
 0xcea   :  { %18827 = vmatprep.mubr.msk.f32.mxu0 %vm20548_vm8, %v20547_v16  ;;  %18821 = vmatpush3.msra.mxu1 %v20554_v37 }
 0xceb   :  { %18822 = vmatprep.mubr.msk.f32.mxu1 %vm20548_vm8, %v20547_v16  ;;  %18830 = vmatprep.subr.bf16.mxu1 %v20547_v16 }
 0xcec   :  { %18828 = vmatmul.mubr.msk.f32.vlgmr.msra.gmra.mrb[32].mxu0 %vm468_vm9, %v20282_v5  ;;  %20060 = vmatprep.subr.bf16.mxu0 %v20546_v14 }
 0xced   :  { %18823 = vmatmul.mubr.msk.f32.vlgmr.msra.gmra.mrb[34].mxu1 %vm468_vm9, %v20284_v7  ;;  %20061 = vmatpush3.bf16.msra.mxu0 %v20546_v14 }
 0xcee   :  { %18832 = vmatprep.mubr.msk.bf16.mxu1 %vm20548_vm8, %v20547_v16  ;;  %20062 = vmatprep.subr.bf16.mxu0 %v20546_v14 }
 0xcf1   :  { %20063 = vmatpush3.bf16.msra.mxu0 %v20546_v14 }
 0xcf2   :  { %18858 = vmatprep.subr.bf16.mxu0 %v20547_v16 }
 0xdb4   :  { %v2036_v60 = vpop.f32.mrb[28].mxu1 }
 0xdb5   :  { %v2043_v61 = vadd.f32 %v2036_v60, %v20872_v51  ;;  %v18798_v62 = vpop.f32.mrb[29].mxu1  ;;  %v464_v51 = vld [vmem:[%s22802_s6 + $0xc] sm:$0xf] }
 0xdb6   :  { %v2039_v63 = vpop.f32.mrb[30].mxu1  ;;  %v20177_v62 = vld [vmem:[%s22804_s10] sm:$0xff]  }
 0xdb7   :  { %v2044_v0 = vadd.f32 %v2039_v63, %v20874_v56  ;;  %v18799_v1 = vpop.f32.mrb[31].mxu1  ;;  %v2528_v56 = vsel %vm1425_vm11, %v464_v51, 0  ;;  %v20178_v63 = vld [vmem:[%s22804_s10 + $0x8] sm:$0xff]  }
 0xdb8   :  { %18831 = vmatpush3.bf16.msra.mxu1 %v2528_v56  ;;  %v20180_v1 = vld [vmem:[%s22805_s12 + $0x8] sm:$0xff]  }
 0xdb9   :  { %20064 = vmatprep.subr.bf16.mxu1 %v20546_v14 }
 0xdbb   :  { %v2365_v2 = vpop.f32.mrb[30].mxu0 }
 0xdbc   :  { %v2289_v3 = vpop.f32.mrb[32].mxu1  ;;  %v18819_v4 = vpop.f32.mrb[31].mxu0 }
 0xdbd   :  { %v18814_v6 = vpop.f32.mrb[33].mxu1  ;;  %v20183_v4 = vld [vmem:[%s22805_s12 + $0x20] sm:$0xff]  }
 0xdbe   :  { %v20184_v6 = vld [vmem:[%s22805_s12 + $0x28] sm:$0xff]  }
 0xdbf   :  { %v2505_v8 = vpop.f32.mrb[32].mxu0 }
 0xdc0   :  { %20285 = vrcp.f32 %v2505_v8  ;;  %v2435_v9 = vpop.f32.mrb[34].mxu1  ;;  %v18829_v10 = vpop.f32.mrb[33].mxu0  ;;  %v17523_v8 = vld [vmem:[%s22806_s8] ss:$0 sm:$0xff] }
 0xdc1   :  { %20287 = vrcp.f32 %v2435_v9  ;;  %v18824_v11 = vpop.f32.mrb[35].mxu1 }
 0xdca   :  { %v20286_v12 = vpop.eup %20285 }
 0xdcb   :  { %v20288_v13 = vpop.eup %20287  ;;  %2518 = vperm.xlu1 %20174, %v20286_v12   ;;  %v17524_v12 = vld [vmem:[%s22807_s9] ss:$0 sm:$0xff] }
 0xdcc   :  { %2513 = vperm.xlu0 %20173, %v20288_v13  }
 0xe4a   :  { %v2519_v19 = vpop.permute.xlu1 %2518 }
 0xe4b   :  { %v2522_v20 = vmul.f32 %v2519_v19, %v2365_v2  ;;  %v2514_v21 = vpop.permute.xlu0 %2513  ;;  %v20181_v2 = vld [vmem:[%s22805_s12 + $0x10] sm:$0xff]  }
 0xe4c   :  { %v2521_v22 = vmul.f32 %v2514_v21, %v2289_v3  ;;  %v20182_v3 = vld [vmem:[%s22805_s12 + $0x18] sm:$0xff]  }
 0xe4e   :  { %v2523_v23 = vpack.c.bf16 %v2522_v20, %v2521_v22  ;;  %v20185_v22 = vld [vmem:[%s22805_s12 + $0x30] sm:$0xff]  }
 0xe50   :  { %18833 = vmatmul.mubr.msk.bf16.vlgmr.msra.gmra.mrb[36].mxu1 %vm468_vm9, %v2523_v23  ;;  %v20186_v23 = vld [vmem:[%s22805_s12 + $0x38] sm:$0xff]  }
 0xe51   :  { %20065 = vmatpush3.bf16.msra.mxu1 %v20546_v14 }
 0xe52   :  { %20066 = vmatprep.subr.bf16.mxu1 %v20546_v14 }
 0xe55   :  { %20067 = vmatpush3.bf16.msra.mxu1 %v20546_v14 }
 0xe56   :  { %18866 = vmatprep.subr.bf16.mxu1 %v20547_v16 }
 0xf23   :  { %v2564_v24 = vpop.f32.mrb[36].mxu1 }
 0xf24   :  { %v2571_v25 = vadd.f32 %v2564_v24, %v2043_v61  ;;  %v18834_v28 = vpop.f32.mrb[37].mxu1  ;;  %v17525_v24 = vld [vmem:[%s22808_s11] ss:$0 sm:$0xff] }
 0xf25   :  { %v2567_v17 = vpop.f32.mrb[38].mxu1 }
 0xf26   :  { %v2573_v18 = vadd.f32 %v2571_v25, %v20703_v26  ;;  %v2572_v30 = vadd.f32 %v2567_v17, %v2044_v0  ;;  %v18835_v31 = vpop.f32.mrb[39].mxu1  ;;  %v20179_v0 = vld [vmem:[%s22805_s12] sm:$0xff]  }
 0xf28   :  { %v20968_v32 = vadd.f32 %v17518_v29, %v2573_v18  ;;  %v2574_v33 = vadd.f32 %v2572_v30, %v20705_v27 }
 0xf2a   :  { %v20971_v34 = vadd.f32 %v17518_v29, %v2574_v33  ;;  %18844 = vmatprep.mubr.msk.f32.mxu0 %vm173_vm3, %v20968_v32 }
 0xf2c   :  { %18845 = vmatmul.mubr.msk.f32.vlgmr.msra.gmra.mrb[34].mxu0 %vm173_vm3, %v20971_v34 }
 0xf2d   :  { %18862 = vmatprep.mubr.msk.bf16.mxu0 %vm20548_vm8, %v20547_v16  ;;  %18859 = vmatpush3.bf16.msra.mxu0 %v20177_v62 }
 0xf2e   :  { %18860 = vmatprep.subr.bf16.mxu0 %v20547_v16 }
 0xf31   :  { %18861 = vmatpush3.bf16.msra.mxu0 %v20178_v63 }
 0xf32   :  { %20068 = vmatprep.subr.bf16.mxu0 %v20546_v14 }
 0xfff   :  { %v18846_v35 = vpop.f32.mrb[34].mxu0 }
0x1000   :  { %v2668_v36 = vmul.f32 0.03125, %v18846_v35  ;;  %v2658_v26 = vpop.f32.mrb[35].mxu0 }
0x1001   :  { %v2667_v38 = vmul.f32 0.03125, %v2658_v26 }
0x1002   :  { %2676 = vperm.xlu1 %20174, %v2668_v36   ;;  %v17529_v36 = vld [vmem:[%s22809_s13] ss:$0 sm:$0xff] }
0x1003   :  { %2671 = vperm.xlu0 %20173, %v2667_v38  }
0x1081   :  { %v2677_v39 = vpop.permute.xlu1 %2676 }
0x1082   :  { %v20980_v27 = vsub.f32 %v20971_v34, %v2677_v39  ;;  %v2672_v40 = vpop.permute.xlu0 %2671 }
0x1083   :  { %v20983_v41 = vsub.f32 %v20968_v32, %v2672_v40 }
0x1084   :  { %v2682_v43 = vmul.f32 %v20980_v27, %v20980_v27 }
0x1085   :  { %v2681_v42 = vmul.f32 %v20983_v41, %v20983_v41 }
0x1087   :  { %18855 = vmatprep.mubr.msk.f32.mxu1 %vm173_vm3, %v2681_v42 }
0x1088   :  { %18856 = vmatmul.mubr.msk.f32.vlgmr.msra.gmra.mrb[40].mxu1 %vm173_vm3, %v2682_v43 }
0x1089   :  { %18882 = vmatprep.mubr.msk.bf16.mxu1 %vm20548_vm8, %v20547_v16  ;;  %18867 = vmatpush3.bf16.msra.mxu1 %v20179_v0 }
0x108a   :  { %18868 = vmatprep.subr.bf16.mxu1 %v20547_v16 }
0x108d   :  { %18869 = vmatpush3.bf16.msra.mxu1 %v20180_v1 }
0x108e   :  { %18870 = vmatprep.subr.bf16.mxu1 %v20547_v16 }
0x1091   :  { %18871 = vmatpush3.bf16.msra.mxu1 %v20181_v2 }
0x1092   :  { %18872 = vmatprep.subr.bf16.mxu1 %v20547_v16 }
0x1095   :  { %18873 = vmatpush3.bf16.msra.mxu1 %v20182_v3 }
0x1096   :  { %18874 = vmatprep.subr.bf16.mxu1 %v20547_v16 }
0x1099   :  { %18875 = vmatpush3.bf16.msra.mxu1 %v20183_v4 }
0x109a   :  { %18876 = vmatprep.subr.bf16.mxu1 %v20547_v16 }
0x109d   :  { %18877 = vmatpush3.bf16.msra.mxu1 %v20184_v6 }
0x109e   :  { %18878 = vmatprep.subr.bf16.mxu1 %v20547_v16 }
0x10a1   :  { %18879 = vmatpush3.bf16.msra.mxu1 %v20185_v22 }
0x10a2   :  { %18880 = vmatprep.subr.bf16.mxu1 %v20547_v16 }
0x10a5   :  { %18881 = vmatpush3.bf16.msra.mxu1 %v20186_v23 }
0x10a6   :  { %18921 = vmatprep.subr.mxu1 %v20547_v16 }
0x115b   :  { %v18857_v44 = vpop.f32.mrb[40].mxu1 }
0x115c   :  { %v2765_v45 = vmul.f32 0.032258064, %v18857_v44  ;;  %v2755_v46 = vpop.f32.mrb[41].mxu1 }
0x115d   :  { %v2764_v47 = vmul.f32 0.032258064, %v2755_v46 }
0x115e   :  { %20289 = vrsqrt.f32 %v2765_v45  ;;  %vm2775_vm12 = vcmp.eq.f32.partialorder %v2765_v45, inf  ;;  %v2778_v52 = vand.u32 2147483648, %v2765_v45  ;;  %vm2777_vm13 = vcmp.eq.f32.partialorder %v2765_v45, 0.0 }
0x115f   :  { %20291 = vrsqrt.f32 %v2764_v47  ;;  %vm2768_vm14 = vcmp.eq.f32.partialorder %v2764_v47, inf  ;;  %v2771_v55 = vand.u32 2147483648, %v2764_v47  ;;  %vm2770_vm15 = vcmp.eq.f32.partialorder %v2764_v47, 0.0 }
0x1168   :  { %v20290_v48 = vpop.eup %20289 }
0x1169   :  { %v20292_v49 = vpop.eup %20291  ;;  %v2774_v50 = vmul.f32 %v20290_v48, %v2765_v45 }
0x116a   :  { %v2767_v53 = vmul.f32 %v20292_v49, %v2764_v47 }
0x116b   :  { %v2776_v54 = vsel %vm2775_vm12, %v2765_v45, %v2774_v50 }
0x116c   :  { %v2779_v57 = vsel %vm2777_vm13, %v2778_v52, %v2776_v54  ;;  %v2769_v58 = vsel %vm2768_vm14, %v2764_v47, %v2767_v53 }
0x116d   :  { %v2781_v59 = vadd.f32 1e-06, %v2779_v57  ;;  %v2772_v5 = vsel %vm2770_vm15, %v2771_v55, %v2769_v58 }
0x116e   :  { %v2780_v7 = vadd.f32 1e-06, %v2772_v5 }
0x116f   :  { %20293 = vrsqrt.f32 %v2781_v59 }
0x1170   :  { %20295 = vrsqrt.f32 %v2780_v7 }
0x1179   :  { %v20294_v60 = vpop.eup %20293 }
0x117a   :  { %v20296_v61 = vpop.eup %20295  ;;  %2791 = vperm.xlu1 %20174, %v20294_v60  }
0x117b   :  { %2786 = vperm.xlu0 %20173, %v20296_v61  }
0x11f9   :  { %v2792_v9 = vpop.permute.xlu1 %2791 }
0x11fa   :  { %v2795_v10 = vmul.f32 %v2792_v9, %v20980_v27  ;;  %v2787_v11 = vpop.permute.xlu0 %2786  ;;  %v20188_v9 = vld [vmem:[%s22799_s5 + $0x18] sm:$0xff]  }
0x11fb   :  { %v2794_v13 = vmul.f32 %v2787_v11, %v20983_v41 }
0x11fc   :  { %v2803_v51 = vmul.f32 %v17523_v8, %v2795_v10  ;;  %v17544_v10 = vld [vmem:[%s22800_s3 + $0x1] ss:$0 sm:$0xff] }
0x11fd   :  { %v2802_v56 = vmul.f32 %v17523_v8, %v2794_v13  ;;  %v20187_v8 = vld [vmem:[%s22799_s5 + $0x10] sm:$0xff]  }
0x11fe   :  { %v2811_v19 = vadd.f32 %v17524_v12, %v2803_v51  ;;  %v17545_v51 = vld [vmem:[%s22801_s4 + $0x1] ss:$0 sm:$0xff] }
0x11ff   :  { %v2810_v20 = vadd.f32 %v17524_v12, %v2802_v56 }
0x1201   :  { %v2812_v21 = vpack.c.bf16 %v2811_v19, %v2810_v20 }
0x1203   :  { %18863 = vmatmul.mubr.msk.bf16.vlgmr.msra.gmra.mrb[36].mxu0 %vm173_vm3, %v2812_v21 }
0x1204   :  { %20069 = vmatpush3.bf16.msra.mxu0 %v20546_v14 }
0x1205   :  { %20070 = vmatprep.subr.bf16.mxu0 %v20546_v14 }
0x1208   :  { %20071 = vmatpush3.bf16.msra.mxu0 %v20546_v14 }
0x1209   :  { %20072 = vmatprep.subr.bf16.mxu0 %v20546_v14 }
0x12d6   :  { %v2873_v25 = vpop.f32.mrb[36].mxu0 }
0x12d7   :  { %v2874_v28 = vadd.f32 %v17525_v24, %v2873_v25  ;;  %v18864_v29 = vpop.f32.mrb[37].mxu0 }
0x12d8   :  { %v2876_v17 = vpop.f32.mrb[38].mxu0 }
0x12d9   :  { %v2877_v18 = vadd.f32 %v17525_v24, %v2876_v17  ;;  %v18865_v30 = vpop.f32.mrb[39].mxu0  ;;  %v2880_v31 = vmax.f32 %v2874_v28, 0.0 }
0x12db   :  { %v2881_v33 = vmax.f32 %v2877_v18, 0.0 }
0x12dd   :  { %v2882_v35 = vpack.c.bf16 %v2881_v33, %v2880_v31 }
0x12df   :  { %18883 = vmatmul.mubr.bf16.vlgmr.msra.gmra.mrb[44].mxu1 %v2882_v35 }
0x12e0   :  { %18923 = vmatprep.mubr.msk.f32.mxu1 %vm20548_vm8, %v20547_v16 }
0x13b2   :  { %v2988_v26 = vpop.f32.mrb[44].mxu1 }
0x13b3   :  { %v2989_v38 = vadd.f32 %v17529_v36, %v2988_v26  ;;  %v18884_v39 = vpop.f32.mrb[45].mxu1 }
0x13b4   :  { %v2991_v27 = vpop.f32.mrb[46].mxu1 }
0x13b5   :  { %v21055_v40 = vadd.f32 %v2989_v38, %v20968_v32  ;;  %v2992_v41 = vadd.f32 %v17529_v36, %v2991_v27  ;;  %v18885_v42 = vpop.f32.mrb[47].mxu1 }
0x13b7   :  { %v21058_v43 = vadd.f32 %v2992_v41, %v20971_v34  ;;  %18894 = vmatprep.mubr.msk.f32.mxu0 %vm173_vm3, %v21055_v40 }
0x13b9   :  { %18895 = vmatmul.mubr.msk.f32.vlgmr.msra.gmra.mrb[40].mxu0 %vm173_vm3, %v21058_v43 }
0x13ba   :  { %20073 = vmatpush3.bf16.msra.mxu0 %v20546_v14 }
0x13bb   :  { %20074 = vmatprep.subr.bf16.mxu0 %v20546_v14 }
0x13be   :  { %20075 = vmatpush3.bf16.msra.mxu0 %v20546_v14 }
0x13bf   :  { %18908 = vmatprep.subr.bf16.mxu0 %v20547_v16 }
0x148c   :  { %v18896_v32 = vpop.f32.mrb[40].mxu0 }
0x148d   :  { %v3083_v44 = vmul.f32 0.03125, %v18896_v32  ;;  %v3073_v45 = vpop.f32.mrb[41].mxu0 }
0x148e   :  { %v3082_v46 = vmul.f32 0.03125, %v3073_v45 }
0x148f   :  { %3091 = vperm.xlu1 %20174, %v3083_v44  }
0x1490   :  { %3086 = vperm.xlu0 %20173, %v3082_v46  }
0x150e   :  { %v3092_v34 = vpop.permute.xlu1 %3091 }
0x150f   :  { %v3095_v47 = vsub.f32 %v21058_v43, %v3092_v34  ;;  %v3087_v48 = vpop.permute.xlu0 %3086 }
0x1510   :  { %v3094_v49 = vsub.f32 %v21055_v40, %v3087_v48 }
0x1511   :  { %v3097_v52 = vmul.f32 %v3095_v47, %v3095_v47 }
0x1512   :  { %v3096_v50 = vmul.f32 %v3094_v49, %v3094_v49 }
0x1514   :  { %18905 = vmatprep.mubr.msk.f32.mxu0 %vm173_vm3, %v3096_v50 }
0x1515   :  { %18906 = vmatmul.mubr.msk.f32.vlgmr.msra.gmra.mrb[42].mxu0 %vm173_vm3, %v3097_v52 }
0x1516   :  { %18912 = vmatprep.mubr.msk.bf16.mxu0 %vm20548_vm8, %v20547_v16  ;;  %18909 = vmatpush3.bf16.msra.mxu0 %v20187_v8 }
0x1517   :  { %18910 = vmatprep.subr.bf16.mxu0 %v20547_v16 }
0x151a   :  { %18911 = vmatpush3.bf16.msra.mxu0 %v20188_v9 }
0x151b   :  { %18916 = vmatprep.subr.mxu0 %v20547_v16 }
0x15e8   :  { %v18907_v53 = vpop.f32.mrb[42].mxu0 }
0x15e9   :  { %v3180_v54 = vmul.f32 0.032258064, %v18907_v53  ;;  %v3170_v55 = vpop.f32.mrb[43].mxu0 }
0x15ea   :  { %v3179_v57 = vmul.f32 0.032258064, %v3170_v55 }
0x15eb   :  { %20297 = vrsqrt.f32 %v3180_v54  ;;  %vm3190_vm0 = vcmp.eq.f32.partialorder %v3180_v54, inf  ;;  %v3193_v7 = vand.u32 2147483648, %v3180_v54  ;;  %vm3192_vm1 = vcmp.eq.f32.partialorder %v3180_v54, 0.0 }
0x15ec   :  { %20299 = vrsqrt.f32 %v3179_v57  ;;  %vm3183_vm2 = vcmp.eq.f32.partialorder %v3179_v57, inf  ;;  %v3186_v62 = vand.u32 2147483648, %v3179_v57  ;;  %vm3185_vm4 = vcmp.eq.f32.partialorder %v3179_v57, 0.0 }
0x15f5   :  { %v20298_v58 = vpop.eup %20297 }
0x15f6   :  { %v20300_v59 = vpop.eup %20299  ;;  %v3189_v5 = vmul.f32 %v20298_v58, %v3180_v54 }
0x15f7   :  { %v3182_v60 = vmul.f32 %v20300_v59, %v3179_v57 }
0x15f8   :  { %v3191_v61 = vsel %vm3190_vm0, %v3180_v54, %v3189_v5 }
0x15f9   :  { %v3194_v63 = vsel %vm3192_vm1, %v3193_v7, %v3191_v61  ;;  %v3184_v0 = vsel %vm3183_vm2, %v3179_v57, %v3182_v60 }
0x15fa   :  { %v3196_v1 = vadd.f32 1e-06, %v3194_v63  ;;  %v3187_v2 = vsel %vm3185_vm4, %v3186_v62, %v3184_v0 }
0x15fb   :  { %v3195_v3 = vadd.f32 1e-06, %v3187_v2 }
0x15fc   :  { %20301 = vrsqrt.f32 %v3196_v1 }
0x15fd   :  { %20303 = vrsqrt.f32 %v3195_v3 }
0x1606   :  { %v20302_v4 = vpop.eup %20301 }
0x1607   :  { %v20304_v6 = vpop.eup %20303  ;;  %3206 = vperm.xlu1 %20174, %v20302_v4  }
0x1608   :  { %3201 = vperm.xlu0 %20173, %v20304_v6  }
0x1686   :  { %v3207_v11 = vpop.permute.xlu1 %3206 }
0x1687   :  { %v3210_v12 = vmul.f32 %v3207_v11, %v3095_v47  ;;  %v3202_v13 = vpop.permute.xlu0 %3201 }
0x1688   :  { %v3209_v56 = vmul.f32 %v3202_v13, %v3094_v49 }
0x1689   :  { %v3218_v19 = vmul.f32 %v17544_v10, %v3210_v12 }
0x168a   :  { %v3217_v20 = vmul.f32 %v17544_v10, %v3209_v56 }
0x168b   :  { %v3226_v21 = vadd.f32 %v17545_v51, %v3218_v19 }
0x168c   :  { %v3225_v22 = vadd.f32 %v17545_v51, %v3217_v20 }
0x168e   :  { %v3232_v23 = vpack.c.bf16 %v3226_v21, %v3225_v22 }
0x1690   :  { %18913 = vmatmul.mubr.msk.bf16.vlgmr.msra.gmra.mrb[44].mxu0 %vm173_vm3, %v3232_v23 }
0x1691   :  { %18918 = vmatprep.mubr.msk.f32.mxu0 %vm20548_vm8, %v20547_v16 }
0x1763   :  { %v21091_v24 = vpop.f32.mrb[44].mxu0 }
0x1764   :  { %3295 = vrot.lane.b32.xlu0 %v21091_v24, %s22837_s0  ;;  %v18914_v25 = vpop.f32.mrb[45].mxu0 }
0x1765   :  { %v21095_v28 = vpop.f32.mrb[46].mxu0 }
0x1766   :  { %3372 = vrot.lane.b32.xlu1 %v21095_v28, %s22837_s0  ;;  %v18915_v29 = vpop.f32.mrb[47].mxu0 }
0x176a   :  { %3540 = vrot.lane.b32.xlu1 %v21095_v28, %s22835_s1 }
0x17d6   :  { %v3296_v17 = vpop.permute.xlu0 %3295 }
0x17d7   :  { %18917 = vmatpush3.xpose.msk.msra.mxu0 %vm468_vm9, %v3296_v17 }
0x17d8   :  { %v3373_v18 = vpop.permute.xlu1 %3372  ;;  %18926 = vmatprep.subr.mxu0 %v20547_v16 }
0x17d9   :  { %18922 = vmatpush3.xpose.msk.msra.mxu1 %vm468_vm9, %v3373_v18 }
0x17da   :  { %18919 = vmatmul.mubr.msk.f32.vlgmr.msra.gmra.mrb[48].mxu0 %vm468_vm9, %v21091_v24  ;;  %18931 = vmatprep.subr.mxu1 %v20547_v16 }
0x17db   :  { %18928 = vmatprep.mubr.msk.f32.mxu0 %vm20548_vm8, %v20547_v16 }
0x17dc   :  { %18924 = vmatmul.mubr.msk.f32.vlgmr.msra.gmra.mrb[42].mxu1 %vm468_vm9, %v21095_v28  ;;  %v3541_v30 = vpop.permute.xlu1 %3540 }
0x17dd   :  { %18932 = vmatpush3.msra.mxu1 %v3541_v30  ;;  %18933 = vmatprep.mubr.msk.f32.mxu1 %vm20548_vm8, %v20547_v16 }
0x17de   :  { %18941 = vmatprep.subr.mxu1 %v20547_v16 }
0x18ad   :  { %v3367_v31 = vpop.f32.mrb[48].mxu0 }
0x18ae   :  { %v3448_v33 = vmul.f32 0.17677669, %v3367_v31  ;;  %v18920_v35 = vpop.f32.mrb[49].mxu0 }
0x18af   :  { %v3444_v36 = vpop.f32.mrb[42].mxu1  ;;  %v17553_v35 = vld [vmem:[%s22802_s6 + $0x10] sm:$0xf] }
0x18b0   :  { %v3449_v26 = vmul.f32 0.17677669, %v3444_v36  ;;  %v18925_v38 = vpop.f32.mrb[43].mxu1  ;;  %v3450_v39 = vadd.f32 %v3448_v33, %v20765_v15  ;;  %v4301_v36 = vsel %vm1425_vm11, %v17553_v35, 0 }
0x18b2   :  { %v3452_v27 = vsel %vm468_vm9, %v3450_v39, -inf  ;;  %v3451_v41 = vadd.f32 %v3449_v26, %v20765_v15  ;;  %v17554_v26 = vld [vmem:[%s22802_s6 + $0x14] sm:$0xf] }
0x18b3   :  { %3453 = vmax.xlane.f32.xlu0 %v3452_v27  ;;  %v4254_v38 = vsel %vm1425_vm11, %v17554_v26, 0 }
0x18b4   :  { %v3455_v42 = vsel %vm468_vm9, %v3451_v41, -inf }
0x18b5   :  { %3456 = vmax.xlane.f32.xlu1 %v3455_v42 }
0x18c6   :  { %3851 = vrot.lane.b32.xlu1 %v21095_v28, %s22833_s29 }
0x18c9   :  { %3464 = vrot.lane.b32.xlu0 %v21091_v24, %s22835_s1 }
0x18ca   :  { %3849 = vrot.lane.b32.xlu1 %v21095_v28, %s22831_s20 }
0x18cd   :  { %3773 = vrot.lane.b32.xlu0 %v21091_v24, %s22833_s29 }
0x18d1   :  { %3771 = vrot.lane.b32.xlu0 %v21091_v24, %s22831_s20  ;;  %s22855_s20 = smov 56  }
0x1940   :  { %v3454_v32 = vpop.xlane.xlu0 %3453 }
0x1941   :  { %v3458_v44 = vsub.f32 %v3450_v39, %v3454_v32 }
0x1942   :  { %v3457_v45 = vpop.xlane.xlu1 %3456 }
0x1943   :  { %v3460_v46 = vmul.f32 1.442695, %v3458_v44  ;;  %v3459_v34 = vsub.f32 %v3451_v41, %v3457_v45 }
0x1944   :  { %v3465_v47 = vpop.permute.xlu0 %3464 }
0x1945   :  { %20305 = vpow2.f32 %v3460_v46  ;;  %v3462_v48 = vmul.f32 1.442695, %v3459_v34  ;;  %18927 = vmatpush3.msra.mxu0 %v3465_v47 }
0x1946   :  { %18936 = vmatprep.subr.mxu0 %v20547_v16  ;;  %v3852_v53 = vpop.permute.xlu1 %3851 }
0x1947   :  { %20307 = vpow2.f32 %v3462_v48 }
0x1948   :  { %v3774_v52 = vpop.permute.xlu0 %3773 }
0x194a   :  { %v3850_v55 = vpop.permute.xlu1 %3849 }
0x194c   :  { %v3772_v54 = vpop.permute.xlu0 %3771 }
0x194f   :  { %v20306_v49 = vpop.eup %20305 }
0x1950   :  { %18929 = vmatmul.mubr.msk.f32.vlgmr.msra.gmra.mrb[50].mxu0 %vm468_vm9, %v20306_v49 }
0x1951   :  { %v20308_v50 = vpop.eup %20307  ;;  %18937 = vmatpush3.msra.mxu0 %v20554_v37  ;;  %18938 = vmatprep.mubr.msk.f32.mxu0 %vm20548_vm8, %v20547_v16 }
0x1952   :  { %18934 = vmatmul.mubr.msk.f32.vlgmr.msra.gmra.mrb[48].mxu1 %vm468_vm9, %v20308_v50  ;;  %18946 = vmatprep.subr.mxu0 %v20547_v16 }
0x1953   :  { %18942 = vmatpush3.msra.mxu1 %v20554_v37  ;;  %18943 = vmatprep.mubr.msk.f32.mxu1 %vm20548_vm8, %v20547_v16 }
0x1954   :  { %18939 = vmatmul.mubr.msk.f32.vlgmr.msra.gmra.mrb[52].mxu0 %vm468_vm9, %v20306_v49  ;;  %18951 = vmatprep.subr.mxu1 %v20547_v16 }
0x1955   :  { %18948 = vmatprep.mubr.msk.f32.mxu0 %vm20548_vm8, %v20547_v16 }
0x1956   :  { %18944 = vmatmul.mubr.msk.f32.vlgmr.msra.gmra.mrb[50].mxu1 %vm468_vm9, %v20308_v50 }
0x1957   :  { %18953 = vmatprep.mubr.msk.f32.mxu1 %vm20548_vm8, %v20547_v16 }
0x1958   :  { %18947 = vmatpush3.xpose.msk.msra.mxu0 %vm468_vm9, %v3774_v52 }
0x1959   :  { %18956 = vmatprep.subr.mxu0 %v20547_v16 }
0x195a   :  { %18952 = vmatpush3.xpose.msk.msra.mxu1 %vm468_vm9, %v3852_v53 }
0x195b   :  { %18949 = vmatmul.mubr.msk.f32.vlgmr.msra.gmra.mrb[54].mxu0 %vm468_vm9, %v3772_v54  ;;  %18961 = vmatprep.subr.mxu1 %v20547_v16 }
0x195c   :  { %18958 = vmatprep.mubr.msk.f32.mxu0 %vm20548_vm8, %v20547_v16 }
0x195d   :  { %18954 = vmatmul.mubr.msk.f32.vlgmr.msra.gmra.mrb[52].mxu1 %vm468_vm9, %v3850_v55 }
0x195e   :  { %18963 = vmatprep.mubr.msk.f32.mxu1 %vm20548_vm8, %v20547_v16 }
0x1a23   :  { %v3536_v57 = vpop.f32.mrb[50].mxu0 }
0x1a24   :  { %v18930_v58 = vpop.f32.mrb[51].mxu0 }
0x1a25   :  { %v3612_v59 = vpop.f32.mrb[48].mxu1 }
0x1a26   :  { %v18935_v5 = vpop.f32.mrb[49].mxu1 }
0x1a27   :  { %v3682_v7 = vpop.f32.mrb[52].mxu0 }
0x1a28   :  { %v18940_v60 = vpop.f32.mrb[53].mxu0 }
0x1a29   :  { %v3752_v61 = vpop.f32.mrb[50].mxu1 }
0x1a2a   :  { %v18945_v62 = vpop.f32.mrb[51].mxu1  ;;  %20309 = vrcp.f32 %v3752_v61 }
0x1a2b   :  { %20311 = vrcp.f32 %v3682_v7 }
0x1a2e   :  { %v3845_v63 = vpop.f32.mrb[54].mxu0 }
0x1a2f   :  { %v3927_v0 = vmul.f32 0.17677669, %v3845_v63  ;;  %v18950_v1 = vpop.f32.mrb[55].mxu0 }
0x1a30   :  { %v3923_v2 = vpop.f32.mrb[52].mxu1 }
0x1a31   :  { %v3928_v3 = vmul.f32 0.17677669, %v3923_v2  ;;  %v18955_v4 = vpop.f32.mrb[53].mxu1  ;;  %v3929_v6 = vadd.f32 %v3927_v0, %v20765_v15 }
0x1a33   :  { %v3931_v8 = vsel %vm468_vm9, %v3929_v6, -inf  ;;  %v3930_v9 = vadd.f32 %v3928_v3, %v20765_v15 }
0x1a34   :  { %3932 = vmax.xlane.f32.xlu0 %v3931_v8  ;;  %v20310_v11 = vpop.eup %20309 }
0x1a35   :  { %v3934_v10 = vsel %vm468_vm9, %v3930_v9, -inf  ;;  %v20312_v12 = vpop.eup %20311 }
0x1a36   :  { %3935 = vmax.xlane.f32.xlu1 %v3934_v10 }
0x1a47   :  { %4019 = vrot.lane.b32.xlu1 %v21095_v28, %s22829_s19 }
0x1a4a   :  { %3943 = vrot.lane.b32.xlu0 %v21091_v24, %s22829_s19  ;;  %s22862_s19 = sld [smem:[#allocation6_spill]] }
0x1a4b   :  { %3765 = vperm.xlu1 %20174, %v20310_v11  }
0x1a4e   :  { %3760 = vperm.xlu0 %20173, %v20312_v12  }
0x1ac1   :  { %v3933_v13 = vpop.xlane.xlu0 %3932 }
0x1ac2   :  { %v3937_v51 = vsub.f32 %v3929_v6, %v3933_v13 }
0x1ac3   :  { %v3936_v56 = vpop.xlane.xlu1 %3935 }
0x1ac4   :  { %v3939_v19 = vmul.f32 1.442695, %v3937_v51  ;;  %v3938_v20 = vsub.f32 %v3930_v9, %v3936_v56 }
0x1ac5   :  { %v3944_v21 = vpop.permute.xlu0 %3943 }
0x1ac6   :  { %20313 = vpow2.f32 %v3939_v19  ;;  %v3941_v22 = vmul.f32 1.442695, %v3938_v20  ;;  %18957 = vmatpush3.msra.mxu0 %v3944_v21 }
0x1ac7   :  { %v4020_v23 = vpop.permute.xlu1 %4019  ;;  %18966 = vmatprep.subr.mxu0 %v20547_v16 }
0x1ac8   :  { %20315 = vpow2.f32 %v3941_v22  ;;  %18962 = vmatpush3.msra.mxu1 %v4020_v23 }
0x1ac9   :  { %18971 = vmatprep.subr.mxu1 %v20547_v16 }
0x1acb   :  { %v3766_v25 = vpop.permute.xlu1 %3765 }
0x1acc   :  { %v3769_v17 = vmul.f32 %v3766_v25, %v3612_v59 }
0x1acd   :  { %v3761_v29 = vpop.permute.xlu0 %3760 }
0x1ace   :  { %v3768_v18 = vmul.f32 %v3761_v29, %v3536_v57 }
0x1ad0   :  { %v20314_v30 = vpop.eup %20313  ;;  %v3770_v31 = vpack.c.bf16 %v3769_v17, %v3768_v18 }
0x1ad1   :  { %18959 = vmatmul.mubr.msk.f32.vlgmr.msra.gmra.mrb[56].mxu0 %vm468_vm9, %v20314_v30 }
0x1ad2   :  { %v20316_v33 = vpop.eup %20315  ;;  %18967 = vmatpush3.msra.mxu0 %v20554_v37  ;;  %18968 = vmatprep.mubr.msk.f32.mxu0 %vm20548_vm8, %v20547_v16 }
0x1ad3   :  { %18964 = vmatmul.mubr.msk.f32.vlgmr.msra.gmra.mrb[54].mxu1 %vm468_vm9, %v20316_v33  ;;  %18976 = vmatprep.subr.bf16.mxu0 %v20547_v16 }
0x1ad4   :  { %18972 = vmatpush3.msra.mxu1 %v20554_v37  ;;  %18973 = vmatprep.mubr.msk.f32.mxu1 %vm20548_vm8, %v20547_v16 }
0x1ad5   :  { %18969 = vmatmul.mubr.msk.f32.vlgmr.msra.gmra.mrb[58].mxu0 %vm468_vm9, %v20314_v30  ;;  %18982 = vmatprep.subr.bf16.mxu1 %v20547_v16 }
0x1ad6   :  { %18978 = vmatprep.mubr.msk.bf16.mxu0 %vm20548_vm8, %v20547_v16  ;;  %18977 = vmatpush3.bf16.msra.mxu0 %v4254_v38 }
0x1ad7   :  { %18974 = vmatmul.mubr.msk.f32.vlgmr.msra.gmra.mrb[56].mxu1 %vm468_vm9, %v20316_v33  ;;  %18988 = vmatprep.subr.mxu0 %v20547_v16 }
0x1ad8   :  { %18983 = vmatpush3.bf16.msra.mxu1 %v4301_v36  ;;  %18984 = vmatprep.mubr.msk.bf16.mxu1 %vm20548_vm8, %v20547_v16 }
0x1ad9   :  { %18993 = vmatprep.subr.mxu1 %v20547_v16 }
0x1adb   :  { %18985 = vmatmul.mubr.msk.bf16.vlgmr.msra.gmra.mrb[60].mxu1 %vm468_vm9, %v3770_v31 }
0x1adc   :  { %18995 = vmatprep.mubr.msk.f32.mxu1 %vm20548_vm8, %v20547_v16 }
0x1ba4   :  { %v4015_v39 = vpop.f32.mrb[56].mxu0 }
0x1ba5   :  { %v18960_v27 = vpop.f32.mrb[57].mxu0 }
0x1ba6   :  { %v4091_v41 = vpop.f32.mrb[54].mxu1 }
0x1ba7   :  { %v18965_v42 = vpop.f32.mrb[55].mxu1 }
0x1ba8   :  { %v4161_v32 = vpop.f32.mrb[58].mxu0 }
0x1ba9   :  { %20317 = vrcp.f32 %v4161_v32  ;;  %v18970_v44 = vpop.f32.mrb[59].mxu0 }
0x1baa   :  { %v4231_v45 = vpop.f32.mrb[56].mxu1 }
0x1bab   :  { %20319 = vrcp.f32 %v4231_v45  ;;  %v18975_v46 = vpop.f32.mrb[57].mxu1 }
0x1bae   :  { %v4337_v34 = vpop.f32.mrb[60].mxu1 }
0x1baf   :  { %v18986_v47 = vpop.f32.mrb[61].mxu1 }
0x1bb0   :  { %v4340_v48 = vpop.f32.mrb[62].mxu1 }
0x1bb1   :  { %v18987_v49 = vpop.f32.mrb[63].mxu1 }
0x1bb3   :  { %v20318_v50 = vpop.eup %20317 }
0x1bb4   :  { %4239 = vperm.xlu0 %20173, %v20318_v50  }
0x1bb5   :  { %v20320_v52 = vpop.eup %20319 }
0x1bb6   :  { %4244 = vperm.xlu1 %20174, %v20320_v52  }
0x1bb8   :  { %4424 = vrot.lane.b32.xlu0 %v21095_v28, %s22827_s24 }
0x1bba   :  { %4422 = vrot.lane.b32.xlu1 %v21095_v28, %s22825_s25 }
0x1bbc   :  { %4346 = vrot.lane.b32.xlu0 %v21091_v24, %s22827_s24  ;;  %s22854_s24 = smov 120  }
0x1bbe   :  { %4344 = vrot.lane.b32.xlu1 %v21091_v24, %s22825_s25  ;;  %s22864_s25 = sld [smem:[#allocation8_spill]] }
0x1bc2   :  { %4874 = vrot.lane.b32.xlu1 %v21091_v24, %s22850_s2 }
0x1bc6   :  { %4952 = vrot.lane.b32.xlu1 %v21095_v28, %s22850_s2 }
0x1c33   :  { %v4240_v53 = vpop.permute.xlu0 %4239 }
0x1c34   :  { %v4247_v55 = vmul.f32 %v4240_v53, %v4015_v39 }
0x1c35   :  { %v4245_v54 = vpop.permute.xlu1 %4244 }
0x1c36   :  { %v4248_v57 = vmul.f32 %v4245_v54, %v4091_v41 }
0x1c37   :  { %v4425_v58 = vpop.permute.xlu0 %4424 }
0x1c38   :  { %v4249_v59 = vpack.c.bf16 %v4248_v57, %v4247_v55  ;;  %18994 = vmatpush3.xpose.msk.msra.mxu1 %vm468_vm9, %v4425_v58  ;;  %v17555_v55 = vld [vmem:[%s22802_s6 + $0x18] sm:$0xf] }
0x1c39   :  { %v4423_v5 = vpop.permute.xlu1 %4422  ;;  %19003 = vmatprep.subr.mxu1 %v20547_v16  ;;  %v4827_v58 = vsel %vm1425_vm11, %v17555_v55, 0 }
0x1c3a   :  { %18979 = vmatmul.mubr.msk.bf16.vlgmr.msra.gmra.mrb[60].mxu0 %vm468_vm9, %v4249_v59 }
0x1c3b   :  { %18996 = vmatmul.mubr.msk.f32.vlgmr.msra.gmra.mrb[58].mxu1 %vm468_vm9, %v4423_v5  ;;  %v4347_v7 = vpop.permute.xlu0 %4346  ;;  %18990 = vmatprep.mubr.msk.f32.mxu0 %vm20548_vm8, %v20547_v16 }
0x1c3c   :  { %18989 = vmatpush3.xpose.msk.msra.mxu0 %vm468_vm9, %v4347_v7  ;;  %19005 = vmatprep.mubr.msk.f32.mxu1 %vm20548_vm8, %v20547_v16 }
0x1c3d   :  { %18998 = vmatprep.subr.mxu0 %v20547_v16  ;;  %v4345_v60 = vpop.permute.xlu1 %4344 }
0x1c41   :  { %v4875_v56 = vpop.permute.xlu1 %4874 }
0x1c42   :  { %18991 = vmatmul.mubr.msk.f32.vlgmr.msra.gmra.mrb[64].mxu0 %vm468_vm9, %v4345_v60 }
0x1c43   :  { %19000 = vmatprep.mubr.msk.f32.mxu0 %vm20548_vm8, %v20547_v16 }
0x1c45   :  { %v4953_v21 = vpop.permute.xlu1 %4952 }
0x1d0d   :  { %v4290_v61 = vpop.f32.mrb[60].mxu0 }
0x1d0e   :  { %v21219_v62 = vadd.f32 %v4337_v34, %v4290_v61  ;;  %v18980_v63 = vpop.f32.mrb[61].mxu0  ;;  %v4496_v0 = vpop.f32.mrb[58].mxu1 }
0x1d0f   :  { %v4501_v1 = vmul.f32 0.17677669, %v4496_v0  ;;  %v4293_v2 = vpop.f32.mrb[62].mxu0  ;;  %v18997_v3 = vpop.f32.mrb[59].mxu1 }
0x1d10   :  { %v21221_v4 = vadd.f32 %v4340_v48, %v4293_v2  ;;  %v18981_v6 = vpop.f32.mrb[63].mxu0 }
0x1d11   :  { %v4503_v8 = vadd.f32 %v4501_v1, %v20765_v15 }
0x1d13   :  { %v4507_v9 = vsel %vm468_vm9, %v4503_v8, -inf }
0x1d14   :  { %4508 = vmax.xlane.f32.xlu0 %v4507_v9 }
0x1d15   :  { %v4418_v10 = vpop.f32.mrb[64].mxu0 }
0x1d16   :  { %v4500_v11 = vmul.f32 0.17677669, %v4418_v10  ;;  %v18992_v12 = vpop.f32.mrb[65].mxu0 }
0x1d18   :  { %v4502_v13 = vadd.f32 %v4500_v11, %v20765_v15 }
0x1d1a   :  { %v4504_v51 = vsel %vm468_vm9, %v4502_v13, -inf }
0x1d1b   :  { %4505 = vmax.xlane.f32.xlu1 %v4504_v51 }
0x1d2a   :  { %4592 = vrot.lane.b32.xlu0 %v21095_v28, %s22851_s23 }
0x1d2c   :  { %4950 = vrot.lane.b32.xlu1 %v21095_v28, %s22852_s30 }
0x1d2e   :  { %4872 = vrot.lane.b32.xlu0 %v21091_v24, %s22852_s30 }
0x1d32   :  { %4516 = vrot.lane.b32.xlu0 %v21091_v24, %s22851_s23 }
0x1da1   :  { %v4509_v19 = vpop.xlane.xlu0 %4508 }
0x1da2   :  { %v4511_v20 = vsub.f32 %v4503_v8, %v4509_v19 }
0x1da4   :  { %v4514_v22 = vmul.f32 1.442695, %v4511_v20 }
0x1da5   :  { %v4593_v23 = vpop.permute.xlu0 %4592 }
0x1da6   :  { %20321 = vpow2.f32 %v4514_v22  ;;  %19004 = vmatpush3.msra.mxu1 %v4593_v23 }
0x1da7   :  { %19013 = vmatprep.subr.mxu1 %v20547_v16 }
0x1da8   :  { %v4506_v25 = vpop.xlane.xlu1 %4505 }
0x1da9   :  { %v4510_v29 = vsub.f32 %v4502_v13, %v4506_v25  ;;  %v4873_v17 = vpop.permute.xlu0 %4872 }
0x1dab   :  { %v4512_v18 = vmul.f32 1.442695, %v4510_v29 }
0x1dac   :  { %v4951_v35 = vpop.permute.xlu1 %4950 }
0x1dad   :  { %20323 = vpow2.f32 %v4512_v18  ;;  %v4517_v30 = vpop.permute.xlu0 %4516 }
0x1dae   :  { %18999 = vmatpush3.msra.mxu0 %v4517_v30 }
0x1daf   :  { %19008 = vmatprep.subr.mxu0 %v20547_v16 }
0x1db0   :  { %v20322_v31 = vpop.eup %20321 }
0x1db1   :  { %19006 = vmatmul.mubr.msk.f32.vlgmr.msra.gmra.mrb[64].mxu1 %vm468_vm9, %v20322_v31 }
0x1db2   :  { %19014 = vmatpush3.msra.mxu1 %v20554_v37  ;;  %19015 = vmatprep.mubr.msk.f32.mxu1 %vm20548_vm8, %v20547_v16 }
0x1db3   :  { %19024 = vmatprep.subr.mxu1 %v20547_v16 }
0x1db5   :  { %19016 = vmatmul.mubr.msk.f32.vlgmr.msra.gmra.mrb[66].mxu1 %vm468_vm9, %v20322_v31 }
0x1db6   :  { %19026 = vmatprep.mubr.msk.f32.mxu1 %vm20548_vm8, %v20547_v16 }
0x1db7   :  { %v20324_v33 = vpop.eup %20323 }
0x1db8   :  { %19001 = vmatmul.mubr.msk.f32.vlgmr.msra.gmra.mrb[66].mxu0 %vm468_vm9, %v20324_v33 }
0x1db9   :  { %19025 = vmatpush3.xpose.msk.msra.mxu1 %vm468_vm9, %v4875_v56  ;;  %19009 = vmatpush3.msra.mxu0 %v20554_v37 }
0x1dba   :  { %19010 = vmatprep.mubr.msk.f32.mxu0 %vm20548_vm8, %v20547_v16  ;;  %19029 = vmatprep.subr.mxu1 %v20547_v16 }
0x1dbb   :  { %19018 = vmatprep.subr.bf16.mxu0 %v20547_v16 }
0x1dbc   :  { %19027 = vmatmul.mubr.msk.f32.vlgmr.msra.gmra.mrb[68].mxu1 %vm468_vm9, %v4873_v17  ;;  %19011 = vmatmul.mubr.msk.f32.vlgmr.msra.gmra.mrb[68].mxu0 %vm468_vm9, %v20324_v33 }
0x1dbd   :  { %19030 = vmatpush3.xpose.msk.msra.mxu1 %vm468_vm9, %v4953_v21  ;;  %19031 = vmatprep.mubr.msk.f32.mxu1 %vm20548_vm8, %v20547_v16 }
0x1dbe   :  { %19020 = vmatprep.mubr.msk.bf16.mxu0 %vm20548_vm8, %v20547_v16  ;;  %19039 = vmatprep.subr.mxu1 %v20547_v16 }
0x1dbf   :  { %19019 = vmatpush3.bf16.msra.mxu0 %v4827_v58 }
0x1dc0   :  { %19032 = vmatmul.mubr.msk.f32.vlgmr.msra.gmra.mrb[70].mxu1 %vm468_vm9, %v4951_v35  ;;  %19034 = vmatprep.subr.mxu0 %v20547_v16 }
0x1dc1   :  { %19041 = vmatprep.mubr.msk.f32.mxu1 %vm20548_vm8, %v20547_v16 }
0x1e84   :  { %v4664_v36 = vpop.f32.mrb[64].mxu1 }
0x1e85   :  { %v19007_v26 = vpop.f32.mrb[65].mxu1 }
0x1e88   :  { %v4804_v38 = vpop.f32.mrb[66].mxu1 }
0x1e89   :  { %v19017_v39 = vpop.f32.mrb[67].mxu1  ;;  %20325 = vrcp.f32 %v4804_v38 }
0x1e8b   :  { %v4588_v27 = vpop.f32.mrb[66].mxu0 }
0x1e8c   :  { %v19002_v41 = vpop.f32.mrb[67].mxu0 }
0x1e8d   :  { %v17594_v41 = vld [vmem:[%s22803_s7 + $0x1] ss:$0 sm:$0xff] }
0x1e8f   :  { %v4946_v42 = vpop.f32.mrb[68].mxu1  ;;  %v4734_v32 = vpop.f32.mrb[68].mxu0 }
0x1e90   :  { %v5028_v44 = vmul.f32 0.17677669, %v4946_v42  ;;  %v19028_v45 = vpop.f32.mrb[69].mxu1  ;;  %v19012_v46 = vpop.f32.mrb[69].mxu0  ;;  %20327 = vrcp.f32 %v4734_v32 }
0x1e92   :  { %v5030_v34 = vadd.f32 %v5028_v44, %v20765_v15 }
0x1e93   :  { %v5024_v47 = vpop.f32.mrb[70].mxu1  ;;  %v20326_v54 = vpop.eup %20325 }
0x1e94   :  { %v5029_v48 = vmul.f32 0.17677669, %v5024_v47  ;;  %v19033_v49 = vpop.f32.mrb[71].mxu1  ;;  %v5032_v50 = vsel %vm468_vm9, %v5030_v34, -inf }
0x1e95   :  { %5033 = vmax.xlane.f32.xlu0 %v5032_v50 }
0x1e96   :  { %v5031_v52 = vadd.f32 %v5029_v48, %v20765_v15 }
0x1e98   :  { %v5035_v53 = vsel %vm468_vm9, %v5031_v52, -inf }
0x1e99   :  { %5036 = vmax.xlane.f32.xlu1 %v5035_v53 }
0x1e9a   :  { %v20328_v57 = vpop.eup %20327 }
0x1eaa   :  { %4817 = vperm.xlu1 %20174, %v20326_v54  }
0x1eab   :  { %4812 = vperm.xlu0 %20173, %v20328_v57  }
0x1eae   :  { %5120 = vrot.lane.b32.xlu1 %v21095_v28, %s22853_s22 }
0x1eaf   :  { %5044 = vrot.lane.b32.xlu0 %v21091_v24, %s22853_s22 }
0x1f22   :  { %v5034_v59 = vpop.xlane.xlu0 %5033 }
0x1f23   :  { %v5038_v5 = vsub.f32 %v5030_v34, %v5034_v59 }
0x1f25   :  { %v5040_v61 = vmul.f32 1.442695, %v5038_v5 }
0x1f26   :  { %v5037_v7 = vpop.xlane.xlu1 %5036 }
0x1f27   :  { %v5039_v60 = vsub.f32 %v5031_v52, %v5037_v7 }
0x1f29   :  { %v5042_v63 = vmul.f32 1.442695, %v5039_v60 }
0x1f2a   :  { %v4818_v0 = vpop.permute.xlu1 %4817  ;;  %v4813_v1 = vpop.permute.xlu0 %4812 }
0x1f2b   :  { %20329 = vpow2.f32 %v5042_v63  ;;  %v4821_v2 = vmul.f32 %v4818_v0, %v4664_v36  ;;  %v4820_v3 = vmul.f32 %v4813_v1, %v4588_v27 }
0x1f2c   :  { %20331 = vpow2.f32 %v5040_v61 }
0x1f2d   :  { %v4822_v6 = vpack.c.bf16 %v4821_v2, %v4820_v3 }
0x1f2e   :  { %v5121_v8 = vpop.permute.xlu1 %5120  ;;  %v5045_v9 = vpop.permute.xlu0 %5044 }
0x1f2f   :  { %19021 = vmatmul.mubr.msk.bf16.vlgmr.msra.gmra.mrb[72].mxu0 %vm468_vm9, %v4822_v6  ;;  %19040 = vmatpush3.msra.mxu1 %v5121_v8 }
0x1f30   :  { %19035 = vmatpush3.msra.mxu0 %v5045_v9  ;;  %19036 = vmatprep.mubr.msk.f32.mxu0 %vm20548_vm8, %v20547_v16 }
0x1f31   :  { %19049 = vmatprep.subr.mxu1 %v20547_v16  ;;  %19044 = vmatprep.subr.mxu0 %v20547_v16 }
0x1f35   :  { %v20330_v24 = vpop.eup %20329 }
0x1f36   :  { %v20332_v28 = vpop.eup %20331  ;;  %19042 = vmatmul.mubr.msk.f32.vlgmr.msra.gmra.mrb[72].mxu1 %vm468_vm9, %v20330_v24 }
0x1f37   :  { %19037 = vmatmul.mubr.msk.f32.vlgmr.msra.gmra.mrb[70].mxu0 %vm468_vm9, %v20332_v28  ;;  %19050 = vmatpush3.msra.mxu1 %v20554_v37 }
0x1f38   :  { %19051 = vmatprep.mubr.msk.f32.mxu1 %vm20548_vm8, %v20547_v16  ;;  %19045 = vmatpush3.msra.mxu0 %v20554_v37 }
0x1f39   :  { %19046 = vmatprep.mubr.msk.f32.mxu0 %vm20548_vm8, %v20547_v16  ;;  %19054 = vmatprep.subr.bf16.mxu0 %v20547_v16 }
0x1f3a   :  { %19052 = vmatmul.mubr.msk.f32.vlgmr.msra.gmra.mrb[74].mxu1 %vm468_vm9, %v20330_v24  ;;  %20076 = vmatprep.subr.bf16.mxu1 %v20546_v14 }
0x1f3b   :  { %19047 = vmatmul.mubr.msk.f32.vlgmr.msra.gmra.mrb[76].mxu0 %vm468_vm9, %v20332_v28  ;;  %20077 = vmatpush3.bf16.msra.mxu1 %v20546_v14 }
0x1f3c   :  { %19056 = vmatprep.mubr.msk.bf16.mxu0 %vm20548_vm8, %v20547_v16  ;;  %20078 = vmatprep.subr.bf16.mxu1 %v20546_v14 }
0x1f3f   :  { %20079 = vmatpush3.bf16.msra.mxu1 %v20546_v14 }
0x1f40   :  { %19082 = vmatprep.subr.bf16.mxu1 %v20547_v16 }
0x2002   :  { %v4863_v10 = vpop.f32.mrb[72].mxu0 }
0x2003   :  { %v4870_v11 = vadd.f32 %v4863_v10, %v21219_v62  ;;  %v19022_v12 = vpop.f32.mrb[73].mxu0  ;;  %v17556_v62 = vld [vmem:[%s22802_s6 + $0x1c] sm:$0xf] }
0x2004   :  { %v4866_v13 = vpop.f32.mrb[74].mxu0  ;;  %v20189_v12 = vld [vmem:[%s22804_s10 + $0x10] sm:$0xff]  }
0x2005   :  { %v4871_v51 = vadd.f32 %v4866_v13, %v21221_v4  ;;  %v19023_v56 = vpop.f32.mrb[75].mxu0  ;;  %v5355_v4 = vsel %vm1425_vm11, %v17556_v62, 0  ;;  %v20190_v13 = vld [vmem:[%s22804_s10 + $0x18] sm:$0xff]  }
0x2006   :  { %19055 = vmatpush3.bf16.msra.mxu0 %v5355_v4  ;;  %v20192_v56 = vld [vmem:[%s22805_s12 + $0x48] sm:$0xff]  }
0x2007   :  { %20080 = vmatprep.subr.bf16.mxu0 %v20546_v14 }
0x2009   :  { %v5192_v19 = vpop.f32.mrb[72].mxu1 }
0x200a   :  { %v5116_v20 = vpop.f32.mrb[70].mxu0  ;;  %v19043_v21 = vpop.f32.mrb[73].mxu1 }
0x200b   :  { %v19038_v22 = vpop.f32.mrb[71].mxu0  ;;  %v20195_v21 = vld [vmem:[%s22805_s12 + $0x60] sm:$0xff]  }
0x200c   :  { %v20196_v22 = vld [vmem:[%s22805_s12 + $0x68] sm:$0xff]  }
0x200d   :  { %v5332_v23 = vpop.f32.mrb[74].mxu1 }
0x200e   :  { %20333 = vrcp.f32 %v5332_v23  ;;  %v5262_v25 = vpop.f32.mrb[76].mxu0  ;;  %v19053_v29 = vpop.f32.mrb[75].mxu1  ;;  %v17601_v23 = vld [vmem:[%s22806_s8 + $0x1] ss:$0 sm:$0xff] }
0x200f   :  { %20335 = vrcp.f32 %v5262_v25  ;;  %v19048_v17 = vpop.f32.mrb[77].mxu0 }
0x2018   :  { %v20334_v18 = vpop.eup %20333 }
0x2019   :  { %v20336_v30 = vpop.eup %20335  ;;  %5345 = vperm.xlu1 %20174, %v20334_v18   ;;  %v17602_v18 = vld [vmem:[%s22807_s9 + $0x1] ss:$0 sm:$0xff] }
0x201a   :  { %5340 = vperm.xlu0 %20173, %v20336_v30  }
0x2098   :  { %v5346_v31 = vpop.permute.xlu1 %5345 }
0x2099   :  { %v5349_v33 = vmul.f32 %v5346_v31, %v5192_v19  ;;  %v5341_v35 = vpop.permute.xlu0 %5340  ;;  %v20193_v19 = vld [vmem:[%s22805_s12 + $0x50] sm:$0xff]  }
0x209a   :  { %v5348_v36 = vmul.f32 %v5341_v35, %v5116_v20  ;;  %v20194_v20 = vld [vmem:[%s22805_s12 + $0x58] sm:$0xff]  }
0x209c   :  { %v5350_v26 = vpack.c.bf16 %v5349_v33, %v5348_v36  ;;  %v20197_v36 = vld [vmem:[%s22805_s12 + $0x70] sm:$0xff]  }
0x209e   :  { %19057 = vmatmul.mubr.msk.bf16.vlgmr.msra.gmra.mrb[80].mxu0 %vm468_vm9, %v5350_v26  ;;  %v20198_v26 = vld [vmem:[%s22805_s12 + $0x78] sm:$0xff]  }
0x209f   :  { %20081 = vmatpush3.bf16.msra.mxu0 %v20546_v14 }
0x20a0   :  { %20082 = vmatprep.subr.bf16.mxu0 %v20546_v14 }
0x20a3   :  { %20083 = vmatpush3.bf16.msra.mxu0 %v20546_v14 }
0x20a4   :  { %19090 = vmatprep.subr.bf16.mxu0 %v20547_v16 }
0x2171   :  { %v5391_v38 = vpop.f32.mrb[80].mxu0 }
0x2172   :  { %v5398_v39 = vadd.f32 %v5391_v38, %v4870_v11  ;;  %v19058_v27 = vpop.f32.mrb[81].mxu0  ;;  %v17608_v38 = vld [vmem:[%s22808_s11 + $0x1] ss:$0 sm:$0xff] }
0x2173   :  { %v5394_v42 = vpop.f32.mrb[82].mxu0 }
0x2174   :  { %v5400_v32 = vadd.f32 %v5398_v39, %v21055_v40  ;;  %v5399_v44 = vadd.f32 %v5394_v42, %v4871_v51  ;;  %v19059_v45 = vpop.f32.mrb[83].mxu0  ;;  %v20191_v51 = vld [vmem:[%s22805_s12 + $0x40] sm:$0xff]  }
0x2176   :  { %v21315_v46 = vadd.f32 %v17594_v41, %v5400_v32  ;;  %v5401_v34 = vadd.f32 %v5399_v44, %v21058_v43 }
0x2178   :  { %v21318_v47 = vadd.f32 %v17594_v41, %v5401_v34  ;;  %19068 = vmatprep.mubr.msk.f32.mxu1 %vm173_vm3, %v21315_v46 }
0x217a   :  { %19069 = vmatmul.mubr.msk.f32.vlgmr.msra.gmra.mrb[76].mxu1 %vm173_vm3, %v21318_v47 }
0x217b   :  { %19086 = vmatprep.mubr.msk.bf16.mxu1 %vm20548_vm8, %v20547_v16  ;;  %19083 = vmatpush3.bf16.msra.mxu1 %v20189_v12 }
0x217c   :  { %19084 = vmatprep.subr.bf16.mxu1 %v20547_v16 }
0x217f   :  { %19085 = vmatpush3.bf16.msra.mxu1 %v20190_v13 }
0x2180   :  { %20084 = vmatprep.subr.bf16.mxu1 %v20546_v14 }
0x224d   :  { %v19070_v48 = vpop.f32.mrb[76].mxu1 }
0x224e   :  { %v5498_v49 = vmul.f32 0.03125, %v19070_v48  ;;  %v5488_v40 = vpop.f32.mrb[77].mxu1 }
0x224f   :  { %v5497_v50 = vmul.f32 0.03125, %v5488_v40 }
0x2250   :  { %5506 = vperm.xlu1 %20174, %v5498_v49   ;;  %v17629_v49 = vld [vmem:[%s22809_s13 + $0x1] ss:$0 sm:$0xff] }
0x2251   :  { %5501 = vperm.xlu0 %20173, %v5497_v50  }
0x22cf   :  { %v5507_v52 = vpop.permute.xlu1 %5506 }
0x22d0   :  { %v5510_v43 = vsub.f32 %v21318_v47, %v5507_v52  ;;  %v5502_v53 = vpop.permute.xlu0 %5501 }
0x22d1   :  { %v21328_v54 = vsub.f32 %v21315_v46, %v5502_v53 }
0x22d2   :  { %v5512_v57 = vmul.f32 %v5510_v43, %v5510_v43 }
0x22d3   :  { %v5511_v55 = vmul.f32 %v21328_v54, %v21328_v54 }
0x22d5   :  { %19079 = vmatprep.mubr.msk.f32.mxu0 %vm173_vm3, %v5511_v55 }
0x22d6   :  { %19080 = vmatmul.mubr.msk.f32.vlgmr.msra.gmra.mrb[78].mxu0 %vm173_vm3, %v5512_v57 }
0x22d7   :  { %19106 = vmatprep.mubr.msk.bf16.mxu0 %vm20548_vm8, %v20547_v16  ;;  %19091 = vmatpush3.bf16.msra.mxu0 %v20191_v51 }
0x22d8   :  { %19092 = vmatprep.subr.bf16.mxu0 %v20547_v16 }
0x22db   :  { %19093 = vmatpush3.bf16.msra.mxu0 %v20192_v56 }
0x22dc   :  { %19094 = vmatprep.subr.bf16.mxu0 %v20547_v16 }
0x22df   :  { %19095 = vmatpush3.bf16.msra.mxu0 %v20193_v19 }
0x22e0   :  { %19096 = vmatprep.subr.bf16.mxu0 %v20547_v16 }
0x22e3   :  { %19097 = vmatpush3.bf16.msra.mxu0 %v20194_v20 }
0x22e4   :  { %19098 = vmatprep.subr.bf16.mxu0 %v20547_v16 }
0x22e7   :  { %19099 = vmatpush3.bf16.msra.mxu0 %v20195_v21 }
0x22e8   :  { %19100 = vmatprep.subr.bf16.mxu0 %v20547_v16 }
0x22eb   :  { %19101 = vmatpush3.bf16.msra.mxu0 %v20196_v22 }
0x22ec   :  { %19102 = vmatprep.subr.bf16.mxu0 %v20547_v16 }
0x22ef   :  { %19103 = vmatpush3.bf16.msra.mxu0 %v20197_v36 }
0x22f0   :  { %19104 = vmatprep.subr.bf16.mxu0 %v20547_v16 }
0x22f3   :  { %19105 = vmatpush3.bf16.msra.mxu0 %v20198_v26 }
0x22f4   :  { %19145 = vmatprep.subr.mxu0 %v20547_v16 }
0x23a9   :  { %v19081_v58 = vpop.f32.mrb[78].mxu0 }
0x23aa   :  { %v5595_v59 = vmul.f32 0.032258064, %v19081_v58  ;;  %v5585_v5 = vpop.f32.mrb[79].mxu0 }
0x23ab   :  { %v5594_v7 = vmul.f32 0.032258064, %v5585_v5 }
0x23ac   :  { %20337 = vrsqrt.f32 %v5595_v59  ;;  %vm5605_vm5 = vcmp.eq.f32.partialorder %v5595_v59, inf  ;;  %v5608_v0 = vand.u32 2147483648, %v5595_v59  ;;  %vm5607_vm6 = vcmp.eq.f32.partialorder %v5595_v59, 0.0 }
0x23ad   :  { %20339 = vrsqrt.f32 %v5594_v7  ;;  %vm5598_vm7 = vcmp.eq.f32.partialorder %v5594_v7, inf  ;;  %v5601_v3 = vand.u32 2147483648, %v5594_v7  ;;  %vm5600_vm10 = vcmp.eq.f32.partialorder %v5594_v7, 0.0 }
0x23b6   :  { %v20338_v60 = vpop.eup %20337 }
0x23b7   :  { %v20340_v61 = vpop.eup %20339  ;;  %v5604_v63 = vmul.f32 %v20338_v60, %v5595_v59 }
0x23b8   :  { %v5597_v1 = vmul.f32 %v20340_v61, %v5594_v7 }
0x23b9   :  { %v5606_v2 = vsel %vm5605_vm5, %v5595_v59, %v5604_v63 }
0x23ba   :  { %v5609_v6 = vsel %vm5607_vm6, %v5608_v0, %v5606_v2  ;;  %v5599_v8 = vsel %vm5598_vm7, %v5594_v7, %v5597_v1 }
0x23bb   :  { %v5611_v9 = vadd.f32 1e-06, %v5609_v6  ;;  %v5602_v24 = vsel %vm5600_vm10, %v5601_v3, %v5599_v8 }
0x23bc   :  { %v5610_v28 = vadd.f32 1e-06, %v5602_v24 }
0x23bd   :  { %20341 = vrsqrt.f32 %v5611_v9 }
0x23be   :  { %20343 = vrsqrt.f32 %v5610_v28 }
0x23c7   :  { %v20342_v10 = vpop.eup %20341 }
0x23c8   :  { %v20344_v11 = vpop.eup %20343  ;;  %5621 = vperm.xlu1 %20174, %v20342_v10  }
0x23c9   :  { %5616 = vperm.xlu0 %20173, %v20344_v11  }
0x2447   :  { %v5622_v25 = vpop.permute.xlu1 %5621 }
0x2448   :  { %v5625_v29 = vmul.f32 %v5622_v25, %v5510_v43  ;;  %v5617_v17 = vpop.permute.xlu0 %5616  ;;  %v20200_v25 = vld [vmem:[%s22799_s5 + $0x28] sm:$0xff]  }
0x2449   :  { %v5624_v30 = vmul.f32 %v5617_v17, %v21328_v54 }
0x244a   :  { %v5633_v62 = vmul.f32 %v17601_v23, %v5625_v29  ;;  %v17644_v29 = vld [vmem:[%s22800_s3 + $0x2] ss:$0 sm:$0xff] }
0x244b   :  { %v5632_v4 = vmul.f32 %v17601_v23, %v5624_v30  ;;  %v20199_v23 = vld [vmem:[%s22799_s5 + $0x20] sm:$0xff]  }
0x244c   :  { %v5641_v31 = vadd.f32 %v17602_v18, %v5633_v62  ;;  %v17645_v62 = vld [vmem:[%s22801_s4 + $0x2] ss:$0 sm:$0xff] }
0x244d   :  { %v5640_v33 = vadd.f32 %v17602_v18, %v5632_v4 }
0x244f   :  { %v5642_v35 = vpack.c.bf16 %v5641_v31, %v5640_v33 }
0x2451   :  { %19087 = vmatmul.mubr.msk.bf16.vlgmr.msra.gmra.mrb[80].mxu1 %vm173_vm3, %v5642_v35 }
0x2452   :  { %20085 = vmatpush3.bf16.msra.mxu1 %v20546_v14 }
0x2453   :  { %20086 = vmatprep.subr.bf16.mxu1 %v20546_v14 }
0x2456   :  { %20087 = vmatpush3.bf16.msra.mxu1 %v20546_v14 }
0x2457   :  { %20088 = vmatprep.subr.bf16.mxu1 %v20546_v14 }
0x2524   :  { %v5705_v39 = vpop.f32.mrb[80].mxu1 }
0x2525   :  { %v5706_v27 = vadd.f32 %v17608_v38, %v5705_v39  ;;  %v19088_v41 = vpop.f32.mrb[81].mxu1 }
0x2526   :  { %v5708_v42 = vpop.f32.mrb[82].mxu1 }
0x2527   :  { %v5709_v32 = vadd.f32 %v17608_v38, %v5708_v42  ;;  %v19089_v44 = vpop.f32.mrb[83].mxu1  ;;  %v5712_v45 = vmax.f32 %v5706_v27, 0.0 }
0x2529   :  { %v5713_v34 = vmax.f32 %v5709_v32, 0.0 }
0x252b   :  { %v5714_v48 = vpack.c.bf16 %v5713_v34, %v5712_v45 }
0x252d   :  { %19107 = vmatmul.mubr.bf16.vlgmr.msra.gmra.mrb[84].mxu0 %v5714_v48 }
0x252e   :  { %19147 = vmatprep.mubr.msk.f32.mxu0 %vm20548_vm8, %v20547_v16 }
0x2600   :  { %v5822_v40 = vpop.f32.mrb[84].mxu0 }
0x2601   :  { %v5823_v50 = vadd.f32 %v17629_v49, %v5822_v40  ;;  %v19108_v52 = vpop.f32.mrb[85].mxu0 }
0x2602   :  { %v5825_v43 = vpop.f32.mrb[86].mxu0 }
0x2603   :  { %v21397_v53 = vadd.f32 %v5823_v50, %v21315_v46  ;;  %v5826_v54 = vadd.f32 %v17629_v49, %v5825_v43  ;;  %v19109_v55 = vpop.f32.mrb[87].mxu0 }
0x2605   :  { %v21400_v57 = vadd.f32 %v5826_v54, %v21318_v47  ;;  %19118 = vmatprep.mubr.msk.f32.mxu1 %vm173_vm3, %v21397_v53 }
0x2607   :  { %19119 = vmatmul.mubr.msk.f32.vlgmr.msra.gmra.mrb[78].mxu1 %vm173_vm3, %v21400_v57 }
0x2608   :  { %20089 = vmatpush3.bf16.msra.mxu1 %v20546_v14 }
0x2609   :  { %20090 = vmatprep.subr.bf16.mxu1 %v20546_v14 }
0x260c   :  { %20091 = vmatpush3.bf16.msra.mxu1 %v20546_v14 }
0x260d   :  { %19132 = vmatprep.subr.bf16.mxu1 %v20547_v16 }
0x26da   :  { %v19120_v46 = vpop.f32.mrb[78].mxu1 }
0x26db   :  { %v5917_v58 = vmul.f32 0.03125, %v19120_v46  ;;  %v5907_v59 = vpop.f32.mrb[79].mxu1 }
0x26dc   :  { %v5916_v5 = vmul.f32 0.03125, %v5907_v59 }
0x26dd   :  { %5925 = vperm.xlu1 %20174, %v5917_v58  }
0x26de   :  { %5920 = vperm.xlu0 %20173, %v5916_v5  }
0x275c   :  { %v5926_v47 = vpop.permute.xlu1 %5925 }
0x275d   :  { %v5929_v7 = vsub.f32 %v21400_v57, %v5926_v47  ;;  %v5921_v60 = vpop.permute.xlu0 %5920 }
0x275e   :  { %v5928_v61 = vsub.f32 %v21397_v53, %v5921_v60 }
0x275f   :  { %v5931_v0 = vmul.f32 %v5929_v7, %v5929_v7 }
0x2760   :  { %v5930_v63 = vmul.f32 %v5928_v61, %v5928_v61 }
0x2762   :  { %19129 = vmatprep.mubr.msk.f32.mxu1 %vm173_vm3, %v5930_v63 }
0x2763   :  { %19130 = vmatmul.mubr.msk.f32.vlgmr.msra.gmra.mrb[84].mxu1 %vm173_vm3, %v5931_v0 }
0x2764   :  { %19136 = vmatprep.mubr.msk.bf16.mxu1 %vm20548_vm8, %v20547_v16  ;;  %19133 = vmatpush3.bf16.msra.mxu1 %v20199_v23 }
0x2765   :  { %19134 = vmatprep.subr.bf16.mxu1 %v20547_v16 }
0x2768   :  { %19135 = vmatpush3.bf16.msra.mxu1 %v20200_v25 }
0x2769   :  { %19140 = vmatprep.subr.mxu1 %v20547_v16 }
0x2836   :  { %v19131_v1 = vpop.f32.mrb[84].mxu1 }
0x2837   :  { %v6014_v2 = vmul.f32 0.032258064, %v19131_v1  ;;  %v6004_v3 = vpop.f32.mrb[85].mxu1 }
0x2838   :  { %v6013_v6 = vmul.f32 0.032258064, %v6004_v3 }
0x2839   :  { %20345 = vrsqrt.f32 %v6014_v2  ;;  %vm6024_vm12 = vcmp.eq.f32.partialorder %v6014_v2, inf  ;;  %v6027_v28 = vand.u32 2147483648, %v6014_v2  ;;  %vm6026_vm13 = vcmp.eq.f32.partialorder %v6014_v2, 0.0 }
0x283a   :  { %20347 = vrsqrt.f32 %v6013_v6  ;;  %vm6017_vm14 = vcmp.eq.f32.partialorder %v6013_v6, inf  ;;  %v6020_v12 = vand.u32 2147483648, %v6013_v6  ;;  %vm6019_vm15 = vcmp.eq.f32.partialorder %v6013_v6, 0.0 }
0x2843   :  { %v20346_v8 = vpop.eup %20345 }
0x2844   :  { %v20348_v9 = vpop.eup %20347  ;;  %v6023_v24 = vmul.f32 %v20346_v8, %v6014_v2 }
0x2845   :  { %v6016_v10 = vmul.f32 %v20348_v9, %v6013_v6 }
0x2846   :  { %v6025_v11 = vsel %vm6024_vm12, %v6014_v2, %v6023_v24 }
0x2847   :  { %v6028_v13 = vsel %vm6026_vm13, %v6027_v28, %v6025_v11  ;;  %v6018_v51 = vsel %vm6017_vm14, %v6013_v6, %v6016_v10 }
0x2848   :  { %v6030_v56 = vadd.f32 1e-06, %v6028_v13  ;;  %v6021_v19 = vsel %vm6019_vm15, %v6020_v12, %v6018_v51 }
0x2849   :  { %v6029_v20 = vadd.f32 1e-06, %v6021_v19 }
0x284a   :  { %20349 = vrsqrt.f32 %v6030_v56 }
0x284b   :  { %20351 = vrsqrt.f32 %v6029_v20 }
0x2854   :  { %v20350_v21 = vpop.eup %20349 }
0x2855   :  { %v20352_v22 = vpop.eup %20351  ;;  %6040 = vperm.xlu1 %20174, %v20350_v21  }
0x2856   :  { %6035 = vperm.xlu0 %20173, %v20352_v22  }
0x28d4   :  { %v6041_v17 = vpop.permute.xlu1 %6040 }
0x28d5   :  { %v6044_v18 = vmul.f32 %v6041_v17, %v5929_v7  ;;  %v6036_v30 = vpop.permute.xlu0 %6035 }
0x28d6   :  { %v6043_v4 = vmul.f32 %v6036_v30, %v5928_v61 }
0x28d7   :  { %v6052_v31 = vmul.f32 %v17644_v29, %v6044_v18 }
0x28d8   :  { %v6051_v33 = vmul.f32 %v17644_v29, %v6043_v4 }
0x28d9   :  { %v6060_v35 = vadd.f32 %v17645_v62, %v6052_v31 }
0x28da   :  { %v6059_v36 = vadd.f32 %v17645_v62, %v6051_v33 }
0x28dc   :  { %v6066_v26 = vpack.c.bf16 %v6060_v35, %v6059_v36 }
0x28de   :  { %19137 = vmatmul.mubr.msk.bf16.vlgmr.msra.gmra.mrb[88].mxu1 %vm173_vm3, %v6066_v26 }
0x28df   :  { %19142 = vmatprep.mubr.msk.f32.mxu1 %vm20548_vm8, %v20547_v16 }
0x29b1   :  { %v21433_v38 = vpop.f32.mrb[88].mxu1 }
0x29b2   :  { %6129 = vrot.lane.b32.xlu0 %v21433_v38, %s22837_s0  ;;  %v19138_v39 = vpop.f32.mrb[89].mxu1 }
0x29b3   :  { %v21437_v27 = vpop.f32.mrb[90].mxu1 }
0x29b4   :  { %6206 = vrot.lane.b32.xlu1 %v21437_v27, %s22837_s0  ;;  %v19139_v41 = vpop.f32.mrb[91].mxu1  ;;  %s22860_s0 = smov 88  }
0x29b8   :  { %6374 = vrot.lane.b32.xlu1 %v21437_v27, %s22835_s1 }
0x2a24   :  { %v6130_v42 = vpop.permute.xlu0 %6129 }
0x2a25   :  { %19141 = vmatpush3.xpose.msk.msra.mxu1 %vm468_vm9, %v6130_v42 }
0x2a26   :  { %v6207_v32 = vpop.permute.xlu1 %6206  ;;  %19150 = vmatprep.subr.mxu1 %v20547_v16 }
0x2a27   :  { %19146 = vmatpush3.xpose.msk.msra.mxu0 %vm468_vm9, %v6207_v32 }
0x2a28   :  { %19143 = vmatmul.mubr.msk.f32.vlgmr.msra.gmra.mrb[86].mxu1 %vm468_vm9, %v21433_v38  ;;  %19155 = vmatprep.subr.mxu0 %v20547_v16 }
0x2a29   :  { %19152 = vmatprep.mubr.msk.f32.mxu1 %vm20548_vm8, %v20547_v16 }
0x2a2a   :  { %19148 = vmatmul.mubr.msk.f32.vlgmr.msra.gmra.mrb[88].mxu0 %vm468_vm9, %v21437_v27  ;;  %v6375_v44 = vpop.permute.xlu1 %6374 }
0x2a2b   :  { %19156 = vmatpush3.msra.mxu0 %v6375_v44  ;;  %19157 = vmatprep.mubr.msk.f32.mxu0 %vm20548_vm8, %v20547_v16 }
0x2a2c   :  { %19165 = vmatprep.subr.mxu0 %v20547_v16 }
0x2afb   :  { %v6201_v45 = vpop.f32.mrb[86].mxu1 }
0x2afc   :  { %v6282_v34 = vmul.f32 0.17677669, %v6201_v45  ;;  %v19144_v48 = vpop.f32.mrb[87].mxu1 }
0x2afd   :  { %v6278_v49 = vpop.f32.mrb[88].mxu0  ;;  %v17653_v48 = vld [vmem:[%s22802_s6 + $0x20] sm:$0xf] }
0x2afe   :  { %v6284_v40 = vadd.f32 %v6282_v34, %v20765_v15  ;;  %v6283_v50 = vmul.f32 0.17677669, %v6278_v49  ;;  %v19149_v52 = vpop.f32.mrb[89].mxu0  ;;  %v7135_v49 = vsel %vm1425_vm11, %v17653_v48, 0 }
0x2b00   :  { %v6285_v43 = vadd.f32 %v6283_v50, %v20765_v15  ;;  %v6286_v54 = vsel %vm468_vm9, %v6284_v40, -inf }
0x2b01   :  { %6287 = vmax.xlane.f32.xlu0 %v6286_v54 }
0x2b02   :  { %v6289_v55 = vsel %vm468_vm9, %v6285_v43, -inf }
0x2b03   :  { %6290 = vmax.xlane.f32.xlu1 %v6289_v55 }
0x2b14   :  { %6685 = vrot.lane.b32.xlu1 %v21437_v27, %s22833_s29 }
0x2b17   :  { %6298 = vrot.lane.b32.xlu0 %v21433_v38, %s22835_s1  ;;  %s22858_s1 = smov 96  }
0x2b18   :  { %6683 = vrot.lane.b32.xlu1 %v21437_v27, %s22854_s24 }
0x2b1b   :  { %6607 = vrot.lane.b32.xlu0 %v21433_v38, %s22833_s29 }
0x2b1f   :  { %6605 = vrot.lane.b32.xlu0 %v21433_v38, %s22854_s24 }
0x2b8e   :  { %v6288_v46 = vpop.xlane.xlu0 %6287 }
0x2b8f   :  { %v6292_v58 = vsub.f32 %v6284_v40, %v6288_v46  ;;  %v17654_v40 = vld [vmem:[%s22802_s6 + $0x24] sm:$0xf] }
0x2b90   :  { %v6291_v59 = vpop.xlane.xlu1 %6290  ;;  %v7088_v50 = vsel %vm1425_vm11, %v17654_v40, 0 }
0x2b91   :  { %v6294_v5 = vmul.f32 1.442695, %v6292_v58  ;;  %v6293_v47 = vsub.f32 %v6285_v43, %v6291_v59 }
0x2b92   :  { %v6299_v7 = vpop.permute.xlu0 %6298 }
0x2b93   :  { %20353 = vpow2.f32 %v6294_v5  ;;  %v6296_v60 = vmul.f32 1.442695, %v6293_v47  ;;  %19151 = vmatpush3.msra.mxu1 %v6299_v7 }
0x2b94   :  { %19160 = vmatprep.subr.mxu1 %v20547_v16  ;;  %v6686_v1 = vpop.permute.xlu1 %6685 }
0x2b95   :  { %20355 = vpow2.f32 %v6296_v60 }
0x2b96   :  { %v6608_v0 = vpop.permute.xlu0 %6607 }
0x2b98   :  { %v6684_v3 = vpop.permute.xlu1 %6683 }
0x2b9a   :  { %v6606_v2 = vpop.permute.xlu0 %6605 }
0x2b9d   :  { %v20354_v61 = vpop.eup %20353 }
0x2b9e   :  { %19153 = vmatmul.mubr.msk.f32.vlgmr.msra.gmra.mrb[92].mxu1 %vm468_vm9, %v20354_v61 }
0x2b9f   :  { %v20356_v63 = vpop.eup %20355  ;;  %19161 = vmatpush3.msra.mxu1 %v20554_v37  ;;  %19162 = vmatprep.mubr.msk.f32.mxu1 %vm20548_vm8, %v20547_v16 }
0x2ba0   :  { %19158 = vmatmul.mubr.msk.f32.vlgmr.msra.gmra.mrb[90].mxu0 %vm468_vm9, %v20356_v63  ;;  %19170 = vmatprep.subr.mxu1 %v20547_v16 }
0x2ba1   :  { %19166 = vmatpush3.msra.mxu0 %v20554_v37  ;;  %19167 = vmatprep.mubr.msk.f32.mxu0 %vm20548_vm8, %v20547_v16 }
0x2ba2   :  { %19163 = vmatmul.mubr.msk.f32.vlgmr.msra.gmra.mrb[94].mxu1 %vm468_vm9, %v20354_v61  ;;  %19175 = vmatprep.subr.mxu0 %v20547_v16 }
0x2ba3   :  { %19172 = vmatprep.mubr.msk.f32.mxu1 %vm20548_vm8, %v20547_v16 }
0x2ba4   :  { %19168 = vmatmul.mubr.msk.f32.vlgmr.msra.gmra.mrb[92].mxu0 %vm468_vm9, %v20356_v63 }
0x2ba5   :  { %19177 = vmatprep.mubr.msk.f32.mxu0 %vm20548_vm8, %v20547_v16 }
0x2ba6   :  { %19171 = vmatpush3.xpose.msk.msra.mxu1 %vm468_vm9, %v6608_v0 }
0x2ba7   :  { %19180 = vmatprep.subr.mxu1 %v20547_v16 }
0x2ba8   :  { %19176 = vmatpush3.xpose.msk.msra.mxu0 %vm468_vm9, %v6686_v1 }
0x2ba9   :  { %19173 = vmatmul.mubr.msk.f32.vlgmr.msra.gmra.mrb[96].mxu1 %vm468_vm9, %v6606_v2  ;;  %19185 = vmatprep.subr.mxu0 %v20547_v16 }
0x2baa   :  { %19182 = vmatprep.mubr.msk.f32.mxu1 %vm20548_vm8, %v20547_v16 }
0x2bab   :  { %19178 = vmatmul.mubr.msk.f32.vlgmr.msra.gmra.mrb[94].mxu0 %vm468_vm9, %v6684_v3 }
0x2bac   :  { %19187 = vmatprep.mubr.msk.f32.mxu0 %vm20548_vm8, %v20547_v16 }
0x2c71   :  { %v6370_v6 = vpop.f32.mrb[92].mxu1 }
0x2c72   :  { %v19154_v8 = vpop.f32.mrb[93].mxu1 }
0x2c73   :  { %v6446_v9 = vpop.f32.mrb[90].mxu0 }
0x2c74   :  { %v19159_v24 = vpop.f32.mrb[91].mxu0 }
0x2c75   :  { %v6516_v28 = vpop.f32.mrb[94].mxu1 }
0x2c76   :  { %v19164_v10 = vpop.f32.mrb[95].mxu1 }
0x2c77   :  { %v6586_v11 = vpop.f32.mrb[92].mxu0 }
0x2c78   :  { %v19169_v12 = vpop.f32.mrb[93].mxu0  ;;  %20357 = vrcp.f32 %v6586_v11 }
0x2c79   :  { %20359 = vrcp.f32 %v6516_v28 }
0x2c7c   :  { %v6679_v13 = vpop.f32.mrb[96].mxu1 }
0x2c7d   :  { %v6761_v51 = vmul.f32 0.17677669, %v6679_v13  ;;  %v19174_v56 = vpop.f32.mrb[97].mxu1 }
0x2c7e   :  { %v6757_v19 = vpop.f32.mrb[94].mxu0 }
0x2c7f   :  { %v6763_v20 = vadd.f32 %v6761_v51, %v20765_v15  ;;  %v6762_v21 = vmul.f32 0.17677669, %v6757_v19  ;;  %v19179_v22 = vpop.f32.mrb[95].mxu0 }
0x2c81   :  { %v6764_v23 = vadd.f32 %v6762_v21, %v20765_v15  ;;  %v6765_v25 = vsel %vm468_vm9, %v6763_v20, -inf }
0x2c82   :  { %6766 = vmax.xlane.f32.xlu0 %v6765_v25  ;;  %v20358_v17 = vpop.eup %20357 }
0x2c83   :  { %v6768_v29 = vsel %vm468_vm9, %v6764_v23, -inf  ;;  %v20360_v18 = vpop.eup %20359 }
0x2c84   :  { %6769 = vmax.xlane.f32.xlu1 %v6768_v29 }
0x2c95   :  { %6853 = vrot.lane.b32.xlu1 %v21437_v27, %s22855_s20 }
0x2c98   :  { %6777 = vrot.lane.b32.xlu0 %v21433_v38, %s22855_s20 }
0x2c99   :  { %6599 = vperm.xlu1 %20174, %v20358_v17  }
0x2c9c   :  { %6594 = vperm.xlu0 %20173, %v20360_v18  }
0x2d0f   :  { %v6767_v30 = vpop.xlane.xlu0 %6766 }
0x2d10   :  { %v6771_v62 = vsub.f32 %v6763_v20, %v6767_v30 }
0x2d11   :  { %v6770_v4 = vpop.xlane.xlu1 %6769 }
0x2d12   :  { %v6773_v31 = vmul.f32 1.442695, %v6771_v62  ;;  %v6772_v33 = vsub.f32 %v6764_v23, %v6770_v4 }
0x2d13   :  { %v6778_v35 = vpop.permute.xlu0 %6777 }
0x2d14   :  { %20361 = vpow2.f32 %v6773_v31  ;;  %v6775_v36 = vmul.f32 1.442695, %v6772_v33  ;;  %19181 = vmatpush3.msra.mxu1 %v6778_v35 }
0x2d15   :  { %v6854_v26 = vpop.permute.xlu1 %6853  ;;  %19190 = vmatprep.subr.mxu1 %v20547_v16 }
0x2d16   :  { %20363 = vpow2.f32 %v6775_v36  ;;  %19186 = vmatpush3.msra.mxu0 %v6854_v26 }
0x2d17   :  { %19195 = vmatprep.subr.mxu0 %v20547_v16 }
0x2d19   :  { %v6600_v39 = vpop.permute.xlu1 %6599 }
0x2d1a   :  { %v6603_v42 = vmul.f32 %v6600_v39, %v6446_v9 }
0x2d1b   :  { %v6595_v41 = vpop.permute.xlu0 %6594 }
0x2d1c   :  { %v6602_v32 = vmul.f32 %v6595_v41, %v6370_v6 }
0x2d1e   :  { %v20362_v44 = vpop.eup %20361  ;;  %v6604_v45 = vpack.c.bf16 %v6603_v42, %v6602_v32 }
0x2d1f   :  { %19183 = vmatmul.mubr.msk.f32.vlgmr.msra.gmra.mrb[98].mxu1 %vm468_vm9, %v20362_v44 }
0x2d20   :  { %v20364_v34 = vpop.eup %20363  ;;  %19191 = vmatpush3.msra.mxu1 %v20554_v37  ;;  %19192 = vmatprep.mubr.msk.f32.mxu1 %vm20548_vm8, %v20547_v16 }
0x2d21   :  { %19188 = vmatmul.mubr.msk.f32.vlgmr.msra.gmra.mrb[96].mxu0 %vm468_vm9, %v20364_v34  ;;  %19200 = vmatprep.subr.bf16.mxu1 %v20547_v16 }
0x2d22   :  { %19196 = vmatpush3.msra.mxu0 %v20554_v37  ;;  %19197 = vmatprep.mubr.msk.f32.mxu0 %vm20548_vm8, %v20547_v16 }
0x2d23   :  { %19193 = vmatmul.mubr.msk.f32.vlgmr.msra.gmra.mrb[100].mxu1 %vm468_vm9, %v20362_v44  ;;  %19206 = vmatprep.subr.bf16.mxu0 %v20547_v16 }
0x2d24   :  { %19202 = vmatprep.mubr.msk.bf16.mxu1 %vm20548_vm8, %v20547_v16  ;;  %19201 = vmatpush3.bf16.msra.mxu1 %v7088_v50 }
0x2d25   :  { %19198 = vmatmul.mubr.msk.f32.vlgmr.msra.gmra.mrb[98].mxu0 %vm468_vm9, %v20364_v34  ;;  %19212 = vmatprep.subr.mxu1 %v20547_v16 }
0x2d26   :  { %19207 = vmatpush3.bf16.msra.mxu0 %v7135_v49  ;;  %19208 = vmatprep.mubr.msk.bf16.mxu0 %vm20548_vm8, %v20547_v16 }
0x2d27   :  { %19217 = vmatprep.subr.mxu0 %v20547_v16 }
0x2d29   :  { %19209 = vmatmul.mubr.msk.bf16.vlgmr.msra.gmra.mrb[100].mxu0 %vm468_vm9, %v6604_v45 }
0x2d2a   :  { %19219 = vmatprep.mubr.msk.f32.mxu0 %vm20548_vm8, %v20547_v16 }
0x2df2   :  { %v6849_v52 = vpop.f32.mrb[98].mxu1 }
0x2df3   :  { %v19184_v43 = vpop.f32.mrb[99].mxu1 }
0x2df4   :  { %v6925_v54 = vpop.f32.mrb[96].mxu0 }
0x2df5   :  { %v19189_v55 = vpop.f32.mrb[97].mxu0 }
0x2df6   :  { %v6995_v46 = vpop.f32.mrb[100].mxu1 }
0x2df7   :  { %20365 = vrcp.f32 %v6995_v46  ;;  %v19194_v58 = vpop.f32.mrb[101].mxu1 }
0x2df8   :  { %v7065_v59 = vpop.f32.mrb[98].mxu0 }
0x2df9   :  { %20367 = vrcp.f32 %v7065_v59  ;;  %v19199_v5 = vpop.f32.mrb[99].mxu0 }
0x2dfc   :  { %v7171_v47 = vpop.f32.mrb[100].mxu0 }
0x2dfd   :  { %v19210_v7 = vpop.f32.mrb[101].mxu0 }
0x2dfe   :  { %v7174_v60 = vpop.f32.mrb[102].mxu0 }
0x2dff   :  { %v19211_v61 = vpop.f32.mrb[103].mxu0 }
0x2e01   :  { %v20366_v63 = vpop.eup %20365 }
0x2e02   :  { %7073 = vperm.xlu0 %20173, %v20366_v63  }
0x2e03   :  { %v20368_v0 = vpop.eup %20367 }
0x2e04   :  { %7078 = vperm.xlu1 %20174, %v20368_v0  }
0x2e06   :  { %7258 = vrot.lane.b32.xlu0 %v21437_v27, %s22856_s21 }
0x2e08   :  { %7256 = vrot.lane.b32.xlu1 %v21437_v27, %s22857_s28 }
0x2e0a   :  { %7180 = vrot.lane.b32.xlu0 %v21433_v38, %s22856_s21 }
0x2e0c   :  { %7178 = vrot.lane.b32.xlu1 %v21433_v38, %s22857_s28 }
0x2e10   :  { %7708 = vrot.lane.b32.xlu1 %v21433_v38, %s22850_s2 }
0x2e14   :  { %7786 = vrot.lane.b32.xlu1 %v21437_v27, %s22850_s2 }
0x2e81   :  { %v7074_v1 = vpop.permute.xlu0 %7073 }
0x2e82   :  { %v7081_v3 = vmul.f32 %v7074_v1, %v6849_v52 }
0x2e83   :  { %v7079_v2 = vpop.permute.xlu1 %7078 }
0x2e84   :  { %v7082_v6 = vmul.f32 %v7079_v2, %v6925_v54 }
0x2e85   :  { %v7259_v8 = vpop.permute.xlu0 %7258 }
0x2e86   :  { %v7083_v9 = vpack.c.bf16 %v7082_v6, %v7081_v3  ;;  %19218 = vmatpush3.xpose.msk.msra.mxu0 %vm468_vm9, %v7259_v8  ;;  %v17655_v3 = vld [vmem:[%s22802_s6 + $0x28] sm:$0xf] }
0x2e87   :  { %v7257_v24 = vpop.permute.xlu1 %7256  ;;  %19227 = vmatprep.subr.mxu0 %v20547_v16  ;;  %v7661_v8 = vsel %vm1425_vm11, %v17655_v3, 0 }
0x2e88   :  { %19203 = vmatmul.mubr.msk.bf16.vlgmr.msra.gmra.mrb[104].mxu1 %vm468_vm9, %v7083_v9 }
0x2e89   :  { %19220 = vmatmul.mubr.msk.f32.vlgmr.msra.gmra.mrb[104].mxu0 %vm468_vm9, %v7257_v24  ;;  %v7181_v28 = vpop.permute.xlu0 %7180  ;;  %19214 = vmatprep.mubr.msk.f32.mxu1 %vm20548_vm8, %v20547_v16 }
0x2e8a   :  { %19213 = vmatpush3.xpose.msk.msra.mxu1 %vm468_vm9, %v7181_v28  ;;  %19229 = vmatprep.mubr.msk.f32.mxu0 %vm20548_vm8, %v20547_v16 }
0x2e8b   :  { %19222 = vmatprep.subr.mxu1 %v20547_v16  ;;  %v7179_v10 = vpop.permute.xlu1 %7178 }
0x2e8f   :  { %v7709_v4 = vpop.permute.xlu1 %7708 }
0x2e90   :  { %19215 = vmatmul.mubr.msk.f32.vlgmr.msra.gmra.mrb[102].mxu1 %vm468_vm9, %v7179_v10 }
0x2e91   :  { %19224 = vmatprep.mubr.msk.f32.mxu1 %vm20548_vm8, %v20547_v16 }
0x2e93   :  { %v7787_v35 = vpop.permute.xlu1 %7786 }
0x2f5b   :  { %v7124_v11 = vpop.f32.mrb[104].mxu1 }
0x2f5c   :  { %v21561_v12 = vadd.f32 %v7171_v47, %v7124_v11  ;;  %v19204_v13 = vpop.f32.mrb[105].mxu1  ;;  %v7330_v51 = vpop.f32.mrb[104].mxu0 }
0x2f5d   :  { %v7335_v56 = vmul.f32 0.17677669, %v7330_v51  ;;  %v7127_v19 = vpop.f32.mrb[106].mxu1  ;;  %v19221_v20 = vpop.f32.mrb[105].mxu0 }
0x2f5e   :  { %v21563_v21 = vadd.f32 %v7174_v60, %v7127_v19  ;;  %v19205_v22 = vpop.f32.mrb[107].mxu1 }
0x2f5f   :  { %v7337_v23 = vadd.f32 %v7335_v56, %v20765_v15 }
0x2f61   :  { %v7341_v25 = vsel %vm468_vm9, %v7337_v23, -inf }
0x2f62   :  { %7342 = vmax.xlane.f32.xlu0 %v7341_v25 }
0x2f63   :  { %v7252_v29 = vpop.f32.mrb[102].mxu1 }
0x2f64   :  { %v7334_v17 = vmul.f32 0.17677669, %v7252_v29  ;;  %v19216_v18 = vpop.f32.mrb[103].mxu1 }
0x2f66   :  { %v7336_v30 = vadd.f32 %v7334_v17, %v20765_v15 }
0x2f68   :  { %v7338_v62 = vsel %vm468_vm9, %v7336_v30, -inf }
0x2f69   :  { %7339 = vmax.xlane.f32.xlu1 %v7338_v62 }
0x2f78   :  { %7426 = vrot.lane.b32.xlu0 %v21437_v27, %s22851_s23 }
0x2f7a   :  { %7784 = vrot.lane.b32.xlu1 %v21437_v27, %s22852_s30 }
0x2f7c   :  { %7706 = vrot.lane.b32.xlu0 %v21433_v38, %s22852_s30 }
0x2f80   :  { %7350 = vrot.lane.b32.xlu0 %v21433_v38, %s22851_s23 }
0x2fef   :  { %v7343_v31 = vpop.xlane.xlu0 %7342 }
0x2ff0   :  { %v7345_v33 = vsub.f32 %v7337_v23, %v7343_v31 }
0x2ff2   :  { %v7348_v36 = vmul.f32 1.442695, %v7345_v33 }
0x2ff3   :  { %v7427_v26 = vpop.permute.xlu0 %7426 }
0x2ff4   :  { %20369 = vpow2.f32 %v7348_v36  ;;  %19228 = vmatpush3.msra.mxu0 %v7427_v26 }
0x2ff5   :  { %19237 = vmatprep.subr.mxu0 %v20547_v16 }
0x2ff6   :  { %v7340_v39 = vpop.xlane.xlu1 %7339 }
0x2ff7   :  { %v7344_v41 = vsub.f32 %v7336_v30, %v7340_v39  ;;  %v7707_v42 = vpop.permute.xlu0 %7706 }
0x2ff9   :  { %v7346_v32 = vmul.f32 1.442695, %v7344_v41 }
0x2ffa   :  { %v7785_v48 = vpop.permute.xlu1 %7784 }
0x2ffb   :  { %20371 = vpow2.f32 %v7346_v32  ;;  %v7351_v44 = vpop.permute.xlu0 %7350 }
0x2ffc   :  { %19223 = vmatpush3.msra.mxu1 %v7351_v44 }
0x2ffd   :  { %19232 = vmatprep.subr.mxu1 %v20547_v16 }
0x2ffe   :  { %v20370_v45 = vpop.eup %20369 }
0x2fff   :  { %19230 = vmatmul.mubr.msk.f32.vlgmr.msra.gmra.mrb[106].mxu0 %vm468_vm9, %v20370_v45 }
0x3000   :  { %19238 = vmatpush3.msra.mxu0 %v20554_v37  ;;  %19239 = vmatprep.mubr.msk.f32.mxu0 %vm20548_vm8, %v20547_v16 }
0x3001   :  { %19248 = vmatprep.subr.mxu0 %v20547_v16 }
0x3003   :  { %19240 = vmatmul.mubr.msk.f32.vlgmr.msra.gmra.mrb[108].mxu0 %vm468_vm9, %v20370_v45 }
0x3004   :  { %19250 = vmatprep.mubr.msk.f32.mxu0 %vm20548_vm8, %v20547_v16 }
0x3005   :  { %v20372_v34 = vpop.eup %20371 }
0x3006   :  { %19225 = vmatmul.mubr.msk.f32.vlgmr.msra.gmra.mrb[108].mxu1 %vm468_vm9, %v20372_v34 }
0x3007   :  { %19249 = vmatpush3.xpose.msk.msra.mxu0 %vm468_vm9, %v7709_v4  ;;  %19233 = vmatpush3.msra.mxu1 %v20554_v37 }
0x3008   :  { %19234 = vmatprep.mubr.msk.f32.mxu1 %vm20548_vm8, %v20547_v16  ;;  %19253 = vmatprep.subr.mxu0 %v20547_v16 }
0x3009   :  { %19242 = vmatprep.subr.bf16.mxu1 %v20547_v16 }
0x300a   :  { %19251 = vmatmul.mubr.msk.f32.vlgmr.msra.gmra.mrb[110].mxu0 %vm468_vm9, %v7707_v42  ;;  %19235 = vmatmul.mubr.msk.f32.vlgmr.msra.gmra.mrb[110].mxu1 %vm468_vm9, %v20372_v34 }
0x300b   :  { %19254 = vmatpush3.xpose.msk.msra.mxu0 %vm468_vm9, %v7787_v35  ;;  %19255 = vmatprep.mubr.msk.f32.mxu0 %vm20548_vm8, %v20547_v16 }
0x300c   :  { %19244 = vmatprep.mubr.msk.bf16.mxu1 %vm20548_vm8, %v20547_v16  ;;  %19263 = vmatprep.subr.mxu0 %v20547_v16 }
0x300d   :  { %19243 = vmatpush3.bf16.msra.mxu1 %v7661_v8 }
0x300e   :  { %19256 = vmatmul.mubr.msk.f32.vlgmr.msra.gmra.mrb[112].mxu0 %vm468_vm9, %v7785_v48  ;;  %19258 = vmatprep.subr.mxu1 %v20547_v16 }
0x300f   :  { %19265 = vmatprep.mubr.msk.f32.mxu0 %vm20548_vm8, %v20547_v16 }
0x30d2   :  { %v7498_v49 = vpop.f32.mrb[106].mxu0 }
0x30d3   :  { %v19231_v40 = vpop.f32.mrb[107].mxu0 }
0x30d6   :  { %v7638_v50 = vpop.f32.mrb[108].mxu0 }
0x30d7   :  { %v19241_v52 = vpop.f32.mrb[109].mxu0  ;;  %20373 = vrcp.f32 %v7638_v50 }
0x30d9   :  { %v7422_v43 = vpop.f32.mrb[108].mxu1 }
0x30da   :  { %v19226_v54 = vpop.f32.mrb[109].mxu1 }
0x30db   :  { %v17694_v54 = vld [vmem:[%s22803_s7 + $0x2] ss:$0 sm:$0xff] }
0x30dd   :  { %v7780_v55 = vpop.f32.mrb[110].mxu0  ;;  %v7568_v46 = vpop.f32.mrb[110].mxu1 }
0x30de   :  { %v7862_v58 = vmul.f32 0.17677669, %v7780_v55  ;;  %v19252_v59 = vpop.f32.mrb[111].mxu0  ;;  %v19236_v5 = vpop.f32.mrb[111].mxu1  ;;  %20375 = vrcp.f32 %v7568_v46 }
0x30e0   :  { %v7864_v47 = vadd.f32 %v7862_v58, %v20765_v15 }
0x30e1   :  { %v7858_v7 = vpop.f32.mrb[112].mxu0  ;;  %v20374_v2 = vpop.eup %20373 }
0x30e2   :  { %v7863_v60 = vmul.f32 0.17677669, %v7858_v7  ;;  %v19257_v61 = vpop.f32.mrb[113].mxu0  ;;  %v7866_v63 = vsel %vm468_vm9, %v7864_v47, -inf }
0x30e3   :  { %7867 = vmax.xlane.f32.xlu0 %v7866_v63 }
0x30e4   :  { %v7865_v0 = vadd.f32 %v7863_v60, %v20765_v15 }
0x30e6   :  { %v7869_v1 = vsel %vm468_vm9, %v7865_v0, -inf }
0x30e7   :  { %7870 = vmax.xlane.f32.xlu1 %v7869_v1 }
0x30e8   :  { %v20376_v6 = vpop.eup %20375 }
0x30f8   :  { %7651 = vperm.xlu1 %20174, %v20374_v2  }
0x30f9   :  { %7646 = vperm.xlu0 %20173, %v20376_v6  }
0x30fc   :  { %7954 = vrot.lane.b32.xlu1 %v21437_v27, %s22853_s22 }
0x30fd   :  { %7878 = vrot.lane.b32.xlu0 %v21433_v38, %s22853_s22 }
0x3170   :  { %v7868_v9 = vpop.xlane.xlu0 %7867 }
0x3171   :  { %v7872_v24 = vsub.f32 %v7864_v47, %v7868_v9 }
0x3173   :  { %v7874_v11 = vmul.f32 1.442695, %v7872_v24 }
0x3174   :  { %v7871_v28 = vpop.xlane.xlu1 %7870 }
0x3175   :  { %v7873_v10 = vsub.f32 %v7865_v0, %v7871_v28 }
0x3177   :  { %v7876_v13 = vmul.f32 1.442695, %v7873_v10 }
0x3178   :  { %v7652_v51 = vpop.permute.xlu1 %7651  ;;  %v7647_v56 = vpop.permute.xlu0 %7646 }
0x3179   :  { %20377 = vpow2.f32 %v7876_v13  ;;  %v7655_v19 = vmul.f32 %v7652_v51, %v7498_v49  ;;  %v7654_v20 = vmul.f32 %v7647_v56, %v7422_v43 }
0x317a   :  { %20379 = vpow2.f32 %v7874_v11 }
0x317b   :  { %v7656_v22 = vpack.c.bf16 %v7655_v19, %v7654_v20 }
0x317c   :  { %v7955_v23 = vpop.permute.xlu1 %7954  ;;  %v7879_v25 = vpop.permute.xlu0 %7878 }
0x317d   :  { %19245 = vmatmul.mubr.msk.bf16.vlgmr.msra.gmra.mrb[112].mxu1 %vm468_vm9, %v7656_v22  ;;  %19264 = vmatpush3.msra.mxu0 %v7955_v23 }
0x317e   :  { %19259 = vmatpush3.msra.mxu1 %v7879_v25  ;;  %19260 = vmatprep.mubr.msk.f32.mxu1 %vm20548_vm8, %v20547_v16 }
0x317f   :  { %19273 = vmatprep.subr.mxu0 %v20547_v16  ;;  %19268 = vmatprep.subr.mxu1 %v20547_v16 }
0x3183   :  { %v20378_v38 = vpop.eup %20377 }
0x3184   :  { %v20380_v27 = vpop.eup %20379  ;;  %19266 = vmatmul.mubr.msk.f32.vlgmr.msra.gmra.mrb[114].mxu0 %vm468_vm9, %v20378_v38 }
0x3185   :  { %19261 = vmatmul.mubr.msk.f32.vlgmr.msra.gmra.mrb[116].mxu1 %vm468_vm9, %v20380_v27  ;;  %19274 = vmatpush3.msra.mxu0 %v20554_v37 }
0x3186   :  { %19275 = vmatprep.mubr.msk.f32.mxu0 %vm20548_vm8, %v20547_v16  ;;  %19269 = vmatpush3.msra.mxu1 %v20554_v37 }
0x3187   :  { %19270 = vmatprep.mubr.msk.f32.mxu1 %vm20548_vm8, %v20547_v16  ;;  %19278 = vmatprep.subr.bf16.mxu1 %v20547_v16 }
0x3188   :  { %19276 = vmatmul.mubr.msk.f32.vlgmr.msra.gmra.mrb[116].mxu0 %vm468_vm9, %v20378_v38  ;;  %20092 = vmatprep.subr.bf16.mxu0 %v20546_v14 }
0x3189   :  { %19271 = vmatmul.mubr.msk.f32.vlgmr.msra.gmra.mrb[118].mxu1 %vm468_vm9, %v20380_v27  ;;  %20093 = vmatpush3.bf16.msra.mxu0 %v20546_v14 }
0x318a   :  { %19280 = vmatprep.mubr.msk.bf16.mxu1 %vm20548_vm8, %v20547_v16  ;;  %20094 = vmatprep.subr.bf16.mxu0 %v20546_v14 }
0x318d   :  { %20095 = vmatpush3.bf16.msra.mxu0 %v20546_v14 }
0x318e   :  { %19306 = vmatprep.subr.bf16.mxu0 %v20547_v16 }
0x3250   :  { %v7697_v29 = vpop.f32.mrb[112].mxu1 }
0x3251   :  { %v7704_v17 = vadd.f32 %v7697_v29, %v21561_v12  ;;  %v19246_v18 = vpop.f32.mrb[113].mxu1  ;;  %v17656_v12 = vld [vmem:[%s22802_s6 + $0x2c] sm:$0xf] }
0x3252   :  { %v7700_v30 = vpop.f32.mrb[114].mxu1  ;;  %v20201_v18 = vld [vmem:[%s22804_s10 + $0x20] sm:$0xff]  }
0x3253   :  { %v7705_v62 = vadd.f32 %v7700_v30, %v21563_v21  ;;  %v19247_v4 = vpop.f32.mrb[115].mxu1  ;;  %v8189_v21 = vsel %vm1425_vm11, %v17656_v12, 0  ;;  %v20202_v30 = vld [vmem:[%s22804_s10 + $0x28] sm:$0xff]  }
0x3254   :  { %19279 = vmatpush3.bf16.msra.mxu1 %v8189_v21  ;;  %v20204_v4 = vld [vmem:[%s22805_s12 + $0x88] sm:$0xff]  }
0x3255   :  { %20096 = vmatprep.subr.bf16.mxu1 %v20546_v14 }
0x3257   :  { %v8026_v31 = vpop.f32.mrb[114].mxu0 }
0x3258   :  { %v7950_v33 = vpop.f32.mrb[116].mxu1  ;;  %v19267_v35 = vpop.f32.mrb[115].mxu0 }
0x3259   :  { %v19262_v36 = vpop.f32.mrb[117].mxu1  ;;  %v20207_v35 = vld [vmem:[%s22805_s12 + $0xa0] sm:$0xff]  }
0x325a   :  { %v20208_v36 = vld [vmem:[%s22805_s12 + $0xa8] sm:$0xff]  }
0x325b   :  { %v8166_v26 = vpop.f32.mrb[116].mxu0 }
0x325c   :  { %20381 = vrcp.f32 %v8166_v26  ;;  %v8096_v39 = vpop.f32.mrb[118].mxu1  ;;  %v19277_v41 = vpop.f32.mrb[117].mxu0  ;;  %v17701_v26 = vld [vmem:[%s22806_s8 + $0x2] ss:$0 sm:$0xff] }
0x325d   :  { %20383 = vrcp.f32 %v8096_v39  ;;  %v19272_v42 = vpop.f32.mrb[119].mxu1 }
0x3266   :  { %v20382_v32 = vpop.eup %20381 }
0x3267   :  { %v20384_v44 = vpop.eup %20383  ;;  %8179 = vperm.xlu1 %20174, %v20382_v32   ;;  %v17702_v32 = vld [vmem:[%s22807_s9 + $0x2] ss:$0 sm:$0xff] }
0x3268   :  { %8174 = vperm.xlu0 %20173, %v20384_v44  }
0x32e6   :  { %v8180_v45 = vpop.permute.xlu1 %8179 }
0x32e7   :  { %v8183_v34 = vmul.f32 %v8180_v45, %v8026_v31  ;;  %v8175_v48 = vpop.permute.xlu0 %8174  ;;  %v20205_v31 = vld [vmem:[%s22805_s12 + $0x90] sm:$0xff]  }
0x32e8   :  { %v8182_v49 = vmul.f32 %v8175_v48, %v7950_v33  ;;  %v20206_v33 = vld [vmem:[%s22805_s12 + $0x98] sm:$0xff]  }
0x32ea   :  { %v8184_v40 = vpack.c.bf16 %v8183_v34, %v8182_v49  ;;  %v20209_v49 = vld [vmem:[%s22805_s12 + $0xb0] sm:$0xff]  }
0x32ec   :  { %19281 = vmatmul.mubr.msk.bf16.vlgmr.msra.gmra.mrb[120].mxu1 %vm468_vm9, %v8184_v40  ;;  %v20210_v40 = vld [vmem:[%s22805_s12 + $0xb8] sm:$0xff]  }
0x32ed   :  { %20097 = vmatpush3.bf16.msra.mxu1 %v20546_v14 }
0x32ee   :  { %20098 = vmatprep.subr.bf16.mxu1 %v20546_v14 }
0x32f1   :  { %20099 = vmatpush3.bf16.msra.mxu1 %v20546_v14 }
0x32f2   :  { %19314 = vmatprep.subr.bf16.mxu1 %v20547_v16 }
0x33bf   :  { %v8225_v50 = vpop.f32.mrb[120].mxu1 }
0x33c0   :  { %v8232_v52 = vadd.f32 %v8225_v50, %v7704_v17  ;;  %v19282_v43 = vpop.f32.mrb[121].mxu1  ;;  %v17708_v50 = vld [vmem:[%s22808_s11 + $0x2] ss:$0 sm:$0xff] }
0x33c1   :  { %v8228_v55 = vpop.f32.mrb[122].mxu1 }
0x33c2   :  { %v8234_v46 = vadd.f32 %v8232_v52, %v21397_v53  ;;  %v8233_v58 = vadd.f32 %v8228_v55, %v7705_v62  ;;  %v19283_v59 = vpop.f32.mrb[123].mxu1  ;;  %v20203_v62 = vld [vmem:[%s22805_s12 + $0x80] sm:$0xff]  }
0x33c4   :  { %v21657_v5 = vadd.f32 %v17694_v54, %v8234_v46  ;;  %v8235_v47 = vadd.f32 %v8233_v58, %v21400_v57 }
0x33c6   :  { %v21660_v7 = vadd.f32 %v17694_v54, %v8235_v47  ;;  %19292 = vmatprep.mubr.msk.f32.mxu0 %vm173_vm3, %v21657_v5 }
0x33c8   :  { %19293 = vmatmul.mubr.msk.f32.vlgmr.msra.gmra.mrb[118].mxu0 %vm173_vm3, %v21660_v7 }
0x33c9   :  { %19310 = vmatprep.mubr.msk.bf16.mxu0 %vm20548_vm8, %v20547_v16  ;;  %19307 = vmatpush3.bf16.msra.mxu0 %v20201_v18 }
0x33ca   :  { %19308 = vmatprep.subr.bf16.mxu0 %v20547_v16 }
0x33cd   :  { %19309 = vmatpush3.bf16.msra.mxu0 %v20202_v30 }
0x33ce   :  { %20100 = vmatprep.subr.bf16.mxu0 %v20546_v14 }
0x349b   :  { %v19294_v60 = vpop.f32.mrb[118].mxu0 }
0x349c   :  { %v8332_v61 = vmul.f32 0.03125, %v19294_v60  ;;  %v8322_v53 = vpop.f32.mrb[119].mxu0 }
0x349d   :  { %v8331_v63 = vmul.f32 0.03125, %v8322_v53 }
0x349e   :  { %8340 = vperm.xlu1 %20174, %v8332_v61   ;;  %v17729_v61 = vld [vmem:[%s22809_s13 + $0x2] ss:$0 sm:$0xff] }
0x349f   :  { %8335 = vperm.xlu0 %20173, %v8331_v63  }
0x351d   :  { %v8341_v0 = vpop.permute.xlu1 %8340 }
0x351e   :  { %v8344_v57 = vsub.f32 %v21660_v7, %v8341_v0  ;;  %v8336_v1 = vpop.permute.xlu0 %8335 }
0x351f   :  { %v21670_v2 = vsub.f32 %v21657_v5, %v8336_v1 }
0x3520   :  { %v8346_v6 = vmul.f32 %v8344_v57, %v8344_v57 }
0x3521   :  { %v8345_v3 = vmul.f32 %v21670_v2, %v21670_v2 }
0x3523   :  { %19303 = vmatprep.mubr.msk.f32.mxu1 %vm173_vm3, %v8345_v3 }
0x3524   :  { %19304 = vmatmul.mubr.msk.f32.vlgmr.msra.gmra.mrb[124].mxu1 %vm173_vm3, %v8346_v6 }
0x3525   :  { %19330 = vmatprep.mubr.msk.bf16.mxu1 %vm20548_vm8, %v20547_v16  ;;  %19315 = vmatpush3.bf16.msra.mxu1 %v20203_v62 }
0x3526   :  { %19316 = vmatprep.subr.bf16.mxu1 %v20547_v16 }
0x3529   :  { %19317 = vmatpush3.bf16.msra.mxu1 %v20204_v4 }
0x352a   :  { %19318 = vmatprep.subr.bf16.mxu1 %v20547_v16 }
0x352d   :  { %19319 = vmatpush3.bf16.msra.mxu1 %v20205_v31 }
0x352e   :  { %19320 = vmatprep.subr.bf16.mxu1 %v20547_v16 }
0x3531   :  { %19321 = vmatpush3.bf16.msra.mxu1 %v20206_v33 }
0x3532   :  { %19322 = vmatprep.subr.bf16.mxu1 %v20547_v16 }
0x3535   :  { %19323 = vmatpush3.bf16.msra.mxu1 %v20207_v35 }
0x3536   :  { %19324 = vmatprep.subr.bf16.mxu1 %v20547_v16 }
0x3539   :  { %19325 = vmatpush3.bf16.msra.mxu1 %v20208_v36 }
0x353a   :  { %19326 = vmatprep.subr.bf16.mxu1 %v20547_v16 }
0x353d   :  { %19327 = vmatpush3.bf16.msra.mxu1 %v20209_v49 }
0x353e   :  { %19328 = vmatprep.subr.bf16.mxu1 %v20547_v16 }
0x3541   :  { %19329 = vmatpush3.bf16.msra.mxu1 %v20210_v40 }
0x3542   :  { %19369 = vmatprep.subr.mxu1 %v20547_v16 }
0x35f7   :  { %v19305_v8 = vpop.f32.mrb[124].mxu1 }
0x35f8   :  { %v8429_v9 = vmul.f32 0.032258064, %v19305_v8  ;;  %v8419_v24 = vpop.f32.mrb[125].mxu1 }
0x35f9   :  { %v8428_v28 = vmul.f32 0.032258064, %v8419_v24 }
0x35fa   :  { %20385 = vrsqrt.f32 %v8429_v9  ;;  %vm8439_vm0 = vcmp.eq.f32.partialorder %v8429_v9, inf  ;;  %v8442_v51 = vand.u32 2147483648, %v8429_v9  ;;  %vm8441_vm1 = vcmp.eq.f32.partialorder %v8429_v9, 0.0 }
0x35fb   :  { %20387 = vrsqrt.f32 %v8428_v28  ;;  %vm8432_vm2 = vcmp.eq.f32.partialorder %v8428_v28, inf  ;;  %v8435_v20 = vand.u32 2147483648, %v8428_v28  ;;  %vm8434_vm4 = vcmp.eq.f32.partialorder %v8428_v28, 0.0 }
0x3604   :  { %v20386_v10 = vpop.eup %20385 }
0x3605   :  { %v20388_v11 = vpop.eup %20387  ;;  %v8438_v13 = vmul.f32 %v20386_v10, %v8429_v9 }
0x3606   :  { %v8431_v56 = vmul.f32 %v20388_v11, %v8428_v28 }
0x3607   :  { %v8440_v19 = vsel %vm8439_vm0, %v8429_v9, %v8438_v13 }
0x3608   :  { %v8443_v22 = vsel %vm8441_vm1, %v8442_v51, %v8440_v19  ;;  %v8433_v23 = vsel %vm8432_vm2, %v8428_v28, %v8431_v56 }
0x3609   :  { %v8445_v25 = vadd.f32 1e-06, %v8443_v22  ;;  %v8436_v38 = vsel %vm8434_vm4, %v8435_v20, %v8433_v23 }
0x360a   :  { %v8444_v27 = vadd.f32 1e-06, %v8436_v38 }
0x360b   :  { %20389 = vrsqrt.f32 %v8445_v25 }
0x360c   :  { %20391 = vrsqrt.f32 %v8444_v27 }
0x3615   :  { %v20390_v29 = vpop.eup %20389 }
0x3616   :  { %v20392_v17 = vpop.eup %20391  ;;  %8455 = vperm.xlu1 %20174, %v20390_v29  }
0x3617   :  { %8450 = vperm.xlu0 %20173, %v20392_v17  }
0x3695   :  { %v8456_v39 = vpop.permute.xlu1 %8455 }
0x3696   :  { %v8459_v41 = vmul.f32 %v8456_v39, %v8344_v57  ;;  %v8451_v42 = vpop.permute.xlu0 %8450  ;;  %v20212_v39 = vld [vmem:[%s22799_s5 + $0x38] sm:$0xff]  }
0x3697   :  { %v8458_v44 = vmul.f32 %v8451_v42, %v21670_v2 }
0x3698   :  { %v8467_v12 = vmul.f32 %v17701_v26, %v8459_v41  ;;  %v17744_v41 = vld [vmem:[%s22800_s3 + $0x3] ss:$0 sm:$0xff] }
0x3699   :  { %v8466_v21 = vmul.f32 %v17701_v26, %v8458_v44  ;;  %v20211_v26 = vld [vmem:[%s22799_s5 + $0x30] sm:$0xff]  }
0x369a   :  { %v8475_v45 = vadd.f32 %v17702_v32, %v8467_v12  ;;  %v17745_v12 = vld [vmem:[%s22801_s4 + $0x3] ss:$0 sm:$0xff] }
0x369b   :  { %v8474_v34 = vadd.f32 %v17702_v32, %v8466_v21 }
0x369d   :  { %v8476_v48 = vpack.c.bf16 %v8475_v45, %v8474_v34 }
0x369f   :  { %19311 = vmatmul.mubr.msk.bf16.vlgmr.msra.gmra.mrb[120].mxu0 %vm173_vm3, %v8476_v48 }
0x36a0   :  { %20101 = vmatpush3.bf16.msra.mxu0 %v20546_v14 }
0x36a1   :  { %20102 = vmatprep.subr.bf16.mxu0 %v20546_v14 }
0x36a4   :  { %20103 = vmatpush3.bf16.msra.mxu0 %v20546_v14 }
0x36a5   :  { %20104 = vmatprep.subr.bf16.mxu0 %v20546_v14 }
0x3772   :  { %v8539_v52 = vpop.f32.mrb[120].mxu0 }
0x3773   :  { %v8540_v43 = vadd.f32 %v17708_v50, %v8539_v52  ;;  %v19312_v54 = vpop.f32.mrb[121].mxu0 }
0x3774   :  { %v8542_v55 = vpop.f32.mrb[122].mxu0 }
0x3775   :  { %v8543_v46 = vadd.f32 %v17708_v50, %v8542_v55  ;;  %v19313_v58 = vpop.f32.mrb[123].mxu0  ;;  %v8546_v59 = vmax.f32 %v8540_v43, 0.0 }
0x3777   :  { %v8547_v47 = vmax.f32 %v8543_v46, 0.0 }
0x3779   :  { %v8548_v60 = vpack.c.bf16 %v8547_v47, %v8546_v59 }
0x377b   :  { %19331 = vmatmul.mubr.bf16.vlgmr.msra.gmra.mrb[128].mxu1 %v8548_v60 }
0x377c   :  { %19371 = vmatprep.mubr.msk.f32.mxu1 %vm20548_vm8, %v20547_v16 }
0x384e   :  { %v8656_v53 = vpop.f32.mrb[128].mxu1 }
0x384f   :  { %v8657_v63 = vadd.f32 %v17729_v61, %v8656_v53  ;;  %v19332_v0 = vpop.f32.mrb[129].mxu1 }
0x3850   :  { %v8659_v57 = vpop.f32.mrb[130].mxu1 }
0x3851   :  { %v21739_v1 = vadd.f32 %v8657_v63, %v21657_v5  ;;  %v8660_v2 = vadd.f32 %v17729_v61, %v8659_v57  ;;  %v19333_v3 = vpop.f32.mrb[131].mxu1 }
0x3853   :  { %v21742_v6 = vadd.f32 %v8660_v2, %v21660_v7  ;;  %19342 = vmatprep.mubr.msk.f32.mxu0 %vm173_vm3, %v21739_v1 }
0x3855   :  { %19343 = vmatmul.mubr.msk.f32.vlgmr.msra.gmra.mrb[124].mxu0 %vm173_vm3, %v21742_v6 }
0x3856   :  { %20105 = vmatpush3.bf16.msra.mxu0 %v20546_v14 }
0x3857   :  { %20106 = vmatprep.subr.bf16.mxu0 %v20546_v14 }
0x385a   :  { %20107 = vmatpush3.bf16.msra.mxu0 %v20546_v14 }
0x385b   :  { %19356 = vmatprep.subr.bf16.mxu0 %v20547_v16 }
0x3928   :  { %v19344_v5 = vpop.f32.mrb[124].mxu0 }
0x3929   :  { %v8751_v8 = vmul.f32 0.03125, %v19344_v5  ;;  %v8741_v9 = vpop.f32.mrb[125].mxu0 }
0x392a   :  { %v8750_v24 = vmul.f32 0.03125, %v8741_v9 }
0x392b   :  { %8759 = vperm.xlu1 %20174, %v8751_v8  }
0x392c   :  { %8754 = vperm.xlu0 %20173, %v8750_v24  }
0x39aa   :  { %v8760_v7 = vpop.permute.xlu1 %8759 }
0x39ab   :  { %v8763_v28 = vsub.f32 %v21742_v6, %v8760_v7  ;;  %v8755_v10 = vpop.permute.xlu0 %8754 }
0x39ac   :  { %v8762_v11 = vsub.f32 %v21739_v1, %v8755_v10 }
0x39ad   :  { %v8765_v51 = vmul.f32 %v8763_v28, %v8763_v28 }
0x39ae   :  { %v8764_v13 = vmul.f32 %v8762_v11, %v8762_v11 }
0x39b0   :  { %19353 = vmatprep.mubr.msk.f32.mxu0 %vm173_vm3, %v8764_v13 }
0x39b1   :  { %19354 = vmatmul.mubr.msk.f32.vlgmr.msra.gmra.mrb[126].mxu0 %vm173_vm3, %v8765_v51 }
0x39b2   :  { %19360 = vmatprep.mubr.msk.bf16.mxu0 %vm20548_vm8, %v20547_v16  ;;  %19357 = vmatpush3.bf16.msra.mxu0 %v20211_v26 }
0x39b3   :  { %19358 = vmatprep.subr.bf16.mxu0 %v20547_v16 }
0x39b6   :  { %19359 = vmatpush3.bf16.msra.mxu0 %v20212_v39 }
0x39b7   :  { %19364 = vmatprep.subr.mxu0 %v20547_v16 }
0x3a84   :  { %v19355_v56 = vpop.f32.mrb[126].mxu0 }
0x3a85   :  { %v8848_v19 = vmul.f32 0.032258064, %v19355_v56  ;;  %v8838_v20 = vpop.f32.mrb[127].mxu0 }
0x3a86   :  { %v8847_v22 = vmul.f32 0.032258064, %v8838_v20 }
0x3a87   :  { %20393 = vrsqrt.f32 %v8848_v19  ;;  %vm8858_vm5 = vcmp.eq.f32.partialorder %v8848_v19, inf  ;;  %v8861_v27 = vand.u32 2147483648, %v8848_v19  ;;  %vm8860_vm6 = vcmp.eq.f32.partialorder %v8848_v19, 0.0 }
0x3a88   :  { %20395 = vrsqrt.f32 %v8847_v22  ;;  %vm8851_vm7 = vcmp.eq.f32.partialorder %v8847_v22, inf  ;;  %v8854_v18 = vand.u32 2147483648, %v8847_v22  ;;  %vm8853_vm10 = vcmp.eq.f32.partialorder %v8847_v22, 0.0 }
0x3a91   :  { %v20394_v23 = vpop.eup %20393 }
0x3a92   :  { %v20396_v25 = vpop.eup %20395  ;;  %v8857_v38 = vmul.f32 %v20394_v23, %v8848_v19 }
0x3a93   :  { %v8850_v29 = vmul.f32 %v20396_v25, %v8847_v22 }
0x3a94   :  { %v8859_v17 = vsel %vm8858_vm5, %v8848_v19, %v8857_v38 }
0x3a95   :  { %v8862_v30 = vsel %vm8860_vm6, %v8861_v27, %v8859_v17  ;;  %v8852_v62 = vsel %vm8851_vm7, %v8847_v22, %v8850_v29 }
0x3a96   :  { %v8864_v4 = vadd.f32 1e-06, %v8862_v30  ;;  %v8855_v31 = vsel %vm8853_vm10, %v8854_v18, %v8852_v62 }
0x3a97   :  { %v8863_v33 = vadd.f32 1e-06, %v8855_v31 }
0x3a98   :  { %20397 = vrsqrt.f32 %v8864_v4 }
0x3a99   :  { %20399 = vrsqrt.f32 %v8863_v33 }
0x3aa2   :  { %v20398_v35 = vpop.eup %20397 }
0x3aa3   :  { %v20400_v36 = vpop.eup %20399  ;;  %8874 = vperm.xlu1 %20174, %v20398_v35  }
0x3aa4   :  { %8869 = vperm.xlu0 %20173, %v20400_v36  }
0x3b22   :  { %v8875_v42 = vpop.permute.xlu1 %8874 }
0x3b23   :  { %v8878_v32 = vmul.f32 %v8875_v42, %v8763_v28  ;;  %v8870_v44 = vpop.permute.xlu0 %8869 }
0x3b24   :  { %v8877_v21 = vmul.f32 %v8870_v44, %v8762_v11 }
0x3b25   :  { %v8886_v45 = vmul.f32 %v17744_v41, %v8878_v32 }
0x3b26   :  { %v8885_v34 = vmul.f32 %v17744_v41, %v8877_v21 }
0x3b27   :  { %v8894_v48 = vadd.f32 %v17745_v12, %v8886_v45 }
0x3b28   :  { %v8893_v49 = vadd.f32 %v17745_v12, %v8885_v34 }
0x3b2a   :  { %v8900_v40 = vpack.c.bf16 %v8894_v48, %v8893_v49 }
0x3b2c   :  { %19361 = vmatmul.mubr.msk.bf16.vlgmr.msra.gmra.mrb[128].mxu0 %vm173_vm3, %v8900_v40 }
0x3b2d   :  { %19366 = vmatprep.mubr.msk.f32.mxu0 %vm20548_vm8, %v20547_v16 }
0x3bff   :  { %v21775_v50 = vpop.f32.mrb[128].mxu0 }
0x3c00   :  { %8963 = vrot.lane.b32.xlu0 %v21775_v50, %s22858_s1  ;;  %v19362_v52 = vpop.f32.mrb[129].mxu0 }
0x3c01   :  { %v21779_v43 = vpop.f32.mrb[130].mxu0 }
0x3c02   :  { %9040 = vrot.lane.b32.xlu1 %v21779_v43, %s22858_s1  ;;  %v19363_v54 = vpop.f32.mrb[131].mxu0 }
0x3c06   :  { %9208 = vrot.lane.b32.xlu1 %v21779_v43, %s22859_s18 }
0x3c72   :  { %v8964_v55 = vpop.permute.xlu0 %8963 }
0x3c73   :  { %19365 = vmatpush3.xpose.msk.msra.mxu0 %vm468_vm9, %v8964_v55 }
0x3c74   :  { %v9041_v46 = vpop.permute.xlu1 %9040  ;;  %19374 = vmatprep.subr.mxu0 %v20547_v16 }
0x3c75   :  { %19370 = vmatpush3.xpose.msk.msra.mxu1 %vm468_vm9, %v9041_v46 }
0x3c76   :  { %19367 = vmatmul.mubr.msk.f32.vlgmr.msra.gmra.mrb[132].mxu0 %vm468_vm9, %v21775_v50  ;;  %19379 = vmatprep.subr.mxu1 %v20547_v16 }
0x3c77   :  { %19376 = vmatprep.mubr.msk.f32.mxu0 %vm20548_vm8, %v20547_v16 }
0x3c78   :  { %19372 = vmatmul.mubr.msk.f32.vlgmr.msra.gmra.mrb[126].mxu1 %vm468_vm9, %v21779_v43  ;;  %v9209_v58 = vpop.permute.xlu1 %9208 }
0x3c79   :  { %19380 = vmatpush3.msra.mxu1 %v9209_v58  ;;  %19381 = vmatprep.mubr.msk.f32.mxu1 %vm20548_vm8, %v20547_v16 }
0x3c7a   :  { %19389 = vmatprep.subr.mxu1 %v20547_v16 }
0x3d49   :  { %v9035_v59 = vpop.f32.mrb[132].mxu0 }
0x3d4a   :  { %v9116_v47 = vmul.f32 0.17677669, %v9035_v59  ;;  %v19368_v60 = vpop.f32.mrb[133].mxu0 }
0x3d4b   :  { %v9112_v61 = vpop.f32.mrb[126].mxu1  ;;  %v17753_v60 = vld [vmem:[%s22802_s6 + $0x30] sm:$0xf] }
0x3d4c   :  { %v9118_v53 = vadd.f32 %v9116_v47, %v20765_v15  ;;  %v9117_v63 = vmul.f32 0.17677669, %v9112_v61  ;;  %v19373_v0 = vpop.f32.mrb[127].mxu1  ;;  %v9969_v61 = vsel %vm1425_vm11, %v17753_v60, 0 }
0x3d4e   :  { %v9119_v57 = vadd.f32 %v9117_v63, %v20765_v15  ;;  %v9120_v2 = vsel %vm468_vm9, %v9118_v53, -inf }
0x3d4f   :  { %9121 = vmax.xlane.f32.xlu0 %v9120_v2 }
0x3d50   :  { %v9123_v3 = vsel %vm468_vm9, %v9119_v57, -inf }
0x3d51   :  { %9124 = vmax.xlane.f32.xlu1 %v9123_v3 }
0x3d62   :  { %9519 = vrot.lane.b32.xlu1 %v21779_v43, %s22860_s0 }
0x3d65   :  { %9132 = vrot.lane.b32.xlu0 %v21775_v50, %s22859_s18 }
0x3d66   :  { %9517 = vrot.lane.b32.xlu1 %v21779_v43, %s22854_s24 }
0x3d69   :  { %9441 = vrot.lane.b32.xlu0 %v21775_v50, %s22860_s0 }
0x3d6d   :  { %9439 = vrot.lane.b32.xlu0 %v21775_v50, %s22854_s24 }
0x3ddc   :  { %v9122_v5 = vpop.xlane.xlu0 %9121 }
0x3ddd   :  { %v9126_v8 = vsub.f32 %v9118_v53, %v9122_v5  ;;  %v17754_v53 = vld [vmem:[%s22802_s6 + $0x34] sm:$0xf] }
0x3dde   :  { %v9125_v9 = vpop.xlane.xlu1 %9124  ;;  %v9922_v63 = vsel %vm1425_vm11, %v17754_v53, 0 }
0x3ddf   :  { %v9128_v24 = vmul.f32 1.442695, %v9126_v8  ;;  %v9127_v7 = vsub.f32 %v9119_v57, %v9125_v9 }
0x3de0   :  { %v9133_v28 = vpop.permute.xlu0 %9132 }
0x3de1   :  { %20401 = vpow2.f32 %v9128_v24  ;;  %v9130_v10 = vmul.f32 1.442695, %v9127_v7  ;;  %19375 = vmatpush3.msra.mxu0 %v9133_v28 }
0x3de2   :  { %19384 = vmatprep.subr.mxu0 %v20547_v16  ;;  %v9520_v56 = vpop.permute.xlu1 %9519 }
0x3de3   :  { %20403 = vpow2.f32 %v9130_v10 }
0x3de4   :  { %v9442_v51 = vpop.permute.xlu0 %9441 }
0x3de6   :  { %v9518_v20 = vpop.permute.xlu1 %9517 }
0x3de8   :  { %v9440_v19 = vpop.permute.xlu0 %9439 }
0x3deb   :  { %v20402_v11 = vpop.eup %20401 }
0x3dec   :  { %19377 = vmatmul.mubr.msk.f32.vlgmr.msra.gmra.mrb[134].mxu0 %vm468_vm9, %v20402_v11 }
0x3ded   :  { %v20404_v13 = vpop.eup %20403  ;;  %19385 = vmatpush3.msra.mxu0 %v20554_v37  ;;  %19386 = vmatprep.mubr.msk.f32.mxu0 %vm20548_vm8, %v20547_v16 }
0x3dee   :  { %19382 = vmatmul.mubr.msk.f32.vlgmr.msra.gmra.mrb[132].mxu1 %vm468_vm9, %v20404_v13  ;;  %19394 = vmatprep.subr.mxu0 %v20547_v16 }
0x3def   :  { %19390 = vmatpush3.msra.mxu1 %v20554_v37  ;;  %19391 = vmatprep.mubr.msk.f32.mxu1 %vm20548_vm8, %v20547_v16 }
0x3df0   :  { %19387 = vmatmul.mubr.msk.f32.vlgmr.msra.gmra.mrb[136].mxu0 %vm468_vm9, %v20402_v11  ;;  %19399 = vmatprep.subr.mxu1 %v20547_v16 }
0x3df1   :  { %19396 = vmatprep.mubr.msk.f32.mxu0 %vm20548_vm8, %v20547_v16 }
0x3df2   :  { %19392 = vmatmul.mubr.msk.f32.vlgmr.msra.gmra.mrb[134].mxu1 %vm468_vm9, %v20404_v13 }
0x3df3   :  { %19401 = vmatprep.mubr.msk.f32.mxu1 %vm20548_vm8, %v20547_v16 }
0x3df4   :  { %19395 = vmatpush3.xpose.msk.msra.mxu0 %vm468_vm9, %v9442_v51 }
0x3df5   :  { %19404 = vmatprep.subr.mxu0 %v20547_v16 }
0x3df6   :  { %19400 = vmatpush3.xpose.msk.msra.mxu1 %vm468_vm9, %v9520_v56 }
0x3df7   :  { %19397 = vmatmul.mubr.msk.f32.vlgmr.msra.gmra.mrb[138].mxu0 %vm468_vm9, %v9440_v19  ;;  %19409 = vmatprep.subr.mxu1 %v20547_v16 }
0x3df8   :  { %19406 = vmatprep.mubr.msk.f32.mxu0 %vm20548_vm8, %v20547_v16 }
0x3df9   :  { %19402 = vmatmul.mubr.msk.f32.vlgmr.msra.gmra.mrb[136].mxu1 %vm468_vm9, %v9518_v20 }
0x3dfa   :  { %19411 = vmatprep.mubr.msk.f32.mxu1 %vm20548_vm8, %v20547_v16 }
0x3ebf   :  { %v9204_v22 = vpop.f32.mrb[134].mxu0 }
0x3ec0   :  { %v19378_v23 = vpop.f32.mrb[135].mxu0 }
0x3ec1   :  { %v9280_v25 = vpop.f32.mrb[132].mxu1 }
0x3ec2   :  { %v19383_v38 = vpop.f32.mrb[133].mxu1 }
0x3ec3   :  { %v9350_v27 = vpop.f32.mrb[136].mxu0 }
0x3ec4   :  { %v19388_v29 = vpop.f32.mrb[137].mxu0 }
0x3ec5   :  { %v9420_v17 = vpop.f32.mrb[134].mxu1 }
0x3ec6   :  { %v19393_v18 = vpop.f32.mrb[135].mxu1  ;;  %20405 = vrcp.f32 %v9420_v17 }
0x3ec7   :  { %20407 = vrcp.f32 %v9350_v27 }
0x3eca   :  { %v9513_v30 = vpop.f32.mrb[138].mxu0 }
0x3ecb   :  { %v9595_v62 = vmul.f32 0.17677669, %v9513_v30  ;;  %v19398_v4 = vpop.f32.mrb[139].mxu0 }
0x3ecc   :  { %v9591_v31 = vpop.f32.mrb[136].mxu1 }
0x3ecd   :  { %v9597_v33 = vadd.f32 %v9595_v62, %v20765_v15  ;;  %v9596_v35 = vmul.f32 0.17677669, %v9591_v31  ;;  %v19403_v36 = vpop.f32.mrb[137].mxu1 }
0x3ecf   :  { %v9598_v26 = vadd.f32 %v9596_v35, %v20765_v15  ;;  %v9599_v39 = vsel %vm468_vm9, %v9597_v33, -inf }
0x3ed0   :  { %9600 = vmax.xlane.f32.xlu0 %v9599_v39  ;;  %v20406_v42 = vpop.eup %20405 }
0x3ed1   :  { %v9602_v41 = vsel %vm468_vm9, %v9598_v26, -inf  ;;  %v20408_v32 = vpop.eup %20407 }
0x3ed2   :  { %9603 = vmax.xlane.f32.xlu1 %v9602_v41 }
0x3ee3   :  { %9687 = vrot.lane.b32.xlu1 %v21779_v43, %s22855_s20 }
0x3ee6   :  { %9611 = vrot.lane.b32.xlu0 %v21775_v50, %s22855_s20 }
0x3ee7   :  { %9433 = vperm.xlu1 %20174, %v20406_v42  }
0x3eea   :  { %9428 = vperm.xlu0 %20173, %v20408_v32  }
0x3f5d   :  { %v9601_v44 = vpop.xlane.xlu0 %9600 }
0x3f5e   :  { %v9605_v12 = vsub.f32 %v9597_v33, %v9601_v44 }
0x3f5f   :  { %v9604_v21 = vpop.xlane.xlu1 %9603 }
0x3f60   :  { %v9607_v45 = vmul.f32 1.442695, %v9605_v12  ;;  %v9606_v34 = vsub.f32 %v9598_v26, %v9604_v21 }
0x3f61   :  { %v9612_v48 = vpop.permute.xlu0 %9611 }
0x3f62   :  { %20409 = vpow2.f32 %v9607_v45  ;;  %v9609_v49 = vmul.f32 1.442695, %v9606_v34  ;;  %19405 = vmatpush3.msra.mxu0 %v9612_v48 }
0x3f63   :  { %v9688_v40 = vpop.permute.xlu1 %9687  ;;  %19414 = vmatprep.subr.mxu0 %v20547_v16 }
0x3f64   :  { %20411 = vpow2.f32 %v9609_v49  ;;  %19410 = vmatpush3.msra.mxu1 %v9688_v40 }
0x3f65   :  { %19419 = vmatprep.subr.mxu1 %v20547_v16 }
0x3f67   :  { %v9434_v52 = vpop.permute.xlu1 %9433 }
0x3f68   :  { %v9437_v55 = vmul.f32 %v9434_v52, %v9280_v25 }
0x3f69   :  { %v9429_v54 = vpop.permute.xlu0 %9428 }
0x3f6a   :  { %v9436_v46 = vmul.f32 %v9429_v54, %v9204_v22 }
0x3f6c   :  { %v20410_v58 = vpop.eup %20409  ;;  %v9438_v59 = vpack.c.bf16 %v9437_v55, %v9436_v46 }
0x3f6d   :  { %19407 = vmatmul.mubr.msk.f32.vlgmr.msra.gmra.mrb[140].mxu0 %vm468_vm9, %v20410_v58 }
0x3f6e   :  { %v20412_v47 = vpop.eup %20411  ;;  %19415 = vmatpush3.msra.mxu0 %v20554_v37  ;;  %19416 = vmatprep.mubr.msk.f32.mxu0 %vm20548_vm8, %v20547_v16 }
0x3f6f   :  { %19412 = vmatmul.mubr.msk.f32.vlgmr.msra.gmra.mrb[138].mxu1 %vm468_vm9, %v20412_v47  ;;  %19424 = vmatprep.subr.bf16.mxu0 %v20547_v16 }
0x3f70   :  { %19420 = vmatpush3.msra.mxu1 %v20554_v37  ;;  %19421 = vmatprep.mubr.msk.f32.mxu1 %vm20548_vm8, %v20547_v16 }
0x3f71   :  { %19417 = vmatmul.mubr.msk.f32.vlgmr.msra.gmra.mrb[142].mxu0 %vm468_vm9, %v20410_v58  ;;  %19430 = vmatprep.subr.bf16.mxu1 %v20547_v16 }
0x3f72   :  { %19426 = vmatprep.mubr.msk.bf16.mxu0 %vm20548_vm8, %v20547_v16  ;;  %19425 = vmatpush3.bf16.msra.mxu0 %v9922_v63 }
0x3f73   :  { %19422 = vmatmul.mubr.msk.f32.vlgmr.msra.gmra.mrb[140].mxu1 %vm468_vm9, %v20412_v47  ;;  %19436 = vmatprep.subr.mxu0 %v20547_v16 }
0x3f74   :  { %19431 = vmatpush3.bf16.msra.mxu1 %v9969_v61  ;;  %19432 = vmatprep.mubr.msk.bf16.mxu1 %vm20548_vm8, %v20547_v16 }
0x3f75   :  { %19441 = vmatprep.subr.mxu1 %v20547_v16 }
0x3f77   :  { %19433 = vmatmul.mubr.msk.bf16.vlgmr.msra.gmra.mrb[144].mxu1 %vm468_vm9, %v9438_v59 }
0x3f78   :  { %19443 = vmatprep.mubr.msk.f32.mxu1 %vm20548_vm8, %v20547_v16 }
0x4040   :  { %v9683_v0 = vpop.f32.mrb[140].mxu0 }
0x4041   :  { %v19408_v57 = vpop.f32.mrb[141].mxu0 }
0x4042   :  { %v9759_v2 = vpop.f32.mrb[138].mxu1 }
0x4043   :  { %v19413_v3 = vpop.f32.mrb[139].mxu1 }
0x4044   :  { %v9829_v5 = vpop.f32.mrb[142].mxu0 }
0x4045   :  { %20413 = vrcp.f32 %v9829_v5  ;;  %v19418_v8 = vpop.f32.mrb[143].mxu0 }
0x4046   :  { %v9899_v9 = vpop.f32.mrb[140].mxu1 }
0x4047   :  { %20415 = vrcp.f32 %v9899_v9  ;;  %v19423_v24 = vpop.f32.mrb[141].mxu1 }
0x404a   :  { %v10005_v7 = vpop.f32.mrb[144].mxu1 }
0x404b   :  { %v19434_v28 = vpop.f32.mrb[145].mxu1 }
0x404c   :  { %v10008_v10 = vpop.f32.mrb[146].mxu1 }
0x404d   :  { %v19435_v11 = vpop.f32.mrb[147].mxu1 }
0x404f   :  { %v20414_v13 = vpop.eup %20413 }
0x4050   :  { %9907 = vperm.xlu0 %20173, %v20414_v13  }
0x4051   :  { %v20416_v51 = vpop.eup %20415 }
0x4052   :  { %9912 = vperm.xlu1 %20174, %v20416_v51  }
0x4054   :  { %10092 = vrot.lane.b32.xlu0 %v21779_v43, %s22856_s21 }
0x4056   :  { %10090 = vrot.lane.b32.xlu1 %v21779_v43, %s22857_s28 }
0x4058   :  { %10014 = vrot.lane.b32.xlu0 %v21775_v50, %s22856_s21 }
0x405a   :  { %10012 = vrot.lane.b32.xlu1 %v21775_v50, %s22857_s28 }
0x405e   :  { %10542 = vrot.lane.b32.xlu1 %v21775_v50, %s22850_s2 }
0x4062   :  { %10620 = vrot.lane.b32.xlu1 %v21779_v43, %s22850_s2 }
0x40cf   :  { %v9908_v56 = vpop.permute.xlu0 %9907 }
0x40d0   :  { %v9915_v20 = vmul.f32 %v9908_v56, %v9683_v0 }
0x40d1   :  { %v9913_v19 = vpop.permute.xlu1 %9912 }
0x40d2   :  { %v9916_v22 = vmul.f32 %v9913_v19, %v9759_v2 }
0x40d3   :  { %v10093_v23 = vpop.permute.xlu0 %10092 }
0x40d4   :  { %v9917_v25 = vpack.c.bf16 %v9916_v22, %v9915_v20  ;;  %19442 = vmatpush3.xpose.msk.msra.mxu1 %vm468_vm9, %v10093_v23  ;;  %v17755_v20 = vld [vmem:[%s22802_s6 + $0x38] sm:$0xf] }
0x40d5   :  { %v10091_v38 = vpop.permute.xlu1 %10090  ;;  %19451 = vmatprep.subr.mxu1 %v20547_v16  ;;  %v10495_v23 = vsel %vm1425_vm11, %v17755_v20, 0 }
0x40d6   :  { %19427 = vmatmul.mubr.msk.bf16.vlgmr.msra.gmra.mrb[144].mxu0 %vm468_vm9, %v9917_v25 }
0x40d7   :  { %19444 = vmatmul.mubr.msk.f32.vlgmr.msra.gmra.mrb[142].mxu1 %vm468_vm9, %v10091_v38  ;;  %v10015_v27 = vpop.permute.xlu0 %10014  ;;  %19438 = vmatprep.mubr.msk.f32.mxu0 %vm20548_vm8, %v20547_v16 }
0x40d8   :  { %19437 = vmatpush3.xpose.msk.msra.mxu0 %vm468_vm9, %v10015_v27  ;;  %19453 = vmatprep.mubr.msk.f32.mxu1 %vm20548_vm8, %v20547_v16 }
0x40d9   :  { %19446 = vmatprep.subr.mxu0 %v20547_v16  ;;  %v10013_v29 = vpop.permute.xlu1 %10012 }
0x40dd   :  { %v10543_v21 = vpop.permute.xlu1 %10542 }
0x40de   :  { %19439 = vmatmul.mubr.msk.f32.vlgmr.msra.gmra.mrb[148].mxu0 %vm468_vm9, %v10013_v29 }
0x40df   :  { %19448 = vmatprep.mubr.msk.f32.mxu0 %vm20548_vm8, %v20547_v16 }
0x40e1   :  { %v10621_v48 = vpop.permute.xlu1 %10620 }
0x41a9   :  { %v9958_v17 = vpop.f32.mrb[144].mxu0 }
0x41aa   :  { %v21903_v18 = vadd.f32 %v10005_v7, %v9958_v17  ;;  %v19428_v30 = vpop.f32.mrb[145].mxu0  ;;  %v10164_v62 = vpop.f32.mrb[142].mxu1 }
0x41ab   :  { %v10169_v4 = vmul.f32 0.17677669, %v10164_v62  ;;  %v9961_v31 = vpop.f32.mrb[146].mxu0  ;;  %v19445_v33 = vpop.f32.mrb[143].mxu1 }
0x41ac   :  { %v21905_v35 = vadd.f32 %v10008_v10, %v9961_v31  ;;  %v19429_v36 = vpop.f32.mrb[147].mxu0 }
0x41ad   :  { %v10171_v26 = vadd.f32 %v10169_v4, %v20765_v15 }
0x41af   :  { %v10175_v39 = vsel %vm468_vm9, %v10171_v26, -inf }
0x41b0   :  { %10176 = vmax.xlane.f32.xlu0 %v10175_v39 }
0x41b1   :  { %v10086_v41 = vpop.f32.mrb[148].mxu0 }
0x41b2   :  { %v10168_v42 = vmul.f32 0.17677669, %v10086_v41  ;;  %v19440_v32 = vpop.f32.mrb[149].mxu0 }
0x41b4   :  { %v10170_v44 = vadd.f32 %v10168_v42, %v20765_v15 }
0x41b6   :  { %v10172_v12 = vsel %vm468_vm9, %v10170_v44, -inf }
0x41b7   :  { %10173 = vmax.xlane.f32.xlu1 %v10172_v12 }
0x41c6   :  { %10260 = vrot.lane.b32.xlu0 %v21779_v43, %s22851_s23 }
0x41c8   :  { %10618 = vrot.lane.b32.xlu1 %v21779_v43, %s22852_s30 }
0x41ca   :  { %10540 = vrot.lane.b32.xlu0 %v21775_v50, %s22852_s30 }
0x41ce   :  { %10184 = vrot.lane.b32.xlu0 %v21775_v50, %s22851_s23 }
0x423d   :  { %v10177_v45 = vpop.xlane.xlu0 %10176 }
0x423e   :  { %v10179_v34 = vsub.f32 %v10171_v26, %v10177_v45 }
0x4240   :  { %v10182_v49 = vmul.f32 1.442695, %v10179_v34 }
0x4241   :  { %v10261_v40 = vpop.permute.xlu0 %10260 }
0x4242   :  { %20417 = vpow2.f32 %v10182_v49  ;;  %19452 = vmatpush3.msra.mxu1 %v10261_v40 }
0x4243   :  { %19461 = vmatprep.subr.mxu1 %v20547_v16 }
0x4244   :  { %v10174_v52 = vpop.xlane.xlu1 %10173 }
0x4245   :  { %v10178_v54 = vsub.f32 %v10170_v44, %v10174_v52  ;;  %v10541_v55 = vpop.permute.xlu0 %10540 }
0x4247   :  { %v10180_v46 = vmul.f32 1.442695, %v10178_v54 }
0x4248   :  { %v10619_v60 = vpop.permute.xlu1 %10618 }
0x4249   :  { %20419 = vpow2.f32 %v10180_v46  ;;  %v10185_v58 = vpop.permute.xlu0 %10184 }
0x424a   :  { %19447 = vmatpush3.msra.mxu0 %v10185_v58 }
0x424b   :  { %19456 = vmatprep.subr.mxu0 %v20547_v16 }
0x424c   :  { %v20418_v59 = vpop.eup %20417 }
0x424d   :  { %19454 = vmatmul.mubr.msk.f32.vlgmr.msra.gmra.mrb[148].mxu1 %vm468_vm9, %v20418_v59 }
0x424e   :  { %19462 = vmatpush3.msra.mxu1 %v20554_v37  ;;  %19463 = vmatprep.mubr.msk.f32.mxu1 %vm20548_vm8, %v20547_v16 }
0x424f   :  { %19472 = vmatprep.subr.mxu1 %v20547_v16 }
0x4251   :  { %19464 = vmatmul.mubr.msk.f32.vlgmr.msra.gmra.mrb[150].mxu1 %vm468_vm9, %v20418_v59 }
0x4252   :  { %19474 = vmatprep.mubr.msk.f32.mxu1 %vm20548_vm8, %v20547_v16 }
0x4253   :  { %v20420_v47 = vpop.eup %20419 }
0x4254   :  { %19449 = vmatmul.mubr.msk.f32.vlgmr.msra.gmra.mrb[150].mxu0 %vm468_vm9, %v20420_v47 }
0x4255   :  { %19473 = vmatpush3.xpose.msk.msra.mxu1 %vm468_vm9, %v10543_v21  ;;  %19457 = vmatpush3.msra.mxu0 %v20554_v37 }
0x4256   :  { %19458 = vmatprep.mubr.msk.f32.mxu0 %vm20548_vm8, %v20547_v16  ;;  %19477 = vmatprep.subr.mxu1 %v20547_v16 }
0x4257   :  { %19466 = vmatprep.subr.bf16.mxu0 %v20547_v16 }
0x4258   :  { %19475 = vmatmul.mubr.msk.f32.vlgmr.msra.gmra.mrb[152].mxu1 %vm468_vm9, %v10541_v55  ;;  %19459 = vmatmul.mubr.msk.f32.vlgmr.msra.gmra.mrb[152].mxu0 %vm468_vm9, %v20420_v47 }
0x4259   :  { %19478 = vmatpush3.xpose.msk.msra.mxu1 %vm468_vm9, %v10621_v48  ;;  %19479 = vmatprep.mubr.msk.f32.mxu1 %vm20548_vm8, %v20547_v16 }
0x425a   :  { %19468 = vmatprep.mubr.msk.bf16.mxu0 %vm20548_vm8, %v20547_v16  ;;  %19487 = vmatprep.subr.mxu1 %v20547_v16 }
0x425b   :  { %19467 = vmatpush3.bf16.msra.mxu0 %v10495_v23 }
0x425c   :  { %19480 = vmatmul.mubr.msk.f32.vlgmr.msra.gmra.mrb[154].mxu1 %vm468_vm9, %v10619_v60  ;;  %19482 = vmatprep.subr.mxu0 %v20547_v16 }
0x425d   :  { %19489 = vmatprep.mubr.msk.f32.mxu1 %vm20548_vm8, %v20547_v16 }
0x4320   :  { %v10332_v61 = vpop.f32.mrb[148].mxu1 }
0x4321   :  { %v19455_v53 = vpop.f32.mrb[149].mxu1 }
0x4324   :  { %v10472_v63 = vpop.f32.mrb[150].mxu1 }
0x4325   :  { %v19465_v0 = vpop.f32.mrb[151].mxu1  ;;  %20421 = vrcp.f32 %v10472_v63 }
0x4327   :  { %v10256_v57 = vpop.f32.mrb[150].mxu0 }
0x4328   :  { %v19450_v2 = vpop.f32.mrb[151].mxu0 }
0x4329   :  { %v17794_v2 = vld [vmem:[%s22803_s7 + $0x3] ss:$0 sm:$0xff] }
0x432b   :  { %v10614_v3 = vpop.f32.mrb[152].mxu1  ;;  %v10402_v5 = vpop.f32.mrb[152].mxu0 }
0x432c   :  { %v10696_v8 = vmul.f32 0.17677669, %v10614_v3  ;;  %v19476_v9 = vpop.f32.mrb[153].mxu1  ;;  %v19460_v24 = vpop.f32.mrb[153].mxu0  ;;  %20423 = vrcp.f32 %v10402_v5 }
0x432e   :  { %v10698_v7 = vadd.f32 %v10696_v8, %v20765_v15 }
0x432f   :  { %v10692_v28 = vpop.f32.mrb[154].mxu1  ;;  %v20422_v19 = vpop.eup %20421 }
0x4330   :  { %v10697_v10 = vmul.f32 0.17677669, %v10692_v28  ;;  %v19481_v11 = vpop.f32.mrb[155].mxu1  ;;  %v10700_v13 = vsel %vm468_vm9, %v10698_v7, -inf }
0x4331   :  { %10701 = vmax.xlane.f32.xlu0 %v10700_v13 }
0x4332   :  { %v10699_v51 = vadd.f32 %v10697_v10, %v20765_v15 }
0x4334   :  { %v10703_v56 = vsel %vm468_vm9, %v10699_v51, -inf }
0x4335   :  { %10704 = vmax.xlane.f32.xlu1 %v10703_v56 }
0x4336   :  { %v20424_v22 = vpop.eup %20423 }
0x4346   :  { %10485 = vperm.xlu1 %20174, %v20422_v19  }
0x4347   :  { %10480 = vperm.xlu0 %20173, %v20424_v22  }
0x434a   :  { %10788 = vrot.lane.b32.xlu1 %v21779_v43, %s22853_s22 }
0x434b   :  { %10712 = vrot.lane.b32.xlu0 %v21775_v50, %s22853_s22 }
0x43be   :  { %v10702_v25 = vpop.xlane.xlu0 %10701 }
0x43bf   :  { %v10706_v38 = vsub.f32 %v10698_v7, %v10702_v25 }
0x43c1   :  { %v10708_v17 = vmul.f32 1.442695, %v10706_v38 }
0x43c2   :  { %v10705_v27 = vpop.xlane.xlu1 %10704 }
0x43c3   :  { %v10707_v29 = vsub.f32 %v10699_v51, %v10705_v27 }
0x43c5   :  { %v10710_v30 = vmul.f32 1.442695, %v10707_v29 }
0x43c6   :  { %v10486_v62 = vpop.permute.xlu1 %10485  ;;  %v10481_v4 = vpop.permute.xlu0 %10480 }
0x43c7   :  { %20425 = vpow2.f32 %v10710_v30  ;;  %v10489_v31 = vmul.f32 %v10486_v62, %v10332_v61  ;;  %v10488_v33 = vmul.f32 %v10481_v4, %v10256_v57 }
0x43c8   :  { %20427 = vpow2.f32 %v10708_v17 }
0x43c9   :  { %v10490_v36 = vpack.c.bf16 %v10489_v31, %v10488_v33 }
0x43ca   :  { %v10789_v26 = vpop.permute.xlu1 %10788  ;;  %v10713_v39 = vpop.permute.xlu0 %10712 }
0x43cb   :  { %19469 = vmatmul.mubr.msk.bf16.vlgmr.msra.gmra.mrb[156].mxu0 %vm468_vm9, %v10490_v36  ;;  %19488 = vmatpush3.msra.mxu1 %v10789_v26 }
0x43cc   :  { %19483 = vmatpush3.msra.mxu0 %v10713_v39  ;;  %19484 = vmatprep.mubr.msk.f32.mxu0 %vm20548_vm8, %v20547_v16 }
0x43cd   :  { %19497 = vmatprep.subr.mxu1 %v20547_v16  ;;  %19492 = vmatprep.subr.mxu0 %v20547_v16 }
0x43d1   :  { %v20426_v50 = vpop.eup %20425 }
0x43d2   :  { %v20428_v43 = vpop.eup %20427  ;;  %19490 = vmatmul.mubr.msk.f32.vlgmr.msra.gmra.mrb[156].mxu1 %vm468_vm9, %v20426_v50 }
0x43d3   :  { %19485 = vmatmul.mubr.msk.f32.vlgmr.msra.gmra.mrb[154].mxu0 %vm468_vm9, %v20428_v43  ;;  %19498 = vmatpush3.msra.mxu1 %v20554_v37 }
0x43d4   :  { %19499 = vmatprep.mubr.msk.f32.mxu1 %vm20548_vm8, %v20547_v16  ;;  %19493 = vmatpush3.msra.mxu0 %v20554_v37 }
0x43d5   :  { %19494 = vmatprep.mubr.msk.f32.mxu0 %vm20548_vm8, %v20547_v16  ;;  %19502 = vmatprep.subr.bf16.mxu0 %v20547_v16 }
0x43d6   :  { %19500 = vmatmul.mubr.msk.f32.vlgmr.msra.gmra.mrb[158].mxu1 %vm468_vm9, %v20426_v50  ;;  %20108 = vmatprep.subr.bf16.mxu1 %v20546_v14 }
0x43d7   :  { %19495 = vmatmul.mubr.msk.f32.vlgmr.msra.gmra.mrb[160].mxu0 %vm468_vm9, %v20428_v43  ;;  %20109 = vmatpush3.bf16.msra.mxu1 %v20546_v14 }
0x43d8   :  { %19504 = vmatprep.mubr.msk.bf16.mxu0 %vm20548_vm8, %v20547_v16  ;;  %20110 = vmatprep.subr.bf16.mxu1 %v20546_v14 }
0x43db   :  { %20111 = vmatpush3.bf16.msra.mxu1 %v20546_v14 }
0x43dc   :  { %19530 = vmatprep.subr.bf16.mxu1 %v20547_v16 }
0x449e   :  { %v10531_v41 = vpop.f32.mrb[156].mxu0 }
0x449f   :  { %v10538_v42 = vadd.f32 %v10531_v41, %v21903_v18  ;;  %v19470_v32 = vpop.f32.mrb[157].mxu0  ;;  %v17756_v18 = vld [vmem:[%s22802_s6 + $0x3c] sm:$0xf] }
0x44a0   :  { %v10534_v44 = vpop.f32.mrb[158].mxu0  ;;  %v20213_v32 = vld [vmem:[%s22804_s10 + $0x30] sm:$0xff]  }
0x44a1   :  { %v10539_v12 = vadd.f32 %v10534_v44, %v21905_v35  ;;  %v19471_v21 = vpop.f32.mrb[159].mxu0  ;;  %v11023_v35 = vsel %vm1425_vm11, %v17756_v18, 0  ;;  %v20214_v44 = vld [vmem:[%s22804_s10 + $0x38] sm:$0xff]  }
0x44a2   :  { %19503 = vmatpush3.bf16.msra.mxu0 %v11023_v35  ;;  %v20216_v21 = vld [vmem:[%s22805_s12 + $0xc8] sm:$0xff]  }
0x44a3   :  { %20112 = vmatprep.subr.bf16.mxu0 %v20546_v14 }
0x44a5   :  { %v10860_v45 = vpop.f32.mrb[156].mxu1 }
0x44a6   :  { %v10784_v34 = vpop.f32.mrb[154].mxu0  ;;  %v19491_v48 = vpop.f32.mrb[157].mxu1 }
0x44a7   :  { %v19486_v49 = vpop.f32.mrb[155].mxu0  ;;  %v20219_v48 = vld [vmem:[%s22805_s12 + $0xe0] sm:$0xff]  }
0x44a8   :  { %v20220_v49 = vld [vmem:[%s22805_s12 + $0xe8] sm:$0xff]  }
0x44a9   :  { %v11000_v40 = vpop.f32.mrb[158].mxu1 }
0x44aa   :  { %20429 = vrcp.f32 %v11000_v40  ;;  %v10930_v52 = vpop.f32.mrb[160].mxu0  ;;  %v19501_v54 = vpop.f32.mrb[159].mxu1  ;;  %v17801_v40 = vld [vmem:[%s22806_s8 + $0x3] ss:$0 sm:$0xff] }
0x44ab   :  { %20431 = vrcp.f32 %v10930_v52  ;;  %v19496_v55 = vpop.f32.mrb[161].mxu0 }
0x44b4   :  { %v20430_v46 = vpop.eup %20429 }
0x44b5   :  { %v20432_v58 = vpop.eup %20431  ;;  %11013 = vperm.xlu1 %20174, %v20430_v46   ;;  %v17802_v46 = vld [vmem:[%s22807_s9 + $0x3] ss:$0 sm:$0xff] }
0x44b6   :  { %11008 = vperm.xlu0 %20173, %v20432_v58  }
0x4534   :  { %v11014_v59 = vpop.permute.xlu1 %11013 }
0x4535   :  { %v11017_v47 = vmul.f32 %v11014_v59, %v10860_v45  ;;  %v11009_v60 = vpop.permute.xlu0 %11008  ;;  %v20217_v45 = vld [vmem:[%s22805_s12 + $0xd0] sm:$0xff]  }
0x4536   :  { %v11016_v61 = vmul.f32 %v11009_v60, %v10784_v34  ;;  %v20218_v34 = vld [vmem:[%s22805_s12 + $0xd8] sm:$0xff]  }
0x4538   :  { %v11018_v53 = vpack.c.bf16 %v11017_v47, %v11016_v61  ;;  %v20221_v61 = vld [vmem:[%s22805_s12 + $0xf0] sm:$0xff]  }
0x453a   :  { %19505 = vmatmul.mubr.msk.bf16.vlgmr.msra.gmra.mrb[164].mxu0 %vm468_vm9, %v11018_v53  ;;  %v20222_v53 = vld [vmem:[%s22805_s12 + $0xf8] sm:$0xff]  }
0x453b   :  { %20113 = vmatpush3.bf16.msra.mxu0 %v20546_v14 }
0x453c   :  { %20114 = vmatprep.subr.bf16.mxu0 %v20546_v14 }
0x453f   :  { %20115 = vmatpush3.bf16.msra.mxu0 %v20546_v14 }
0x4540   :  { %19538 = vmatprep.subr.bf16.mxu0 %v20547_v16 }
0x460d   :  { %v11059_v63 = vpop.f32.mrb[164].mxu0 }
0x460e   :  { %v11066_v0 = vadd.f32 %v11059_v63, %v10538_v42  ;;  %v19506_v57 = vpop.f32.mrb[165].mxu0  ;;  %v17808_v63 = vld [vmem:[%s22808_s11 + $0x3] ss:$0 sm:$0xff] }
0x460f   :  { %v11062_v3 = vpop.f32.mrb[166].mxu0 }
0x4610   :  { %v11068_v5 = vadd.f32 %v11066_v0, %v21739_v1  ;;  %v11067_v8 = vadd.f32 %v11062_v3, %v10539_v12  ;;  %v19507_v9 = vpop.f32.mrb[167].mxu0  ;;  %v20215_v12 = vld [vmem:[%s22805_s12 + $0xc0] sm:$0xff]  }
0x4612   :  { %v21999_v24 = vadd.f32 %v17794_v2, %v11068_v5  ;;  %v11069_v7 = vadd.f32 %v11067_v8, %v21742_v6 }
0x4614   :  { %v22002_v28 = vadd.f32 %v17794_v2, %v11069_v7  ;;  %19516 = vmatprep.mubr.msk.f32.mxu1 %vm173_vm3, %v21999_v24 }
0x4616   :  { %19517 = vmatmul.mubr.msk.f32.vlgmr.msra.gmra.mrb[160].mxu1 %vm173_vm3, %v22002_v28 }
0x4617   :  { %19534 = vmatprep.mubr.msk.bf16.mxu1 %vm20548_vm8, %v20547_v16  ;;  %19531 = vmatpush3.bf16.msra.mxu1 %v20213_v32 }
0x4618   :  { %19532 = vmatprep.subr.bf16.mxu1 %v20547_v16 }
0x461b   :  { %19533 = vmatpush3.bf16.msra.mxu1 %v20214_v44 }
0x461c   :  { %20116 = vmatprep.subr.bf16.mxu1 %v20546_v14 }
0x46e9   :  { %v19518_v10 = vpop.f32.mrb[160].mxu1 }
0x46ea   :  { %v11166_v11 = vmul.f32 0.03125, %v19518_v10  ;;  %v11156_v1 = vpop.f32.mrb[161].mxu1 }
0x46eb   :  { %v11165_v13 = vmul.f32 0.03125, %v11156_v1 }
0x46ec   :  { %11174 = vperm.xlu1 %20174, %v11166_v11   ;;  %v17829_v11 = vld [vmem:[%s22809_s13 + $0x3] ss:$0 sm:$0xff] }
0x46ed   :  { %11169 = vperm.xlu0 %20173, %v11165_v13  }
0x476b   :  { %v11175_v51 = vpop.permute.xlu1 %11174 }
0x476c   :  { %v11178_v6 = vsub.f32 %v22002_v28, %v11175_v51  ;;  %v11170_v56 = vpop.permute.xlu0 %11169 }
0x476d   :  { %v22012_v19 = vsub.f32 %v21999_v24, %v11170_v56 }
0x476e   :  { %v11180_v22 = vmul.f32 %v11178_v6, %v11178_v6 }
0x476f   :  { %v11179_v20 = vmul.f32 %v22012_v19, %v22012_v19 }
0x4771   :  { %19527 = vmatprep.mubr.msk.f32.mxu0 %vm173_vm3, %v11179_v20 }
0x4772   :  { %19528 = vmatmul.mubr.msk.f32.vlgmr.msra.gmra.mrb[162].mxu0 %vm173_vm3, %v11180_v22 }
0x4773   :  { %19554 = vmatprep.mubr.msk.bf16.mxu0 %vm20548_vm8, %v20547_v16  ;;  %19539 = vmatpush3.bf16.msra.mxu0 %v20215_v12 }
0x4774   :  { %19540 = vmatprep.subr.bf16.mxu0 %v20547_v16 }
0x4777   :  { %19541 = vmatpush3.bf16.msra.mxu0 %v20216_v21 }
0x4778   :  { %19542 = vmatprep.subr.bf16.mxu0 %v20547_v16 }
0x477b   :  { %19543 = vmatpush3.bf16.msra.mxu0 %v20217_v45 }
0x477c   :  { %19544 = vmatprep.subr.bf16.mxu0 %v20547_v16 }
0x477f   :  { %19545 = vmatpush3.bf16.msra.mxu0 %v20218_v34 }
0x4780   :  { %19546 = vmatprep.subr.bf16.mxu0 %v20547_v16 }
0x4783   :  { %19547 = vmatpush3.bf16.msra.mxu0 %v20219_v48 }
0x4784   :  { %19548 = vmatprep.subr.bf16.mxu0 %v20547_v16 }
0x4787   :  { %19549 = vmatpush3.bf16.msra.mxu0 %v20220_v49 }
0x4788   :  { %19550 = vmatprep.subr.bf16.mxu0 %v20547_v16 }
0x478b   :  { %19551 = vmatpush3.bf16.msra.mxu0 %v20221_v61 }
0x478c   :  { %19552 = vmatprep.subr.bf16.mxu0 %v20547_v16 }
0x478f   :  { %19553 = vmatpush3.bf16.msra.mxu0 %v20222_v53 }
0x4790   :  { %19593 = vmatprep.subr.mxu0 %v20547_v16 }
0x4845   :  { %v19529_v23 = vpop.f32.mrb[162].mxu0 }
0x4846   :  { %v11263_v25 = vmul.f32 0.032258064, %v19529_v23  ;;  %v11253_v38 = vpop.f32.mrb[163].mxu0 }
0x4847   :  { %v11262_v27 = vmul.f32 0.032258064, %v11253_v38 }
0x4848   :  { %20433 = vrsqrt.f32 %v11263_v25  ;;  %vm11273_vm12 = vcmp.eq.f32.partialorder %v11263_v25, inf  ;;  %v11276_v62 = vand.u32 2147483648, %v11263_v25  ;;  %vm11275_vm13 = vcmp.eq.f32.partialorder %v11263_v25, 0.0 }
0x4849   :  { %20435 = vrsqrt.f32 %v11262_v27  ;;  %vm11266_vm14 = vcmp.eq.f32.partialorder %v11262_v27, inf  ;;  %v11269_v33 = vand.u32 2147483648, %v11262_v27  ;;  %vm11268_vm15 = vcmp.eq.f32.partialorder %v11262_v27, 0.0 }
0x4852   :  { %v20434_v29 = vpop.eup %20433 }
0x4853   :  { %v20436_v17 = vpop.eup %20435  ;;  %v11272_v30 = vmul.f32 %v20434_v29, %v11263_v25 }
0x4854   :  { %v11265_v4 = vmul.f32 %v20436_v17, %v11262_v27 }
0x4855   :  { %v11274_v31 = vsel %vm11273_vm12, %v11263_v25, %v11272_v30 }
0x4856   :  { %v11277_v36 = vsel %vm11275_vm13, %v11276_v62, %v11274_v31  ;;  %v11267_v26 = vsel %vm11266_vm14, %v11262_v27, %v11265_v4 }
0x4857   :  { %v11279_v39 = vadd.f32 1e-06, %v11277_v36  ;;  %v11270_v50 = vsel %vm11268_vm15, %v11269_v33, %v11267_v26 }
0x4858   :  { %v11278_v43 = vadd.f32 1e-06, %v11270_v50 }
0x4859   :  { %20437 = vrsqrt.f32 %v11279_v39 }
0x485a   :  { %20439 = vrsqrt.f32 %v11278_v43 }
0x4863   :  { %v20438_v41 = vpop.eup %20437 }
0x4864   :  { %v20440_v42 = vpop.eup %20439  ;;  %11289 = vperm.xlu1 %20174, %v20438_v41  }
0x4865   :  { %11284 = vperm.xlu0 %20173, %v20440_v42  }
0x48e3   :  { %v11290_v52 = vpop.permute.xlu1 %11289 }
0x48e4   :  { %v11293_v54 = vmul.f32 %v11290_v52, %v11178_v6  ;;  %v11285_v55 = vpop.permute.xlu0 %11284  ;;  %v20224_v52 = vld [vmem:[%s22799_s5 + $0x48] sm:$0xff]  }
0x48e5   :  { %v11292_v58 = vmul.f32 %v11285_v55, %v22012_v19 }
0x48e6   :  { %v11301_v18 = vmul.f32 %v17801_v40, %v11293_v54  ;;  %v17844_v54 = vld [vmem:[%s22800_s3 + $0x4] ss:$0 sm:$0xff] }
0x48e7   :  { %v11300_v35 = vmul.f32 %v17801_v40, %v11292_v58  ;;  %v20223_v40 = vld [vmem:[%s22799_s5 + $0x40] sm:$0xff]  }
0x48e8   :  { %v11309_v59 = vadd.f32 %v17802_v46, %v11301_v18  ;;  %v17845_v18 = vld [vmem:[%s22801_s4 + $0x4] ss:$0 sm:$0xff] }
0x48e9   :  { %v11308_v47 = vadd.f32 %v17802_v46, %v11300_v35 }
0x48eb   :  { %v11310_v60 = vpack.c.bf16 %v11309_v59, %v11308_v47 }
0x48ed   :  { %19535 = vmatmul.mubr.msk.bf16.vlgmr.msra.gmra.mrb[164].mxu1 %vm173_vm3, %v11310_v60 }
0x48ee   :  { %20117 = vmatpush3.bf16.msra.mxu1 %v20546_v14 }
0x48ef   :  { %20118 = vmatprep.subr.bf16.mxu1 %v20546_v14 }
0x48f2   :  { %20119 = vmatpush3.bf16.msra.mxu1 %v20546_v14 }
0x48f3   :  { %20120 = vmatprep.subr.bf16.mxu1 %v20546_v14 }
0x49c0   :  { %v11373_v0 = vpop.f32.mrb[164].mxu1 }
0x49c1   :  { %v11374_v57 = vadd.f32 %v17808_v63, %v11373_v0  ;;  %v19536_v2 = vpop.f32.mrb[165].mxu1 }
0x49c2   :  { %v11376_v3 = vpop.f32.mrb[166].mxu1 }
0x49c3   :  { %v11377_v5 = vadd.f32 %v17808_v63, %v11376_v3  ;;  %v19537_v8 = vpop.f32.mrb[167].mxu1  ;;  %v11380_v9 = vmax.f32 %v11374_v57, 0.0 }
0x49c5   :  { %v11381_v7 = vmax.f32 %v11377_v5, 0.0 }
0x49c7   :  { %v11382_v10 = vpack.c.bf16 %v11381_v7, %v11380_v9 }
0x49c9   :  { %19555 = vmatmul.mubr.bf16.vlgmr.msra.gmra.mrb[168].mxu0 %v11382_v10 }
0x49ca   :  { %19595 = vmatprep.mubr.msk.f32.mxu0 %vm20548_vm8, %v20547_v16 }
0x4a9c   :  { %v11490_v1 = vpop.f32.mrb[168].mxu0 }
0x4a9d   :  { %v11491_v13 = vadd.f32 %v17829_v11, %v11490_v1  ;;  %v19556_v51 = vpop.f32.mrb[169].mxu0 }
0x4a9e   :  { %v11493_v6 = vpop.f32.mrb[170].mxu0 }
0x4a9f   :  { %v22081_v56 = vadd.f32 %v11491_v13, %v21999_v24  ;;  %v11494_v19 = vadd.f32 %v17829_v11, %v11493_v6  ;;  %v19557_v20 = vpop.f32.mrb[171].mxu0 }
0x4aa1   :  { %v22084_v22 = vadd.f32 %v11494_v19, %v22002_v28  ;;  %19566 = vmatprep.mubr.msk.f32.mxu1 %vm173_vm3, %v22081_v56 }
0x4aa3   :  { %19567 = vmatmul.mubr.msk.f32.vlgmr.msra.gmra.mrb[162].mxu1 %vm173_vm3, %v22084_v22 }
0x4aa4   :  { %20121 = vmatpush3.bf16.msra.mxu1 %v20546_v14 }
0x4aa5   :  { %20122 = vmatprep.subr.bf16.mxu1 %v20546_v14 }
0x4aa8   :  { %20123 = vmatpush3.bf16.msra.mxu1 %v20546_v14 }
0x4aa9   :  { %19580 = vmatprep.subr.bf16.mxu1 %v20547_v16 }
0x4b76   :  { %v19568_v24 = vpop.f32.mrb[162].mxu1 }
0x4b77   :  { %v11585_v23 = vmul.f32 0.03125, %v19568_v24  ;;  %v11575_v25 = vpop.f32.mrb[163].mxu1 }
0x4b78   :  { %v11584_v38 = vmul.f32 0.03125, %v11575_v25 }
0x4b79   :  { %11593 = vperm.xlu1 %20174, %v11585_v23  }
0x4b7a   :  { %11588 = vperm.xlu0 %20173, %v11584_v38  }
0x4bf8   :  { %v11594_v28 = vpop.permute.xlu1 %11593 }
0x4bf9   :  { %v11597_v27 = vsub.f32 %v22084_v22, %v11594_v28  ;;  %v11589_v29 = vpop.permute.xlu0 %11588 }
0x4bfa   :  { %v11596_v17 = vsub.f32 %v22081_v56, %v11589_v29 }
0x4bfb   :  { %v11599_v62 = vmul.f32 %v11597_v27, %v11597_v27 }
0x4bfc   :  { %v11598_v30 = vmul.f32 %v11596_v17, %v11596_v17 }
0x4bfe   :  { %19577 = vmatprep.mubr.msk.f32.mxu1 %vm173_vm3, %v11598_v30 }
0x4bff   :  { %19578 = vmatmul.mubr.msk.f32.vlgmr.msra.gmra.mrb[168].mxu1 %vm173_vm3, %v11599_v62 }
0x4c00   :  { %19584 = vmatprep.mubr.msk.bf16.mxu1 %vm20548_vm8, %v20547_v16  ;;  %19581 = vmatpush3.bf16.msra.mxu1 %v20223_v40 }
0x4c01   :  { %19582 = vmatprep.subr.bf16.mxu1 %v20547_v16 }
0x4c04   :  { %19583 = vmatpush3.bf16.msra.mxu1 %v20224_v52 }
0x4c05   :  { %19588 = vmatprep.subr.mxu1 %v20547_v16 }
0x4cd2   :  { %v19579_v4 = vpop.f32.mrb[168].mxu1 }
0x4cd3   :  { %v11682_v31 = vmul.f32 0.032258064, %v19579_v4  ;;  %v11672_v33 = vpop.f32.mrb[169].mxu1 }
0x4cd4   :  { %v11681_v36 = vmul.f32 0.032258064, %v11672_v33 }
0x4cd5   :  { %20441 = vrsqrt.f32 %v11682_v31  ;;  %vm11692_vm0 = vcmp.eq.f32.partialorder %v11682_v31, inf  ;;  %v11695_v43 = vand.u32 2147483648, %v11682_v31  ;;  %vm11694_vm1 = vcmp.eq.f32.partialorder %v11682_v31, 0.0 }
0x4cd6   :  { %20443 = vrsqrt.f32 %v11681_v36  ;;  %vm11685_vm2 = vcmp.eq.f32.partialorder %v11681_v36, inf  ;;  %v11688_v32 = vand.u32 2147483648, %v11681_v36  ;;  %vm11687_vm4 = vcmp.eq.f32.partialorder %v11681_v36, 0.0 }
0x4cdf   :  { %v20442_v26 = vpop.eup %20441 }
0x4ce0   :  { %v20444_v39 = vpop.eup %20443  ;;  %v11691_v50 = vmul.f32 %v20442_v26, %v11682_v31 }
0x4ce1   :  { %v11684_v41 = vmul.f32 %v20444_v39, %v11681_v36 }
0x4ce2   :  { %v11693_v42 = vsel %vm11692_vm0, %v11682_v31, %v11691_v50 }
0x4ce3   :  { %v11696_v44 = vsel %vm11694_vm1, %v11695_v43, %v11693_v42  ;;  %v11686_v12 = vsel %vm11685_vm2, %v11681_v36, %v11684_v41 }
0x4ce4   :  { %v11698_v21 = vadd.f32 1e-06, %v11696_v44  ;;  %v11689_v45 = vsel %vm11687_vm4, %v11688_v32, %v11686_v12 }
0x4ce5   :  { %v11697_v34 = vadd.f32 1e-06, %v11689_v45 }
0x4ce6   :  { %20445 = vrsqrt.f32 %v11698_v21 }
0x4ce7   :  { %20447 = vrsqrt.f32 %v11697_v34 }
0x4cf0   :  { %v20446_v48 = vpop.eup %20445 }
0x4cf1   :  { %v20448_v49 = vpop.eup %20447  ;;  %11708 = vperm.xlu1 %20174, %v20446_v48  }
0x4cf2   :  { %11703 = vperm.xlu0 %20173, %v20448_v49  }
0x4d70   :  { %v11709_v55 = vpop.permute.xlu1 %11708 }
0x4d71   :  { %v11712_v46 = vmul.f32 %v11709_v55, %v11597_v27  ;;  %v11704_v58 = vpop.permute.xlu0 %11703 }
0x4d72   :  { %v11711_v35 = vmul.f32 %v11704_v58, %v11596_v17 }
0x4d73   :  { %v11720_v59 = vmul.f32 %v17844_v54, %v11712_v46 }
0x4d74   :  { %v11719_v47 = vmul.f32 %v17844_v54, %v11711_v35 }
0x4d75   :  { %v11728_v60 = vadd.f32 %v17845_v18, %v11720_v59 }
0x4d76   :  { %v11727_v61 = vadd.f32 %v17845_v18, %v11719_v47 }
0x4d78   :  { %v11734_v53 = vpack.c.bf16 %v11728_v60, %v11727_v61 }
0x4d7a   :  { %19585 = vmatmul.mubr.msk.bf16.vlgmr.msra.gmra.mrb[172].mxu1 %vm173_vm3, %v11734_v53 }
0x4d7b   :  { %19590 = vmatprep.mubr.msk.f32.mxu1 %vm20548_vm8, %v20547_v16 }
0x4e4d   :  { %v22117_v63 = vpop.f32.mrb[172].mxu1 }
0x4e4e   :  { %11797 = vrot.lane.b32.xlu0 %v22117_v63, %s22858_s1  ;;  %v19586_v0 = vpop.f32.mrb[173].mxu1 }
0x4e4f   :  { %v22121_v57 = vpop.f32.mrb[174].mxu1 }
0x4e50   :  { %11874 = vrot.lane.b32.xlu1 %v22121_v57, %s22858_s1  ;;  %v19587_v2 = vpop.f32.mrb[175].mxu1 }
0x4e54   :  { %12042 = vrot.lane.b32.xlu1 %v22121_v57, %s22859_s18 }
0x4ec0   :  { %v11798_v3 = vpop.permute.xlu0 %11797 }
0x4ec1   :  { %19589 = vmatpush3.xpose.msk.msra.mxu1 %vm468_vm9, %v11798_v3 }
0x4ec2   :  { %v11875_v5 = vpop.permute.xlu1 %11874  ;;  %19598 = vmatprep.subr.mxu1 %v20547_v16 }
0x4ec3   :  { %19594 = vmatpush3.xpose.msk.msra.mxu0 %vm468_vm9, %v11875_v5 }
0x4ec4   :  { %19591 = vmatmul.mubr.msk.f32.vlgmr.msra.gmra.mrb[170].mxu1 %vm468_vm9, %v22117_v63  ;;  %19603 = vmatprep.subr.mxu0 %v20547_v16 }
0x4ec5   :  { %19600 = vmatprep.mubr.msk.f32.mxu1 %vm20548_vm8, %v20547_v16 }
0x4ec6   :  { %19596 = vmatmul.mubr.msk.f32.vlgmr.msra.gmra.mrb[172].mxu0 %vm468_vm9, %v22121_v57  ;;  %v12043_v8 = vpop.permute.xlu1 %12042 }
0x4ec7   :  { %19604 = vmatpush3.msra.mxu0 %v12043_v8  ;;  %19605 = vmatprep.mubr.msk.f32.mxu0 %vm20548_vm8, %v20547_v16 }
0x4ec8   :  { %19613 = vmatprep.subr.mxu0 %v20547_v16 }
0x4f97   :  { %v11869_v9 = vpop.f32.mrb[170].mxu1 }
0x4f98   :  { %v11950_v7 = vmul.f32 0.17677669, %v11869_v9  ;;  %v19592_v10 = vpop.f32.mrb[171].mxu1 }
0x4f99   :  { %v11946_v11 = vpop.f32.mrb[172].mxu0  ;;  %v17853_v10 = vld [vmem:[%s22802_s6 + $0x40] sm:$0xf] }
0x4f9a   :  { %v11952_v1 = vadd.f32 %v11950_v7, %v20765_v15  ;;  %v11951_v13 = vmul.f32 0.17677669, %v11946_v11  ;;  %v19597_v51 = vpop.f32.mrb[173].mxu0  ;;  %v12803_v11 = vsel %vm1425_vm11, %v17853_v10, 0 }
0x4f9c   :  { %v11953_v6 = vadd.f32 %v11951_v13, %v20765_v15  ;;  %v11954_v19 = vsel %vm468_vm9, %v11952_v1, -inf }
0x4f9d   :  { %11955 = vmax.xlane.f32.xlu0 %v11954_v19 }
0x4f9e   :  { %v11957_v20 = vsel %vm468_vm9, %v11953_v6, -inf }
0x4f9f   :  { %11958 = vmax.xlane.f32.xlu1 %v11957_v20 }
0x4fb0   :  { %12353 = vrot.lane.b32.xlu1 %v22121_v57, %s22860_s0 }
0x4fb3   :  { %11966 = vrot.lane.b32.xlu0 %v22117_v63, %s22859_s18 }
0x4fb4   :  { %12351 = vrot.lane.b32.xlu1 %v22121_v57, %s22854_s24 }
0x4fb7   :  { %12275 = vrot.lane.b32.xlu0 %v22117_v63, %s22860_s0 }
0x4fbb   :  { %12273 = vrot.lane.b32.xlu0 %v22117_v63, %s22854_s24 }
0x502a   :  { %v11956_v24 = vpop.xlane.xlu0 %11955 }
0x502b   :  { %v11960_v23 = vsub.f32 %v11952_v1, %v11956_v24  ;;  %v17854_v1 = vld [vmem:[%s22802_s6 + $0x44] sm:$0xf] }
0x502c   :  { %v11959_v25 = vpop.xlane.xlu1 %11958  ;;  %v12756_v13 = vsel %vm1425_vm11, %v17854_v1, 0 }
0x502d   :  { %v11962_v38 = vmul.f32 1.442695, %v11960_v23  ;;  %v11961_v28 = vsub.f32 %v11953_v6, %v11959_v25 }
0x502e   :  { %v11967_v27 = vpop.permute.xlu0 %11966 }
0x502f   :  { %20449 = vpow2.f32 %v11962_v38  ;;  %v11964_v29 = vmul.f32 1.442695, %v11961_v28  ;;  %19599 = vmatpush3.msra.mxu1 %v11967_v27 }
0x5030   :  { %19608 = vmatprep.subr.mxu1 %v20547_v16  ;;  %v12354_v4 = vpop.permute.xlu1 %12353 }
0x5031   :  { %20451 = vpow2.f32 %v11964_v29 }
0x5032   :  { %v12276_v62 = vpop.permute.xlu0 %12275 }
0x5034   :  { %v12352_v33 = vpop.permute.xlu1 %12351 }
0x5036   :  { %v12274_v31 = vpop.permute.xlu0 %12273 }
0x5039   :  { %v20450_v17 = vpop.eup %20449 }
0x503a   :  { %19601 = vmatmul.mubr.msk.f32.vlgmr.msra.gmra.mrb[176].mxu1 %vm468_vm9, %v20450_v17 }
0x503b   :  { %v20452_v30 = vpop.eup %20451  ;;  %19609 = vmatpush3.msra.mxu1 %v20554_v37  ;;  %19610 = vmatprep.mubr.msk.f32.mxu1 %vm20548_vm8, %v20547_v16 }
0x503c   :  { %19606 = vmatmul.mubr.msk.f32.vlgmr.msra.gmra.mrb[174].mxu0 %vm468_vm9, %v20452_v30  ;;  %19618 = vmatprep.subr.mxu1 %v20547_v16 }
0x503d   :  { %19614 = vmatpush3.msra.mxu0 %v20554_v37  ;;  %19615 = vmatprep.mubr.msk.f32.mxu0 %vm20548_vm8, %v20547_v16 }
0x503e   :  { %19611 = vmatmul.mubr.msk.f32.vlgmr.msra.gmra.mrb[178].mxu1 %vm468_vm9, %v20450_v17  ;;  %19623 = vmatprep.subr.mxu0 %v20547_v16 }
0x503f   :  { %19620 = vmatprep.mubr.msk.f32.mxu1 %vm20548_vm8, %v20547_v16 }
0x5040   :  { %19616 = vmatmul.mubr.msk.f32.vlgmr.msra.gmra.mrb[176].mxu0 %vm468_vm9, %v20452_v30 }
0x5041   :  { %19625 = vmatprep.mubr.msk.f32.mxu0 %vm20548_vm8, %v20547_v16 }
0x5042   :  { %19619 = vmatpush3.xpose.msk.msra.mxu1 %vm468_vm9, %v12276_v62 }
0x5043   :  { %19628 = vmatprep.subr.mxu1 %v20547_v16 }
0x5044   :  { %19624 = vmatpush3.xpose.msk.msra.mxu0 %vm468_vm9, %v12354_v4 }
0x5045   :  { %19621 = vmatmul.mubr.msk.f32.vlgmr.msra.gmra.mrb[180].mxu1 %vm468_vm9, %v12274_v31  ;;  %19633 = vmatprep.subr.mxu0 %v20547_v16 }
0x5046   :  { %19630 = vmatprep.mubr.msk.f32.mxu1 %vm20548_vm8, %v20547_v16 }
0x5047   :  { %19626 = vmatmul.mubr.msk.f32.vlgmr.msra.gmra.mrb[178].mxu0 %vm468_vm9, %v12352_v33 }
0x5048   :  { %19635 = vmatprep.mubr.msk.f32.mxu0 %vm20548_vm8, %v20547_v16 }
0x510d   :  { %v12038_v36 = vpop.f32.mrb[176].mxu1 }
0x510e   :  { %v19602_v26 = vpop.f32.mrb[177].mxu1 }
0x510f   :  { %v12114_v39 = vpop.f32.mrb[174].mxu0 }
0x5110   :  { %v19607_v50 = vpop.f32.mrb[175].mxu0 }
0x5111   :  { %v12184_v43 = vpop.f32.mrb[178].mxu1 }
0x5112   :  { %v19612_v41 = vpop.f32.mrb[179].mxu1 }
0x5113   :  { %v12254_v42 = vpop.f32.mrb[176].mxu0 }
0x5114   :  { %v19617_v32 = vpop.f32.mrb[177].mxu0  ;;  %20453 = vrcp.f32 %v12254_v42 }
0x5115   :  { %20455 = vrcp.f32 %v12184_v43 }
0x5118   :  { %v12347_v44 = vpop.f32.mrb[180].mxu1 }
0x5119   :  { %v12429_v12 = vmul.f32 0.17677669, %v12347_v44  ;;  %v19622_v21 = vpop.f32.mrb[181].mxu1 }
0x511a   :  { %v12425_v45 = vpop.f32.mrb[178].mxu0 }
0x511b   :  { %v12431_v34 = vadd.f32 %v12429_v12, %v20765_v15  ;;  %v12430_v48 = vmul.f32 0.17677669, %v12425_v45  ;;  %v19627_v49 = vpop.f32.mrb[179].mxu0 }
0x511d   :  { %v12432_v40 = vadd.f32 %v12430_v48, %v20765_v15  ;;  %v12433_v52 = vsel %vm468_vm9, %v12431_v34, -inf }
0x511e   :  { %12434 = vmax.xlane.f32.xlu0 %v12433_v52  ;;  %v20454_v55 = vpop.eup %20453 }
0x511f   :  { %v12436_v54 = vsel %vm468_vm9, %v12432_v40, -inf  ;;  %v20456_v46 = vpop.eup %20455 }
0x5120   :  { %12437 = vmax.xlane.f32.xlu1 %v12436_v54 }
0x5131   :  { %12521 = vrot.lane.b32.xlu1 %v22121_v57, %s22855_s20 }
0x5134   :  { %12445 = vrot.lane.b32.xlu0 %v22117_v63, %s22855_s20 }
0x5135   :  { %12267 = vperm.xlu1 %20174, %v20454_v55  }
0x5138   :  { %12262 = vperm.xlu0 %20173, %v20456_v46  }
0x51ab   :  { %v12435_v58 = vpop.xlane.xlu0 %12434 }
0x51ac   :  { %v12439_v18 = vsub.f32 %v12431_v34, %v12435_v58 }
0x51ad   :  { %v12438_v35 = vpop.xlane.xlu1 %12437 }
0x51ae   :  { %v12441_v59 = vmul.f32 1.442695, %v12439_v18  ;;  %v12440_v47 = vsub.f32 %v12432_v40, %v12438_v35 }
0x51af   :  { %v12446_v60 = vpop.permute.xlu0 %12445 }
0x51b0   :  { %20457 = vpow2.f32 %v12441_v59  ;;  %v12443_v61 = vmul.f32 1.442695, %v12440_v47  ;;  %19629 = vmatpush3.msra.mxu1 %v12446_v60 }
0x51b1   :  { %v12522_v53 = vpop.permute.xlu1 %12521  ;;  %19638 = vmatprep.subr.mxu1 %v20547_v16 }
0x51b2   :  { %20459 = vpow2.f32 %v12443_v61  ;;  %19634 = vmatpush3.msra.mxu0 %v12522_v53 }
0x51b3   :  { %19643 = vmatprep.subr.mxu0 %v20547_v16 }
0x51b5   :  { %v12268_v0 = vpop.permute.xlu1 %12267 }
0x51b6   :  { %v12271_v3 = vmul.f32 %v12268_v0, %v12114_v39 }
0x51b7   :  { %v12263_v2 = vpop.permute.xlu0 %12262 }
0x51b8   :  { %v12270_v5 = vmul.f32 %v12263_v2, %v12038_v36 }
0x51ba   :  { %v20458_v8 = vpop.eup %20457  ;;  %v12272_v9 = vpack.c.bf16 %v12271_v3, %v12270_v5 }
0x51bb   :  { %19631 = vmatmul.mubr.msk.f32.vlgmr.msra.gmra.mrb[182].mxu1 %vm468_vm9, %v20458_v8 }
0x51bc   :  { %v20460_v7 = vpop.eup %20459  ;;  %19639 = vmatpush3.msra.mxu1 %v20554_v37  ;;  %19640 = vmatprep.mubr.msk.f32.mxu1 %vm20548_vm8, %v20547_v16 }
0x51bd   :  { %19636 = vmatmul.mubr.msk.f32.vlgmr.msra.gmra.mrb[180].mxu0 %vm468_vm9, %v20460_v7  ;;  %19648 = vmatprep.subr.bf16.mxu1 %v20547_v16 }
0x51be   :  { %19644 = vmatpush3.msra.mxu0 %v20554_v37  ;;  %19645 = vmatprep.mubr.msk.f32.mxu0 %vm20548_vm8, %v20547_v16 }
0x51bf   :  { %19641 = vmatmul.mubr.msk.f32.vlgmr.msra.gmra.mrb[184].mxu1 %vm468_vm9, %v20458_v8  ;;  %19654 = vmatprep.subr.bf16.mxu0 %v20547_v16 }
0x51c0   :  { %19650 = vmatprep.mubr.msk.bf16.mxu1 %vm20548_vm8, %v20547_v16  ;;  %19649 = vmatpush3.bf16.msra.mxu1 %v12756_v13 }
0x51c1   :  { %19646 = vmatmul.mubr.msk.f32.vlgmr.msra.gmra.mrb[182].mxu0 %vm468_vm9, %v20460_v7  ;;  %19660 = vmatprep.subr.mxu1 %v20547_v16 }
0x51c2   :  { %19655 = vmatpush3.bf16.msra.mxu0 %v12803_v11  ;;  %19656 = vmatprep.mubr.msk.bf16.mxu0 %vm20548_vm8, %v20547_v16 }
0x51c3   :  { %19665 = vmatprep.subr.mxu0 %v20547_v16 }
0x51c5   :  { %19657 = vmatmul.mubr.msk.bf16.vlgmr.msra.gmra.mrb[184].mxu0 %vm468_vm9, %v12272_v9 }
0x51c6   :  { %19667 = vmatprep.mubr.msk.f32.mxu0 %vm20548_vm8, %v20547_v16 }
0x528e   :  { %v12517_v51 = vpop.f32.mrb[182].mxu1 }
0x528f   :  { %v19632_v6 = vpop.f32.mrb[183].mxu1 }
0x5290   :  { %v12593_v19 = vpop.f32.mrb[180].mxu0 }
0x5291   :  { %v19637_v20 = vpop.f32.mrb[181].mxu0 }
0x5292   :  { %v12663_v24 = vpop.f32.mrb[184].mxu1 }
0x5293   :  { %20461 = vrcp.f32 %v12663_v24  ;;  %v19642_v23 = vpop.f32.mrb[185].mxu1 }
0x5294   :  { %v12733_v25 = vpop.f32.mrb[182].mxu0 }
0x5295   :  { %20463 = vrcp.f32 %v12733_v25  ;;  %v19647_v38 = vpop.f32.mrb[183].mxu0 }
0x5298   :  { %v12839_v28 = vpop.f32.mrb[184].mxu0 }
0x5299   :  { %v19658_v27 = vpop.f32.mrb[185].mxu0 }
0x529a   :  { %v12842_v29 = vpop.f32.mrb[186].mxu0 }
0x529b   :  { %v19659_v17 = vpop.f32.mrb[187].mxu0 }
0x529d   :  { %v20462_v30 = vpop.eup %20461 }
0x529e   :  { %12741 = vperm.xlu0 %20173, %v20462_v30  }
0x529f   :  { %v20464_v62 = vpop.eup %20463 }
0x52a0   :  { %12746 = vperm.xlu1 %20174, %v20464_v62  }
0x52a2   :  { %12926 = vrot.lane.b32.xlu0 %v22121_v57, %s22856_s21 }
0x52a4   :  { %12924 = vrot.lane.b32.xlu1 %v22121_v57, %s22857_s28 }
0x52a6   :  { %12848 = vrot.lane.b32.xlu0 %v22117_v63, %s22856_s21 }
0x52a8   :  { %12846 = vrot.lane.b32.xlu1 %v22117_v63, %s22857_s28 }
0x52ac   :  { %13376 = vrot.lane.b32.xlu1 %v22117_v63, %s22850_s2 }
0x52b0   :  { %13454 = vrot.lane.b32.xlu1 %v22121_v57, %s22850_s2 }
0x531d   :  { %v12742_v4 = vpop.permute.xlu0 %12741 }
0x531e   :  { %v12749_v33 = vmul.f32 %v12742_v4, %v12517_v51 }
0x531f   :  { %v12747_v31 = vpop.permute.xlu1 %12746 }
0x5320   :  { %v12750_v36 = vmul.f32 %v12747_v31, %v12593_v19 }
0x5321   :  { %v12927_v26 = vpop.permute.xlu0 %12926 }
0x5322   :  { %v12751_v39 = vpack.c.bf16 %v12750_v36, %v12749_v33  ;;  %19666 = vmatpush3.xpose.msk.msra.mxu0 %vm468_vm9, %v12927_v26  ;;  %v17855_v33 = vld [vmem:[%s22802_s6 + $0x48] sm:$0xf] }
0x5323   :  { %v12925_v50 = vpop.permute.xlu1 %12924  ;;  %19675 = vmatprep.subr.mxu0 %v20547_v16  ;;  %v13329_v26 = vsel %vm1425_vm11, %v17855_v33, 0 }
0x5324   :  { %19651 = vmatmul.mubr.msk.bf16.vlgmr.msra.gmra.mrb[188].mxu1 %vm468_vm9, %v12751_v39 }
0x5325   :  { %19668 = vmatmul.mubr.msk.f32.vlgmr.msra.gmra.mrb[188].mxu0 %vm468_vm9, %v12925_v50  ;;  %v12849_v43 = vpop.permute.xlu0 %12848  ;;  %19662 = vmatprep.mubr.msk.f32.mxu1 %vm20548_vm8, %v20547_v16 }
0x5326   :  { %19661 = vmatpush3.xpose.msk.msra.mxu1 %vm468_vm9, %v12849_v43  ;;  %19677 = vmatprep.mubr.msk.f32.mxu0 %vm20548_vm8, %v20547_v16 }
0x5327   :  { %19670 = vmatprep.subr.mxu1 %v20547_v16  ;;  %v12847_v41 = vpop.permute.xlu1 %12846 }
0x532b   :  { %v13377_v35 = vpop.permute.xlu1 %13376 }
0x532c   :  { %19663 = vmatmul.mubr.msk.f32.vlgmr.msra.gmra.mrb[186].mxu1 %vm468_vm9, %v12847_v41 }
0x532d   :  { %19672 = vmatprep.mubr.msk.f32.mxu1 %vm20548_vm8, %v20547_v16 }
0x532f   :  { %v13455_v60 = vpop.permute.xlu1 %13454 }
0x53f7   :  { %v12792_v42 = vpop.f32.mrb[188].mxu1 }
0x53f8   :  { %v22245_v32 = vadd.f32 %v12839_v28, %v12792_v42  ;;  %v19652_v44 = vpop.f32.mrb[189].mxu1  ;;  %v12998_v12 = vpop.f32.mrb[188].mxu0 }
0x53f9   :  { %v13003_v21 = vmul.f32 0.17677669, %v12998_v12  ;;  %v12795_v45 = vpop.f32.mrb[190].mxu1  ;;  %v19669_v34 = vpop.f32.mrb[189].mxu0 }
0x53fa   :  { %v22247_v48 = vadd.f32 %v12842_v29, %v12795_v45  ;;  %v19653_v49 = vpop.f32.mrb[191].mxu1 }
0x53fb   :  { %v13005_v40 = vadd.f32 %v13003_v21, %v20765_v15 }
0x53fd   :  { %v13009_v52 = vsel %vm468_vm9, %v13005_v40, -inf }
0x53fe   :  { %13010 = vmax.xlane.f32.xlu0 %v13009_v52 }
0x53ff   :  { %v12920_v54 = vpop.f32.mrb[186].mxu1 }
0x5400   :  { %v13002_v55 = vmul.f32 0.17677669, %v12920_v54  ;;  %v19664_v46 = vpop.f32.mrb[187].mxu1 }
0x5402   :  { %v13004_v58 = vadd.f32 %v13002_v55, %v20765_v15 }
0x5404   :  { %v13006_v18 = vsel %vm468_vm9, %v13004_v58, -inf }
0x5405   :  { %13007 = vmax.xlane.f32.xlu1 %v13006_v18 }
0x5414   :  { %13094 = vrot.lane.b32.xlu0 %v22121_v57, %s22851_s23 }
0x5416   :  { %13452 = vrot.lane.b32.xlu1 %v22121_v57, %s22852_s30 }
0x5418   :  { %13374 = vrot.lane.b32.xlu0 %v22117_v63, %s22852_s30 }
0x541c   :  { %13018 = vrot.lane.b32.xlu0 %v22117_v63, %s22851_s23 }
0x548b   :  { %v13011_v59 = vpop.xlane.xlu0 %13010 }
0x548c   :  { %v13013_v47 = vsub.f32 %v13005_v40, %v13011_v59 }
0x548e   :  { %v13016_v61 = vmul.f32 1.442695, %v13013_v47 }
0x548f   :  { %v13095_v53 = vpop.permute.xlu0 %13094 }
0x5490   :  { %20465 = vpow2.f32 %v13016_v61  ;;  %19676 = vmatpush3.msra.mxu0 %v13095_v53 }
0x5491   :  { %19685 = vmatprep.subr.mxu0 %v20547_v16 }
0x5492   :  { %v13008_v0 = vpop.xlane.xlu1 %13007 }
0x5493   :  { %v13012_v2 = vsub.f32 %v13004_v58, %v13008_v0  ;;  %v13375_v3 = vpop.permute.xlu0 %13374 }
0x5495   :  { %v13014_v5 = vmul.f32 1.442695, %v13012_v2 }
0x5496   :  { %v13453_v10 = vpop.permute.xlu1 %13452 }
0x5497   :  { %20467 = vpow2.f32 %v13014_v5  ;;  %v13019_v8 = vpop.permute.xlu0 %13018 }
0x5498   :  { %19671 = vmatpush3.msra.mxu1 %v13019_v8 }
0x5499   :  { %19680 = vmatprep.subr.mxu1 %v20547_v16 }
0x549a   :  { %v20466_v9 = vpop.eup %20465 }
0x549b   :  { %19678 = vmatmul.mubr.msk.f32.vlgmr.msra.gmra.mrb[190].mxu0 %vm468_vm9, %v20466_v9 }
0x549c   :  { %19686 = vmatpush3.msra.mxu0 %v20554_v37  ;;  %19687 = vmatprep.mubr.msk.f32.mxu0 %vm20548_vm8, %v20547_v16 }
0x549d   :  { %19696 = vmatprep.subr.mxu0 %v20547_v16 }
0x549f   :  { %19688 = vmatmul.mubr.msk.f32.vlgmr.msra.gmra.mrb[192].mxu0 %vm468_vm9, %v20466_v9 }
0x54a0   :  { %19698 = vmatprep.mubr.msk.f32.mxu0 %vm20548_vm8, %v20547_v16 }
0x54a1   :  { %v20468_v7 = vpop.eup %20467 }
0x54a2   :  { %19673 = vmatmul.mubr.msk.f32.vlgmr.msra.gmra.mrb[192].mxu1 %vm468_vm9, %v20468_v7 }
0x54a3   :  { %19697 = vmatpush3.xpose.msk.msra.mxu0 %vm468_vm9, %v13377_v35  ;;  %19681 = vmatpush3.msra.mxu1 %v20554_v37 }
0x54a4   :  { %19682 = vmatprep.mubr.msk.f32.mxu1 %vm20548_vm8, %v20547_v16  ;;  %19701 = vmatprep.subr.mxu0 %v20547_v16 }
0x54a5   :  { %19690 = vmatprep.subr.bf16.mxu1 %v20547_v16 }
0x54a6   :  { %19699 = vmatmul.mubr.msk.f32.vlgmr.msra.gmra.mrb[194].mxu0 %vm468_vm9, %v13375_v3  ;;  %19683 = vmatmul.mubr.msk.f32.vlgmr.msra.gmra.mrb[194].mxu1 %vm468_vm9, %v20468_v7 }
0x54a7   :  { %19702 = vmatpush3.xpose.msk.msra.mxu0 %vm468_vm9, %v13455_v60  ;;  %19703 = vmatprep.mubr.msk.f32.mxu0 %vm20548_vm8, %v20547_v16 }
0x54a8   :  { %19692 = vmatprep.mubr.msk.bf16.mxu1 %vm20548_vm8, %v20547_v16  ;;  %19711 = vmatprep.subr.mxu0 %v20547_v16 }
0x54a9   :  { %19691 = vmatpush3.bf16.msra.mxu1 %v13329_v26 }
0x54aa   :  { %19704 = vmatmul.mubr.msk.f32.vlgmr.msra.gmra.mrb[196].mxu0 %vm468_vm9, %v13453_v10  ;;  %19706 = vmatprep.subr.mxu1 %v20547_v16 }
0x54ab   :  { %19713 = vmatprep.mubr.msk.f32.mxu0 %vm20548_vm8, %v20547_v16 }
0x556e   :  { %v13166_v11 = vpop.f32.mrb[190].mxu0 }
0x556f   :  { %v19679_v1 = vpop.f32.mrb[191].mxu0 }
0x5572   :  { %v13306_v13 = vpop.f32.mrb[192].mxu0 }
0x5573   :  { %v19689_v51 = vpop.f32.mrb[193].mxu0  ;;  %20469 = vrcp.f32 %v13306_v13 }
0x5575   :  { %v13090_v6 = vpop.f32.mrb[192].mxu1 }
0x5576   :  { %v19674_v19 = vpop.f32.mrb[193].mxu1 }
0x5577   :  { %v17894_v19 = vld [vmem:[%s22803_s7 + $0x4] ss:$0 sm:$0xff] }
0x5579   :  { %v13448_v20 = vpop.f32.mrb[194].mxu0  ;;  %v13236_v24 = vpop.f32.mrb[194].mxu1 }
0x557a   :  { %v13530_v23 = vmul.f32 0.17677669, %v13448_v20  ;;  %v19700_v25 = vpop.f32.mrb[195].mxu0  ;;  %v19684_v38 = vpop.f32.mrb[195].mxu1  ;;  %20471 = vrcp.f32 %v13236_v24 }
0x557c   :  { %v13532_v28 = vadd.f32 %v13530_v23, %v20765_v15 }
0x557d   :  { %v13526_v27 = vpop.f32.mrb[196].mxu0  ;;  %v20470_v31 = vpop.eup %20469 }
0x557e   :  { %v13531_v29 = vmul.f32 0.17677669, %v13526_v27  ;;  %v19705_v17 = vpop.f32.mrb[197].mxu0  ;;  %v13534_v30 = vsel %vm468_vm9, %v13532_v28, -inf }
0x557f   :  { %13535 = vmax.xlane.f32.xlu0 %v13534_v30 }
0x5580   :  { %v13533_v62 = vadd.f32 %v13531_v29, %v20765_v15 }
0x5582   :  { %v13537_v4 = vsel %vm468_vm9, %v13533_v62, -inf }
0x5583   :  { %13538 = vmax.xlane.f32.xlu1 %v13537_v4 }
0x5584   :  { %v20472_v36 = vpop.eup %20471 }
0x5594   :  { %13319 = vperm.xlu1 %20174, %v20470_v31  }
0x5595   :  { %13314 = vperm.xlu0 %20173, %v20472_v36  }
0x5598   :  { %13622 = vrot.lane.b32.xlu1 %v22121_v57, %s22853_s22 }
0x5599   :  { %13546 = vrot.lane.b32.xlu0 %v22117_v63, %s22853_s22 }
0x560c   :  { %v13536_v39 = vpop.xlane.xlu0 %13535 }
0x560d   :  { %v13540_v50 = vsub.f32 %v13532_v28, %v13536_v39 }
0x560f   :  { %v13542_v42 = vmul.f32 1.442695, %v13540_v50 }
0x5610   :  { %v13539_v43 = vpop.xlane.xlu1 %13538 }
0x5611   :  { %v13541_v41 = vsub.f32 %v13533_v62, %v13539_v43 }
0x5613   :  { %v13544_v44 = vmul.f32 1.442695, %v13541_v41 }
0x5614   :  { %v13320_v12 = vpop.permute.xlu1 %13319  ;;  %v13315_v21 = vpop.permute.xlu0 %13314 }
0x5615   :  { %20473 = vpow2.f32 %v13544_v44  ;;  %v13323_v45 = vmul.f32 %v13320_v12, %v13166_v11  ;;  %v13322_v34 = vmul.f32 %v13315_v21, %v13090_v6 }
0x5616   :  { %20475 = vpow2.f32 %v13542_v42 }
0x5617   :  { %v13324_v49 = vpack.c.bf16 %v13323_v45, %v13322_v34 }
0x5618   :  { %v13623_v40 = vpop.permute.xlu1 %13622  ;;  %v13547_v52 = vpop.permute.xlu0 %13546 }
0x5619   :  { %19693 = vmatmul.mubr.msk.bf16.vlgmr.msra.gmra.mrb[196].mxu1 %vm468_vm9, %v13324_v49  ;;  %19712 = vmatpush3.msra.mxu0 %v13623_v40 }
0x561a   :  { %19707 = vmatpush3.msra.mxu1 %v13547_v52  ;;  %19708 = vmatprep.mubr.msk.f32.mxu1 %vm20548_vm8, %v20547_v16 }
0x561b   :  { %19721 = vmatprep.subr.mxu0 %v20547_v16  ;;  %19716 = vmatprep.subr.mxu1 %v20547_v16 }
0x561f   :  { %v20474_v63 = vpop.eup %20473 }
0x5620   :  { %v20476_v57 = vpop.eup %20475  ;;  %19714 = vmatmul.mubr.msk.f32.vlgmr.msra.gmra.mrb[198].mxu0 %vm468_vm9, %v20474_v63 }
0x5621   :  { %19709 = vmatmul.mubr.msk.f32.vlgmr.msra.gmra.mrb[200].mxu1 %vm468_vm9, %v20476_v57  ;;  %19722 = vmatpush3.msra.mxu0 %v20554_v37 }
0x5622   :  { %19723 = vmatprep.mubr.msk.f32.mxu0 %vm20548_vm8, %v20547_v16  ;;  %19717 = vmatpush3.msra.mxu1 %v20554_v37 }
0x5623   :  { %19718 = vmatprep.mubr.msk.f32.mxu1 %vm20548_vm8, %v20547_v16  ;;  %19726 = vmatprep.subr.bf16.mxu1 %v20547_v16 }
0x5624   :  { %19724 = vmatmul.mubr.msk.f32.vlgmr.msra.gmra.mrb[200].mxu0 %vm468_vm9, %v20474_v63  ;;  %20124 = vmatprep.subr.bf16.mxu0 %v20546_v14 }
0x5625   :  { %19719 = vmatmul.mubr.msk.f32.vlgmr.msra.gmra.mrb[202].mxu1 %vm468_vm9, %v20476_v57  ;;  %20125 = vmatpush3.bf16.msra.mxu0 %v20546_v14 }
0x5626   :  { %19728 = vmatprep.mubr.msk.bf16.mxu1 %vm20548_vm8, %v20547_v16  ;;  %20126 = vmatprep.subr.bf16.mxu0 %v20546_v14 }
0x5629   :  { %20127 = vmatpush3.bf16.msra.mxu0 %v20546_v14 }
0x562a   :  { %19754 = vmatprep.subr.bf16.mxu0 %v20547_v16 }
0x56ec   :  { %v13365_v54 = vpop.f32.mrb[196].mxu1 }
0x56ed   :  { %v13372_v55 = vadd.f32 %v13365_v54, %v22245_v32  ;;  %v19694_v46 = vpop.f32.mrb[197].mxu1  ;;  %v17856_v32 = vld [vmem:[%s22802_s6 + $0x4c] sm:$0xf] }
0x56ee   :  { %v13368_v58 = vpop.f32.mrb[198].mxu1  ;;  %v20225_v46 = vld [vmem:[%s22804_s10 + $0x40] sm:$0xff]  }
0x56ef   :  { %v13373_v18 = vadd.f32 %v13368_v58, %v22247_v48  ;;  %v19695_v35 = vpop.f32.mrb[199].mxu1  ;;  %v13857_v48 = vsel %vm1425_vm11, %v17856_v32, 0  ;;  %v20226_v58 = vld [vmem:[%s22804_s10 + $0x48] sm:$0xff]  }
0x56f0   :  { %19727 = vmatpush3.bf16.msra.mxu1 %v13857_v48  ;;  %v20228_v35 = vld [vmem:[%s22805_s12 + $0x108] sm:$0xff]  }
0x56f1   :  { %20128 = vmatprep.subr.bf16.mxu1 %v20546_v14 }
0x56f3   :  { %v13694_v59 = vpop.f32.mrb[198].mxu0 }
0x56f4   :  { %v13618_v47 = vpop.f32.mrb[200].mxu1  ;;  %v19715_v60 = vpop.f32.mrb[199].mxu0 }
0x56f5   :  { %v19710_v61 = vpop.f32.mrb[201].mxu1  ;;  %v20231_v60 = vld [vmem:[%s22805_s12 + $0x120] sm:$0xff]  }
0x56f6   :  { %v20232_v61 = vld [vmem:[%s22805_s12 + $0x128] sm:$0xff]  }
0x56f7   :  { %v13834_v53 = vpop.f32.mrb[200].mxu0 }
0x56f8   :  { %20477 = vrcp.f32 %v13834_v53  ;;  %v13764_v0 = vpop.f32.mrb[202].mxu1  ;;  %v19725_v2 = vpop.f32.mrb[201].mxu0  ;;  %v17901_v53 = vld [vmem:[%s22806_s8 + $0x4] ss:$0 sm:$0xff] }
0x56f9   :  { %20479 = vrcp.f32 %v13764_v0  ;;  %v19720_v3 = vpop.f32.mrb[203].mxu1 }
0x5702   :  { %v20478_v5 = vpop.eup %20477 }
0x5703   :  { %v20480_v8 = vpop.eup %20479  ;;  %13847 = vperm.xlu1 %20174, %v20478_v5   ;;  %v17902_v5 = vld [vmem:[%s22807_s9 + $0x4] ss:$0 sm:$0xff] }
0x5704   :  { %13842 = vperm.xlu0 %20173, %v20480_v8  }
0x5782   :  { %v13848_v9 = vpop.permute.xlu1 %13847 }
0x5783   :  { %v13851_v7 = vmul.f32 %v13848_v9, %v13694_v59  ;;  %v13843_v10 = vpop.permute.xlu0 %13842  ;;  %v20229_v59 = vld [vmem:[%s22805_s12 + $0x110] sm:$0xff]  }
0x5784   :  { %v13850_v11 = vmul.f32 %v13843_v10, %v13618_v47  ;;  %v20230_v47 = vld [vmem:[%s22805_s12 + $0x118] sm:$0xff]  }
0x5786   :  { %v13852_v1 = vpack.c.bf16 %v13851_v7, %v13850_v11  ;;  %v20233_v11 = vld [vmem:[%s22805_s12 + $0x130] sm:$0xff]  }
0x5788   :  { %19729 = vmatmul.mubr.msk.bf16.vlgmr.msra.gmra.mrb[204].mxu1 %vm468_vm9, %v13852_v1  ;;  %v20234_v1 = vld [vmem:[%s22805_s12 + $0x138] sm:$0xff]  }
0x5789   :  { %20129 = vmatpush3.bf16.msra.mxu1 %v20546_v14 }
0x578a   :  { %20130 = vmatprep.subr.bf16.mxu1 %v20546_v14 }
0x578d   :  { %20131 = vmatpush3.bf16.msra.mxu1 %v20546_v14 }
0x578e   :  { %19762 = vmatprep.subr.bf16.mxu1 %v20547_v16 }
0x585b   :  { %v13893_v13 = vpop.f32.mrb[204].mxu1 }
0x585c   :  { %v13900_v51 = vadd.f32 %v13893_v13, %v13372_v55  ;;  %v19730_v6 = vpop.f32.mrb[205].mxu1  ;;  %v17908_v13 = vld [vmem:[%s22808_s11 + $0x4] ss:$0 sm:$0xff] }
0x585d   :  { %v13896_v20 = vpop.f32.mrb[206].mxu1 }
0x585e   :  { %v13902_v24 = vadd.f32 %v13900_v51, %v22081_v56  ;;  %v13901_v23 = vadd.f32 %v13896_v20, %v13373_v18  ;;  %v19731_v25 = vpop.f32.mrb[207].mxu1  ;;  %v20227_v18 = vld [vmem:[%s22805_s12 + $0x100] sm:$0xff]  }
0x5860   :  { %v22341_v38 = vadd.f32 %v17894_v19, %v13902_v24  ;;  %v13903_v28 = vadd.f32 %v13901_v23, %v22084_v22 }
0x5862   :  { %v22344_v27 = vadd.f32 %v17894_v19, %v13903_v28  ;;  %19740 = vmatprep.mubr.msk.f32.mxu0 %vm173_vm3, %v22341_v38 }
0x5864   :  { %19741 = vmatmul.mubr.msk.f32.vlgmr.msra.gmra.mrb[202].mxu0 %vm173_vm3, %v22344_v27 }
0x5865   :  { %19758 = vmatprep.mubr.msk.bf16.mxu0 %vm20548_vm8, %v20547_v16  ;;  %19755 = vmatpush3.bf16.msra.mxu0 %v20225_v46 }
0x5866   :  { %19756 = vmatprep.subr.bf16.mxu0 %v20547_v16 }
0x5869   :  { %19757 = vmatpush3.bf16.msra.mxu0 %v20226_v58 }
0x586a   :  { %20132 = vmatprep.subr.bf16.mxu0 %v20546_v14 }
0x5937   :  { %v19742_v29 = vpop.f32.mrb[202].mxu0 }
0x5938   :  { %v14000_v17 = vmul.f32 0.03125, %v19742_v29  ;;  %v13990_v56 = vpop.f32.mrb[203].mxu0 }
0x5939   :  { %v13999_v30 = vmul.f32 0.03125, %v13990_v56 }
0x593a   :  { %14008 = vperm.xlu1 %20174, %v14000_v17   ;;  %v17929_v17 = vld [vmem:[%s22809_s13 + $0x4] ss:$0 sm:$0xff] }
0x593b   :  { %14003 = vperm.xlu0 %20173, %v13999_v30  }
0x59b9   :  { %v14009_v62 = vpop.permute.xlu1 %14008 }
0x59ba   :  { %v14012_v22 = vsub.f32 %v22344_v27, %v14009_v62  ;;  %v14004_v4 = vpop.permute.xlu0 %14003 }
0x59bb   :  { %v22354_v31 = vsub.f32 %v22341_v38, %v14004_v4 }
0x59bc   :  { %v14014_v36 = vmul.f32 %v14012_v22, %v14012_v22 }
0x59bd   :  { %v14013_v33 = vmul.f32 %v22354_v31, %v22354_v31 }
0x59bf   :  { %19751 = vmatprep.mubr.msk.f32.mxu1 %vm173_vm3, %v14013_v33 }
0x59c0   :  { %19752 = vmatmul.mubr.msk.f32.vlgmr.msra.gmra.mrb[208].mxu1 %vm173_vm3, %v14014_v36 }
0x59c1   :  { %19778 = vmatprep.mubr.msk.bf16.mxu1 %vm20548_vm8, %v20547_v16  ;;  %19763 = vmatpush3.bf16.msra.mxu1 %v20227_v18 }
0x59c2   :  { %19764 = vmatprep.subr.bf16.mxu1 %v20547_v16 }
0x59c5   :  { %19765 = vmatpush3.bf16.msra.mxu1 %v20228_v35 }
0x59c6   :  { %19766 = vmatprep.subr.bf16.mxu1 %v20547_v16 }
0x59c9   :  { %19767 = vmatpush3.bf16.msra.mxu1 %v20229_v59 }
0x59ca   :  { %19768 = vmatprep.subr.bf16.mxu1 %v20547_v16 }
0x59cd   :  { %19769 = vmatpush3.bf16.msra.mxu1 %v20230_v47 }
0x59ce   :  { %19770 = vmatprep.subr.bf16.mxu1 %v20547_v16 }
0x59d1   :  { %19771 = vmatpush3.bf16.msra.mxu1 %v20231_v60 }
0x59d2   :  { %19772 = vmatprep.subr.bf16.mxu1 %v20547_v16 }
0x59d5   :  { %19773 = vmatpush3.bf16.msra.mxu1 %v20232_v61 }
0x59d6   :  { %19774 = vmatprep.subr.bf16.mxu1 %v20547_v16 }
0x59d9   :  { %19775 = vmatpush3.bf16.msra.mxu1 %v20233_v11 }
0x59da   :  { %19776 = vmatprep.subr.bf16.mxu1 %v20547_v16 }
0x59dd   :  { %19777 = vmatpush3.bf16.msra.mxu1 %v20234_v1 }
0x59de   :  { %19817 = vmatprep.subr.mxu1 %v20547_v16 }
0x5a93   :  { %v19753_v26 = vpop.f32.mrb[208].mxu1 }
0x5a94   :  { %v14097_v39 = vmul.f32 0.032258064, %v19753_v26  ;;  %v14087_v50 = vpop.f32.mrb[209].mxu1 }
0x5a95   :  { %v14096_v43 = vmul.f32 0.032258064, %v14087_v50 }
0x5a96   :  { %20481 = vrsqrt.f32 %v14097_v39  ;;  %vm14107_vm5 = vcmp.eq.f32.partialorder %v14097_v39, inf  ;;  %v14110_v12 = vand.u32 2147483648, %v14097_v39  ;;  %vm14109_vm6 = vcmp.eq.f32.partialorder %v14097_v39, 0.0 }
0x5a97   :  { %20483 = vrsqrt.f32 %v14096_v43  ;;  %vm14100_vm7 = vcmp.eq.f32.partialorder %v14096_v43, inf  ;;  %v14103_v34 = vand.u32 2147483648, %v14096_v43  ;;  %vm14102_vm10 = vcmp.eq.f32.partialorder %v14096_v43, 0.0 }
0x5aa0   :  { %v20482_v41 = vpop.eup %20481 }
0x5aa1   :  { %v20484_v42 = vpop.eup %20483  ;;  %v14106_v44 = vmul.f32 %v20482_v41, %v14097_v39 }
0x5aa2   :  { %v14099_v21 = vmul.f32 %v20484_v42, %v14096_v43 }
0x5aa3   :  { %v14108_v45 = vsel %vm14107_vm5, %v14097_v39, %v14106_v44 }
0x5aa4   :  { %v14111_v49 = vsel %vm14109_vm6, %v14110_v12, %v14108_v45  ;;  %v14101_v40 = vsel %vm14100_vm7, %v14096_v43, %v14099_v21 }
0x5aa5   :  { %v14113_v52 = vadd.f32 1e-06, %v14111_v49  ;;  %v14104_v63 = vsel %vm14102_vm10, %v14103_v34, %v14101_v40 }
0x5aa6   :  { %v14112_v57 = vadd.f32 1e-06, %v14104_v63 }
0x5aa7   :  { %20485 = vrsqrt.f32 %v14113_v52 }
0x5aa8   :  { %20487 = vrsqrt.f32 %v14112_v57 }
0x5ab1   :  { %v20486_v54 = vpop.eup %20485 }
0x5ab2   :  { %v20488_v55 = vpop.eup %20487  ;;  %14123 = vperm.xlu1 %20174, %v20486_v54  }
0x5ab3   :  { %14118 = vperm.xlu0 %20173, %v20488_v55  }
0x5b31   :  { %v14124_v0 = vpop.permute.xlu1 %14123 }
0x5b32   :  { %v14127_v2 = vmul.f32 %v14124_v0, %v14012_v22  ;;  %v14119_v3 = vpop.permute.xlu0 %14118  ;;  %v20236_v0 = vld [vmem:[%s22799_s5 + $0x58] sm:$0xff]  }
0x5b33   :  { %v14126_v8 = vmul.f32 %v14119_v3, %v22354_v31 }
0x5b34   :  { %v14135_v32 = vmul.f32 %v17901_v53, %v14127_v2  ;;  %v17944_v2 = vld [vmem:[%s22800_s3 + $0x5] ss:$0 sm:$0xff] }
0x5b35   :  { %v14134_v48 = vmul.f32 %v17901_v53, %v14126_v8  ;;  %v20235_v53 = vld [vmem:[%s22799_s5 + $0x50] sm:$0xff]  }
0x5b36   :  { %v14143_v9 = vadd.f32 %v17902_v5, %v14135_v32  ;;  %v17945_v32 = vld [vmem:[%s22801_s4 + $0x5] ss:$0 sm:$0xff] }
0x5b37   :  { %v14142_v7 = vadd.f32 %v17902_v5, %v14134_v48 }
0x5b39   :  { %v14144_v10 = vpack.c.bf16 %v14143_v9, %v14142_v7 }
0x5b3b   :  { %19759 = vmatmul.mubr.msk.bf16.vlgmr.msra.gmra.mrb[204].mxu0 %vm173_vm3, %v14144_v10 }
0x5b3c   :  { %20133 = vmatpush3.bf16.msra.mxu0 %v20546_v14 }
0x5b3d   :  { %20134 = vmatprep.subr.bf16.mxu0 %v20546_v14 }
0x5b40   :  { %20135 = vmatpush3.bf16.msra.mxu0 %v20546_v14 }
0x5b41   :  { %20136 = vmatprep.subr.bf16.mxu0 %v20546_v14 }
0x5c0e   :  { %v14207_v51 = vpop.f32.mrb[204].mxu0 }
0x5c0f   :  { %v14208_v6 = vadd.f32 %v17908_v13, %v14207_v51  ;;  %v19760_v19 = vpop.f32.mrb[205].mxu0 }
0x5c10   :  { %v14210_v20 = vpop.f32.mrb[206].mxu0 }
0x5c11   :  { %v14211_v24 = vadd.f32 %v17908_v13, %v14210_v20  ;;  %v19761_v23 = vpop.f32.mrb[207].mxu0  ;;  %v14214_v25 = vmax.f32 %v14208_v6, 0.0 }
0x5c13   :  { %v14215_v28 = vmax.f32 %v14211_v24, 0.0 }
0x5c15   :  { %v14216_v29 = vpack.c.bf16 %v14215_v28, %v14214_v25 }
0x5c17   :  { %19779 = vmatmul.mubr.bf16.vlgmr.msra.gmra.mrb[212].mxu1 %v14216_v29 }
0x5c18   :  { %19819 = vmatprep.mubr.msk.f32.mxu1 %vm20548_vm8, %v20547_v16 }
0x5cea   :  { %v14324_v56 = vpop.f32.mrb[212].mxu1 }
0x5ceb   :  { %v14325_v30 = vadd.f32 %v17929_v17, %v14324_v56  ;;  %v19780_v62 = vpop.f32.mrb[213].mxu1 }
0x5cec   :  { %v14327_v22 = vpop.f32.mrb[214].mxu1 }
0x5ced   :  { %v22423_v4 = vadd.f32 %v14325_v30, %v22341_v38  ;;  %v14328_v31 = vadd.f32 %v17929_v17, %v14327_v22  ;;  %v19781_v33 = vpop.f32.mrb[215].mxu1 }
0x5cef   :  { %v22426_v36 = vadd.f32 %v14328_v31, %v22344_v27  ;;  %19790 = vmatprep.mubr.msk.f32.mxu0 %vm173_vm3, %v22423_v4 }
0x5cf1   :  { %19791 = vmatmul.mubr.msk.f32.vlgmr.msra.gmra.mrb[208].mxu0 %vm173_vm3, %v22426_v36 }
0x5cf2   :  { %20137 = vmatpush3.bf16.msra.mxu0 %v20546_v14 }
0x5cf3   :  { %20138 = vmatprep.subr.bf16.mxu0 %v20546_v14 }
0x5cf6   :  { %20139 = vmatpush3.bf16.msra.mxu0 %v20546_v14 }
0x5cf7   :  { %19804 = vmatprep.subr.bf16.mxu0 %v20547_v16 }
0x5dc4   :  { %v19792_v38 = vpop.f32.mrb[208].mxu0 }
0x5dc5   :  { %v14419_v26 = vmul.f32 0.03125, %v19792_v38  ;;  %v14409_v39 = vpop.f32.mrb[209].mxu0 }
0x5dc6   :  { %v14418_v50 = vmul.f32 0.03125, %v14409_v39 }
0x5dc7   :  { %14427 = vperm.xlu1 %20174, %v14419_v26  }
0x5dc8   :  { %14422 = vperm.xlu0 %20173, %v14418_v50  }
0x5e46   :  { %v14428_v27 = vpop.permute.xlu1 %14427 }
0x5e47   :  { %v14431_v43 = vsub.f32 %v22426_v36, %v14428_v27  ;;  %v14423_v41 = vpop.permute.xlu0 %14422 }
0x5e48   :  { %v14430_v42 = vsub.f32 %v22423_v4, %v14423_v41 }
0x5e49   :  { %v14433_v12 = vmul.f32 %v14431_v43, %v14431_v43 }
0x5e4a   :  { %v14432_v44 = vmul.f32 %v14430_v42, %v14430_v42 }
0x5e4c   :  { %19801 = vmatprep.mubr.msk.f32.mxu0 %vm173_vm3, %v14432_v44 }
0x5e4d   :  { %19802 = vmatmul.mubr.msk.f32.vlgmr.msra.gmra.mrb[210].mxu0 %vm173_vm3, %v14433_v12 }
0x5e4e   :  { %19808 = vmatprep.mubr.msk.bf16.mxu0 %vm20548_vm8, %v20547_v16  ;;  %19805 = vmatpush3.bf16.msra.mxu0 %v20235_v53 }
0x5e4f   :  { %19806 = vmatprep.subr.bf16.mxu0 %v20547_v16 }
0x5e52   :  { %19807 = vmatpush3.bf16.msra.mxu0 %v20236_v0 }
0x5e53   :  { %19812 = vmatprep.subr.mxu0 %v20547_v16 }
0x5f20   :  { %v19803_v21 = vpop.f32.mrb[210].mxu0 }
0x5f21   :  { %v14516_v45 = vmul.f32 0.032258064, %v19803_v21  ;;  %v14506_v34 = vpop.f32.mrb[211].mxu0 }
0x5f22   :  { %v14515_v49 = vmul.f32 0.032258064, %v14506_v34 }
0x5f23   :  { %20489 = vrsqrt.f32 %v14516_v45  ;;  %vm14526_vm12 = vcmp.eq.f32.partialorder %v14516_v45, inf  ;;  %v14529_v57 = vand.u32 2147483648, %v14516_v45  ;;  %vm14528_vm13 = vcmp.eq.f32.partialorder %v14516_v45, 0.0 }
0x5f24   :  { %20491 = vrsqrt.f32 %v14515_v49  ;;  %vm14519_vm14 = vcmp.eq.f32.partialorder %v14515_v49, inf  ;;  %v14522_v46 = vand.u32 2147483648, %v14515_v49  ;;  %vm14521_vm15 = vcmp.eq.f32.partialorder %v14515_v49, 0.0 }
0x5f2d   :  { %v20490_v40 = vpop.eup %20489 }
0x5f2e   :  { %v20492_v52 = vpop.eup %20491  ;;  %v14525_v63 = vmul.f32 %v20490_v40, %v14516_v45 }
0x5f2f   :  { %v14518_v54 = vmul.f32 %v20492_v52, %v14515_v49 }
0x5f30   :  { %v14527_v55 = vsel %vm14526_vm12, %v14516_v45, %v14525_v63 }
0x5f31   :  { %v14530_v58 = vsel %vm14528_vm13, %v14529_v57, %v14527_v55  ;;  %v14520_v18 = vsel %vm14519_vm14, %v14515_v49, %v14518_v54 }
0x5f32   :  { %v14532_v35 = vadd.f32 1e-06, %v14530_v58  ;;  %v14523_v59 = vsel %vm14521_vm15, %v14522_v46, %v14520_v18 }
0x5f33   :  { %v14531_v47 = vadd.f32 1e-06, %v14523_v59 }
0x5f34   :  { %20493 = vrsqrt.f32 %v14532_v35 }
0x5f35   :  { %20495 = vrsqrt.f32 %v14531_v47 }
0x5f3e   :  { %v20494_v60 = vpop.eup %20493 }
0x5f3f   :  { %v20496_v61 = vpop.eup %20495  ;;  %14542 = vperm.xlu1 %20174, %v20494_v60  }
0x5f40   :  { %14537 = vperm.xlu0 %20173, %v20496_v61  }
0x5fbe   :  { %v14543_v3 = vpop.permute.xlu1 %14542 }
0x5fbf   :  { %v14546_v5 = vmul.f32 %v14543_v3, %v14431_v43  ;;  %v14538_v8 = vpop.permute.xlu0 %14537 }
0x5fc0   :  { %v14545_v48 = vmul.f32 %v14538_v8, %v14430_v42 }
0x5fc1   :  { %v14554_v9 = vmul.f32 %v17944_v2, %v14546_v5 }
0x5fc2   :  { %v14553_v7 = vmul.f32 %v17944_v2, %v14545_v48 }
0x5fc3   :  { %v14562_v10 = vadd.f32 %v17945_v32, %v14554_v9 }
0x5fc4   :  { %v14561_v11 = vadd.f32 %v17945_v32, %v14553_v7 }
0x5fc6   :  { %v14568_v1 = vpack.c.bf16 %v14562_v10, %v14561_v11 }
0x5fc8   :  { %19809 = vmatmul.mubr.msk.bf16.vlgmr.msra.gmra.mrb[212].mxu0 %vm173_vm3, %v14568_v1 }
0x5fc9   :  { %19814 = vmatprep.mubr.msk.f32.mxu0 %vm20548_vm8, %v20547_v16 }
0x609b   :  { %v22459_v13 = vpop.f32.mrb[212].mxu0 }
0x609c   :  { %14631 = vrot.lane.b32.xlu0 %v22459_v13, %s22858_s1  ;;  %v19810_v51 = vpop.f32.mrb[213].mxu0 }
0x609d   :  { %v22463_v6 = vpop.f32.mrb[214].mxu0 }
0x609e   :  { %14708 = vrot.lane.b32.xlu1 %v22463_v6, %s22858_s1  ;;  %v19811_v19 = vpop.f32.mrb[215].mxu0 }
0x60a2   :  { %14876 = vrot.lane.b32.xlu1 %v22463_v6, %s22859_s18 }
0x610e   :  { %v14632_v20 = vpop.permute.xlu0 %14631 }
0x610f   :  { %19813 = vmatpush3.xpose.msk.msra.mxu0 %vm468_vm9, %v14632_v20 }
0x6110   :  { %v14709_v24 = vpop.permute.xlu1 %14708  ;;  %19822 = vmatprep.subr.mxu0 %v20547_v16 }
0x6111   :  { %19818 = vmatpush3.xpose.msk.msra.mxu1 %vm468_vm9, %v14709_v24 }
0x6112   :  { %19815 = vmatmul.mubr.msk.f32.vlgmr.msra.gmra.mrb[216].mxu0 %vm468_vm9, %v22459_v13  ;;  %19827 = vmatprep.subr.mxu1 %v20547_v16 }
0x6113   :  { %19824 = vmatprep.mubr.msk.f32.mxu0 %vm20548_vm8, %v20547_v16 }
0x6114   :  { %19820 = vmatmul.mubr.msk.f32.vlgmr.msra.gmra.mrb[210].mxu1 %vm468_vm9, %v22463_v6  ;;  %v14877_v23 = vpop.permute.xlu1 %14876 }
0x6115   :  { %19828 = vmatpush3.msra.mxu1 %v14877_v23  ;;  %19829 = vmatprep.mubr.msk.f32.mxu1 %vm20548_vm8, %v20547_v16 }
0x6116   :  { %19837 = vmatprep.subr.mxu1 %v20547_v16 }
0x61e5   :  { %v14703_v25 = vpop.f32.mrb[216].mxu0 }
0x61e6   :  { %v14784_v28 = vmul.f32 0.17677669, %v14703_v25  ;;  %v19816_v29 = vpop.f32.mrb[217].mxu0 }
0x61e7   :  { %v14780_v17 = vpop.f32.mrb[210].mxu1  ;;  %v17953_v29 = vld [vmem:[%s22802_s6 + $0x50] sm:$0xf] }
0x61e8   :  { %v14786_v56 = vadd.f32 %v14784_v28, %v20765_v15  ;;  %v14785_v30 = vmul.f32 0.17677669, %v14780_v17  ;;  %v19821_v62 = vpop.f32.mrb[211].mxu1  ;;  %v15637_v17 = vsel %vm1425_vm11, %v17953_v29, 0 }
0x61ea   :  { %v14787_v22 = vadd.f32 %v14785_v30, %v20765_v15  ;;  %v14788_v31 = vsel %vm468_vm9, %v14786_v56, -inf }
0x61eb   :  { %14789 = vmax.xlane.f32.xlu0 %v14788_v31 }
0x61ec   :  { %v14791_v33 = vsel %vm468_vm9, %v14787_v22, -inf }
0x61ed   :  { %14792 = vmax.xlane.f32.xlu1 %v14791_v33 }
0x61fe   :  { %15187 = vrot.lane.b32.xlu1 %v22463_v6, %s22860_s0 }
0x6201   :  { %14800 = vrot.lane.b32.xlu0 %v22459_v13, %s22859_s18  ;;  %s22861_s18 = sld [smem:[#allocation5_spill]] }
0x6202   :  { %15185 = vrot.lane.b32.xlu1 %v22463_v6, %s22854_s24 }
0x6205   :  { %15109 = vrot.lane.b32.xlu0 %v22459_v13, %s22860_s0 }
0x6209   :  { %15107 = vrot.lane.b32.xlu0 %v22459_v13, %s22854_s24 }
0x6278   :  { %v14790_v38 = vpop.xlane.xlu0 %14789 }
0x6279   :  { %v14794_v26 = vsub.f32 %v14786_v56, %v14790_v38  ;;  %v17954_v56 = vld [vmem:[%s22802_s6 + $0x54] sm:$0xf] }
0x627a   :  { %v14793_v39 = vpop.xlane.xlu1 %14792  ;;  %v15590_v30 = vsel %vm1425_vm11, %v17954_v56, 0 }
0x627b   :  { %v14796_v50 = vmul.f32 1.442695, %v14794_v26  ;;  %v14795_v27 = vsub.f32 %v14787_v22, %v14793_v39 }
0x627c   :  { %v14801_v43 = vpop.permute.xlu0 %14800 }
0x627d   :  { %20497 = vpow2.f32 %v14796_v50  ;;  %v14798_v41 = vmul.f32 1.442695, %v14795_v27  ;;  %19823 = vmatpush3.msra.mxu0 %v14801_v43 }
0x627e   :  { %19832 = vmatprep.subr.mxu0 %v20547_v16  ;;  %v15188_v21 = vpop.permute.xlu1 %15187 }
0x627f   :  { %20499 = vpow2.f32 %v14798_v41 }
0x6280   :  { %v15110_v12 = vpop.permute.xlu0 %15109 }
0x6282   :  { %v15186_v34 = vpop.permute.xlu1 %15185 }
0x6284   :  { %v15108_v45 = vpop.permute.xlu0 %15107 }
0x6287   :  { %v20498_v42 = vpop.eup %20497 }
0x6288   :  { %19825 = vmatmul.mubr.msk.f32.vlgmr.msra.gmra.mrb[218].mxu0 %vm468_vm9, %v20498_v42 }
0x6289   :  { %v20500_v44 = vpop.eup %20499  ;;  %19833 = vmatpush3.msra.mxu0 %v20554_v37  ;;  %19834 = vmatprep.mubr.msk.f32.mxu0 %vm20548_vm8, %v20547_v16 }
0x628a   :  { %19830 = vmatmul.mubr.msk.f32.vlgmr.msra.gmra.mrb[216].mxu1 %vm468_vm9, %v20500_v44  ;;  %19842 = vmatprep.subr.mxu0 %v20547_v16 }
0x628b   :  { %19838 = vmatpush3.msra.mxu1 %v20554_v37  ;;  %19839 = vmatprep.mubr.msk.f32.mxu1 %vm20548_vm8, %v20547_v16 }
0x628c   :  { %19835 = vmatmul.mubr.msk.f32.vlgmr.msra.gmra.mrb[220].mxu0 %vm468_vm9, %v20498_v42  ;;  %19847 = vmatprep.subr.mxu1 %v20547_v16 }
0x628d   :  { %19844 = vmatprep.mubr.msk.f32.mxu0 %vm20548_vm8, %v20547_v16 }
0x628e   :  { %19840 = vmatmul.mubr.msk.f32.vlgmr.msra.gmra.mrb[218].mxu1 %vm468_vm9, %v20500_v44 }
0x628f   :  { %19849 = vmatprep.mubr.msk.f32.mxu1 %vm20548_vm8, %v20547_v16 }
0x6290   :  { %19843 = vmatpush3.xpose.msk.msra.mxu0 %vm468_vm9, %v15110_v12 }
0x6291   :  { %19852 = vmatprep.subr.mxu0 %v20547_v16 }
0x6292   :  { %19848 = vmatpush3.xpose.msk.msra.mxu1 %vm468_vm9, %v15188_v21 }
0x6293   :  { %19845 = vmatmul.mubr.msk.f32.vlgmr.msra.gmra.mrb[222].mxu0 %vm468_vm9, %v15108_v45  ;;  %19857 = vmatprep.subr.mxu1 %v20547_v16 }
0x6294   :  { %19854 = vmatprep.mubr.msk.f32.mxu0 %vm20548_vm8, %v20547_v16 }
0x6295   :  { %19850 = vmatmul.mubr.msk.f32.vlgmr.msra.gmra.mrb[220].mxu1 %vm468_vm9, %v15186_v34 }
0x6296   :  { %19859 = vmatprep.mubr.msk.f32.mxu1 %vm20548_vm8, %v20547_v16 }
0x635b   :  { %v14872_v49 = vpop.f32.mrb[218].mxu0 }
0x635c   :  { %v19826_v40 = vpop.f32.mrb[219].mxu0 }
0x635d   :  { %v14948_v52 = vpop.f32.mrb[216].mxu1 }
0x635e   :  { %v19831_v63 = vpop.f32.mrb[217].mxu1 }
0x635f   :  { %v15018_v57 = vpop.f32.mrb[220].mxu0 }
0x6360   :  { %v19836_v54 = vpop.f32.mrb[221].mxu0 }
0x6361   :  { %v15088_v55 = vpop.f32.mrb[218].mxu1 }
0x6362   :  { %v19841_v46 = vpop.f32.mrb[219].mxu1  ;;  %20501 = vrcp.f32 %v15088_v55 }
0x6363   :  { %20503 = vrcp.f32 %v15018_v57 }
0x6366   :  { %v15181_v58 = vpop.f32.mrb[222].mxu0 }
0x6367   :  { %v15263_v18 = vmul.f32 0.17677669, %v15181_v58  ;;  %v19846_v35 = vpop.f32.mrb[223].mxu0 }
0x6368   :  { %v15259_v59 = vpop.f32.mrb[220].mxu1 }
0x6369   :  { %v15265_v47 = vadd.f32 %v15263_v18, %v20765_v15  ;;  %v15264_v60 = vmul.f32 0.17677669, %v15259_v59  ;;  %v19851_v61 = vpop.f32.mrb[221].mxu1 }
0x636b   :  { %v15266_v53 = vadd.f32 %v15264_v60, %v20765_v15  ;;  %v15267_v0 = vsel %vm468_vm9, %v15265_v47, -inf }
0x636c   :  { %15268 = vmax.xlane.f32.xlu0 %v15267_v0  ;;  %v20502_v3 = vpop.eup %20501 }
0x636d   :  { %v15270_v2 = vsel %vm468_vm9, %v15266_v53, -inf  ;;  %v20504_v5 = vpop.eup %20503 }
0x636e   :  { %15271 = vmax.xlane.f32.xlu1 %v15270_v2 }
0x637f   :  { %15355 = vrot.lane.b32.xlu1 %v22463_v6, %s22855_s20 }
0x6382   :  { %15279 = vrot.lane.b32.xlu0 %v22459_v13, %s22855_s20 }
0x6383   :  { %15101 = vperm.xlu1 %20174, %v20502_v3  }
0x6386   :  { %15096 = vperm.xlu0 %20173, %v20504_v5  }
0x63f9   :  { %v15269_v8 = vpop.xlane.xlu0 %15268 }
0x63fa   :  { %v15273_v32 = vsub.f32 %v15265_v47, %v15269_v8 }
0x63fb   :  { %v15272_v48 = vpop.xlane.xlu1 %15271 }
0x63fc   :  { %v15275_v9 = vmul.f32 1.442695, %v15273_v32  ;;  %v15274_v7 = vsub.f32 %v15266_v53, %v15272_v48 }
0x63fd   :  { %v15280_v10 = vpop.permute.xlu0 %15279 }
0x63fe   :  { %20505 = vpow2.f32 %v15275_v9  ;;  %v15277_v11 = vmul.f32 1.442695, %v15274_v7  ;;  %19853 = vmatpush3.msra.mxu0 %v15280_v10 }
0x63ff   :  { %v15356_v1 = vpop.permute.xlu1 %15355  ;;  %19862 = vmatprep.subr.mxu0 %v20547_v16 }
0x6400   :  { %20507 = vpow2.f32 %v15277_v11  ;;  %19858 = vmatpush3.msra.mxu1 %v15356_v1 }
0x6401   :  { %19867 = vmatprep.subr.mxu1 %v20547_v16 }
0x6403   :  { %v15102_v51 = vpop.permute.xlu1 %15101 }
0x6404   :  { %v15105_v20 = vmul.f32 %v15102_v51, %v14948_v52 }
0x6405   :  { %v15097_v19 = vpop.permute.xlu0 %15096 }
0x6406   :  { %v15104_v24 = vmul.f32 %v15097_v19, %v14872_v49 }
0x6408   :  { %v20506_v23 = vpop.eup %20505  ;;  %v15106_v25 = vpack.c.bf16 %v15105_v20, %v15104_v24 }
0x6409   :  { %19855 = vmatmul.mubr.msk.f32.vlgmr.msra.gmra.mrb[224].mxu0 %vm468_vm9, %v20506_v23 }
0x640a   :  { %v20508_v28 = vpop.eup %20507  ;;  %19863 = vmatpush3.msra.mxu0 %v20554_v37  ;;  %19864 = vmatprep.mubr.msk.f32.mxu0 %vm20548_vm8, %v20547_v16 }
0x640b   :  { %19860 = vmatmul.mubr.msk.f32.vlgmr.msra.gmra.mrb[222].mxu1 %vm468_vm9, %v20508_v28  ;;  %19872 = vmatprep.subr.bf16.mxu0 %v20547_v16 }
0x640c   :  { %19868 = vmatpush3.msra.mxu1 %v20554_v37  ;;  %19869 = vmatprep.mubr.msk.f32.mxu1 %vm20548_vm8, %v20547_v16 }
0x640d   :  { %19865 = vmatmul.mubr.msk.f32.vlgmr.msra.gmra.mrb[226].mxu0 %vm468_vm9, %v20506_v23  ;;  %19878 = vmatprep.subr.bf16.mxu1 %v20547_v16 }
0x640e   :  { %19874 = vmatprep.mubr.msk.bf16.mxu0 %vm20548_vm8, %v20547_v16  ;;  %19873 = vmatpush3.bf16.msra.mxu0 %v15590_v30 }
0x640f   :  { %19870 = vmatmul.mubr.msk.f32.vlgmr.msra.gmra.mrb[224].mxu1 %vm468_vm9, %v20508_v28  ;;  %19884 = vmatprep.subr.mxu0 %v20547_v16 }
0x6410   :  { %19879 = vmatpush3.bf16.msra.mxu1 %v15637_v17  ;;  %19880 = vmatprep.mubr.msk.bf16.mxu1 %vm20548_vm8, %v20547_v16 }
0x6411   :  { %19889 = vmatprep.subr.mxu1 %v20547_v16 }
0x6413   :  { %19881 = vmatmul.mubr.msk.bf16.vlgmr.msra.gmra.mrb[228].mxu1 %vm468_vm9, %v15106_v25 }
0x6414   :  { %19891 = vmatprep.mubr.msk.f32.mxu1 %vm20548_vm8, %v20547_v16 }
0x64dc   :  { %v15351_v62 = vpop.f32.mrb[224].mxu0 }
0x64dd   :  { %v19856_v22 = vpop.f32.mrb[225].mxu0 }
0x64de   :  { %v15427_v31 = vpop.f32.mrb[222].mxu1 }
0x64df   :  { %v19861_v33 = vpop.f32.mrb[223].mxu1 }
0x64e0   :  { %v15497_v38 = vpop.f32.mrb[226].mxu0 }
0x64e1   :  { %20509 = vrcp.f32 %v15497_v38  ;;  %v19866_v26 = vpop.f32.mrb[227].mxu0 }
0x64e2   :  { %v15567_v39 = vpop.f32.mrb[224].mxu1 }
0x64e3   :  { %20511 = vrcp.f32 %v15567_v39  ;;  %v19871_v50 = vpop.f32.mrb[225].mxu1 }
0x64e6   :  { %v15673_v27 = vpop.f32.mrb[228].mxu1 }
0x64e7   :  { %v19882_v43 = vpop.f32.mrb[229].mxu1 }
0x64e8   :  { %v15676_v41 = vpop.f32.mrb[230].mxu1 }
0x64e9   :  { %v19883_v42 = vpop.f32.mrb[231].mxu1 }
0x64eb   :  { %v20510_v44 = vpop.eup %20509 }
0x64ec   :  { %15575 = vperm.xlu0 %20173, %v20510_v44  }
0x64ed   :  { %v20512_v12 = vpop.eup %20511 }
0x64ee   :  { %15580 = vperm.xlu1 %20174, %v20512_v12  }
0x64f0   :  { %15760 = vrot.lane.b32.xlu0 %v22463_v6, %s22856_s21 }
0x64f2   :  { %15758 = vrot.lane.b32.xlu1 %v22463_v6, %s22857_s28 }
0x64f4   :  { %15682 = vrot.lane.b32.xlu0 %v22459_v13, %s22856_s21 }
0x64f6   :  { %15680 = vrot.lane.b32.xlu1 %v22459_v13, %s22857_s28 }
0x64fa   :  { %16210 = vrot.lane.b32.xlu1 %v22459_v13, %s22850_s2 }
0x64fe   :  { %16288 = vrot.lane.b32.xlu1 %v22463_v6, %s22850_s2 }
0x656b   :  { %v15576_v21 = vpop.permute.xlu0 %15575 }
0x656c   :  { %v15583_v34 = vmul.f32 %v15576_v21, %v15351_v62 }
0x656d   :  { %v15581_v45 = vpop.permute.xlu1 %15580 }
0x656e   :  { %v15584_v49 = vmul.f32 %v15581_v45, %v15427_v31 }
0x656f   :  { %v15761_v40 = vpop.permute.xlu0 %15760 }
0x6570   :  { %v15585_v52 = vpack.c.bf16 %v15584_v49, %v15583_v34  ;;  %19890 = vmatpush3.xpose.msk.msra.mxu1 %vm468_vm9, %v15761_v40  ;;  %v17955_v34 = vld [vmem:[%s22802_s6 + $0x58] sm:$0xf] }
0x6571   :  { %v15759_v63 = vpop.permute.xlu1 %15758  ;;  %19899 = vmatprep.subr.mxu1 %v20547_v16  ;;  %v16163_v40 = vsel %vm1425_vm11, %v17955_v34, 0 }
0x6572   :  { %19875 = vmatmul.mubr.msk.bf16.vlgmr.msra.gmra.mrb[228].mxu0 %vm468_vm9, %v15585_v52 }
0x6573   :  { %19892 = vmatmul.mubr.msk.f32.vlgmr.msra.gmra.mrb[226].mxu1 %vm468_vm9, %v15759_v63  ;;  %v15683_v57 = vpop.permute.xlu0 %15682  ;;  %19886 = vmatprep.mubr.msk.f32.mxu0 %vm20548_vm8, %v20547_v16 }
0x6574   :  { %19885 = vmatpush3.xpose.msk.msra.mxu0 %vm468_vm9, %v15683_v57  ;;  %19901 = vmatprep.mubr.msk.f32.mxu1 %vm20548_vm8, %v20547_v16 }
0x6575   :  { %19894 = vmatprep.subr.mxu0 %v20547_v16  ;;  %v15681_v54 = vpop.permute.xlu1 %15680 }
0x6579   :  { %v16211_v48 = vpop.permute.xlu1 %16210 }
0x657a   :  { %19887 = vmatmul.mubr.msk.f32.vlgmr.msra.gmra.mrb[232].mxu0 %vm468_vm9, %v15681_v54 }
0x657b   :  { %19896 = vmatprep.mubr.msk.f32.mxu0 %vm20548_vm8, %v20547_v16 }
0x657d   :  { %v16289_v10 = vpop.permute.xlu1 %16288 }
0x6645   :  { %v15626_v55 = vpop.f32.mrb[228].mxu0 }
0x6646   :  { %v22587_v46 = vadd.f32 %v15673_v27, %v15626_v55  ;;  %v19876_v58 = vpop.f32.mrb[229].mxu0  ;;  %v15832_v18 = vpop.f32.mrb[226].mxu1 }
0x6647   :  { %v15837_v35 = vmul.f32 0.17677669, %v15832_v18  ;;  %v15629_v59 = vpop.f32.mrb[230].mxu0  ;;  %v19893_v47 = vpop.f32.mrb[227].mxu1 }
0x6648   :  { %v22589_v60 = vadd.f32 %v15676_v41, %v15629_v59  ;;  %v19877_v61 = vpop.f32.mrb[231].mxu0 }
0x6649   :  { %v15839_v53 = vadd.f32 %v15837_v35, %v20765_v15 }
0x664b   :  { %v15843_v0 = vsel %vm468_vm9, %v15839_v53, -inf }
0x664c   :  { %15844 = vmax.xlane.f32.xlu0 %v15843_v0 }
0x664d   :  { %v15754_v2 = vpop.f32.mrb[232].mxu0 }
0x664e   :  { %v15836_v3 = vmul.f32 0.17677669, %v15754_v2  ;;  %v19888_v5 = vpop.f32.mrb[233].mxu0 }
0x6650   :  { %v15838_v8 = vadd.f32 %v15836_v3, %v20765_v15 }
0x6652   :  { %v15840_v32 = vsel %vm468_vm9, %v15838_v8, -inf }
0x6653   :  { %15841 = vmax.xlane.f32.xlu1 %v15840_v32 }
0x6662   :  { %15928 = vrot.lane.b32.xlu0 %v22463_v6, %s22851_s23 }
0x6664   :  { %16286 = vrot.lane.b32.xlu1 %v22463_v6, %s22852_s30 }
0x6666   :  { %16208 = vrot.lane.b32.xlu0 %v22459_v13, %s22852_s30 }
0x666a   :  { %15852 = vrot.lane.b32.xlu0 %v22459_v13, %s22851_s23 }
0x66d9   :  { %v15845_v9 = vpop.xlane.xlu0 %15844 }
0x66da   :  { %v15847_v7 = vsub.f32 %v15839_v53, %v15845_v9 }
0x66dc   :  { %v15850_v11 = vmul.f32 1.442695, %v15847_v7 }
0x66dd   :  { %v15929_v1 = vpop.permute.xlu0 %15928 }
0x66de   :  { %20513 = vpow2.f32 %v15850_v11  ;;  %19900 = vmatpush3.msra.mxu1 %v15929_v1 }
0x66df   :  { %19909 = vmatprep.subr.mxu1 %v20547_v16 }
0x66e0   :  { %v15842_v51 = vpop.xlane.xlu1 %15841 }
0x66e1   :  { %v15846_v19 = vsub.f32 %v15838_v8, %v15842_v51  ;;  %v16209_v20 = vpop.permute.xlu0 %16208 }
0x66e3   :  { %v15848_v24 = vmul.f32 1.442695, %v15846_v19 }
0x66e4   :  { %v16287_v29 = vpop.permute.xlu1 %16286 }
0x66e5   :  { %20515 = vpow2.f32 %v15848_v24  ;;  %v15853_v23 = vpop.permute.xlu0 %15852 }
0x66e6   :  { %19895 = vmatpush3.msra.mxu0 %v15853_v23 }
0x66e7   :  { %19904 = vmatprep.subr.mxu0 %v20547_v16 }
0x66e8   :  { %v20514_v25 = vpop.eup %20513 }
0x66e9   :  { %19902 = vmatmul.mubr.msk.f32.vlgmr.msra.gmra.mrb[232].mxu1 %vm468_vm9, %v20514_v25 }
0x66ea   :  { %19910 = vmatpush3.msra.mxu1 %v20554_v37  ;;  %19911 = vmatprep.mubr.msk.f32.mxu1 %vm20548_vm8, %v20547_v16 }
0x66eb   :  { %19920 = vmatprep.subr.mxu1 %v20547_v16 }
0x66ed   :  { %19912 = vmatmul.mubr.msk.f32.vlgmr.msra.gmra.mrb[234].mxu1 %vm468_vm9, %v20514_v25 }
0x66ee   :  { %19922 = vmatprep.mubr.msk.f32.mxu1 %vm20548_vm8, %v20547_v16 }
0x66ef   :  { %v20516_v28 = vpop.eup %20515 }
0x66f0   :  { %19897 = vmatmul.mubr.msk.f32.vlgmr.msra.gmra.mrb[234].mxu0 %vm468_vm9, %v20516_v28 }
0x66f1   :  { %19921 = vmatpush3.xpose.msk.msra.mxu1 %vm468_vm9, %v16211_v48  ;;  %19905 = vmatpush3.msra.mxu0 %v20554_v37 }
0x66f2   :  { %19906 = vmatprep.mubr.msk.f32.mxu0 %vm20548_vm8, %v20547_v16  ;;  %19925 = vmatprep.subr.mxu1 %v20547_v16 }
0x66f3   :  { %19914 = vmatprep.subr.bf16.mxu0 %v20547_v16 }
0x66f4   :  { %19923 = vmatmul.mubr.msk.f32.vlgmr.msra.gmra.mrb[236].mxu1 %vm468_vm9, %v16209_v20  ;;  %19907 = vmatmul.mubr.msk.f32.vlgmr.msra.gmra.mrb[236].mxu0 %vm468_vm9, %v20516_v28 }
0x66f5   :  { %19926 = vmatpush3.xpose.msk.msra.mxu1 %vm468_vm9, %v16289_v10  ;;  %19927 = vmatprep.mubr.msk.f32.mxu1 %vm20548_vm8, %v20547_v16 }
0x66f6   :  { %19916 = vmatprep.mubr.msk.bf16.mxu0 %vm20548_vm8, %v20547_v16  ;;  %19935 = vmatprep.subr.mxu1 %v20547_v16 }
0x66f7   :  { %19915 = vmatpush3.bf16.msra.mxu0 %v16163_v40 }
0x66f8   :  { %19928 = vmatmul.mubr.msk.f32.vlgmr.msra.gmra.mrb[238].mxu1 %vm468_vm9, %v16287_v29  ;;  %19930 = vmatprep.subr.mxu0 %v20547_v16 }
0x66f9   :  { %19937 = vmatprep.mubr.msk.f32.mxu1 %vm20548_vm8, %v20547_v16 }
0x67bc   :  { %v16000_v17 = vpop.f32.mrb[232].mxu1 }
0x67bd   :  { %v19903_v56 = vpop.f32.mrb[233].mxu1 }
0x67c0   :  { %v16140_v30 = vpop.f32.mrb[234].mxu1 }
0x67c1   :  { %v19913_v62 = vpop.f32.mrb[235].mxu1  ;;  %20517 = vrcp.f32 %v16140_v30 }
0x67c2   :  { %v17994_v62 = vld [vmem:[%s22803_s7 + $0x5] ss:$0 sm:$0xff] }
0x67c3   :  { %v15924_v22 = vpop.f32.mrb[234].mxu0 }
0x67c4   :  { %v19898_v31 = vpop.f32.mrb[235].mxu0 }
0x67c7   :  { %v16282_v33 = vpop.f32.mrb[236].mxu1  ;;  %v16070_v38 = vpop.f32.mrb[236].mxu0 }
0x67c8   :  { %v16364_v26 = vmul.f32 0.17677669, %v16282_v33  ;;  %v19924_v39 = vpop.f32.mrb[237].mxu1  ;;  %v19908_v50 = vpop.f32.mrb[237].mxu0  ;;  %20519 = vrcp.f32 %v16070_v38 }
0x67ca   :  { %v16366_v27 = vadd.f32 %v16364_v26, %v20765_v15 }
0x67cb   :  { %v16360_v43 = vpop.f32.mrb[238].mxu1  ;;  %v20518_v45 = vpop.eup %20517 }
0x67cc   :  { %v16365_v41 = vmul.f32 0.17677669, %v16360_v43  ;;  %v19929_v42 = vpop.f32.mrb[239].mxu1  ;;  %v16368_v44 = vsel %vm468_vm9, %v16366_v27, -inf }
0x67cd   :  { %16369 = vmax.xlane.f32.xlu0 %v16368_v44 }
0x67ce   :  { %v16367_v12 = vadd.f32 %v16365_v41, %v20765_v15 }
0x67d0   :  { %v16371_v21 = vsel %vm468_vm9, %v16367_v12, -inf }
0x67d1   :  { %16372 = vmax.xlane.f32.xlu1 %v16371_v21 }
0x67d2   :  { %v20520_v49 = vpop.eup %20519 }
0x67e2   :  { %16153 = vperm.xlu1 %20174, %v20518_v45  }
0x67e3   :  { %16148 = vperm.xlu0 %20173, %v20520_v49  }
0x67e6   :  { %16456 = vrot.lane.b32.xlu1 %v22463_v6, %s22853_s22 }
0x67e7   :  { %16380 = vrot.lane.b32.xlu0 %v22459_v13, %s22853_s22 }
0x685a   :  { %v16370_v15 = vpop.xlane.xlu0 %16369 }
0x685b   :  { %v16374_v52 = vsub.f32 %v16366_v27, %v16370_v15 }
0x685d   :  { %v16376_v54 = vmul.f32 1.442695, %v16374_v52 }
0x685e   :  { %v16373_v63 = vpop.xlane.xlu1 %16372 }
0x685f   :  { %v16375_v57 = vsub.f32 %v16367_v12, %v16373_v63 }
0x6861   :  { %v16378_v55 = vmul.f32 1.442695, %v16375_v57 }
0x6862   :  { %v16154_v58 = vpop.permute.xlu1 %16153  ;;  %v16149_v18 = vpop.permute.xlu0 %16148 }
0x6863   :  { %20521 = vpow2.f32 %v16378_v55  ;;  %v16157_v35 = vmul.f32 %v16154_v58, %v16000_v17  ;;  %v16156_v59 = vmul.f32 %v16149_v18, %v15924_v22 }
0x6864   :  { %20523 = vpow2.f32 %v16376_v54 }
0x6865   :  { %v16158_v47 = vpack.c.bf16 %v16157_v35, %v16156_v59 }
0x6866   :  { %v16457_v61 = vpop.permute.xlu1 %16456  ;;  %v16381_v53 = vpop.permute.xlu0 %16380 }
0x6867   :  { %19917 = vmatmul.mubr.msk.bf16.vlgmr.msra.gmra.mrb[240].mxu0 %vm468_vm9, %v16158_v47  ;;  %19936 = vmatpush3.msra.mxu1 %v16457_v61 }
0x6868   :  { %19931 = vmatpush3.msra.mxu0 %v16381_v53  ;;  %19932 = vmatprep.mubr.msk.f32.mxu0 %vm20548_vm8, %v20547_v16 }
0x6869   :  { %19945 = vmatprep.subr.mxu1 %v20547_v16  ;;  %19940 = vmatprep.subr.mxu0 %v20547_v16 }
0x686d   :  { %v20522_v13 = vpop.eup %20521 }
0x686e   :  { %v20524_v6 = vpop.eup %20523  ;;  %19938 = vmatmul.mubr.msk.f32.vlgmr.msra.gmra.mrb[240].mxu1 %vm468_vm9, %v20522_v13 }
0x686f   :  { %19933 = vmatmul.mubr.msk.f32.vlgmr.msra.gmra.mrb[238].mxu0 %vm468_vm9, %v20524_v6  ;;  %19946 = vmatpush3.msra.mxu1 %v20554_v37 }
0x6870   :  { %19947 = vmatprep.mubr.msk.f32.mxu1 %vm20548_vm8, %v20547_v16  ;;  %19941 = vmatpush3.msra.mxu0 %v20554_v37 }
0x6871   :  { %19942 = vmatprep.mubr.msk.f32.mxu0 %vm20548_vm8, %v20547_v16  ;;  %19950 = vmatprep.subr.bf16.mxu0 %v20547_v16 }
0x6872   :  { %19948 = vmatmul.mubr.msk.f32.vlgmr.msra.gmra.mrb[242].mxu1 %vm468_vm9, %v20522_v13  ;;  %20140 = vmatprep.subr.bf16.mxu1 %v20546_v14 }
0x6873   :  { %19943 = vmatmul.mubr.msk.f32.vlgmr.msra.gmra.mrb[244].mxu0 %vm468_vm9, %v20524_v6  ;;  %20141 = vmatpush3.bf16.msra.mxu1 %v20546_v14 }
0x6874   :  { %19952 = vmatprep.mubr.msk.bf16.mxu0 %vm20548_vm8, %v20547_v16  ;;  %20142 = vmatprep.subr.bf16.mxu1 %v20546_v14 }
0x6877   :  { %20143 = vmatpush3.bf16.msra.mxu1 %v20546_v14 }
0x6878   :  { %19978 = vmatprep.subr.bf16.mxu1 %v20547_v16 }
0x693a   :  { %v16199_v37 = vpop.f32.mrb[240].mxu0 }
0x693b   :  { %v16206_v0 = vadd.f32 %v16199_v37, %v22587_v46  ;;  %v19918_v2 = vpop.f32.mrb[241].mxu0  ;;  %v17956_v46 = vld [vmem:[%s22802_s6 + $0x5c] sm:$0xf]  ;;  %v20237_v37 = vld [vmem:[%s22804_s10 + $0x50] sm:$0xff]  }
0x693c   :  { %v16202_v3 = vpop.f32.mrb[242].mxu0  ;;  %v20239_v2 = vld [vmem:[%s22805_s12 + $0x140] sm:$0xff]  }
0x693d   :  { %v16207_v5 = vadd.f32 %v16202_v3, %v22589_v60  ;;  %v19919_v8 = vpop.f32.mrb[243].mxu0  ;;  %v16691_v60 = vsel %vm1425_vm11, %v17956_v46, 0  ;;  %v20240_v3 = vld [vmem:[%s22805_s12 + $0x148] sm:$0xff]  }
0x693e   :  { %19951 = vmatpush3.bf16.msra.mxu0 %v16691_v60  ;;  %v20242_v8 = vld [vmem:[%s22805_s12 + $0x158] sm:$0xff]  }
0x693f   :  { %20144 = vmatprep.subr.bf16.mxu0 %v20546_v14 }
0x6941   :  { %v16528_v32 = vpop.f32.mrb[240].mxu1 }
0x6942   :  { %v16452_v48 = vpop.f32.mrb[238].mxu0  ;;  %v19939_v9 = vpop.f32.mrb[241].mxu1 }
0x6943   :  { %v19934_v7 = vpop.f32.mrb[239].mxu0  ;;  %v18001_v9 = vld [vmem:[%s22806_s8 + $0x5] ss:$0 sm:$0xff] }
0x6945   :  { %v16668_v10 = vpop.f32.mrb[242].mxu1 }
0x6946   :  { %20525 = vrcp.f32 %v16668_v10  ;;  %v16598_v11 = vpop.f32.mrb[244].mxu0  ;;  %v19949_v1 = vpop.f32.mrb[243].mxu1 }
0x6947   :  { %20527 = vrcp.f32 %v16598_v11  ;;  %v19944_v51 = vpop.f32.mrb[245].mxu0  ;;  %v18002_v1 = vld [vmem:[%s22807_s9 + $0x5] ss:$0 sm:$0xff] }
0x6950   :  { %v20526_v19 = vpop.eup %20525 }
0x6951   :  { %v20528_v20 = vpop.eup %20527  ;;  %16681 = vperm.xlu1 %20174, %v20526_v19  }
0x6952   :  { %16676 = vperm.xlu0 %20173, %v20528_v20  }
0x69d0   :  { %v16682_v24 = vpop.permute.xlu1 %16681 }
0x69d1   :  { %v16685_v23 = vmul.f32 %v16682_v24, %v16528_v32  ;;  %v16677_v25 = vpop.permute.xlu0 %16676  ;;  %v20243_v32 = vld [vmem:[%s22805_s12 + $0x160] sm:$0xff]  }
0x69d2   :  { %v16684_v28 = vmul.f32 %v16677_v25, %v16452_v48  ;;  %v20244_v48 = vld [vmem:[%s22805_s12 + $0x168] sm:$0xff]   ;;  %v20246_v25 = vld [vmem:[%s22805_s12 + $0x178] sm:$0xff]  }
0x69d4   :  { %v16686_v29 = vpack.c.bf16 %v16685_v23, %v16684_v28  ;;  %v20245_v23 = vld [vmem:[%s22805_s12 + $0x170] sm:$0xff]   ;;  %v18008_v28 = vld [vmem:[%s22808_s11 + $0x5] ss:$0 sm:$0xff] }
0x69d6   :  { %19953 = vmatmul.mubr.msk.bf16.vlgmr.msra.gmra.mrb[248].mxu0 %vm468_vm9, %v16686_v29 }
0x69d7   :  { %20145 = vmatpush3.bf16.msra.mxu0 %v20546_v14 }
0x69d8   :  { %20146 = vmatprep.subr.bf16.mxu0 %v20546_v14 }
0x69db   :  { %20147 = vmatpush3.bf16.msra.mxu0 %v20546_v14 }
0x69dc   :  { %19986 = vmatprep.subr.bf16.mxu0 %v20547_v16 }
0x6aa9   :  { %v16727_v17 = vpop.f32.mrb[248].mxu0 }
0x6aaa   :  { %v16734_v56 = vadd.f32 %v16727_v17, %v16206_v0  ;;  %v19954_v30 = vpop.f32.mrb[249].mxu0  ;;  %v20238_v0 = vld [vmem:[%s22804_s10 + $0x58] sm:$0xff]  }
0x6aab   :  { %v16730_v22 = vpop.f32.mrb[250].mxu0 }
0x6aac   :  { %v16736_v31 = vadd.f32 %v16734_v56, %v22423_v4  ;;  %v16735_v33 = vadd.f32 %v16730_v22, %v16207_v5  ;;  %v19955_v38 = vpop.f32.mrb[251].mxu0  ;;  %v20241_v5 = vld [vmem:[%s22805_s12 + $0x150] sm:$0xff]  }
0x6aae   :  { %v22683_v26 = vadd.f32 %v17994_v62, %v16736_v31  ;;  %v16737_v39 = vadd.f32 %v16735_v33, %v22426_v36 }
0x6ab0   :  { %v22686_v50 = vadd.f32 %v17994_v62, %v16737_v39  ;;  %19964 = vmatprep.mubr.msk.f32.mxu1 %vm173_vm3, %v22683_v26  ;;  %v18029_v39 = vld [vmem:[%s22809_s13 + $0x5] ss:$0 sm:$0xff] }
0x6ab2   :  { %19965 = vmatmul.mubr.msk.f32.vlgmr.msra.gmra.mrb[244].mxu1 %vm173_vm3, %v22686_v50 }
0x6ab3   :  { %19982 = vmatprep.mubr.msk.bf16.mxu1 %vm20548_vm8, %v20547_v16  ;;  %19979 = vmatpush3.bf16.msra.mxu1 %v20237_v37 }
0x6ab4   :  { %19980 = vmatprep.subr.bf16.mxu1 %v20547_v16 }
0x6ab7   :  { %19981 = vmatpush3.bf16.msra.mxu1 %v20238_v0 }
0x6ab8   :  { %20148 = vmatprep.subr.bf16.mxu1 %v20546_v14 }
0x6b85   :  { %v19966_v27 = vpop.f32.mrb[244].mxu1 }
0x6b86   :  { %v16834_v43 = vmul.f32 0.03125, %v19966_v27  ;;  %v16824_v4 = vpop.f32.mrb[245].mxu1 }
0x6b87   :  { %v16833_v41 = vmul.f32 0.03125, %v16824_v4 }
0x6b88   :  { %16842 = vperm.xlu1 %20174, %v16834_v43  }
0x6b89   :  { %16837 = vperm.xlu0 %20173, %v16833_v41  }
0x6c07   :  { %v16843_v42 = vpop.permute.xlu1 %16842 }
0x6c08   :  { %v16846_v36 = vsub.f32 %v22686_v50, %v16843_v42  ;;  %v16838_v44 = vpop.permute.xlu0 %16837 }
0x6c09   :  { %v22696_v12 = vsub.f32 %v22683_v26, %v16838_v44 }
0x6c0a   :  { %v16848_v45 = vmul.f32 %v16846_v36, %v16846_v36 }
0x6c0b   :  { %v16847_v21 = vmul.f32 %v22696_v12, %v22696_v12 }
0x6c0d   :  { %19975 = vmatprep.mubr.msk.f32.mxu0 %vm173_vm3, %v16847_v21 }
0x6c0e   :  { %19976 = vmatmul.mubr.msk.f32.vlgmr.msra.gmra.mrb[246].mxu0 %vm173_vm3, %v16848_v45 }
0x6c0f   :  { %20002 = vmatprep.mubr.msk.bf16.mxu0 %vm20548_vm8, %v20547_v16  ;;  %19987 = vmatpush3.bf16.msra.mxu0 %v20239_v2 }
0x6c10   :  { %19988 = vmatprep.subr.bf16.mxu0 %v20547_v16 }
0x6c13   :  { %19989 = vmatpush3.bf16.msra.mxu0 %v20240_v3 }
0x6c14   :  { %19990 = vmatprep.subr.bf16.mxu0 %v20547_v16 }
0x6c17   :  { %19991 = vmatpush3.bf16.msra.mxu0 %v20241_v5 }
0x6c18   :  { %19992 = vmatprep.subr.bf16.mxu0 %v20547_v16 }
0x6c1b   :  { %19993 = vmatpush3.bf16.msra.mxu0 %v20242_v8  ;;  %v20247_v8 = vld [vmem:[%s22810_s16] sm:$0xff]  }
0x6c1c   :  { %19994 = vmatprep.subr.bf16.mxu0 %v20547_v16 }
0x6c1f   :  { %19995 = vmatpush3.bf16.msra.mxu0 %v20243_v32  ;;  %v20248_v32 = vld [vmem:[%s22810_s16 + $0x8] sm:$0xff]  }
0x6c20   :  { %19996 = vmatprep.subr.bf16.mxu0 %v20547_v16 }
0x6c23   :  { %19997 = vmatpush3.bf16.msra.mxu0 %v20244_v48  ;;  %v18042_v48 = vld [vmem:[%s22861_s18] ss:$0 sm:$0xff] }
0x6c24   :  { %19998 = vmatprep.subr.bf16.mxu0 %v20547_v16 }
0x6c27   :  { %19999 = vmatpush3.bf16.msra.mxu0 %v20245_v23 }
0x6c28   :  { %20000 = vmatprep.subr.bf16.mxu0 %v20547_v16 }
0x6c2b   :  { %20001 = vmatpush3.bf16.msra.mxu0 %v20246_v25 }
0x6ce1   :  { %v19977_v34 = vpop.f32.mrb[246].mxu0 }
0x6ce2   :  { %v16931_v49 = vmul.f32 0.032258064, %v19977_v34  ;;  %v16921_v40 = vpop.f32.mrb[247].mxu0 }
0x6ce3   :  { %v16930_v15 = vmul.f32 0.032258064, %v16921_v40 }
0x6ce4   :  { %20529 = vrsqrt.f32 %v16931_v49  ;;  %vm16941_vm9 = vcmp.eq.f32.partialorder %v16931_v49, inf  ;;  %v16944_v54 = vand.u32 2147483648, %v16931_v49  ;;  %vm16943_vm11 = vcmp.eq.f32.partialorder %v16931_v49, 0.0 }
0x6ce5   :  { %20531 = vrsqrt.f32 %v16930_v15  ;;  %vm16934_vm0 = vcmp.eq.f32.partialorder %v16930_v15, inf  ;;  %v16937_v18 = vand.u32 2147483648, %v16930_v15  ;;  %vm16936_vm1 = vcmp.eq.f32.partialorder %v16930_v15, 0.0 }
0x6cee   :  { %v20530_v52 = vpop.eup %20529 }
0x6cef   :  { %v20532_v63 = vpop.eup %20531  ;;  %v16940_v57 = vmul.f32 %v20530_v52, %v16931_v49 }
0x6cf0   :  { %v16933_v55 = vmul.f32 %v20532_v63, %v16930_v15 }
0x6cf1   :  { %v16942_v58 = vsel %vm16941_vm9, %v16931_v49, %v16940_v57 }
0x6cf2   :  { %v16945_v35 = vsel %vm16943_vm11, %v16944_v54, %v16942_v58  ;;  %v16935_v59 = vsel %vm16934_vm0, %v16930_v15, %v16933_v55 }
0x6cf3   :  { %v16947_v47 = vadd.f32 1e-06, %v16945_v35  ;;  %v16938_v61 = vsel %vm16936_vm1, %v16937_v18, %v16935_v59 }
0x6cf4   :  { %v16946_v53 = vadd.f32 1e-06, %v16938_v61 }
0x6cf5   :  { %20533 = vrsqrt.f32 %v16947_v47 }
0x6cf6   :  { %20535 = vrsqrt.f32 %v16946_v53 }
0x6cff   :  { %v20534_v13 = vpop.eup %20533 }
0x6d00   :  { %v20536_v6 = vpop.eup %20535  ;;  %16957 = vperm.xlu1 %20174, %v20534_v13  }
0x6d01   :  { %16952 = vperm.xlu0 %20173, %v20536_v6  }
0x6d7f   :  { %v16958_v7 = vpop.permute.xlu1 %16957 }
0x6d80   :  { %v16961_v10 = vmul.f32 %v16958_v7, %v16846_v36  ;;  %v16953_v11 = vpop.permute.xlu0 %16952 }
0x6d81   :  { %v16960_v51 = vmul.f32 %v16953_v11, %v22696_v12  ;;  %v18043_v11 = vld [vmem:[%s22862_s19] ss:$0 sm:$0xff] }
0x6d82   :  { %v16969_v19 = vmul.f32 %v18001_v9, %v16961_v10 }
0x6d83   :  { %v16968_v20 = vmul.f32 %v18001_v9, %v16960_v51 }
0x6d84   :  { %v16977_v46 = vadd.f32 %v18002_v1, %v16969_v19 }
0x6d85   :  { %v16976_v60 = vadd.f32 %v18002_v1, %v16968_v20 }
0x6d87   :  { %v16978_v24 = vpack.c.bf16 %v16977_v46, %v16976_v60  ;;  %v18044_v60 = vld [vmem:[%s22863_s14] ss:$0 sm:$0xff] }
0x6d89   :  { %19983 = vmatmul.mubr.msk.bf16.vlgmr.msra.gmra.mrb[248].mxu1 %vm173_vm3, %v16978_v24 }
0x6d8a   :  { %20149 = vmatpush3.bf16.msra.mxu1 %v20546_v14 }
0x6d8b   :  { %20150 = vmatprep.subr.bf16.mxu1 %v20546_v14 }
0x6d8e   :  { %20151 = vmatpush3.bf16.msra.mxu1 %v20546_v14 }
0x6d8f   :  { %20152 = vmatprep.subr.bf16.mxu1 %v20546_v14 }
0x6e5c   :  { %v17041_v29 = vpop.f32.mrb[248].mxu1 }
0x6e5d   :  { %v17042_v17 = vadd.f32 %v18008_v28, %v17041_v29  ;;  %v19984_v56 = vpop.f32.mrb[249].mxu1 }
0x6e5e   :  { %v17044_v30 = vpop.f32.mrb[250].mxu1 }
0x6e5f   :  { %v17045_v62 = vadd.f32 %v18008_v28, %v17044_v30  ;;  %v19985_v22 = vpop.f32.mrb[251].mxu1  ;;  %v17048_v31 = vmax.f32 %v17042_v17, 0.0 }
0x6e61   :  { %v17049_v33 = vmax.f32 %v17045_v62, 0.0 }
0x6e63   :  { %v17050_v38 = vpack.c.bf16 %v17049_v33, %v17048_v31 }
0x6e65   :  { %20003 = vmatmul.mubr.bf16.vlgmr.msra.gmra.mrb[252].mxu0 %v17050_v38 }
0x6f38   :  { %v17158_v27 = vpop.f32.mrb[252].mxu0 }
0x6f39   :  { %v17159_v43 = vadd.f32 %v18029_v39, %v17158_v27  ;;  %v20004_v4 = vpop.f32.mrb[253].mxu0 }
0x6f3a   :  { %v17161_v41 = vpop.f32.mrb[254].mxu0 }
0x6f3b   :  { %v17165_v42 = vadd.f32 %v17159_v43, %v22683_v26  ;;  %v17162_v36 = vadd.f32 %v18029_v39, %v17161_v41  ;;  %v20005_v44 = vpop.f32.mrb[255].mxu0 }
0x6f3d   :  { %v17166_v12 = vadd.f32 %v17162_v36, %v22686_v50  ;;  %20014 = vmatprep.mubr.msk.f32.mxu1 %vm173_vm3, %v17165_v42 }
0x6f3f   :  { %20015 = vmatmul.mubr.msk.f32.vlgmr.msra.gmra.mrb[246].mxu1 %vm173_vm3, %v17166_v12 }
0x6f40   :  { %20153 = vmatpush3.bf16.msra.mxu1 %v20546_v14 }
0x6f41   :  { %20154 = vmatprep.subr.bf16.mxu1 %v20546_v14 }
0x6f44   :  { %20155 = vmatpush3.bf16.msra.mxu1 %v20546_v14 }
0x6f45   :  { %20028 = vmatprep.subr.bf16.mxu1 %v20547_v16 }
0x7012   :  { %v20016_v21 = vpop.f32.mrb[246].mxu1 }
0x7013   :  { %v17251_v45 = vmul.f32 0.03125, %v20016_v21  ;;  %v17241_v34 = vpop.f32.mrb[247].mxu1 }
0x7014   :  { %v17250_v26 = vmul.f32 0.03125, %v17241_v34 }
0x7015   :  { %17259 = vperm.xlu1 %20174, %v17251_v45  }
0x7016   :  { %17254 = vperm.xlu0 %20173, %v17250_v26  }
0x7094   :  { %v17260_v49 = vpop.permute.xlu1 %17259 }
0x7095   :  { %v17263_v50 = vsub.f32 %v17166_v12, %v17260_v49  ;;  %v17255_v40 = vpop.permute.xlu0 %17254 }
0x7096   :  { %v17262_v15 = vsub.f32 %v17165_v42, %v17255_v40 }
0x7097   :  { %v17265_v63 = vmul.f32 %v17263_v50, %v17263_v50 }
0x7098   :  { %v17264_v52 = vmul.f32 %v17262_v15, %v17262_v15 }
0x709a   :  { %20025 = vmatprep.mubr.msk.f32.mxu1 %vm173_vm3, %v17264_v52 }
0x709b   :  { %20026 = vmatmul.mubr.msk.f32.vlgmr.msra.gmra.mrb[252].mxu1 %vm173_vm3, %v17265_v63 }
0x709c   :  { %20032 = vmatprep.mubr.msk.bf16.mxu1 %vm20548_vm8, %v20547_v16  ;;  %20029 = vmatpush3.bf16.msra.mxu1 %v20247_v8 }
0x709d   :  { %20030 = vmatprep.subr.bf16.mxu1 %v20547_v16 }
0x70a0   :  { %20031 = vmatpush3.bf16.msra.mxu1 %v20248_v32 }
0x716e   :  { %v20027_v14 = vpop.f32.mrb[252].mxu1 }
0x716f   :  { %v17348_v57 = vmul.f32 0.032258064, %v20027_v14  ;;  %v17338_v54 = vpop.f32.mrb[253].mxu1 }
0x7170   :  { %v17347_v55 = vmul.f32 0.032258064, %v17338_v54 }
0x7171   :  { %20537 = vrsqrt.f32 %v17348_v57  ;;  %vm17358_vm2 = vcmp.eq.f32.partialorder %v17348_v57, inf  ;;  %v17361_v59 = vand.u32 2147483648, %v17348_v57  ;;  %vm17360_vm4 = vcmp.eq.f32.partialorder %v17348_v57, 0.0 }
0x7172   :  { %20539 = vrsqrt.f32 %v17347_v55  ;;  %vm17351_vm5 = vcmp.eq.f32.partialorder %v17347_v55, inf  ;;  %v17354_v53 = vand.u32 2147483648, %v17347_v55  ;;  %vm17353_vm6 = vcmp.eq.f32.partialorder %v17347_v55, 0.0 }
0x717b   :  { %v20538_v58 = vpop.eup %20537 }
0x717c   :  { %v20540_v18 = vpop.eup %20539  ;;  %v17357_v35 = vmul.f32 %v20538_v58, %v17348_v57 }
0x717d   :  { %v17350_v47 = vmul.f32 %v20540_v18, %v17347_v55 }
0x717e   :  { %v17359_v61 = vsel %vm17358_vm2, %v17348_v57, %v17357_v35 }
0x717f   :  { %v17362_v13 = vsel %vm17360_vm4, %v17361_v59, %v17359_v61  ;;  %v17352_v6 = vsel %vm17351_vm5, %v17347_v55, %v17350_v47 }
0x7180   :  { %v17364_v37 = vadd.f32 1e-06, %v17362_v13  ;;  %v17355_v0 = vsel %vm17353_vm6, %v17354_v53, %v17352_v6 }
0x7181   :  { %v17363_v2 = vadd.f32 1e-06, %v17355_v0 }
0x7182   :  { %20541 = vrsqrt.f32 %v17364_v37 }
0x7183   :  { %20543 = vrsqrt.f32 %v17363_v2 }
0x718c   :  { %v20542_v3 = vpop.eup %20541 }
0x718d   :  { %v20544_v5 = vpop.eup %20543  ;;  %17374 = vperm.xlu1 %20174, %v20542_v3  }
0x718e   :  { %17369 = vperm.xlu0 %20173, %v20544_v5  }
0x720c   :  { %v17375_v9 = vpop.permute.xlu1 %17374 }
0x720d   :  { %v17378_v7 = vmul.f32 %v17375_v9, %v17263_v50  ;;  %v17370_v10 = vpop.permute.xlu0 %17369 }
0x720e   :  { %v17377_v1 = vmul.f32 %v17370_v10, %v17262_v15 }
0x720f   :  { %v17386_v51 = vmul.f32 %v18042_v48, %v17378_v7 }
0x7210   :  { %v17385_v19 = vmul.f32 %v18042_v48, %v17377_v1 }
0x7211   :  { %v17394_v16 = vadd.f32 %v18043_v11, %v17386_v51 }
0x7212   :  { %v17393_v20 = vadd.f32 %v18043_v11, %v17385_v19 }
0x7214   :  { %v17395_v46 = vpack.c.bf16 %v17394_v16, %v17393_v20 }
0x7216   :  { %20033 = vmatmul.mubr.msk.bf16.vlgmr.msra.gmra.mrb[0].mxu1 %vm173_vm3, %v17395_v46 }
0x72e9   :  { %v17456_v24 = vpop.f32.mrb[0].mxu1 }
0x72ea   :  { %v17457_v23 = vadd.f32 %v18044_v60, %v17456_v24  ;;  %v20034_v25 = vpop.f32.mrb[1].mxu1 }
0x72eb   :  { %v17459_v28 = vpop.f32.mrb[2].mxu1 }
0x72ec   :  { %17463 = vst [vmem:[%s22864_s25] sm:$0xff] %v17457_v23  ;;  %v17460_v29 = vadd.f32 %v18044_v60, %v17459_v28  ;;  %v20035_v17 = vpop.f32.mrb[3].mxu1 }
0x72ee   :  { %17464 = vst [vmem:[%s22864_s25 + $0x8] sm:$0xff] %v17460_v29 }

</bundles_post_ra>
